<compile_context>
chip_gen: v7x
topology: tpu7x:2x2x1
jax: 0.10.0
libtpu: 0.0.40
codegen_flags: <defaults>
</compile_context>

<pallas_src>
import functools

import jax
import jax.numpy as jnp
from jax import lax
from jax.experimental import pallas as pl
from jax.experimental.pallas import tpu as pltpu

# Network geometry fixed by the PyTorch module (fc3 = Linear(30*14*32, 256)).
C0, H0, W0 = 6, 34, 18          # conv1 input  (NCHW: N, 6, 34, 18)
C1, H1, W1 = 16, 32, 16         # conv1 output
C2, H2, W2 = 32, 30, 14         # conv2 output
WH = W2 // 2                    # conv2 width half (7): shrinks the block-diag weight
HD, HB = 256, 128               # fc3 hidden size, streamed hidden-block size
OUT = 5
_TAPS = tuple((i, j) for i in range(3) for j in range(3))


# ---------------------------------------------------------------------------
# Fused kernel: conv1 -> conv2 -> fc3 block -> partial fc4, grid over the two
# 128-wide fc3 hidden blocks (streams w3, overlapping its DMA with compute).
# ---------------------------------------------------------------------------
def _dqn_fused_kernel(x_ref, w1_ref, b1_ref, w2_ref, b2_ref, w3_ref, b3_ref,
                      w4_ref, o_ref, h2_ref, *, batch, conv_every_step):
    s = pl.program_id(0)

    def conv_stage():
        for n in range(batch):                       # static unroll (small batch)
            xn = x_ref[n]                            # (34, 108) = (H0, W0*C0) bf16
            # conv1: 9 taps, each a 2D matmul vs. a (W1*C0, W1*C1) block-diag
            # weight -> lane-dense (H1, W1*C1) output, no im2col buffer.
            a1 = jnp.zeros((H1, W1 * C1), jnp.float32)
            for t, (i, j) in enumerate(_TAPS):
                a1 = a1 + jnp.dot(xn[i:i + H1, j * C0:j * C0 + W1 * C0],
                                  w1_ref[t], preferred_element_type=jnp.float32)
            h1 = jnp.maximum(a1 + b1_ref[...], 0.0).astype(jnp.bfloat16)  # (32, 256)

            # conv2: two width halves share the per-tap (WH*C1, WH*C2) weight.
            for q in range(2):
                a2 = jnp.zeros((H2, WH * C2), jnp.float32)
                for t, (i, j) in enumerate(_TAPS):
                    lo = q * WH * C1 + j * C1
                    a2 = a2 + jnp.dot(h1[i:i + H2, lo:lo + WH * C1],
                                      w2_ref[t], preferred_element_type=jnp.float32)
                a2 = jnp.maximum(a2 + b2_ref[...], 0.0).astype(jnp.bfloat16)
                h2_ref[n, :, q * WH * C2:(q + 1) * WH * C2] = a2   # (30, 224)

    if conv_every_step:
        conv_stage()                 # "parallel" hidden-block axis (v7x): per-core conv
    else:
        pl.when(s == 0)(conv_stage)  # single TensorCore: conv once, scratch persists

    # fc3 block of HB hidden units: contract the (H2, W2*C2) activation row by
    # row (30 static 2D dots) against this step's (H2, W2*C2, HB) slice of w3.
    acc = jnp.zeros((batch, HB), jnp.float32)
    for h in range(H2):
        acc = acc + jnp.dot(h2_ref[:, h, :], w3_ref[0, h],
                            preferred_element_type=jnp.float32)
    hblk = jnp.maximum(acc + b3_ref[...], 0.0).astype(jnp.bfloat16)   # (N, HB)
    # Partial fc4 for this hidden block; blocks are summed in the wrapper.
    o_ref[0] = jnp.dot(hblk, w4_ref[...], preferred_element_type=jnp.float32)


# ---------------------------------------------------------------------------
# One-time weight prep
# ---------------------------------------------------------------------------
def _conv_block_diag(w, wo):
    """(Cout, Cin, 3, 3) conv weight -> (9, wo*Cin, wo*Cout) bf16: per tap, the
    (Cin, Cout) matrix repeated on a wo-block diagonal (lane-dense conv)."""
    cout, cin = w.shape[0], w.shape[1]
    eye = jnp.eye(wo, dtype=w.dtype)
    taps = []
    for i in range(3):
        for j in range(3):
            wij = jnp.transpose(w[:, :, i, j])                 # (Cin, Cout)
            bd = jnp.einsum('xy,cd->xcyd', eye, wij)           # (wo,Cin,wo,Cout)
            taps.append(bd.reshape(wo * cin, wo * cout))
    return jnp.stack(taps, axis=0).astype(jnp.bfloat16)


def prepare_params(params):
    w1, b1, w2, b2, w3, b3, w4, b4 = params
    w1bd = _conv_block_diag(w1, W1)                               # (9, 96, 256)
    w2bd = _conv_block_diag(w2, WH)                               # (9, 112, 224)
    b1r = jnp.tile(b1, W1).reshape(1, W1 * C1).astype(jnp.float32)
    b2r = jnp.tile(b2, WH).reshape(1, WH * C2).astype(jnp.float32)
    # torch flattens the conv2 activation in (c, h, w) order; the kernel's
    # activation rows are h with (w, c) lanes -> permute w3's rows once here,
    # and pre-split the hidden dim into the two streamed 128-column blocks.
    w3_hwc = jnp.transpose(w3.reshape(HD, C2, H2, W2), (2, 3, 1, 0))   # (h,w,c,out)
    w3p = jnp.transpose(w3_hwc.reshape(H2, W2 * C2, HD // HB, HB),
                        (2, 0, 1, 3)).astype(jnp.bfloat16)             # (2,30,448,128)
    b3r = b3.reshape(1, HD).astype(jnp.float32)
    w4p = jnp.transpose(w4).astype(jnp.bfloat16)                       # (256, 5)
    b4r = b4.reshape(1, OUT).astype(jnp.float32)
    return dict(w1=w1bd, b1=b1r, w2=w2bd, b2=b2r, w3=w3p, b3=b3r, w4=w4p, b4=b4r)


def _is_multi_tensorcore():
    """Perf-only heuristic: 2 TensorCores per chip (v7x)."""
    try:
        kind = jax.devices()[0].device_kind.lower()
    except Exception:
        return False
    return "v7" in kind


# ---------------------------------------------------------------------------
# Full forward pass
# ---------------------------------------------------------------------------
def dqn_forward(x_nchw, prep, *, multi_tc=False):
    """DQN.forward. x_nchw: (N, 6, 34, 18) float32 -> (N, 5) float32."""
    assert x_nchw.shape[1:] == (C0, H0, W0)
    n = x_nchw.shape[0]
    # Only wrapper-side glue left: NHWC (W,C)-lane slab + bf16 cast (tiny).
    x_slab = (jnp.transpose(x_nchw, (0, 2, 3, 1))
              .reshape(n, H0, W0 * C0).astype(jnp.bfloat16))

    kern = functools.partial(_dqn_fused_kernel, batch=n,
                             conv_every_step=multi_tc)
    parts = pl.pallas_call(
        kern,
        out_shape=jax.ShapeDtypeStruct((HD // HB, n, OUT), jnp.float32),
        grid=(HD // HB,),
        in_specs=[
            pl.BlockSpec((n, H0, W0 * C0), lambda s: (0, 0, 0)),
            pl.BlockSpec((9, W1 * C0, W1 * C1), lambda s: (0, 0, 0)),
            pl.BlockSpec((1, W1 * C1), lambda s: (0, 0)),
            pl.BlockSpec((9, WH * C1, WH * C2), lambda s: (0, 0, 0)),
            pl.BlockSpec((1, WH * C2), lambda s: (0, 0)),
            pl.BlockSpec((1, H2, W2 * C2, HB), lambda s: (s, 0, 0, 0)),
            pl.BlockSpec((1, HB), lambda s: (0, s)),
            pl.BlockSpec((HB, OUT), lambda s: (s, 0)),
        ],
        out_specs=pl.BlockSpec((1, n, OUT), lambda s: (s, 0, 0)),
        scratch_shapes=[pltpu.VMEM((n, H2, W2 * C2), jnp.bfloat16)],
        compiler_params=pltpu.CompilerParams(
            dimension_semantics=(("parallel",) if multi_tc else ("arbitrary",)),
            vmem_limit_bytes=32 * 1024 * 1024),
    )(x_slab, prep["w1"], prep["b1"], prep["w2"], prep["b2"],
      prep["w3"], prep["b3"], prep["w4"])
    return parts.sum(axis=0) + prep["b4"]


# ---------------------------------------------------------------------------
# Params / pure-JAX reference (mirrors the PyTorch module, f32)
# ---------------------------------------------------------------------------
def init_params(key):
    ks = jax.random.split(key, 8)
    s = 0.05
    w1 = s * jax.random.normal(ks[0], (16, 6, 3, 3), jnp.float32)
    b1 = s * jax.random.normal(ks[1], (16,), jnp.float32)
    w2 = s * jax.random.normal(ks[2], (32, 16, 3, 3), jnp.float32)
    b2 = s * jax.random.normal(ks[3], (32,), jnp.float32)
    w3 = s * jax.random.normal(ks[4], (256, 30 * 14 * 32), jnp.float32)
    b3 = s * jax.random.normal(ks[5], (256,), jnp.float32)
    w4 = s * jax.random.normal(ks[6], (5, 256), jnp.float32)
    b4 = s * jax.random.normal(ks[7], (5,), jnp.float32)
    return (w1, b1, w2, b2, w3, b3, w4, b4)


def reference_forward(x, params):
    w1, b1, w2, b2, w3, b3, w4, b4 = params
    dn = ("NCHW", "OIHW", "NCHW")
    h = jax.nn.relu(lax.conv_general_dilated(x, w1, (1, 1), "VALID",
                                             dimension_numbers=dn)
                    + b1[None, :, None, None])
    h = jax.nn.relu(lax.conv_general_dilated(h, w2, (1, 1), "VALID",
                                             dimension_numbers=dn)
                    + b2[None, :, None, None])
    h = h.reshape(h.shape[0], -1)
    h = jax.nn.relu(h @ w3.T + b3)
    return h @ w4.T + b4


if __name__ == "__main__":
    key = jax.random.PRNGKey(0)
    kx, kp = jax.random.split(key)
    # fc3's in-features (30*14*32) force the conv input spatial size to 34x18.
    x = jax.random.normal(kx, (2, C0, H0, W0), jnp.float32)
    params = init_params(kp)

    prep = prepare_params(params)                       # one-time weight prep
    fwd = jax.jit(functools.partial(dqn_forward, multi_tc=_is_multi_tensorcore()))

    out = jax.block_until_ready(fwd(x, prep))
    ref = jax.block_until_ready(reference_forward(x, params))
    assert out.shape == (2, OUT) and out.dtype == jnp.float32
    # bf16 weight/activation streaming => bf16-level tolerance vs f32 reference.
    assert jnp.allclose(out, ref, rtol=3e-2, atol=3e-2), \
        float(jnp.max(jnp.abs(out - ref)))
    print("KERNEL_OK")
</pallas_src>

<mosaic_0001>
module attributes {stable_mosaic.version = 11 : i64} {
  func.func @_dqn_fused_kernel(%arg0: i32, %arg1: memref<2x34x108xbf16, #tpu.memory_space<vmem>>, %arg2: memref<9x96x256xbf16, #tpu.memory_space<vmem>>, %arg3: memref<1x256xf32, #tpu.memory_space<vmem>>, %arg4: memref<9x112x224xbf16, #tpu.memory_space<vmem>>, %arg5: memref<1x224xf32, #tpu.memory_space<vmem>>, %arg6: memref<1x30x448x128xbf16, #tpu.memory_space<vmem>>, %arg7: memref<1x128xf32, #tpu.memory_space<vmem>>, %arg8: memref<128x5xbf16, #tpu.memory_space<vmem>>, %arg9: memref<1x2x5xf32, #tpu.memory_space<vmem>>, %arg10: memref<2x30x448xbf16, #tpu.memory_space<vmem>>) attributes {dimension_semantics = [#tpu.dimension_semantics<arbitrary>], iteration_bounds = array<i64: 2>, scalar_prefetch = 0 : i64, scratch_operands = 1 : i64, tpu.core_type = #tpu.core_type<tc>, window_params = [{pipeline_mode = #tpu.pipeline_mode<synchronous>, transform_indices = @transform_0, window_bounds = array<i64: 2, 34, 108>}, {pipeline_mode = #tpu.pipeline_mode<synchronous>, transform_indices = @transform_1, window_bounds = array<i64: 9, 96, 256>}, {pipeline_mode = #tpu.pipeline_mode<synchronous>, transform_indices = @transform_2, window_bounds = array<i64: 1, 256>}, {pipeline_mode = #tpu.pipeline_mode<synchronous>, transform_indices = @transform_3, window_bounds = array<i64: 9, 112, 224>}, {pipeline_mode = #tpu.pipeline_mode<synchronous>, transform_indices = @transform_4, window_bounds = array<i64: 1, 224>}, {transform_indices = @transform_5, window_bounds = array<i64: 1, 30, 448, 128>}, {transform_indices = @transform_6, window_bounds = array<i64: 1, 128>}, {transform_indices = @transform_7, window_bounds = array<i64: 128, 5>}, {transform_indices = @transform_8, window_bounds = array<i64: 1, 2, 5>}]} {
    %c0_i32 = arith.constant 0 : i32
    %0 = arith.cmpi eq, %arg0, %c0_i32 : i32
    %1 = arith.extui %0 : i1 to i32
    %c0_i32_0 = arith.constant 0 : i32
    %2 = arith.cmpi ne, %1, %c0_i32_0 : i32
    scf.if %2 {
      %c0_220 = arith.constant 0 : index
      %c0_221 = arith.constant 0 : index
      %c0_222 = arith.constant 0 : index
      %195 = vector.load %arg1[%c0_220, %c0_221, %c0_222] : memref<2x34x108xbf16, #tpu.memory_space<vmem>>, vector<1x34x108xbf16>
      %196 = vector.shape_cast %195 : vector<1x34x108xbf16> to vector<34x108xbf16>
      %cst_223 = arith.constant 0.000000e+00 : f32
      %197 = vector.broadcast %cst_223 : f32 to vector<32x256xf32>
      %198 = vector.extract_strided_slice %196 {offsets = [0, 0], sizes = [32, 96], strides = [1, 1]} : vector<34x108xbf16> to vector<32x96xbf16>
      %c0_224 = arith.constant 0 : index
      %c0_225 = arith.constant 0 : index
      %c0_226 = arith.constant 0 : index
      %199 = vector.load %arg2[%c0_224, %c0_225, %c0_226] : memref<9x96x256xbf16, #tpu.memory_space<vmem>>, vector<1x96x256xbf16>
      %200 = vector.shape_cast %199 : vector<1x96x256xbf16> to vector<96x256xbf16>
      %cst_227 = arith.constant dense<0.000000e+00> : vector<32x256xf32>
      %201 = tpu.matmul %198, %200, %cst_227 {dimension_numbers = #tpu.dot_dimension_numbers<[1], [0], [0], [1], [0, 0, 1, 1], [], []>} : vector<32x96xbf16>, vector<96x256xbf16>, vector<32x256xf32> -> vector<32x256xf32>
      %202 = arith.addf %197, %201 : vector<32x256xf32>
      %203 = vector.extract_strided_slice %196 {offsets = [0, 6], sizes = [32, 96], strides = [1, 1]} : vector<34x108xbf16> to vector<32x96xbf16>
      %c1_228 = arith.constant 1 : index
      %c0_229 = arith.constant 0 : index
      %c0_230 = arith.constant 0 : index
      %204 = vector.load %arg2[%c1_228, %c0_229, %c0_230] : memref<9x96x256xbf16, #tpu.memory_space<vmem>>, vector<1x96x256xbf16>
      %205 = vector.shape_cast %204 : vector<1x96x256xbf16> to vector<96x256xbf16>
      %cst_231 = arith.constant dense<0.000000e+00> : vector<32x256xf32>
      %206 = tpu.matmul %203, %205, %cst_231 {dimension_numbers = #tpu.dot_dimension_numbers<[1], [0], [0], [1], [0, 0, 1, 1], [], []>} : vector<32x96xbf16>, vector<96x256xbf16>, vector<32x256xf32> -> vector<32x256xf32>
      %207 = arith.addf %202, %206 : vector<32x256xf32>
      %208 = vector.extract_strided_slice %196 {offsets = [0, 12], sizes = [32, 96], strides = [1, 1]} : vector<34x108xbf16> to vector<32x96xbf16>
      %c2_232 = arith.constant 2 : index
      %c0_233 = arith.constant 0 : index
      %c0_234 = arith.constant 0 : index
      %209 = vector.load %arg2[%c2_232, %c0_233, %c0_234] : memref<9x96x256xbf16, #tpu.memory_space<vmem>>, vector<1x96x256xbf16>
      %210 = vector.shape_cast %209 : vector<1x96x256xbf16> to vector<96x256xbf16>
      %cst_235 = arith.constant dense<0.000000e+00> : vector<32x256xf32>
      %211 = tpu.matmul %208, %210, %cst_235 {dimension_numbers = #tpu.dot_dimension_numbers<[1], [0], [0], [1], [0, 0, 1, 1], [], []>} : vector<32x96xbf16>, vector<96x256xbf16>, vector<32x256xf32> -> vector<32x256xf32>
      %212 = arith.addf %207, %211 : vector<32x256xf32>
      %213 = vector.extract_strided_slice %196 {offsets = [1, 0], sizes = [32, 96], strides = [1, 1]} : vector<34x108xbf16> to vector<32x96xbf16>
      %c3_236 = arith.constant 3 : index
      %c0_237 = arith.constant 0 : index
      %c0_238 = arith.constant 0 : index
      %214 = vector.load %arg2[%c3_236, %c0_237, %c0_238] : memref<9x96x256xbf16, #tpu.memory_space<vmem>>, vector<1x96x256xbf16>
      %215 = vector.shape_cast %214 : vector<1x96x256xbf16> to vector<96x256xbf16>
      %cst_239 = arith.constant dense<0.000000e+00> : vector<32x256xf32>
      %216 = tpu.matmul %213, %215, %cst_239 {dimension_numbers = #tpu.dot_dimension_numbers<[1], [0], [0], [1], [0, 0, 1, 1], [], []>} : vector<32x96xbf16>, vector<96x256xbf16>, vector<32x256xf32> -> vector<32x256xf32>
      %217 = arith.addf %212, %216 : vector<32x256xf32>
      %218 = vector.extract_strided_slice %196 {offsets = [1, 6], sizes = [32, 96], strides = [1, 1]} : vector<34x108xbf16> to vector<32x96xbf16>
      %c4_240 = arith.constant 4 : index
      %c0_241 = arith.constant 0 : index
      %c0_242 = arith.constant 0 : index
      %219 = vector.load %arg2[%c4_240, %c0_241, %c0_242] : memref<9x96x256xbf16, #tpu.memory_space<vmem>>, vector<1x96x256xbf16>
      %220 = vector.shape_cast %219 : vector<1x96x256xbf16> to vector<96x256xbf16>
      %cst_243 = arith.constant dense<0.000000e+00> : vector<32x256xf32>
      %221 = tpu.matmul %218, %220, %cst_243 {dimension_numbers = #tpu.dot_dimension_numbers<[1], [0], [0], [1], [0, 0, 1, 1], [], []>} : vector<32x96xbf16>, vector<96x256xbf16>, vector<32x256xf32> -> vector<32x256xf32>
      %222 = arith.addf %217, %221 : vector<32x256xf32>
      %223 = vector.extract_strided_slice %196 {offsets = [1, 12], sizes = [32, 96], strides = [1, 1]} : vector<34x108xbf16> to vector<32x96xbf16>
      %c5_244 = arith.constant 5 : index
      %c0_245 = arith.constant 0 : index
      %c0_246 = arith.constant 0 : index
      %224 = vector.load %arg2[%c5_244, %c0_245, %c0_246] : memref<9x96x256xbf16, #tpu.memory_space<vmem>>, vector<1x96x256xbf16>
      %225 = vector.shape_cast %224 : vector<1x96x256xbf16> to vector<96x256xbf16>
      %cst_247 = arith.constant dense<0.000000e+00> : vector<32x256xf32>
      %226 = tpu.matmul %223, %225, %cst_247 {dimension_numbers = #tpu.dot_dimension_numbers<[1], [0], [0], [1], [0, 0, 1, 1], [], []>} : vector<32x96xbf16>, vector<96x256xbf16>, vector<32x256xf32> -> vector<32x256xf32>
      %227 = arith.addf %222, %226 : vector<32x256xf32>
      %228 = vector.extract_strided_slice %196 {offsets = [2, 0], sizes = [32, 96], strides = [1, 1]} : vector<34x108xbf16> to vector<32x96xbf16>
      %c6_248 = arith.constant 6 : index
      %c0_249 = arith.constant 0 : index
      %c0_250 = arith.constant 0 : index
      %229 = vector.load %arg2[%c6_248, %c0_249, %c0_250] : memref<9x96x256xbf16, #tpu.memory_space<vmem>>, vector<1x96x256xbf16>
      %230 = vector.shape_cast %229 : vector<1x96x256xbf16> to vector<96x256xbf16>
      %cst_251 = arith.constant dense<0.000000e+00> : vector<32x256xf32>
      %231 = tpu.matmul %228, %230, %cst_251 {dimension_numbers = #tpu.dot_dimension_numbers<[1], [0], [0], [1], [0, 0, 1, 1], [], []>} : vector<32x96xbf16>, vector<96x256xbf16>, vector<32x256xf32> -> vector<32x256xf32>
      %232 = arith.addf %227, %231 : vector<32x256xf32>
      %233 = vector.extract_strided_slice %196 {offsets = [2, 6], sizes = [32, 96], strides = [1, 1]} : vector<34x108xbf16> to vector<32x96xbf16>
      %c7_252 = arith.constant 7 : index
      %c0_253 = arith.constant 0 : index
      %c0_254 = arith.constant 0 : index
      %234 = vector.load %arg2[%c7_252, %c0_253, %c0_254] : memref<9x96x256xbf16, #tpu.memory_space<vmem>>, vector<1x96x256xbf16>
      %235 = vector.shape_cast %234 : vector<1x96x256xbf16> to vector<96x256xbf16>
      %cst_255 = arith.constant dense<0.000000e+00> : vector<32x256xf32>
      %236 = tpu.matmul %233, %235, %cst_255 {dimension_numbers = #tpu.dot_dimension_numbers<[1], [0], [0], [1], [0, 0, 1, 1], [], []>} : vector<32x96xbf16>, vector<96x256xbf16>, vector<32x256xf32> -> vector<32x256xf32>
      %237 = arith.addf %232, %236 : vector<32x256xf32>
      %238 = vector.extract_strided_slice %196 {offsets = [2, 12], sizes = [32, 96], strides = [1, 1]} : vector<34x108xbf16> to vector<32x96xbf16>
      %c8_256 = arith.constant 8 : index
      %c0_257 = arith.constant 0 : index
      %c0_258 = arith.constant 0 : index
      %239 = vector.load %arg2[%c8_256, %c0_257, %c0_258] : memref<9x96x256xbf16, #tpu.memory_space<vmem>>, vector<1x96x256xbf16>
      %240 = vector.shape_cast %239 : vector<1x96x256xbf16> to vector<96x256xbf16>
      %cst_259 = arith.constant dense<0.000000e+00> : vector<32x256xf32>
      %241 = tpu.matmul %238, %240, %cst_259 {dimension_numbers = #tpu.dot_dimension_numbers<[1], [0], [0], [1], [0, 0, 1, 1], [], []>} : vector<32x96xbf16>, vector<96x256xbf16>, vector<32x256xf32> -> vector<32x256xf32>
      %242 = arith.addf %237, %241 : vector<32x256xf32>
      %c0_260 = arith.constant 0 : index
      %c0_261 = arith.constant 0 : index
      %243 = vector.load %arg3[%c0_260, %c0_261] : memref<1x256xf32, #tpu.memory_space<vmem>>, vector<1x256xf32>
      %244 = vector.broadcast %243 : vector<1x256xf32> to vector<32x256xf32>
      %245 = arith.addf %242, %244 : vector<32x256xf32>
      %cst_262 = arith.constant 0.000000e+00 : f32
      %246 = vector.broadcast %cst_262 : f32 to vector<32x256xf32>
      %247 = arith.maximumf %245, %246 : vector<32x256xf32>
      %248 = arith.truncf %247 : vector<32x256xf32> to vector<32x256xbf16>
      %cst_263 = arith.constant 0.000000e+00 : f32
      %249 = vector.broadcast %cst_263 : f32 to vector<30x224xf32>
      %250 = vector.extract_strided_slice %248 {offsets = [0, 0], sizes = [30, 112], strides = [1, 1]} : vector<32x256xbf16> to vector<30x112xbf16>
      %c0_264 = arith.constant 0 : index
      %c0_265 = arith.constant 0 : index
      %c0_266 = arith.constant 0 : index
      %251 = vector.load %arg4[%c0_264, %c0_265, %c0_266] : memref<9x112x224xbf16, #tpu.memory_space<vmem>>, vector<1x112x224xbf16>
      %252 = vector.shape_cast %251 : vector<1x112x224xbf16> to vector<112x224xbf16>
      %cst_267 = arith.constant dense<0.000000e+00> : vector<30x224xf32>
      %253 = tpu.matmul %250, %252, %cst_267 {dimension_numbers = #tpu.dot_dimension_numbers<[1], [0], [0], [1], [0, 0, 1, 1], [], []>} : vector<30x112xbf16>, vector<112x224xbf16>, vector<30x224xf32> -> vector<30x224xf32>
      %254 = arith.addf %249, %253 : vector<30x224xf32>
      %255 = vector.extract_strided_slice %248 {offsets = [0, 16], sizes = [30, 112], strides = [1, 1]} : vector<32x256xbf16> to vector<30x112xbf16>
      %c1_268 = arith.constant 1 : index
      %c0_269 = arith.constant 0 : index
      %c0_270 = arith.constant 0 : index
      %256 = vector.load %arg4[%c1_268, %c0_269, %c0_270] : memref<9x112x224xbf16, #tpu.memory_space<vmem>>, vector<1x112x224xbf16>
      %257 = vector.shape_cast %256 : vector<1x112x224xbf16> to vector<112x224xbf16>
      %cst_271 = arith.constant dense<0.000000e+00> : vector<30x224xf32>
      %258 = tpu.matmul %255, %257, %cst_271 {dimension_numbers = #tpu.dot_dimension_numbers<[1], [0], [0], [1], [0, 0, 1, 1], [], []>} : vector<30x112xbf16>, vector<112x224xbf16>, vector<30x224xf32> -> vector<30x224xf32>
      %259 = arith.addf %254, %258 : vector<30x224xf32>
      %260 = vector.extract_strided_slice %248 {offsets = [0, 32], sizes = [30, 112], strides = [1, 1]} : vector<32x256xbf16> to vector<30x112xbf16>
      %c2_272 = arith.constant 2 : index
      %c0_273 = arith.constant 0 : index
      %c0_274 = arith.constant 0 : index
      %261 = vector.load %arg4[%c2_272, %c0_273, %c0_274] : memref<9x112x224xbf16, #tpu.memory_space<vmem>>, vector<1x112x224xbf16>
      %262 = vector.shape_cast %261 : vector<1x112x224xbf16> to vector<112x224xbf16>
      %cst_275 = arith.constant dense<0.000000e+00> : vector<30x224xf32>
      %263 = tpu.matmul %260, %262, %cst_275 {dimension_numbers = #tpu.dot_dimension_numbers<[1], [0], [0], [1], [0, 0, 1, 1], [], []>} : vector<30x112xbf16>, vector<112x224xbf16>, vector<30x224xf32> -> vector<30x224xf32>
      %264 = arith.addf %259, %263 : vector<30x224xf32>
      %265 = vector.extract_strided_slice %248 {offsets = [1, 0], sizes = [30, 112], strides = [1, 1]} : vector<32x256xbf16> to vector<30x112xbf16>
      %c3_276 = arith.constant 3 : index
      %c0_277 = arith.constant 0 : index
      %c0_278 = arith.constant 0 : index
      %266 = vector.load %arg4[%c3_276, %c0_277, %c0_278] : memref<9x112x224xbf16, #tpu.memory_space<vmem>>, vector<1x112x224xbf16>
      %267 = vector.shape_cast %266 : vector<1x112x224xbf16> to vector<112x224xbf16>
      %cst_279 = arith.constant dense<0.000000e+00> : vector<30x224xf32>
      %268 = tpu.matmul %265, %267, %cst_279 {dimension_numbers = #tpu.dot_dimension_numbers<[1], [0], [0], [1], [0, 0, 1, 1], [], []>} : vector<30x112xbf16>, vector<112x224xbf16>, vector<30x224xf32> -> vector<30x224xf32>
      %269 = arith.addf %264, %268 : vector<30x224xf32>
      %270 = vector.extract_strided_slice %248 {offsets = [1, 16], sizes = [30, 112], strides = [1, 1]} : vector<32x256xbf16> to vector<30x112xbf16>
      %c4_280 = arith.constant 4 : index
      %c0_281 = arith.constant 0 : index
      %c0_282 = arith.constant 0 : index
      %271 = vector.load %arg4[%c4_280, %c0_281, %c0_282] : memref<9x112x224xbf16, #tpu.memory_space<vmem>>, vector<1x112x224xbf16>
      %272 = vector.shape_cast %271 : vector<1x112x224xbf16> to vector<112x224xbf16>
      %cst_283 = arith.constant dense<0.000000e+00> : vector<30x224xf32>
      %273 = tpu.matmul %270, %272, %cst_283 {dimension_numbers = #tpu.dot_dimension_numbers<[1], [0], [0], [1], [0, 0, 1, 1], [], []>} : vector<30x112xbf16>, vector<112x224xbf16>, vector<30x224xf32> -> vector<30x224xf32>
      %274 = arith.addf %269, %273 : vector<30x224xf32>
      %275 = vector.extract_strided_slice %248 {offsets = [1, 32], sizes = [30, 112], strides = [1, 1]} : vector<32x256xbf16> to vector<30x112xbf16>
      %c5_284 = arith.constant 5 : index
      %c0_285 = arith.constant 0 : index
      %c0_286 = arith.constant 0 : index
      %276 = vector.load %arg4[%c5_284, %c0_285, %c0_286] : memref<9x112x224xbf16, #tpu.memory_space<vmem>>, vector<1x112x224xbf16>
      %277 = vector.shape_cast %276 : vector<1x112x224xbf16> to vector<112x224xbf16>
      %cst_287 = arith.constant dense<0.000000e+00> : vector<30x224xf32>
      %278 = tpu.matmul %275, %277, %cst_287 {dimension_numbers = #tpu.dot_dimension_numbers<[1], [0], [0], [1], [0, 0, 1, 1], [], []>} : vector<30x112xbf16>, vector<112x224xbf16>, vector<30x224xf32> -> vector<30x224xf32>
      %279 = arith.addf %274, %278 : vector<30x224xf32>
      %280 = vector.extract_strided_slice %248 {offsets = [2, 0], sizes = [30, 112], strides = [1, 1]} : vector<32x256xbf16> to vector<30x112xbf16>
      %c6_288 = arith.constant 6 : index
      %c0_289 = arith.constant 0 : index
      %c0_290 = arith.constant 0 : index
      %281 = vector.load %arg4[%c6_288, %c0_289, %c0_290] : memref<9x112x224xbf16, #tpu.memory_space<vmem>>, vector<1x112x224xbf16>
      %282 = vector.shape_cast %281 : vector<1x112x224xbf16> to vector<112x224xbf16>
      %cst_291 = arith.constant dense<0.000000e+00> : vector<30x224xf32>
      %283 = tpu.matmul %280, %282, %cst_291 {dimension_numbers = #tpu.dot_dimension_numbers<[1], [0], [0], [1], [0, 0, 1, 1], [], []>} : vector<30x112xbf16>, vector<112x224xbf16>, vector<30x224xf32> -> vector<30x224xf32>
      %284 = arith.addf %279, %283 : vector<30x224xf32>
      %285 = vector.extract_strided_slice %248 {offsets = [2, 16], sizes = [30, 112], strides = [1, 1]} : vector<32x256xbf16> to vector<30x112xbf16>
      %c7_292 = arith.constant 7 : index
      %c0_293 = arith.constant 0 : index
      %c0_294 = arith.constant 0 : index
      %286 = vector.load %arg4[%c7_292, %c0_293, %c0_294] : memref<9x112x224xbf16, #tpu.memory_space<vmem>>, vector<1x112x224xbf16>
      %287 = vector.shape_cast %286 : vector<1x112x224xbf16> to vector<112x224xbf16>
      %cst_295 = arith.constant dense<0.000000e+00> : vector<30x224xf32>
      %288 = tpu.matmul %285, %287, %cst_295 {dimension_numbers = #tpu.dot_dimension_numbers<[1], [0], [0], [1], [0, 0, 1, 1], [], []>} : vector<30x112xbf16>, vector<112x224xbf16>, vector<30x224xf32> -> vector<30x224xf32>
      %289 = arith.addf %284, %288 : vector<30x224xf32>
      %290 = vector.extract_strided_slice %248 {offsets = [2, 32], sizes = [30, 112], strides = [1, 1]} : vector<32x256xbf16> to vector<30x112xbf16>
      %c8_296 = arith.constant 8 : index
      %c0_297 = arith.constant 0 : index
      %c0_298 = arith.constant 0 : index
      %291 = vector.load %arg4[%c8_296, %c0_297, %c0_298] : memref<9x112x224xbf16, #tpu.memory_space<vmem>>, vector<1x112x224xbf16>
      %292 = vector.shape_cast %291 : vector<1x112x224xbf16> to vector<112x224xbf16>
      %cst_299 = arith.constant dense<0.000000e+00> : vector<30x224xf32>
      %293 = tpu.matmul %290, %292, %cst_299 {dimension_numbers = #tpu.dot_dimension_numbers<[1], [0], [0], [1], [0, 0, 1, 1], [], []>} : vector<30x112xbf16>, vector<112x224xbf16>, vector<30x224xf32> -> vector<30x224xf32>
      %294 = arith.addf %289, %293 : vector<30x224xf32>
      %c0_300 = arith.constant 0 : index
      %c0_301 = arith.constant 0 : index
      %295 = vector.load %arg5[%c0_300, %c0_301] : memref<1x224xf32, #tpu.memory_space<vmem>>, vector<1x224xf32>
      %296 = vector.broadcast %295 : vector<1x224xf32> to vector<30x224xf32>
      %297 = arith.addf %294, %296 : vector<30x224xf32>
      %cst_302 = arith.constant 0.000000e+00 : f32
      %298 = vector.broadcast %cst_302 : f32 to vector<30x224xf32>
      %299 = arith.maximumf %297, %298 : vector<30x224xf32>
      %300 = arith.truncf %299 : vector<30x224xf32> to vector<30x224xbf16>
      %c0_303 = arith.constant 0 : index
      %c0_304 = arith.constant 0 : index
      %c0_305 = arith.constant 0 : index
      %301 = vector.load %arg10[%c0_303, %c0_304, %c0_305] : memref<2x30x448xbf16, #tpu.memory_space<vmem>>, vector<1x30x224xbf16>
      %302 = vector.shape_cast %301 : vector<1x30x224xbf16> to vector<30x224xbf16>
      %303 = vector.shape_cast %300 : vector<30x224xbf16> to vector<1x30x224xbf16>
      tpu.vector_store %arg10[%c0_303, %c0_304, %c0_305], %303 {strides = array<i32>} : memref<2x30x448xbf16, #tpu.memory_space<vmem>>, vector<1x30x224xbf16>,
      %cst_306 = arith.constant 0.000000e+00 : f32
      %304 = vector.broadcast %cst_306 : f32 to vector<30x224xf32>
      %305 = vector.extract_strided_slice %248 {offsets = [0, 112], sizes = [30, 112], strides = [1, 1]} : vector<32x256xbf16> to vector<30x112xbf16>
      %c0_307 = arith.constant 0 : index
      %c0_308 = arith.constant 0 : index
      %c0_309 = arith.constant 0 : index
      %306 = vector.load %arg4[%c0_307, %c0_308, %c0_309] : memref<9x112x224xbf16, #tpu.memory_space<vmem>>, vector<1x112x224xbf16>
      %307 = vector.shape_cast %306 : vector<1x112x224xbf16> to vector<112x224xbf16>
      %cst_310 = arith.constant dense<0.000000e+00> : vector<30x224xf32>
      %308 = tpu.matmul %305, %307, %cst_310 {dimension_numbers = #tpu.dot_dimension_numbers<[1], [0], [0], [1], [0, 0, 1, 1], [], []>} : vector<30x112xbf16>, vector<112x224xbf16>, vector<30x224xf32> -> vector<30x224xf32>
      %309 = arith.addf %304, %308 : vector<30x224xf32>
      %310 = vector.extract_strided_slice %248 {offsets = [0, 128], sizes = [30, 112], strides = [1, 1]} : vector<32x256xbf16> to vector<30x112xbf16>
      %c1_311 = arith.constant 1 : index
      %c0_312 = arith.constant 0 : index
      %c0_313 = arith.constant 0 : index
      %311 = vector.load %arg4[%c1_311, %c0_312, %c0_313] : memref<9x112x224xbf16, #tpu.memory_space<vmem>>, vector<1x112x224xbf16>
      %312 = vector.shape_cast %311 : vector<1x112x224xbf16> to vector<112x224xbf16>
      %cst_314 = arith.constant dense<0.000000e+00> : vector<30x224xf32>
      %313 = tpu.matmul %310, %312, %cst_314 {dimension_numbers = #tpu.dot_dimension_numbers<[1], [0], [0], [1], [0, 0, 1, 1], [], []>} : vector<30x112xbf16>, vector<112x224xbf16>, vector<30x224xf32> -> vector<30x224xf32>
      %314 = arith.addf %309, %313 : vector<30x224xf32>
      %315 = vector.extract_strided_slice %248 {offsets = [0, 144], sizes = [30, 112], strides = [1, 1]} : vector<32x256xbf16> to vector<30x112xbf16>
      %c2_315 = arith.constant 2 : index
      %c0_316 = arith.constant 0 : index
      %c0_317 = arith.constant 0 : index
      %316 = vector.load %arg4[%c2_315, %c0_316, %c0_317] : memref<9x112x224xbf16, #tpu.memory_space<vmem>>, vector<1x112x224xbf16>
      %317 = vector.shape_cast %316 : vector<1x112x224xbf16> to vector<112x224xbf16>
      %cst_318 = arith.constant dense<0.000000e+00> : vector<30x224xf32>
      %318 = tpu.matmul %315, %317, %cst_318 {dimension_numbers = #tpu.dot_dimension_numbers<[1], [0], [0], [1], [0, 0, 1, 1], [], []>} : vector<30x112xbf16>, vector<112x224xbf16>, vector<30x224xf32> -> vector<30x224xf32>
      %319 = arith.addf %314, %318 : vector<30x224xf32>
      %320 = vector.extract_strided_slice %248 {offsets = [1, 112], sizes = [30, 112], strides = [1, 1]} : vector<32x256xbf16> to vector<30x112xbf16>
      %c3_319 = arith.constant 3 : index
      %c0_320 = arith.constant 0 : index
      %c0_321 = arith.constant 0 : index
      %321 = vector.load %arg4[%c3_319, %c0_320, %c0_321] : memref<9x112x224xbf16, #tpu.memory_space<vmem>>, vector<1x112x224xbf16>
      %322 = vector.shape_cast %321 : vector<1x112x224xbf16> to vector<112x224xbf16>
      %cst_322 = arith.constant dense<0.000000e+00> : vector<30x224xf32>
      %323 = tpu.matmul %320, %322, %cst_322 {dimension_numbers = #tpu.dot_dimension_numbers<[1], [0], [0], [1], [0, 0, 1, 1], [], []>} : vector<30x112xbf16>, vector<112x224xbf16>, vector<30x224xf32> -> vector<30x224xf32>
      %324 = arith.addf %319, %323 : vector<30x224xf32>
      %325 = vector.extract_strided_slice %248 {offsets = [1, 128], sizes = [30, 112], strides = [1, 1]} : vector<32x256xbf16> to vector<30x112xbf16>
      %c4_323 = arith.constant 4 : index
      %c0_324 = arith.constant 0 : index
      %c0_325 = arith.constant 0 : index
      %326 = vector.load %arg4[%c4_323, %c0_324, %c0_325] : memref<9x112x224xbf16, #tpu.memory_space<vmem>>, vector<1x112x224xbf16>
      %327 = vector.shape_cast %326 : vector<1x112x224xbf16> to vector<112x224xbf16>
      %cst_326 = arith.constant dense<0.000000e+00> : vector<30x224xf32>
      %328 = tpu.matmul %325, %327, %cst_326 {dimension_numbers = #tpu.dot_dimension_numbers<[1], [0], [0], [1], [0, 0, 1, 1], [], []>} : vector<30x112xbf16>, vector<112x224xbf16>, vector<30x224xf32> -> vector<30x224xf32>
      %329 = arith.addf %324, %328 : vector<30x224xf32>
      %330 = vector.extract_strided_slice %248 {offsets = [1, 144], sizes = [30, 112], strides = [1, 1]} : vector<32x256xbf16> to vector<30x112xbf16>
      %c5_327 = arith.constant 5 : index
      %c0_328 = arith.constant 0 : index
      %c0_329 = arith.constant 0 : index
      %331 = vector.load %arg4[%c5_327, %c0_328, %c0_329] : memref<9x112x224xbf16, #tpu.memory_space<vmem>>, vector<1x112x224xbf16>
      %332 = vector.shape_cast %331 : vector<1x112x224xbf16> to vector<112x224xbf16>
      %cst_330 = arith.constant dense<0.000000e+00> : vector<30x224xf32>
      %333 = tpu.matmul %330, %332, %cst_330 {dimension_numbers = #tpu.dot_dimension_numbers<[1], [0], [0], [1], [0, 0, 1, 1], [], []>} : vector<30x112xbf16>, vector<112x224xbf16>, vector<30x224xf32> -> vector<30x224xf32>
      %334 = arith.addf %329, %333 : vector<30x224xf32>
      %335 = vector.extract_strided_slice %248 {offsets = [2, 112], sizes = [30, 112], strides = [1, 1]} : vector<32x256xbf16> to vector<30x112xbf16>
      %c6_331 = arith.constant 6 : index
      %c0_332 = arith.constant 0 : index
      %c0_333 = arith.constant 0 : index
      %336 = vector.load %arg4[%c6_331, %c0_332, %c0_333] : memref<9x112x224xbf16, #tpu.memory_space<vmem>>, vector<1x112x224xbf16>
      %337 = vector.shape_cast %336 : vector<1x112x224xbf16> to vector<112x224xbf16>
      %cst_334 = arith.constant dense<0.000000e+00> : vector<30x224xf32>
      %338 = tpu.matmul %335, %337, %cst_334 {dimension_numbers = #tpu.dot_dimension_numbers<[1], [0], [0], [1], [0, 0, 1, 1], [], []>} : vector<30x112xbf16>, vector<112x224xbf16>, vector<30x224xf32> -> vector<30x224xf32>
      %339 = arith.addf %334, %338 : vector<30x224xf32>
      %340 = vector.extract_strided_slice %248 {offsets = [2, 128], sizes = [30, 112], strides = [1, 1]} : vector<32x256xbf16> to vector<30x112xbf16>
      %c7_335 = arith.constant 7 : index
      %c0_336 = arith.constant 0 : index
      %c0_337 = arith.constant 0 : index
      %341 = vector.load %arg4[%c7_335, %c0_336, %c0_337] : memref<9x112x224xbf16, #tpu.memory_space<vmem>>, vector<1x112x224xbf16>
      %342 = vector.shape_cast %341 : vector<1x112x224xbf16> to vector<112x224xbf16>
      %cst_338 = arith.constant dense<0.000000e+00> : vector<30x224xf32>
      %343 = tpu.matmul %340, %342, %cst_338 {dimension_numbers = #tpu.dot_dimension_numbers<[1], [0], [0], [1], [0, 0, 1, 1], [], []>} : vector<30x112xbf16>, vector<112x224xbf16>, vector<30x224xf32> -> vector<30x224xf32>
      %344 = arith.addf %339, %343 : vector<30x224xf32>
      %345 = vector.extract_strided_slice %248 {offsets = [2, 144], sizes = [30, 112], strides = [1, 1]} : vector<32x256xbf16> to vector<30x112xbf16>
      %c8_339 = arith.constant 8 : index
      %c0_340 = arith.constant 0 : index
      %c0_341 = arith.constant 0 : index
      %346 = vector.load %arg4[%c8_339, %c0_340, %c0_341] : memref<9x112x224xbf16, #tpu.memory_space<vmem>>, vector<1x112x224xbf16>
      %347 = vector.shape_cast %346 : vector<1x112x224xbf16> to vector<112x224xbf16>
      %cst_342 = arith.constant dense<0.000000e+00> : vector<30x224xf32>
      %348 = tpu.matmul %345, %347, %cst_342 {dimension_numbers = #tpu.dot_dimension_numbers<[1], [0], [0], [1], [0, 0, 1, 1], [], []>} : vector<30x112xbf16>, vector<112x224xbf16>, vector<30x224xf32> -> vector<30x224xf32>
      %349 = arith.addf %344, %348 : vector<30x224xf32>
      %c0_343 = arith.constant 0 : index
      %c0_344 = arith.constant 0 : index
      %350 = vector.load %arg5[%c0_343, %c0_344] : memref<1x224xf32, #tpu.memory_space<vmem>>, vector<1x224xf32>
      %351 = vector.broadcast %350 : vector<1x224xf32> to vector<30x224xf32>
      %352 = arith.addf %349, %351 : vector<30x224xf32>
      %cst_345 = arith.constant 0.000000e+00 : f32
      %353 = vector.broadcast %cst_345 : f32 to vector<30x224xf32>
      %354 = arith.maximumf %352, %353 : vector<30x224xf32>
      %355 = arith.truncf %354 : vector<30x224xf32> to vector<30x224xbf16>
      %c0_346 = arith.constant 0 : index
      %c0_347 = arith.constant 0 : index
      %c224 = arith.constant 224 : index
      %356 = vector.load %arg10[%c0_346, %c0_347, %c224] : memref<2x30x448xbf16, #tpu.memory_space<vmem>>, vector<1x30x224xbf16>
      %357 = vector.shape_cast %356 : vector<1x30x224xbf16> to vector<30x224xbf16>
      %358 = vector.shape_cast %355 : vector<30x224xbf16> to vector<1x30x224xbf16>
      tpu.vector_store %arg10[%c0_346, %c0_347, %c224], %358 {strides = array<i32>} : memref<2x30x448xbf16, #tpu.memory_space<vmem>>, vector<1x30x224xbf16>,
      %c1_348 = arith.constant 1 : index
      %c0_349 = arith.constant 0 : index
      %c0_350 = arith.constant 0 : index
      %359 = vector.load %arg1[%c1_348, %c0_349, %c0_350] : memref<2x34x108xbf16, #tpu.memory_space<vmem>>, vector<1x34x108xbf16>
      %360 = vector.shape_cast %359 : vector<1x34x108xbf16> to vector<34x108xbf16>
      %cst_351 = arith.constant 0.000000e+00 : f32
      %361 = vector.broadcast %cst_351 : f32 to vector<32x256xf32>
      %362 = vector.extract_strided_slice %360 {offsets = [0, 0], sizes = [32, 96], strides = [1, 1]} : vector<34x108xbf16> to vector<32x96xbf16>
      %c0_352 = arith.constant 0 : index
      %c0_353 = arith.constant 0 : index
      %c0_354 = arith.constant 0 : index
      %363 = vector.load %arg2[%c0_352, %c0_353, %c0_354] : memref<9x96x256xbf16, #tpu.memory_space<vmem>>, vector<1x96x256xbf16>
      %364 = vector.shape_cast %363 : vector<1x96x256xbf16> to vector<96x256xbf16>
      %cst_355 = arith.constant dense<0.000000e+00> : vector<32x256xf32>
      %365 = tpu.matmul %362, %364, %cst_355 {dimension_numbers = #tpu.dot_dimension_numbers<[1], [0], [0], [1], [0, 0, 1, 1], [], []>} : vector<32x96xbf16>, vector<96x256xbf16>, vector<32x256xf32> -> vector<32x256xf32>
      %366 = arith.addf %361, %365 : vector<32x256xf32>
      %367 = vector.extract_strided_slice %360 {offsets = [0, 6], sizes = [32, 96], strides = [1, 1]} : vector<34x108xbf16> to vector<32x96xbf16>
      %c1_356 = arith.constant 1 : index
      %c0_357 = arith.constant 0 : index
      %c0_358 = arith.constant 0 : index
      %368 = vector.load %arg2[%c1_356, %c0_357, %c0_358] : memref<9x96x256xbf16, #tpu.memory_space<vmem>>, vector<1x96x256xbf16>
      %369 = vector.shape_cast %368 : vector<1x96x256xbf16> to vector<96x256xbf16>
      %cst_359 = arith.constant dense<0.000000e+00> : vector<32x256xf32>
      %370 = tpu.matmul %367, %369, %cst_359 {dimension_numbers = #tpu.dot_dimension_numbers<[1], [0], [0], [1], [0, 0, 1, 1], [], []>} : vector<32x96xbf16>, vector<96x256xbf16>, vector<32x256xf32> -> vector<32x256xf32>
      %371 = arith.addf %366, %370 : vector<32x256xf32>
      %372 = vector.extract_strided_slice %360 {offsets = [0, 12], sizes = [32, 96], strides = [1, 1]} : vector<34x108xbf16> to vector<32x96xbf16>
      %c2_360 = arith.constant 2 : index
      %c0_361 = arith.constant 0 : index
      %c0_362 = arith.constant 0 : index
      %373 = vector.load %arg2[%c2_360, %c0_361, %c0_362] : memref<9x96x256xbf16, #tpu.memory_space<vmem>>, vector<1x96x256xbf16>
      %374 = vector.shape_cast %373 : vector<1x96x256xbf16> to vector<96x256xbf16>
      %cst_363 = arith.constant dense<0.000000e+00> : vector<32x256xf32>
      %375 = tpu.matmul %372, %374, %cst_363 {dimension_numbers = #tpu.dot_dimension_numbers<[1], [0], [0], [1], [0, 0, 1, 1], [], []>} : vector<32x96xbf16>, vector<96x256xbf16>, vector<32x256xf32> -> vector<32x256xf32>
      %376 = arith.addf %371, %375 : vector<32x256xf32>
      %377 = vector.extract_strided_slice %360 {offsets = [1, 0], sizes = [32, 96], strides = [1, 1]} : vector<34x108xbf16> to vector<32x96xbf16>
      %c3_364 = arith.constant 3 : index
      %c0_365 = arith.constant 0 : index
      %c0_366 = arith.constant 0 : index
      %378 = vector.load %arg2[%c3_364, %c0_365, %c0_366] : memref<9x96x256xbf16, #tpu.memory_space<vmem>>, vector<1x96x256xbf16>
      %379 = vector.shape_cast %378 : vector<1x96x256xbf16> to vector<96x256xbf16>
      %cst_367 = arith.constant dense<0.000000e+00> : vector<32x256xf32>
      %380 = tpu.matmul %377, %379, %cst_367 {dimension_numbers = #tpu.dot_dimension_numbers<[1], [0], [0], [1], [0, 0, 1, 1], [], []>} : vector<32x96xbf16>, vector<96x256xbf16>, vector<32x256xf32> -> vector<32x256xf32>
      %381 = arith.addf %376, %380 : vector<32x256xf32>
      %382 = vector.extract_strided_slice %360 {offsets = [1, 6], sizes = [32, 96], strides = [1, 1]} : vector<34x108xbf16> to vector<32x96xbf16>
      %c4_368 = arith.constant 4 : index
      %c0_369 = arith.constant 0 : index
      %c0_370 = arith.constant 0 : index
      %383 = vector.load %arg2[%c4_368, %c0_369, %c0_370] : memref<9x96x256xbf16, #tpu.memory_space<vmem>>, vector<1x96x256xbf16>
      %384 = vector.shape_cast %383 : vector<1x96x256xbf16> to vector<96x256xbf16>
      %cst_371 = arith.constant dense<0.000000e+00> : vector<32x256xf32>
      %385 = tpu.matmul %382, %384, %cst_371 {dimension_numbers = #tpu.dot_dimension_numbers<[1], [0], [0], [1], [0, 0, 1, 1], [], []>} : vector<32x96xbf16>, vector<96x256xbf16>, vector<32x256xf32> -> vector<32x256xf32>
      %386 = arith.addf %381, %385 : vector<32x256xf32>
      %387 = vector.extract_strided_slice %360 {offsets = [1, 12], sizes = [32, 96], strides = [1, 1]} : vector<34x108xbf16> to vector<32x96xbf16>
      %c5_372 = arith.constant 5 : index
      %c0_373 = arith.constant 0 : index
      %c0_374 = arith.constant 0 : index
      %388 = vector.load %arg2[%c5_372, %c0_373, %c0_374] : memref<9x96x256xbf16, #tpu.memory_space<vmem>>, vector<1x96x256xbf16>
      %389 = vector.shape_cast %388 : vector<1x96x256xbf16> to vector<96x256xbf16>
      %cst_375 = arith.constant dense<0.000000e+00> : vector<32x256xf32>
      %390 = tpu.matmul %387, %389, %cst_375 {dimension_numbers = #tpu.dot_dimension_numbers<[1], [0], [0], [1], [0, 0, 1, 1], [], []>} : vector<32x96xbf16>, vector<96x256xbf16>, vector<32x256xf32> -> vector<32x256xf32>
      %391 = arith.addf %386, %390 : vector<32x256xf32>
      %392 = vector.extract_strided_slice %360 {offsets = [2, 0], sizes = [32, 96], strides = [1, 1]} : vector<34x108xbf16> to vector<32x96xbf16>
      %c6_376 = arith.constant 6 : index
      %c0_377 = arith.constant 0 : index
      %c0_378 = arith.constant 0 : index
      %393 = vector.load %arg2[%c6_376, %c0_377, %c0_378] : memref<9x96x256xbf16, #tpu.memory_space<vmem>>, vector<1x96x256xbf16>
      %394 = vector.shape_cast %393 : vector<1x96x256xbf16> to vector<96x256xbf16>
      %cst_379 = arith.constant dense<0.000000e+00> : vector<32x256xf32>
      %395 = tpu.matmul %392, %394, %cst_379 {dimension_numbers = #tpu.dot_dimension_numbers<[1], [0], [0], [1], [0, 0, 1, 1], [], []>} : vector<32x96xbf16>, vector<96x256xbf16>, vector<32x256xf32> -> vector<32x256xf32>
      %396 = arith.addf %391, %395 : vector<32x256xf32>
      %397 = vector.extract_strided_slice %360 {offsets = [2, 6], sizes = [32, 96], strides = [1, 1]} : vector<34x108xbf16> to vector<32x96xbf16>
      %c7_380 = arith.constant 7 : index
      %c0_381 = arith.constant 0 : index
      %c0_382 = arith.constant 0 : index
      %398 = vector.load %arg2[%c7_380, %c0_381, %c0_382] : memref<9x96x256xbf16, #tpu.memory_space<vmem>>, vector<1x96x256xbf16>
      %399 = vector.shape_cast %398 : vector<1x96x256xbf16> to vector<96x256xbf16>
      %cst_383 = arith.constant dense<0.000000e+00> : vector<32x256xf32>
      %400 = tpu.matmul %397, %399, %cst_383 {dimension_numbers = #tpu.dot_dimension_numbers<[1], [0], [0], [1], [0, 0, 1, 1], [], []>} : vector<32x96xbf16>, vector<96x256xbf16>, vector<32x256xf32> -> vector<32x256xf32>
      %401 = arith.addf %396, %400 : vector<32x256xf32>
      %402 = vector.extract_strided_slice %360 {offsets = [2, 12], sizes = [32, 96], strides = [1, 1]} : vector<34x108xbf16> to vector<32x96xbf16>
      %c8_384 = arith.constant 8 : index
      %c0_385 = arith.constant 0 : index
      %c0_386 = arith.constant 0 : index
      %403 = vector.load %arg2[%c8_384, %c0_385, %c0_386] : memref<9x96x256xbf16, #tpu.memory_space<vmem>>, vector<1x96x256xbf16>
      %404 = vector.shape_cast %403 : vector<1x96x256xbf16> to vector<96x256xbf16>
      %cst_387 = arith.constant dense<0.000000e+00> : vector<32x256xf32>
      %405 = tpu.matmul %402, %404, %cst_387 {dimension_numbers = #tpu.dot_dimension_numbers<[1], [0], [0], [1], [0, 0, 1, 1], [], []>} : vector<32x96xbf16>, vector<96x256xbf16>, vector<32x256xf32> -> vector<32x256xf32>
      %406 = arith.addf %401, %405 : vector<32x256xf32>
      %c0_388 = arith.constant 0 : index
      %c0_389 = arith.constant 0 : index
      %407 = vector.load %arg3[%c0_388, %c0_389] : memref<1x256xf32, #tpu.memory_space<vmem>>, vector<1x256xf32>
      %408 = vector.broadcast %407 : vector<1x256xf32> to vector<32x256xf32>
      %409 = arith.addf %406, %408 : vector<32x256xf32>
      %cst_390 = arith.constant 0.000000e+00 : f32
      %410 = vector.broadcast %cst_390 : f32 to vector<32x256xf32>
      %411 = arith.maximumf %409, %410 : vector<32x256xf32>
      %412 = arith.truncf %411 : vector<32x256xf32> to vector<32x256xbf16>
      %cst_391 = arith.constant 0.000000e+00 : f32
      %413 = vector.broadcast %cst_391 : f32 to vector<30x224xf32>
      %414 = vector.extract_strided_slice %412 {offsets = [0, 0], sizes = [30, 112], strides = [1, 1]} : vector<32x256xbf16> to vector<30x112xbf16>
      %c0_392 = arith.constant 0 : index
      %c0_393 = arith.constant 0 : index
      %c0_394 = arith.constant 0 : index
      %415 = vector.load %arg4[%c0_392, %c0_393, %c0_394] : memref<9x112x224xbf16, #tpu.memory_space<vmem>>, vector<1x112x224xbf16>
      %416 = vector.shape_cast %415 : vector<1x112x224xbf16> to vector<112x224xbf16>
      %cst_395 = arith.constant dense<0.000000e+00> : vector<30x224xf32>
      %417 = tpu.matmul %414, %416, %cst_395 {dimension_numbers = #tpu.dot_dimension_numbers<[1], [0], [0], [1], [0, 0, 1, 1], [], []>} : vector<30x112xbf16>, vector<112x224xbf16>, vector<30x224xf32> -> vector<30x224xf32>
      %418 = arith.addf %413, %417 : vector<30x224xf32>
      %419 = vector.extract_strided_slice %412 {offsets = [0, 16], sizes = [30, 112], strides = [1, 1]} : vector<32x256xbf16> to vector<30x112xbf16>
      %c1_396 = arith.constant 1 : index
      %c0_397 = arith.constant 0 : index
      %c0_398 = arith.constant 0 : index
      %420 = vector.load %arg4[%c1_396, %c0_397, %c0_398] : memref<9x112x224xbf16, #tpu.memory_space<vmem>>, vector<1x112x224xbf16>
      %421 = vector.shape_cast %420 : vector<1x112x224xbf16> to vector<112x224xbf16>
      %cst_399 = arith.constant dense<0.000000e+00> : vector<30x224xf32>
      %422 = tpu.matmul %419, %421, %cst_399 {dimension_numbers = #tpu.dot_dimension_numbers<[1], [0], [0], [1], [0, 0, 1, 1], [], []>} : vector<30x112xbf16>, vector<112x224xbf16>, vector<30x224xf32> -> vector<30x224xf32>
      %423 = arith.addf %418, %422 : vector<30x224xf32>
      %424 = vector.extract_strided_slice %412 {offsets = [0, 32], sizes = [30, 112], strides = [1, 1]} : vector<32x256xbf16> to vector<30x112xbf16>
      %c2_400 = arith.constant 2 : index
      %c0_401 = arith.constant 0 : index
      %c0_402 = arith.constant 0 : index
      %425 = vector.load %arg4[%c2_400, %c0_401, %c0_402] : memref<9x112x224xbf16, #tpu.memory_space<vmem>>, vector<1x112x224xbf16>
      %426 = vector.shape_cast %425 : vector<1x112x224xbf16> to vector<112x224xbf16>
      %cst_403 = arith.constant dense<0.000000e+00> : vector<30x224xf32>
      %427 = tpu.matmul %424, %426, %cst_403 {dimension_numbers = #tpu.dot_dimension_numbers<[1], [0], [0], [1], [0, 0, 1, 1], [], []>} : vector<30x112xbf16>, vector<112x224xbf16>, vector<30x224xf32> -> vector<30x224xf32>
      %428 = arith.addf %423, %427 : vector<30x224xf32>
      %429 = vector.extract_strided_slice %412 {offsets = [1, 0], sizes = [30, 112], strides = [1, 1]} : vector<32x256xbf16> to vector<30x112xbf16>
      %c3_404 = arith.constant 3 : index
      %c0_405 = arith.constant 0 : index
      %c0_406 = arith.constant 0 : index
      %430 = vector.load %arg4[%c3_404, %c0_405, %c0_406] : memref<9x112x224xbf16, #tpu.memory_space<vmem>>, vector<1x112x224xbf16>
      %431 = vector.shape_cast %430 : vector<1x112x224xbf16> to vector<112x224xbf16>
      %cst_407 = arith.constant dense<0.000000e+00> : vector<30x224xf32>
      %432 = tpu.matmul %429, %431, %cst_407 {dimension_numbers = #tpu.dot_dimension_numbers<[1], [0], [0], [1], [0, 0, 1, 1], [], []>} : vector<30x112xbf16>, vector<112x224xbf16>, vector<30x224xf32> -> vector<30x224xf32>
      %433 = arith.addf %428, %432 : vector<30x224xf32>
      %434 = vector.extract_strided_slice %412 {offsets = [1, 16], sizes = [30, 112], strides = [1, 1]} : vector<32x256xbf16> to vector<30x112xbf16>
      %c4_408 = arith.constant 4 : index
      %c0_409 = arith.constant 0 : index
      %c0_410 = arith.constant 0 : index
      %435 = vector.load %arg4[%c4_408, %c0_409, %c0_410] : memref<9x112x224xbf16, #tpu.memory_space<vmem>>, vector<1x112x224xbf16>
      %436 = vector.shape_cast %435 : vector<1x112x224xbf16> to vector<112x224xbf16>
      %cst_411 = arith.constant dense<0.000000e+00> : vector<30x224xf32>
      %437 = tpu.matmul %434, %436, %cst_411 {dimension_numbers = #tpu.dot_dimension_numbers<[1], [0], [0], [1], [0, 0, 1, 1], [], []>} : vector<30x112xbf16>, vector<112x224xbf16>, vector<30x224xf32> -> vector<30x224xf32>
      %438 = arith.addf %433, %437 : vector<30x224xf32>
      %439 = vector.extract_strided_slice %412 {offsets = [1, 32], sizes = [30, 112], strides = [1, 1]} : vector<32x256xbf16> to vector<30x112xbf16>
      %c5_412 = arith.constant 5 : index
      %c0_413 = arith.constant 0 : index
      %c0_414 = arith.constant 0 : index
      %440 = vector.load %arg4[%c5_412, %c0_413, %c0_414] : memref<9x112x224xbf16, #tpu.memory_space<vmem>>, vector<1x112x224xbf16>
      %441 = vector.shape_cast %440 : vector<1x112x224xbf16> to vector<112x224xbf16>
      %cst_415 = arith.constant dense<0.000000e+00> : vector<30x224xf32>
      %442 = tpu.matmul %439, %441, %cst_415 {dimension_numbers = #tpu.dot_dimension_numbers<[1], [0], [0], [1], [0, 0, 1, 1], [], []>} : vector<30x112xbf16>, vector<112x224xbf16>, vector<30x224xf32> -> vector<30x224xf32>
      %443 = arith.addf %438, %442 : vector<30x224xf32>
      %444 = vector.extract_strided_slice %412 {offsets = [2, 0], sizes = [30, 112], strides = [1, 1]} : vector<32x256xbf16> to vector<30x112xbf16>
      %c6_416 = arith.constant 6 : index
      %c0_417 = arith.constant 0 : index
      %c0_418 = arith.constant 0 : index
      %445 = vector.load %arg4[%c6_416, %c0_417, %c0_418] : memref<9x112x224xbf16, #tpu.memory_space<vmem>>, vector<1x112x224xbf16>
      %446 = vector.shape_cast %445 : vector<1x112x224xbf16> to vector<112x224xbf16>
      %cst_419 = arith.constant dense<0.000000e+00> : vector<30x224xf32>
      %447 = tpu.matmul %444, %446, %cst_419 {dimension_numbers = #tpu.dot_dimension_numbers<[1], [0], [0], [1], [0, 0, 1, 1], [], []>} : vector<30x112xbf16>, vector<112x224xbf16>, vector<30x224xf32> -> vector<30x224xf32>
      %448 = arith.addf %443, %447 : vector<30x224xf32>
      %449 = vector.extract_strided_slice %412 {offsets = [2, 16], sizes = [30, 112], strides = [1, 1]} : vector<32x256xbf16> to vector<30x112xbf16>
      %c7_420 = arith.constant 7 : index
      %c0_421 = arith.constant 0 : index
      %c0_422 = arith.constant 0 : index
      %450 = vector.load %arg4[%c7_420, %c0_421, %c0_422] : memref<9x112x224xbf16, #tpu.memory_space<vmem>>, vector<1x112x224xbf16>
      %451 = vector.shape_cast %450 : vector<1x112x224xbf16> to vector<112x224xbf16>
      %cst_423 = arith.constant dense<0.000000e+00> : vector<30x224xf32>
      %452 = tpu.matmul %449, %451, %cst_423 {dimension_numbers = #tpu.dot_dimension_numbers<[1], [0], [0], [1], [0, 0, 1, 1], [], []>} : vector<30x112xbf16>, vector<112x224xbf16>, vector<30x224xf32> -> vector<30x224xf32>
      %453 = arith.addf %448, %452 : vector<30x224xf32>
      %454 = vector.extract_strided_slice %412 {offsets = [2, 32], sizes = [30, 112], strides = [1, 1]} : vector<32x256xbf16> to vector<30x112xbf16>
      %c8_424 = arith.constant 8 : index
      %c0_425 = arith.constant 0 : index
      %c0_426 = arith.constant 0 : index
      %455 = vector.load %arg4[%c8_424, %c0_425, %c0_426] : memref<9x112x224xbf16, #tpu.memory_space<vmem>>, vector<1x112x224xbf16>
      %456 = vector.shape_cast %455 : vector<1x112x224xbf16> to vector<112x224xbf16>
      %cst_427 = arith.constant dense<0.000000e+00> : vector<30x224xf32>
      %457 = tpu.matmul %454, %456, %cst_427 {dimension_numbers = #tpu.dot_dimension_numbers<[1], [0], [0], [1], [0, 0, 1, 1], [], []>} : vector<30x112xbf16>, vector<112x224xbf16>, vector<30x224xf32> -> vector<30x224xf32>
      %458 = arith.addf %453, %457 : vector<30x224xf32>
      %c0_428 = arith.constant 0 : index
      %c0_429 = arith.constant 0 : index
      %459 = vector.load %arg5[%c0_428, %c0_429] : memref<1x224xf32, #tpu.memory_space<vmem>>, vector<1x224xf32>
      %460 = vector.broadcast %459 : vector<1x224xf32> to vector<30x224xf32>
      %461 = arith.addf %458, %460 : vector<30x224xf32>
      %cst_430 = arith.constant 0.000000e+00 : f32
      %462 = vector.broadcast %cst_430 : f32 to vector<30x224xf32>
      %463 = arith.maximumf %461, %462 : vector<30x224xf32>
      %464 = arith.truncf %463 : vector<30x224xf32> to vector<30x224xbf16>
      %c1_431 = arith.constant 1 : index
      %c0_432 = arith.constant 0 : index
      %c0_433 = arith.constant 0 : index
      %465 = vector.load %arg10[%c1_431, %c0_432, %c0_433] : memref<2x30x448xbf16, #tpu.memory_space<vmem>>, vector<1x30x224xbf16>
      %466 = vector.shape_cast %465 : vector<1x30x224xbf16> to vector<30x224xbf16>
      %467 = vector.shape_cast %464 : vector<30x224xbf16> to vector<1x30x224xbf16>
      tpu.vector_store %arg10[%c1_431, %c0_432, %c0_433], %467 {strides = array<i32>} : memref<2x30x448xbf16, #tpu.memory_space<vmem>>, vector<1x30x224xbf16>,
      %cst_434 = arith.constant 0.000000e+00 : f32
      %468 = vector.broadcast %cst_434 : f32 to vector<30x224xf32>
      %469 = vector.extract_strided_slice %412 {offsets = [0, 112], sizes = [30, 112], strides = [1, 1]} : vector<32x256xbf16> to vector<30x112xbf16>
      %c0_435 = arith.constant 0 : index
      %c0_436 = arith.constant 0 : index
      %c0_437 = arith.constant 0 : index
      %470 = vector.load %arg4[%c0_435, %c0_436, %c0_437] : memref<9x112x224xbf16, #tpu.memory_space<vmem>>, vector<1x112x224xbf16>
      %471 = vector.shape_cast %470 : vector<1x112x224xbf16> to vector<112x224xbf16>
      %cst_438 = arith.constant dense<0.000000e+00> : vector<30x224xf32>
      %472 = tpu.matmul %469, %471, %cst_438 {dimension_numbers = #tpu.dot_dimension_numbers<[1], [0], [0], [1], [0, 0, 1, 1], [], []>} : vector<30x112xbf16>, vector<112x224xbf16>, vector<30x224xf32> -> vector<30x224xf32>
      %473 = arith.addf %468, %472 : vector<30x224xf32>
      %474 = vector.extract_strided_slice %412 {offsets = [0, 128], sizes = [30, 112], strides = [1, 1]} : vector<32x256xbf16> to vector<30x112xbf16>
      %c1_439 = arith.constant 1 : index
      %c0_440 = arith.constant 0 : index
      %c0_441 = arith.constant 0 : index
      %475 = vector.load %arg4[%c1_439, %c0_440, %c0_441] : memref<9x112x224xbf16, #tpu.memory_space<vmem>>, vector<1x112x224xbf16>
      %476 = vector.shape_cast %475 : vector<1x112x224xbf16> to vector<112x224xbf16>
      %cst_442 = arith.constant dense<0.000000e+00> : vector<30x224xf32>
      %477 = tpu.matmul %474, %476, %cst_442 {dimension_numbers = #tpu.dot_dimension_numbers<[1], [0], [0], [1], [0, 0, 1, 1], [], []>} : vector<30x112xbf16>, vector<112x224xbf16>, vector<30x224xf32> -> vector<30x224xf32>
      %478 = arith.addf %473, %477 : vector<30x224xf32>
      %479 = vector.extract_strided_slice %412 {offsets = [0, 144], sizes = [30, 112], strides = [1, 1]} : vector<32x256xbf16> to vector<30x112xbf16>
      %c2_443 = arith.constant 2 : index
      %c0_444 = arith.constant 0 : index
      %c0_445 = arith.constant 0 : index
      %480 = vector.load %arg4[%c2_443, %c0_444, %c0_445] : memref<9x112x224xbf16, #tpu.memory_space<vmem>>, vector<1x112x224xbf16>
      %481 = vector.shape_cast %480 : vector<1x112x224xbf16> to vector<112x224xbf16>
      %cst_446 = arith.constant dense<0.000000e+00> : vector<30x224xf32>
      %482 = tpu.matmul %479, %481, %cst_446 {dimension_numbers = #tpu.dot_dimension_numbers<[1], [0], [0], [1], [0, 0, 1, 1], [], []>} : vector<30x112xbf16>, vector<112x224xbf16>, vector<30x224xf32> -> vector<30x224xf32>
      %483 = arith.addf %478, %482 : vector<30x224xf32>
      %484 = vector.extract_strided_slice %412 {offsets = [1, 112], sizes = [30, 112], strides = [1, 1]} : vector<32x256xbf16> to vector<30x112xbf16>
      %c3_447 = arith.constant 3 : index
      %c0_448 = arith.constant 0 : index
      %c0_449 = arith.constant 0 : index
      %485 = vector.load %arg4[%c3_447, %c0_448, %c0_449] : memref<9x112x224xbf16, #tpu.memory_space<vmem>>, vector<1x112x224xbf16>
      %486 = vector.shape_cast %485 : vector<1x112x224xbf16> to vector<112x224xbf16>
      %cst_450 = arith.constant dense<0.000000e+00> : vector<30x224xf32>
      %487 = tpu.matmul %484, %486, %cst_450 {dimension_numbers = #tpu.dot_dimension_numbers<[1], [0], [0], [1], [0, 0, 1, 1], [], []>} : vector<30x112xbf16>, vector<112x224xbf16>, vector<30x224xf32> -> vector<30x224xf32>
      %488 = arith.addf %483, %487 : vector<30x224xf32>
      %489 = vector.extract_strided_slice %412 {offsets = [1, 128], sizes = [30, 112], strides = [1, 1]} : vector<32x256xbf16> to vector<30x112xbf16>
      %c4_451 = arith.constant 4 : index
      %c0_452 = arith.constant 0 : index
      %c0_453 = arith.constant 0 : index
      %490 = vector.load %arg4[%c4_451, %c0_452, %c0_453] : memref<9x112x224xbf16, #tpu.memory_space<vmem>>, vector<1x112x224xbf16>
      %491 = vector.shape_cast %490 : vector<1x112x224xbf16> to vector<112x224xbf16>
      %cst_454 = arith.constant dense<0.000000e+00> : vector<30x224xf32>
      %492 = tpu.matmul %489, %491, %cst_454 {dimension_numbers = #tpu.dot_dimension_numbers<[1], [0], [0], [1], [0, 0, 1, 1], [], []>} : vector<30x112xbf16>, vector<112x224xbf16>, vector<30x224xf32> -> vector<30x224xf32>
      %493 = arith.addf %488, %492 : vector<30x224xf32>
      %494 = vector.extract_strided_slice %412 {offsets = [1, 144], sizes = [30, 112], strides = [1, 1]} : vector<32x256xbf16> to vector<30x112xbf16>
      %c5_455 = arith.constant 5 : index
      %c0_456 = arith.constant 0 : index
      %c0_457 = arith.constant 0 : index
      %495 = vector.load %arg4[%c5_455, %c0_456, %c0_457] : memref<9x112x224xbf16, #tpu.memory_space<vmem>>, vector<1x112x224xbf16>
      %496 = vector.shape_cast %495 : vector<1x112x224xbf16> to vector<112x224xbf16>
      %cst_458 = arith.constant dense<0.000000e+00> : vector<30x224xf32>
      %497 = tpu.matmul %494, %496, %cst_458 {dimension_numbers = #tpu.dot_dimension_numbers<[1], [0], [0], [1], [0, 0, 1, 1], [], []>} : vector<30x112xbf16>, vector<112x224xbf16>, vector<30x224xf32> -> vector<30x224xf32>
      %498 = arith.addf %493, %497 : vector<30x224xf32>
      %499 = vector.extract_strided_slice %412 {offsets = [2, 112], sizes = [30, 112], strides = [1, 1]} : vector<32x256xbf16> to vector<30x112xbf16>
      %c6_459 = arith.constant 6 : index
      %c0_460 = arith.constant 0 : index
      %c0_461 = arith.constant 0 : index
      %500 = vector.load %arg4[%c6_459, %c0_460, %c0_461] : memref<9x112x224xbf16, #tpu.memory_space<vmem>>, vector<1x112x224xbf16>
      %501 = vector.shape_cast %500 : vector<1x112x224xbf16> to vector<112x224xbf16>
      %cst_462 = arith.constant dense<0.000000e+00> : vector<30x224xf32>
      %502 = tpu.matmul %499, %501, %cst_462 {dimension_numbers = #tpu.dot_dimension_numbers<[1], [0], [0], [1], [0, 0, 1, 1], [], []>} : vector<30x112xbf16>, vector<112x224xbf16>, vector<30x224xf32> -> vector<30x224xf32>
      %503 = arith.addf %498, %502 : vector<30x224xf32>
      %504 = vector.extract_strided_slice %412 {offsets = [2, 128], sizes = [30, 112], strides = [1, 1]} : vector<32x256xbf16> to vector<30x112xbf16>
      %c7_463 = arith.constant 7 : index
      %c0_464 = arith.constant 0 : index
      %c0_465 = arith.constant 0 : index
      %505 = vector.load %arg4[%c7_463, %c0_464, %c0_465] : memref<9x112x224xbf16, #tpu.memory_space<vmem>>, vector<1x112x224xbf16>
      %506 = vector.shape_cast %505 : vector<1x112x224xbf16> to vector<112x224xbf16>
      %cst_466 = arith.constant dense<0.000000e+00> : vector<30x224xf32>
      %507 = tpu.matmul %504, %506, %cst_466 {dimension_numbers = #tpu.dot_dimension_numbers<[1], [0], [0], [1], [0, 0, 1, 1], [], []>} : vector<30x112xbf16>, vector<112x224xbf16>, vector<30x224xf32> -> vector<30x224xf32>
      %508 = arith.addf %503, %507 : vector<30x224xf32>
      %509 = vector.extract_strided_slice %412 {offsets = [2, 144], sizes = [30, 112], strides = [1, 1]} : vector<32x256xbf16> to vector<30x112xbf16>
      %c8_467 = arith.constant 8 : index
      %c0_468 = arith.constant 0 : index
      %c0_469 = arith.constant 0 : index
      %510 = vector.load %arg4[%c8_467, %c0_468, %c0_469] : memref<9x112x224xbf16, #tpu.memory_space<vmem>>, vector<1x112x224xbf16>
      %511 = vector.shape_cast %510 : vector<1x112x224xbf16> to vector<112x224xbf16>
      %cst_470 = arith.constant dense<0.000000e+00> : vector<30x224xf32>
      %512 = tpu.matmul %509, %511, %cst_470 {dimension_numbers = #tpu.dot_dimension_numbers<[1], [0], [0], [1], [0, 0, 1, 1], [], []>} : vector<30x112xbf16>, vector<112x224xbf16>, vector<30x224xf32> -> vector<30x224xf32>
      %513 = arith.addf %508, %512 : vector<30x224xf32>
      %c0_471 = arith.constant 0 : index
      %c0_472 = arith.constant 0 : index
      %514 = vector.load %arg5[%c0_471, %c0_472] : memref<1x224xf32, #tpu.memory_space<vmem>>, vector<1x224xf32>
      %515 = vector.broadcast %514 : vector<1x224xf32> to vector<30x224xf32>
      %516 = arith.addf %513, %515 : vector<30x224xf32>
      %cst_473 = arith.constant 0.000000e+00 : f32
      %517 = vector.broadcast %cst_473 : f32 to vector<30x224xf32>
      %518 = arith.maximumf %516, %517 : vector<30x224xf32>
      %519 = arith.truncf %518 : vector<30x224xf32> to vector<30x224xbf16>
      %c1_474 = arith.constant 1 : index
      %c0_475 = arith.constant 0 : index
      %c224_476 = arith.constant 224 : index
      %520 = vector.load %arg10[%c1_474, %c0_475, %c224_476] : memref<2x30x448xbf16, #tpu.memory_space<vmem>>, vector<1x30x224xbf16>
      %521 = vector.shape_cast %520 : vector<1x30x224xbf16> to vector<30x224xbf16>
      %522 = vector.shape_cast %519 : vector<30x224xbf16> to vector<1x30x224xbf16>
      tpu.vector_store %arg10[%c1_474, %c0_475, %c224_476], %522 {strides = array<i32>} : memref<2x30x448xbf16, #tpu.memory_space<vmem>>, vector<1x30x224xbf16>,
    } else {
    }
    %cst = arith.constant 0.000000e+00 : f32
    %3 = vector.broadcast %cst : f32 to vector<2x128xf32>
    %c0 = arith.constant 0 : index
    %c0_1 = arith.constant 0 : index
    %c0_2 = arith.constant 0 : index
    %4 = vector.load %arg10[%c0, %c0_1, %c0_2] : memref<2x30x448xbf16, #tpu.memory_space<vmem>>, vector<2x1x448xbf16>
    %5 = vector.shape_cast %4 : vector<2x1x448xbf16> to vector<2x448xbf16>
    %c0_3 = arith.constant 0 : index
    %c0_4 = arith.constant 0 : index
    %c0_5 = arith.constant 0 : index
    %c0_6 = arith.constant 0 : index
    %6 = vector.load %arg6[%c0_3, %c0_4, %c0_5, %c0_6] : memref<1x30x448x128xbf16, #tpu.memory_space<vmem>>, vector<1x1x448x128xbf16>
    %7 = vector.shape_cast %6 : vector<1x1x448x128xbf16> to vector<448x128xbf16>
    %cst_7 = arith.constant dense<0.000000e+00> : vector<2x128xf32>
    %8 = tpu.matmul %5, %7, %cst_7 {dimension_numbers = #tpu.dot_dimension_numbers<[1], [0], [0], [1], [0, 0, 1, 1], [], []>} : vector<2x448xbf16>, vector<448x128xbf16>, vector<2x128xf32> -> vector<2x128xf32>
    %9 = arith.addf %3, %8 : vector<2x128xf32>
    %c0_8 = arith.constant 0 : index
    %c1 = arith.constant 1 : index
    %c0_9 = arith.constant 0 : index
    %10 = vector.load %arg10[%c0_8, %c1, %c0_9] : memref<2x30x448xbf16, #tpu.memory_space<vmem>>, vector<2x1x448xbf16>
    %11 = vector.shape_cast %10 : vector<2x1x448xbf16> to vector<2x448xbf16>
    %c0_10 = arith.constant 0 : index
    %c1_11 = arith.constant 1 : index
    %c0_12 = arith.constant 0 : index
    %c0_13 = arith.constant 0 : index
    %12 = vector.load %arg6[%c0_10, %c1_11, %c0_12, %c0_13] : memref<1x30x448x128xbf16, #tpu.memory_space<vmem>>, vector<1x1x448x128xbf16>
    %13 = vector.shape_cast %12 : vector<1x1x448x128xbf16> to vector<448x128xbf16>
    %cst_14 = arith.constant dense<0.000000e+00> : vector<2x128xf32>
    %14 = tpu.matmul %11, %13, %cst_14 {dimension_numbers = #tpu.dot_dimension_numbers<[1], [0], [0], [1], [0, 0, 1, 1], [], []>} : vector<2x448xbf16>, vector<448x128xbf16>, vector<2x128xf32> -> vector<2x128xf32>
    %15 = arith.addf %9, %14 : vector<2x128xf32>
    %c0_15 = arith.constant 0 : index
    %c2 = arith.constant 2 : index
    %c0_16 = arith.constant 0 : index
    %16 = vector.load %arg10[%c0_15, %c2, %c0_16] : memref<2x30x448xbf16, #tpu.memory_space<vmem>>, vector<2x1x448xbf16>
    %17 = vector.shape_cast %16 : vector<2x1x448xbf16> to vector<2x448xbf16>
    %c0_17 = arith.constant 0 : index
    %c2_18 = arith.constant 2 : index
    %c0_19 = arith.constant 0 : index
    %c0_20 = arith.constant 0 : index
    %18 = vector.load %arg6[%c0_17, %c2_18, %c0_19, %c0_20] : memref<1x30x448x128xbf16, #tpu.memory_space<vmem>>, vector<1x1x448x128xbf16>
    %19 = vector.shape_cast %18 : vector<1x1x448x128xbf16> to vector<448x128xbf16>
    %cst_21 = arith.constant dense<0.000000e+00> : vector<2x128xf32>
    %20 = tpu.matmul %17, %19, %cst_21 {dimension_numbers = #tpu.dot_dimension_numbers<[1], [0], [0], [1], [0, 0, 1, 1], [], []>} : vector<2x448xbf16>, vector<448x128xbf16>, vector<2x128xf32> -> vector<2x128xf32>
    %21 = arith.addf %15, %20 : vector<2x128xf32>
    %c0_22 = arith.constant 0 : index
    %c3 = arith.constant 3 : index
    %c0_23 = arith.constant 0 : index
    %22 = vector.load %arg10[%c0_22, %c3, %c0_23] : memref<2x30x448xbf16, #tpu.memory_space<vmem>>, vector<2x1x448xbf16>
    %23 = vector.shape_cast %22 : vector<2x1x448xbf16> to vector<2x448xbf16>
    %c0_24 = arith.constant 0 : index
    %c3_25 = arith.constant 3 : index
    %c0_26 = arith.constant 0 : index
    %c0_27 = arith.constant 0 : index
    %24 = vector.load %arg6[%c0_24, %c3_25, %c0_26, %c0_27] : memref<1x30x448x128xbf16, #tpu.memory_space<vmem>>, vector<1x1x448x128xbf16>
    %25 = vector.shape_cast %24 : vector<1x1x448x128xbf16> to vector<448x128xbf16>
    %cst_28 = arith.constant dense<0.000000e+00> : vector<2x128xf32>
    %26 = tpu.matmul %23, %25, %cst_28 {dimension_numbers = #tpu.dot_dimension_numbers<[1], [0], [0], [1], [0, 0, 1, 1], [], []>} : vector<2x448xbf16>, vector<448x128xbf16>, vector<2x128xf32> -> vector<2x128xf32>
    %27 = arith.addf %21, %26 : vector<2x128xf32>
    %c0_29 = arith.constant 0 : index
    %c4 = arith.constant 4 : index
    %c0_30 = arith.constant 0 : index
    %28 = vector.load %arg10[%c0_29, %c4, %c0_30] : memref<2x30x448xbf16, #tpu.memory_space<vmem>>, vector<2x1x448xbf16>
    %29 = vector.shape_cast %28 : vector<2x1x448xbf16> to vector<2x448xbf16>
    %c0_31 = arith.constant 0 : index
    %c4_32 = arith.constant 4 : index
    %c0_33 = arith.constant 0 : index
    %c0_34 = arith.constant 0 : index
    %30 = vector.load %arg6[%c0_31, %c4_32, %c0_33, %c0_34] : memref<1x30x448x128xbf16, #tpu.memory_space<vmem>>, vector<1x1x448x128xbf16>
    %31 = vector.shape_cast %30 : vector<1x1x448x128xbf16> to vector<448x128xbf16>
    %cst_35 = arith.constant dense<0.000000e+00> : vector<2x128xf32>
    %32 = tpu.matmul %29, %31, %cst_35 {dimension_numbers = #tpu.dot_dimension_numbers<[1], [0], [0], [1], [0, 0, 1, 1], [], []>} : vector<2x448xbf16>, vector<448x128xbf16>, vector<2x128xf32> -> vector<2x128xf32>
    %33 = arith.addf %27, %32 : vector<2x128xf32>
    %c0_36 = arith.constant 0 : index
    %c5 = arith.constant 5 : index
    %c0_37 = arith.constant 0 : index
    %34 = vector.load %arg10[%c0_36, %c5, %c0_37] : memref<2x30x448xbf16, #tpu.memory_space<vmem>>, vector<2x1x448xbf16>
    %35 = vector.shape_cast %34 : vector<2x1x448xbf16> to vector<2x448xbf16>
    %c0_38 = arith.constant 0 : index
    %c5_39 = arith.constant 5 : index
    %c0_40 = arith.constant 0 : index
    %c0_41 = arith.constant 0 : index
    %36 = vector.load %arg6[%c0_38, %c5_39, %c0_40, %c0_41] : memref<1x30x448x128xbf16, #tpu.memory_space<vmem>>, vector<1x1x448x128xbf16>
    %37 = vector.shape_cast %36 : vector<1x1x448x128xbf16> to vector<448x128xbf16>
    %cst_42 = arith.constant dense<0.000000e+00> : vector<2x128xf32>
    %38 = tpu.matmul %35, %37, %cst_42 {dimension_numbers = #tpu.dot_dimension_numbers<[1], [0], [0], [1], [0, 0, 1, 1], [], []>} : vector<2x448xbf16>, vector<448x128xbf16>, vector<2x128xf32> -> vector<2x128xf32>
    %39 = arith.addf %33, %38 : vector<2x128xf32>
    %c0_43 = arith.constant 0 : index
    %c6 = arith.constant 6 : index
    %c0_44 = arith.constant 0 : index
    %40 = vector.load %arg10[%c0_43, %c6, %c0_44] : memref<2x30x448xbf16, #tpu.memory_space<vmem>>, vector<2x1x448xbf16>
    %41 = vector.shape_cast %40 : vector<2x1x448xbf16> to vector<2x448xbf16>
    %c0_45 = arith.constant 0 : index
    %c6_46 = arith.constant 6 : index
    %c0_47 = arith.constant 0 : index
    %c0_48 = arith.constant 0 : index
    %42 = vector.load %arg6[%c0_45, %c6_46, %c0_47, %c0_48] : memref<1x30x448x128xbf16, #tpu.memory_space<vmem>>, vector<1x1x448x128xbf16>
    %43 = vector.shape_cast %42 : vector<1x1x448x128xbf16> to vector<448x128xbf16>
    %cst_49 = arith.constant dense<0.000000e+00> : vector<2x128xf32>
    %44 = tpu.matmul %41, %43, %cst_49 {dimension_numbers = #tpu.dot_dimension_numbers<[1], [0], [0], [1], [0, 0, 1, 1], [], []>} : vector<2x448xbf16>, vector<448x128xbf16>, vector<2x128xf32> -> vector<2x128xf32>
    %45 = arith.addf %39, %44 : vector<2x128xf32>
    %c0_50 = arith.constant 0 : index
    %c7 = arith.constant 7 : index
    %c0_51 = arith.constant 0 : index
    %46 = vector.load %arg10[%c0_50, %c7, %c0_51] : memref<2x30x448xbf16, #tpu.memory_space<vmem>>, vector<2x1x448xbf16>
    %47 = vector.shape_cast %46 : vector<2x1x448xbf16> to vector<2x448xbf16>
    %c0_52 = arith.constant 0 : index
    %c7_53 = arith.constant 7 : index
    %c0_54 = arith.constant 0 : index
    %c0_55 = arith.constant 0 : index
    %48 = vector.load %arg6[%c0_52, %c7_53, %c0_54, %c0_55] : memref<1x30x448x128xbf16, #tpu.memory_space<vmem>>, vector<1x1x448x128xbf16>
    %49 = vector.shape_cast %48 : vector<1x1x448x128xbf16> to vector<448x128xbf16>
    %cst_56 = arith.constant dense<0.000000e+00> : vector<2x128xf32>
    %50 = tpu.matmul %47, %49, %cst_56 {dimension_numbers = #tpu.dot_dimension_numbers<[1], [0], [0], [1], [0, 0, 1, 1], [], []>} : vector<2x448xbf16>, vector<448x128xbf16>, vector<2x128xf32> -> vector<2x128xf32>
    %51 = arith.addf %45, %50 : vector<2x128xf32>
    %c0_57 = arith.constant 0 : index
    %c8 = arith.constant 8 : index
    %c0_58 = arith.constant 0 : index
    %52 = vector.load %arg10[%c0_57, %c8, %c0_58] : memref<2x30x448xbf16, #tpu.memory_space<vmem>>, vector<2x1x448xbf16>
    %53 = vector.shape_cast %52 : vector<2x1x448xbf16> to vector<2x448xbf16>
    %c0_59 = arith.constant 0 : index
    %c8_60 = arith.constant 8 : index
    %c0_61 = arith.constant 0 : index
    %c0_62 = arith.constant 0 : index
    %54 = vector.load %arg6[%c0_59, %c8_60, %c0_61, %c0_62] : memref<1x30x448x128xbf16, #tpu.memory_space<vmem>>, vector<1x1x448x128xbf16>
    %55 = vector.shape_cast %54 : vector<1x1x448x128xbf16> to vector<448x128xbf16>
    %cst_63 = arith.constant dense<0.000000e+00> : vector<2x128xf32>
    %56 = tpu.matmul %53, %55, %cst_63 {dimension_numbers = #tpu.dot_dimension_numbers<[1], [0], [0], [1], [0, 0, 1, 1], [], []>} : vector<2x448xbf16>, vector<448x128xbf16>, vector<2x128xf32> -> vector<2x128xf32>
    %57 = arith.addf %51, %56 : vector<2x128xf32>
    %c0_64 = arith.constant 0 : index
    %c9 = arith.constant 9 : index
    %c0_65 = arith.constant 0 : index
    %58 = vector.load %arg10[%c0_64, %c9, %c0_65] : memref<2x30x448xbf16, #tpu.memory_space<vmem>>, vector<2x1x448xbf16>
    %59 = vector.shape_cast %58 : vector<2x1x448xbf16> to vector<2x448xbf16>
    %c0_66 = arith.constant 0 : index
    %c9_67 = arith.constant 9 : index
    %c0_68 = arith.constant 0 : index
    %c0_69 = arith.constant 0 : index
    %60 = vector.load %arg6[%c0_66, %c9_67, %c0_68, %c0_69] : memref<1x30x448x128xbf16, #tpu.memory_space<vmem>>, vector<1x1x448x128xbf16>
    %61 = vector.shape_cast %60 : vector<1x1x448x128xbf16> to vector<448x128xbf16>
    %cst_70 = arith.constant dense<0.000000e+00> : vector<2x128xf32>
    %62 = tpu.matmul %59, %61, %cst_70 {dimension_numbers = #tpu.dot_dimension_numbers<[1], [0], [0], [1], [0, 0, 1, 1], [], []>} : vector<2x448xbf16>, vector<448x128xbf16>, vector<2x128xf32> -> vector<2x128xf32>
    %63 = arith.addf %57, %62 : vector<2x128xf32>
    %c0_71 = arith.constant 0 : index
    %c10 = arith.constant 10 : index
    %c0_72 = arith.constant 0 : index
    %64 = vector.load %arg10[%c0_71, %c10, %c0_72] : memref<2x30x448xbf16, #tpu.memory_space<vmem>>, vector<2x1x448xbf16>
    %65 = vector.shape_cast %64 : vector<2x1x448xbf16> to vector<2x448xbf16>
    %c0_73 = arith.constant 0 : index
    %c10_74 = arith.constant 10 : index
    %c0_75 = arith.constant 0 : index
    %c0_76 = arith.constant 0 : index
    %66 = vector.load %arg6[%c0_73, %c10_74, %c0_75, %c0_76] : memref<1x30x448x128xbf16, #tpu.memory_space<vmem>>, vector<1x1x448x128xbf16>
    %67 = vector.shape_cast %66 : vector<1x1x448x128xbf16> to vector<448x128xbf16>
    %cst_77 = arith.constant dense<0.000000e+00> : vector<2x128xf32>
    %68 = tpu.matmul %65, %67, %cst_77 {dimension_numbers = #tpu.dot_dimension_numbers<[1], [0], [0], [1], [0, 0, 1, 1], [], []>} : vector<2x448xbf16>, vector<448x128xbf16>, vector<2x128xf32> -> vector<2x128xf32>
    %69 = arith.addf %63, %68 : vector<2x128xf32>
    %c0_78 = arith.constant 0 : index
    %c11 = arith.constant 11 : index
    %c0_79 = arith.constant 0 : index
    %70 = vector.load %arg10[%c0_78, %c11, %c0_79] : memref<2x30x448xbf16, #tpu.memory_space<vmem>>, vector<2x1x448xbf16>
    %71 = vector.shape_cast %70 : vector<2x1x448xbf16> to vector<2x448xbf16>
    %c0_80 = arith.constant 0 : index
    %c11_81 = arith.constant 11 : index
    %c0_82 = arith.constant 0 : index
    %c0_83 = arith.constant 0 : index
    %72 = vector.load %arg6[%c0_80, %c11_81, %c0_82, %c0_83] : memref<1x30x448x128xbf16, #tpu.memory_space<vmem>>, vector<1x1x448x128xbf16>
    %73 = vector.shape_cast %72 : vector<1x1x448x128xbf16> to vector<448x128xbf16>
    %cst_84 = arith.constant dense<0.000000e+00> : vector<2x128xf32>
    %74 = tpu.matmul %71, %73, %cst_84 {dimension_numbers = #tpu.dot_dimension_numbers<[1], [0], [0], [1], [0, 0, 1, 1], [], []>} : vector<2x448xbf16>, vector<448x128xbf16>, vector<2x128xf32> -> vector<2x128xf32>
    %75 = arith.addf %69, %74 : vector<2x128xf32>
    %c0_85 = arith.constant 0 : index
    %c12 = arith.constant 12 : index
    %c0_86 = arith.constant 0 : index
    %76 = vector.load %arg10[%c0_85, %c12, %c0_86] : memref<2x30x448xbf16, #tpu.memory_space<vmem>>, vector<2x1x448xbf16>
    %77 = vector.shape_cast %76 : vector<2x1x448xbf16> to vector<2x448xbf16>
    %c0_87 = arith.constant 0 : index
    %c12_88 = arith.constant 12 : index
    %c0_89 = arith.constant 0 : index
    %c0_90 = arith.constant 0 : index
    %78 = vector.load %arg6[%c0_87, %c12_88, %c0_89, %c0_90] : memref<1x30x448x128xbf16, #tpu.memory_space<vmem>>, vector<1x1x448x128xbf16>
    %79 = vector.shape_cast %78 : vector<1x1x448x128xbf16> to vector<448x128xbf16>
    %cst_91 = arith.constant dense<0.000000e+00> : vector<2x128xf32>
    %80 = tpu.matmul %77, %79, %cst_91 {dimension_numbers = #tpu.dot_dimension_numbers<[1], [0], [0], [1], [0, 0, 1, 1], [], []>} : vector<2x448xbf16>, vector<448x128xbf16>, vector<2x128xf32> -> vector<2x128xf32>
    %81 = arith.addf %75, %80 : vector<2x128xf32>
    %c0_92 = arith.constant 0 : index
    %c13 = arith.constant 13 : index
    %c0_93 = arith.constant 0 : index
    %82 = vector.load %arg10[%c0_92, %c13, %c0_93] : memref<2x30x448xbf16, #tpu.memory_space<vmem>>, vector<2x1x448xbf16>
    %83 = vector.shape_cast %82 : vector<2x1x448xbf16> to vector<2x448xbf16>
    %c0_94 = arith.constant 0 : index
    %c13_95 = arith.constant 13 : index
    %c0_96 = arith.constant 0 : index
    %c0_97 = arith.constant 0 : index
    %84 = vector.load %arg6[%c0_94, %c13_95, %c0_96, %c0_97] : memref<1x30x448x128xbf16, #tpu.memory_space<vmem>>, vector<1x1x448x128xbf16>
    %85 = vector.shape_cast %84 : vector<1x1x448x128xbf16> to vector<448x128xbf16>
    %cst_98 = arith.constant dense<0.000000e+00> : vector<2x128xf32>
    %86 = tpu.matmul %83, %85, %cst_98 {dimension_numbers = #tpu.dot_dimension_numbers<[1], [0], [0], [1], [0, 0, 1, 1], [], []>} : vector<2x448xbf16>, vector<448x128xbf16>, vector<2x128xf32> -> vector<2x128xf32>
    %87 = arith.addf %81, %86 : vector<2x128xf32>
    %c0_99 = arith.constant 0 : index
    %c14 = arith.constant 14 : index
    %c0_100 = arith.constant 0 : index
    %88 = vector.load %arg10[%c0_99, %c14, %c0_100] : memref<2x30x448xbf16, #tpu.memory_space<vmem>>, vector<2x1x448xbf16>
    %89 = vector.shape_cast %88 : vector<2x1x448xbf16> to vector<2x448xbf16>
    %c0_101 = arith.constant 0 : index
    %c14_102 = arith.constant 14 : index
    %c0_103 = arith.constant 0 : index
    %c0_104 = arith.constant 0 : index
    %90 = vector.load %arg6[%c0_101, %c14_102, %c0_103, %c0_104] : memref<1x30x448x128xbf16, #tpu.memory_space<vmem>>, vector<1x1x448x128xbf16>
    %91 = vector.shape_cast %90 : vector<1x1x448x128xbf16> to vector<448x128xbf16>
    %cst_105 = arith.constant dense<0.000000e+00> : vector<2x128xf32>
    %92 = tpu.matmul %89, %91, %cst_105 {dimension_numbers = #tpu.dot_dimension_numbers<[1], [0], [0], [1], [0, 0, 1, 1], [], []>} : vector<2x448xbf16>, vector<448x128xbf16>, vector<2x128xf32> -> vector<2x128xf32>
    %93 = arith.addf %87, %92 : vector<2x128xf32>
    %c0_106 = arith.constant 0 : index
    %c15 = arith.constant 15 : index
    %c0_107 = arith.constant 0 : index
    %94 = vector.load %arg10[%c0_106, %c15, %c0_107] : memref<2x30x448xbf16, #tpu.memory_space<vmem>>, vector<2x1x448xbf16>
    %95 = vector.shape_cast %94 : vector<2x1x448xbf16> to vector<2x448xbf16>
    %c0_108 = arith.constant 0 : index
    %c15_109 = arith.constant 15 : index
    %c0_110 = arith.constant 0 : index
    %c0_111 = arith.constant 0 : index
    %96 = vector.load %arg6[%c0_108, %c15_109, %c0_110, %c0_111] : memref<1x30x448x128xbf16, #tpu.memory_space<vmem>>, vector<1x1x448x128xbf16>
    %97 = vector.shape_cast %96 : vector<1x1x448x128xbf16> to vector<448x128xbf16>
    %cst_112 = arith.constant dense<0.000000e+00> : vector<2x128xf32>
    %98 = tpu.matmul %95, %97, %cst_112 {dimension_numbers = #tpu.dot_dimension_numbers<[1], [0], [0], [1], [0, 0, 1, 1], [], []>} : vector<2x448xbf16>, vector<448x128xbf16>, vector<2x128xf32> -> vector<2x128xf32>
    %99 = arith.addf %93, %98 : vector<2x128xf32>
    %c0_113 = arith.constant 0 : index
    %c16 = arith.constant 16 : index
    %c0_114 = arith.constant 0 : index
    %100 = vector.load %arg10[%c0_113, %c16, %c0_114] : memref<2x30x448xbf16, #tpu.memory_space<vmem>>, vector<2x1x448xbf16>
    %101 = vector.shape_cast %100 : vector<2x1x448xbf16> to vector<2x448xbf16>
    %c0_115 = arith.constant 0 : index
    %c16_116 = arith.constant 16 : index
    %c0_117 = arith.constant 0 : index
    %c0_118 = arith.constant 0 : index
    %102 = vector.load %arg6[%c0_115, %c16_116, %c0_117, %c0_118] : memref<1x30x448x128xbf16, #tpu.memory_space<vmem>>, vector<1x1x448x128xbf16>
    %103 = vector.shape_cast %102 : vector<1x1x448x128xbf16> to vector<448x128xbf16>
    %cst_119 = arith.constant dense<0.000000e+00> : vector<2x128xf32>
    %104 = tpu.matmul %101, %103, %cst_119 {dimension_numbers = #tpu.dot_dimension_numbers<[1], [0], [0], [1], [0, 0, 1, 1], [], []>} : vector<2x448xbf16>, vector<448x128xbf16>, vector<2x128xf32> -> vector<2x128xf32>
    %105 = arith.addf %99, %104 : vector<2x128xf32>
    %c0_120 = arith.constant 0 : index
    %c17 = arith.constant 17 : index
    %c0_121 = arith.constant 0 : index
    %106 = vector.load %arg10[%c0_120, %c17, %c0_121] : memref<2x30x448xbf16, #tpu.memory_space<vmem>>, vector<2x1x448xbf16>
    %107 = vector.shape_cast %106 : vector<2x1x448xbf16> to vector<2x448xbf16>
    %c0_122 = arith.constant 0 : index
    %c17_123 = arith.constant 17 : index
    %c0_124 = arith.constant 0 : index
    %c0_125 = arith.constant 0 : index
    %108 = vector.load %arg6[%c0_122, %c17_123, %c0_124, %c0_125] : memref<1x30x448x128xbf16, #tpu.memory_space<vmem>>, vector<1x1x448x128xbf16>
    %109 = vector.shape_cast %108 : vector<1x1x448x128xbf16> to vector<448x128xbf16>
    %cst_126 = arith.constant dense<0.000000e+00> : vector<2x128xf32>
    %110 = tpu.matmul %107, %109, %cst_126 {dimension_numbers = #tpu.dot_dimension_numbers<[1], [0], [0], [1], [0, 0, 1, 1], [], []>} : vector<2x448xbf16>, vector<448x128xbf16>, vector<2x128xf32> -> vector<2x128xf32>
    %111 = arith.addf %105, %110 : vector<2x128xf32>
    %c0_127 = arith.constant 0 : index
    %c18 = arith.constant 18 : index
    %c0_128 = arith.constant 0 : index
    %112 = vector.load %arg10[%c0_127, %c18, %c0_128] : memref<2x30x448xbf16, #tpu.memory_space<vmem>>, vector<2x1x448xbf16>
    %113 = vector.shape_cast %112 : vector<2x1x448xbf16> to vector<2x448xbf16>
    %c0_129 = arith.constant 0 : index
    %c18_130 = arith.constant 18 : index
    %c0_131 = arith.constant 0 : index
    %c0_132 = arith.constant 0 : index
    %114 = vector.load %arg6[%c0_129, %c18_130, %c0_131, %c0_132] : memref<1x30x448x128xbf16, #tpu.memory_space<vmem>>, vector<1x1x448x128xbf16>
    %115 = vector.shape_cast %114 : vector<1x1x448x128xbf16> to vector<448x128xbf16>
    %cst_133 = arith.constant dense<0.000000e+00> : vector<2x128xf32>
    %116 = tpu.matmul %113, %115, %cst_133 {dimension_numbers = #tpu.dot_dimension_numbers<[1], [0], [0], [1], [0, 0, 1, 1], [], []>} : vector<2x448xbf16>, vector<448x128xbf16>, vector<2x128xf32> -> vector<2x128xf32>
    %117 = arith.addf %111, %116 : vector<2x128xf32>
    %c0_134 = arith.constant 0 : index
    %c19 = arith.constant 19 : index
    %c0_135 = arith.constant 0 : index
    %118 = vector.load %arg10[%c0_134, %c19, %c0_135] : memref<2x30x448xbf16, #tpu.memory_space<vmem>>, vector<2x1x448xbf16>
    %119 = vector.shape_cast %118 : vector<2x1x448xbf16> to vector<2x448xbf16>
    %c0_136 = arith.constant 0 : index
    %c19_137 = arith.constant 19 : index
    %c0_138 = arith.constant 0 : index
    %c0_139 = arith.constant 0 : index
    %120 = vector.load %arg6[%c0_136, %c19_137, %c0_138, %c0_139] : memref<1x30x448x128xbf16, #tpu.memory_space<vmem>>, vector<1x1x448x128xbf16>
    %121 = vector.shape_cast %120 : vector<1x1x448x128xbf16> to vector<448x128xbf16>
    %cst_140 = arith.constant dense<0.000000e+00> : vector<2x128xf32>
    %122 = tpu.matmul %119, %121, %cst_140 {dimension_numbers = #tpu.dot_dimension_numbers<[1], [0], [0], [1], [0, 0, 1, 1], [], []>} : vector<2x448xbf16>, vector<448x128xbf16>, vector<2x128xf32> -> vector<2x128xf32>
    %123 = arith.addf %117, %122 : vector<2x128xf32>
    %c0_141 = arith.constant 0 : index
    %c20 = arith.constant 20 : index
    %c0_142 = arith.constant 0 : index
    %124 = vector.load %arg10[%c0_141, %c20, %c0_142] : memref<2x30x448xbf16, #tpu.memory_space<vmem>>, vector<2x1x448xbf16>
    %125 = vector.shape_cast %124 : vector<2x1x448xbf16> to vector<2x448xbf16>
    %c0_143 = arith.constant 0 : index
    %c20_144 = arith.constant 20 : index
    %c0_145 = arith.constant 0 : index
    %c0_146 = arith.constant 0 : index
    %126 = vector.load %arg6[%c0_143, %c20_144, %c0_145, %c0_146] : memref<1x30x448x128xbf16, #tpu.memory_space<vmem>>, vector<1x1x448x128xbf16>
    %127 = vector.shape_cast %126 : vector<1x1x448x128xbf16> to vector<448x128xbf16>
    %cst_147 = arith.constant dense<0.000000e+00> : vector<2x128xf32>
    %128 = tpu.matmul %125, %127, %cst_147 {dimension_numbers = #tpu.dot_dimension_numbers<[1], [0], [0], [1], [0, 0, 1, 1], [], []>} : vector<2x448xbf16>, vector<448x128xbf16>, vector<2x128xf32> -> vector<2x128xf32>
    %129 = arith.addf %123, %128 : vector<2x128xf32>
    %c0_148 = arith.constant 0 : index
    %c21 = arith.constant 21 : index
    %c0_149 = arith.constant 0 : index
    %130 = vector.load %arg10[%c0_148, %c21, %c0_149] : memref<2x30x448xbf16, #tpu.memory_space<vmem>>, vector<2x1x448xbf16>
    %131 = vector.shape_cast %130 : vector<2x1x448xbf16> to vector<2x448xbf16>
    %c0_150 = arith.constant 0 : index
    %c21_151 = arith.constant 21 : index
    %c0_152 = arith.constant 0 : index
    %c0_153 = arith.constant 0 : index
    %132 = vector.load %arg6[%c0_150, %c21_151, %c0_152, %c0_153] : memref<1x30x448x128xbf16, #tpu.memory_space<vmem>>, vector<1x1x448x128xbf16>
    %133 = vector.shape_cast %132 : vector<1x1x448x128xbf16> to vector<448x128xbf16>
    %cst_154 = arith.constant dense<0.000000e+00> : vector<2x128xf32>
    %134 = tpu.matmul %131, %133, %cst_154 {dimension_numbers = #tpu.dot_dimension_numbers<[1], [0], [0], [1], [0, 0, 1, 1], [], []>} : vector<2x448xbf16>, vector<448x128xbf16>, vector<2x128xf32> -> vector<2x128xf32>
    %135 = arith.addf %129, %134 : vector<2x128xf32>
    %c0_155 = arith.constant 0 : index
    %c22 = arith.constant 22 : index
    %c0_156 = arith.constant 0 : index
    %136 = vector.load %arg10[%c0_155, %c22, %c0_156] : memref<2x30x448xbf16, #tpu.memory_space<vmem>>, vector<2x1x448xbf16>
    %137 = vector.shape_cast %136 : vector<2x1x448xbf16> to vector<2x448xbf16>
    %c0_157 = arith.constant 0 : index
    %c22_158 = arith.constant 22 : index
    %c0_159 = arith.constant 0 : index
    %c0_160 = arith.constant 0 : index
    %138 = vector.load %arg6[%c0_157, %c22_158, %c0_159, %c0_160] : memref<1x30x448x128xbf16, #tpu.memory_space<vmem>>, vector<1x1x448x128xbf16>
    %139 = vector.shape_cast %138 : vector<1x1x448x128xbf16> to vector<448x128xbf16>
    %cst_161 = arith.constant dense<0.000000e+00> : vector<2x128xf32>
    %140 = tpu.matmul %137, %139, %cst_161 {dimension_numbers = #tpu.dot_dimension_numbers<[1], [0], [0], [1], [0, 0, 1, 1], [], []>} : vector<2x448xbf16>, vector<448x128xbf16>, vector<2x128xf32> -> vector<2x128xf32>
    %141 = arith.addf %135, %140 : vector<2x128xf32>
    %c0_162 = arith.constant 0 : index
    %c23 = arith.constant 23 : index
    %c0_163 = arith.constant 0 : index
    %142 = vector.load %arg10[%c0_162, %c23, %c0_163] : memref<2x30x448xbf16, #tpu.memory_space<vmem>>, vector<2x1x448xbf16>
    %143 = vector.shape_cast %142 : vector<2x1x448xbf16> to vector<2x448xbf16>
    %c0_164 = arith.constant 0 : index
    %c23_165 = arith.constant 23 : index
    %c0_166 = arith.constant 0 : index
    %c0_167 = arith.constant 0 : index
    %144 = vector.load %arg6[%c0_164, %c23_165, %c0_166, %c0_167] : memref<1x30x448x128xbf16, #tpu.memory_space<vmem>>, vector<1x1x448x128xbf16>
    %145 = vector.shape_cast %144 : vector<1x1x448x128xbf16> to vector<448x128xbf16>
    %cst_168 = arith.constant dense<0.000000e+00> : vector<2x128xf32>
    %146 = tpu.matmul %143, %145, %cst_168 {dimension_numbers = #tpu.dot_dimension_numbers<[1], [0], [0], [1], [0, 0, 1, 1], [], []>} : vector<2x448xbf16>, vector<448x128xbf16>, vector<2x128xf32> -> vector<2x128xf32>
    %147 = arith.addf %141, %146 : vector<2x128xf32>
    %c0_169 = arith.constant 0 : index
    %c24 = arith.constant 24 : index
    %c0_170 = arith.constant 0 : index
    %148 = vector.load %arg10[%c0_169, %c24, %c0_170] : memref<2x30x448xbf16, #tpu.memory_space<vmem>>, vector<2x1x448xbf16>
    %149 = vector.shape_cast %148 : vector<2x1x448xbf16> to vector<2x448xbf16>
    %c0_171 = arith.constant 0 : index
    %c24_172 = arith.constant 24 : index
    %c0_173 = arith.constant 0 : index
    %c0_174 = arith.constant 0 : index
    %150 = vector.load %arg6[%c0_171, %c24_172, %c0_173, %c0_174] : memref<1x30x448x128xbf16, #tpu.memory_space<vmem>>, vector<1x1x448x128xbf16>
    %151 = vector.shape_cast %150 : vector<1x1x448x128xbf16> to vector<448x128xbf16>
    %cst_175 = arith.constant dense<0.000000e+00> : vector<2x128xf32>
    %152 = tpu.matmul %149, %151, %cst_175 {dimension_numbers = #tpu.dot_dimension_numbers<[1], [0], [0], [1], [0, 0, 1, 1], [], []>} : vector<2x448xbf16>, vector<448x128xbf16>, vector<2x128xf32> -> vector<2x128xf32>
    %153 = arith.addf %147, %152 : vector<2x128xf32>
    %c0_176 = arith.constant 0 : index
    %c25 = arith.constant 25 : index
    %c0_177 = arith.constant 0 : index
    %154 = vector.load %arg10[%c0_176, %c25, %c0_177] : memref<2x30x448xbf16, #tpu.memory_space<vmem>>, vector<2x1x448xbf16>
    %155 = vector.shape_cast %154 : vector<2x1x448xbf16> to vector<2x448xbf16>
    %c0_178 = arith.constant 0 : index
    %c25_179 = arith.constant 25 : index
    %c0_180 = arith.constant 0 : index
    %c0_181 = arith.constant 0 : index
    %156 = vector.load %arg6[%c0_178, %c25_179, %c0_180, %c0_181] : memref<1x30x448x128xbf16, #tpu.memory_space<vmem>>, vector<1x1x448x128xbf16>
    %157 = vector.shape_cast %156 : vector<1x1x448x128xbf16> to vector<448x128xbf16>
    %cst_182 = arith.constant dense<0.000000e+00> : vector<2x128xf32>
    %158 = tpu.matmul %155, %157, %cst_182 {dimension_numbers = #tpu.dot_dimension_numbers<[1], [0], [0], [1], [0, 0, 1, 1], [], []>} : vector<2x448xbf16>, vector<448x128xbf16>, vector<2x128xf32> -> vector<2x128xf32>
    %159 = arith.addf %153, %158 : vector<2x128xf32>
    %c0_183 = arith.constant 0 : index
    %c26 = arith.constant 26 : index
    %c0_184 = arith.constant 0 : index
    %160 = vector.load %arg10[%c0_183, %c26, %c0_184] : memref<2x30x448xbf16, #tpu.memory_space<vmem>>, vector<2x1x448xbf16>
    %161 = vector.shape_cast %160 : vector<2x1x448xbf16> to vector<2x448xbf16>
    %c0_185 = arith.constant 0 : index
    %c26_186 = arith.constant 26 : index
    %c0_187 = arith.constant 0 : index
    %c0_188 = arith.constant 0 : index
    %162 = vector.load %arg6[%c0_185, %c26_186, %c0_187, %c0_188] : memref<1x30x448x128xbf16, #tpu.memory_space<vmem>>, vector<1x1x448x128xbf16>
    %163 = vector.shape_cast %162 : vector<1x1x448x128xbf16> to vector<448x128xbf16>
    %cst_189 = arith.constant dense<0.000000e+00> : vector<2x128xf32>
    %164 = tpu.matmul %161, %163, %cst_189 {dimension_numbers = #tpu.dot_dimension_numbers<[1], [0], [0], [1], [0, 0, 1, 1], [], []>} : vector<2x448xbf16>, vector<448x128xbf16>, vector<2x128xf32> -> vector<2x128xf32>
    %165 = arith.addf %159, %164 : vector<2x128xf32>
    %c0_190 = arith.constant 0 : index
    %c27 = arith.constant 27 : index
    %c0_191 = arith.constant 0 : index
    %166 = vector.load %arg10[%c0_190, %c27, %c0_191] : memref<2x30x448xbf16, #tpu.memory_space<vmem>>, vector<2x1x448xbf16>
    %167 = vector.shape_cast %166 : vector<2x1x448xbf16> to vector<2x448xbf16>
    %c0_192 = arith.constant 0 : index
    %c27_193 = arith.constant 27 : index
    %c0_194 = arith.constant 0 : index
    %c0_195 = arith.constant 0 : index
    %168 = vector.load %arg6[%c0_192, %c27_193, %c0_194, %c0_195] : memref<1x30x448x128xbf16, #tpu.memory_space<vmem>>, vector<1x1x448x128xbf16>
    %169 = vector.shape_cast %168 : vector<1x1x448x128xbf16> to vector<448x128xbf16>
    %cst_196 = arith.constant dense<0.000000e+00> : vector<2x128xf32>
    %170 = tpu.matmul %167, %169, %cst_196 {dimension_numbers = #tpu.dot_dimension_numbers<[1], [0], [0], [1], [0, 0, 1, 1], [], []>} : vector<2x448xbf16>, vector<448x128xbf16>, vector<2x128xf32> -> vector<2x128xf32>
    %171 = arith.addf %165, %170 : vector<2x128xf32>
    %c0_197 = arith.constant 0 : index
    %c28 = arith.constant 28 : index
    %c0_198 = arith.constant 0 : index
    %172 = vector.load %arg10[%c0_197, %c28, %c0_198] : memref<2x30x448xbf16, #tpu.memory_space<vmem>>, vector<2x1x448xbf16>
    %173 = vector.shape_cast %172 : vector<2x1x448xbf16> to vector<2x448xbf16>
    %c0_199 = arith.constant 0 : index
    %c28_200 = arith.constant 28 : index
    %c0_201 = arith.constant 0 : index
    %c0_202 = arith.constant 0 : index
    %174 = vector.load %arg6[%c0_199, %c28_200, %c0_201, %c0_202] : memref<1x30x448x128xbf16, #tpu.memory_space<vmem>>, vector<1x1x448x128xbf16>
    %175 = vector.shape_cast %174 : vector<1x1x448x128xbf16> to vector<448x128xbf16>
    %cst_203 = arith.constant dense<0.000000e+00> : vector<2x128xf32>
    %176 = tpu.matmul %173, %175, %cst_203 {dimension_numbers = #tpu.dot_dimension_numbers<[1], [0], [0], [1], [0, 0, 1, 1], [], []>} : vector<2x448xbf16>, vector<448x128xbf16>, vector<2x128xf32> -> vector<2x128xf32>
    %177 = arith.addf %171, %176 : vector<2x128xf32>
    %c0_204 = arith.constant 0 : index
    %c29 = arith.constant 29 : index
    %c0_205 = arith.constant 0 : index
    %178 = vector.load %arg10[%c0_204, %c29, %c0_205] : memref<2x30x448xbf16, #tpu.memory_space<vmem>>, vector<2x1x448xbf16>
    %179 = vector.shape_cast %178 : vector<2x1x448xbf16> to vector<2x448xbf16>
    %c0_206 = arith.constant 0 : index
    %c29_207 = arith.constant 29 : index
    %c0_208 = arith.constant 0 : index
    %c0_209 = arith.constant 0 : index
    %180 = vector.load %arg6[%c0_206, %c29_207, %c0_208, %c0_209] : memref<1x30x448x128xbf16, #tpu.memory_space<vmem>>, vector<1x1x448x128xbf16>
    %181 = vector.shape_cast %180 : vector<1x1x448x128xbf16> to vector<448x128xbf16>
    %cst_210 = arith.constant dense<0.000000e+00> : vector<2x128xf32>
    %182 = tpu.matmul %179, %181, %cst_210 {dimension_numbers = #tpu.dot_dimension_numbers<[1], [0], [0], [1], [0, 0, 1, 1], [], []>} : vector<2x448xbf16>, vector<448x128xbf16>, vector<2x128xf32> -> vector<2x128xf32>
    %183 = arith.addf %177, %182 : vector<2x128xf32>
    %c0_211 = arith.constant 0 : index
    %c0_212 = arith.constant 0 : index
    %184 = vector.load %arg7[%c0_211, %c0_212] : memref<1x128xf32, #tpu.memory_space<vmem>>, vector<1x128xf32>
    %185 = vector.broadcast %184 : vector<1x128xf32> to vector<2x128xf32>
    %186 = arith.addf %183, %185 : vector<2x128xf32>
    %cst_213 = arith.constant 0.000000e+00 : f32
    %187 = vector.broadcast %cst_213 : f32 to vector<2x128xf32>
    %188 = arith.maximumf %186, %187 : vector<2x128xf32>
    %189 = arith.truncf %188 : vector<2x128xf32> to vector<2x128xbf16>
    %c0_214 = arith.constant 0 : index
    %c0_215 = arith.constant 0 : index
    %190 = vector.load %arg8[%c0_214, %c0_215] : memref<128x5xbf16, #tpu.memory_space<vmem>>, vector<128x5xbf16>
    %cst_216 = arith.constant dense<0.000000e+00> : vector<2x5xf32>
    %191 = tpu.matmul %189, %190, %cst_216 {dimension_numbers = #tpu.dot_dimension_numbers<[1], [0], [0], [1], [0, 0, 1, 1], [], []>} : vector<2x128xbf16>, vector<128x5xbf16>, vector<2x5xf32> -> vector<2x5xf32>
    %c0_217 = arith.constant 0 : index
    %c0_218 = arith.constant 0 : index
    %c0_219 = arith.constant 0 : index
    %192 = vector.load %arg9[%c0_217, %c0_218, %c0_219] : memref<1x2x5xf32, #tpu.memory_space<vmem>>, vector<1x2x5xf32>
    %193 = vector.shape_cast %192 : vector<1x2x5xf32> to vector<2x5xf32>
    %194 = vector.shape_cast %191 : vector<2x5xf32> to vector<1x2x5xf32>
    tpu.vector_store %arg9[%c0_217, %c0_218, %c0_219], %194 {strides = array<i32>} : memref<1x2x5xf32, #tpu.memory_space<vmem>>, vector<1x2x5xf32>,
    return
  }
  func.func @transform_0(%arg0: i32) -> (i32, i32, i32) {
    %c0_i32 = arith.constant 0 : i32
    %c0_i32_0 = arith.constant 0 : i32
    %c0_i32_1 = arith.constant 0 : i32
    %c0_i32_2 = arith.constant 0 : i32
    return %c0_i32, %c0_i32_0, %c0_i32_1 : i32, i32, i32
  }
  func.func @transform_1(%arg0: i32) -> (i32, i32, i32) {
    %c0_i32 = arith.constant 0 : i32
    %c0_i32_0 = arith.constant 0 : i32
    %c0_i32_1 = arith.constant 0 : i32
    %c0_i32_2 = arith.constant 0 : i32
    return %c0_i32, %c0_i32_0, %c0_i32_1 : i32, i32, i32
  }
  func.func @transform_2(%arg0: i32) -> (i32, i32) {
    %c0_i32 = arith.constant 0 : i32
    %c0_i32_0 = arith.constant 0 : i32
    %c0_i32_1 = arith.constant 0 : i32
    return %c0_i32, %c0_i32_0 : i32, i32
  }
  func.func @transform_3(%arg0: i32) -> (i32, i32, i32) {
    %c0_i32 = arith.constant 0 : i32
    %c0_i32_0 = arith.constant 0 : i32
    %c0_i32_1 = arith.constant 0 : i32
    %c0_i32_2 = arith.constant 0 : i32
    return %c0_i32, %c0_i32_0, %c0_i32_1 : i32, i32, i32
  }
  func.func @transform_4(%arg0: i32) -> (i32, i32) {
    %c0_i32 = arith.constant 0 : i32
    %c0_i32_0 = arith.constant 0 : i32
    %c0_i32_1 = arith.constant 0 : i32
    return %c0_i32, %c0_i32_0 : i32, i32
  }
  func.func @transform_5(%arg0: i32) -> (i32, i32, i32, i32) {
    %c0_i32 = arith.constant 0 : i32
    %c0_i32_0 = arith.constant 0 : i32
    %c0_i32_1 = arith.constant 0 : i32
    %c0_i32_2 = arith.constant 0 : i32
    return %arg0, %c0_i32, %c0_i32_0, %c0_i32_1 : i32, i32, i32, i32
  }
  func.func @transform_6(%arg0: i32) -> (i32, i32) {
    %c0_i32 = arith.constant 0 : i32
    %c0_i32_0 = arith.constant 0 : i32
    return %c0_i32, %arg0 : i32, i32
  }
  func.func @transform_7(%arg0: i32) -> (i32, i32) {
    %c0_i32 = arith.constant 0 : i32
    %c0_i32_0 = arith.constant 0 : i32
    return %arg0, %c0_i32 : i32, i32
  }
  func.func @transform_8(%arg0: i32) -> (i32, i32, i32) {
    %c0_i32 = arith.constant 0 : i32
    %c0_i32_0 = arith.constant 0 : i32
    %c0_i32_1 = arith.constant 0 : i32
    return %arg0, %c0_i32, %c0_i32_0 : i32, i32, i32
  }
}

</mosaic_0001>

<bundles_post_ra>
// kernel: dqn_forward.1
= control target key start
LH: loop header
LB: loop body
LE: loop exit
PB: predicated region body
PF: predicated region fallthrough
CT: control target
= control target key end

     0   :  { %s30431_s0 = inlined_call_operand.vmem [shape: bf16[2,34,108], index: 0, kind: input, shape index: {}]   ;;  %s30432_s1 = inlined_call_operand.hbm [shape: bf16[9,96,256], index: 1, kind: input, shape index: {}]   ;;  %s30433_s2 = inlined_call_operand.hbm [shape: f32[1,256], index: 2, kind: input, shape index: {}]   ;;  %s30434_s3 = inlined_call_operand.hbm [shape: bf16[9,112,224], index: 3, kind: input, shape index: {}]   ;;  %s30435_s4 = inlined_call_operand.hbm [shape: f32[1,224], index: 4, kind: input, shape index: {}]   ;;  %s30436_s5 = inlined_call_operand.hbm [shape: bf16[2,30,448,128], index: 5, kind: input, shape index: {}]   ;;  %s30437_s6 = inlined_call_operand.hbm [shape: f32[1,256], index: 6, kind: input, shape index: {}]   ;;  %s30438_s7 = inlined_call_operand.vmem [shape: bf16[256,5], index: 7, kind: input, shape index: {}]   ;;  %s30439_s8 = inlined_call_operand.vmem [shape: f32[2,2,5], index: 8, kind: output, shape index: {}]  }
   0x1   :  { %30453 = sst [smem:[#allocation18_spill]] %s30432_s1 }
   0x2   :  { %30454 = sst [smem:[#allocation19_spill]] %s30433_s2 }
   0x3   :  { %30455 = sst [smem:[#allocation20_spill]] %s30436_s5 }
   0x4   :  { %13 = vsyncpa [#allocation4], 0 }
   0x5   :  { %14 = vsyncpa [#allocation6], 0 }
   0x6   :  { %15 = vsyncpa [#allocation9], 0  ;;  %s26226_s27 = smov 0   ;;  %s26228_s28 = smov 0  }
   0x7   :  { %s26230_s29 = smov 0   ;;  %s26232_s30 = smov 0  }
   0x8 LB: > { %s26245_s9 = sadd.s32 4294967295, %s26160_s30   ;;  %p146_p0 = scmp.ne.s32.totalorder %s26152_s28, %s26148_s27  ;;  %s26160_s30 = sphi %s26232_s30, %s30490_s30   ;;  %s26156_s29 = sphi %s26230_s29, %s30494_s29   ;;  %s26152_s28 = sphi %s26228_s28, %s30493_s28   ;;  %s26148_s27 = sphi %s26226_s27, %s30492_s27  }
   0x9   : > { %p30440_p1 = scmp.eq.s32.totalorder %s26245_s9, 0  ;;  %p19556_p2 = scmp.ge.s32.totalorder %s26160_s30, 1 }
   0xa   : > { %p235_p3 = scmp.lt.s32.totalorder %s26160_s30, 3  ;;  %s26162_s12 = smov [#allocation3]  }
   0xb   : > { %p26254_p5 = por %p30440_p1, %p146_p0  ;;  %s250_s13 = sshll.u32 %s26162_s12, 4  ;;  %s251_s13 = int_to_ptr.vmem [resolvable:$true] %s250_s13 }
   0xc   : > { %p26258_p6 = pnand %p19556_p2, %p235_p3  ;;  %s26163_s15 = smov [#allocation5]  }
   0xd   : > { %s30456_s10 = scalar_select %p26254_p5, 1, 0 }
   0xe   : > { %s30457_s11 = scalar_select %p26258_p6, 1, 0 }
   0xf   : > { %p24165_p7 = pneg %p26258_p6  ;;  %s264_s16 = sshll.u32 %s26163_s15, 4  ;;  %s26270_s16 = int_to_ptr.vmem [resolvable:$true] %s264_s16 }
  0x10   : > { %s30459_s1 = sld [smem:[#allocation18_spill]] }
  0x11   : > { %p26266_p8 = pnand %p24165_p7, %p30440_p1 }
  0x13   : > { %s30458_s14 = scalar_select %p26266_p8, 1, 0 }
  0x14   : > { %p26280_p10 = pneg %p26266_p8 }
  0x16   : > { %s25942_s19 = scalar_lea.hbm %s30459_s1, 13824 }
  0x17   : > { %p25943_p9 = scmp.ne.s32.totalorder %s30459_s1, %s25942_s19  ;;  %p25949_p13 = scmp.lt.u32.totalorder %s25942_s19, %s30459_s1 }
  0x19   : > { %p25945_p11 = pnand %p26280_p10, %p25943_p9 }
  0x1b   : > { %p25946_p12 = pneg %p25945_p11 }
  0x1d   : > { %p25951_p0 = pnand %p25949_p13, %p25946_p12 }
  0x1f   : > { %25954 = shalt.err (!%p25951_p0)
}
  0x20   : > { %s25955_s25 = scalar_lea.vmem %s251_s13, 13824  ;;  %p25963_p4 = scmp.lt.s32.totalorder %s251_s13, %s251_s13 }
  0x21   : > { %p25956_p2 = scmp.ne.s32.totalorder %s251_s13, %s25955_s25  ;;  %p25964_p1 = scmp.lt.s32.totalorder %s25955_s25, %s25955_s25 }
  0x23   : > { %p25958_p3 = pnand %p25956_p2, %p26280_p10  ;;  %p25965_p5 = por %p25964_p1, %p25963_p4 }
  0x25   : > { %p25959_p7 = pneg %p25958_p3 }
  0x27   : > { %p25966_p6 = pnand %p25965_p5, %p25959_p7 }
  0x29   : > { %25969 = shalt.err (!%p25966_p6)
}
  0x2a   : > { %s30444_s26 = smov 128   ;;  %s30445_s27 = smov 8  }
  0x2b   : > { %24168 = dma.hbm_to_vmem [thread:$0]  (!%p26266_p8), %s30459_s1, 13824, %s251_s13, [#allocation4], %s30444_s26, %s30444_s26, %s30445_s27  }
  0x2c   : > { %s30461_s2 = sld [smem:[#allocation19_spill]] }
  0x32   : > { %s25970_s19 = scalar_lea.hbm %s30461_s2, 32 }
  0x33   : > { %p25971_p1 = scmp.ne.s32.totalorder %s30461_s2, %s25970_s19  ;;  %p25977_p6 = scmp.lt.u32.totalorder %s25970_s19, %s30461_s2 }
  0x35   : > { %p25973_p4 = pnand %p25971_p1, %p26280_p10 }
  0x37   : > { %p25974_p5 = pneg %p25973_p4 }
  0x39   : > { %p25979_p9 = pnand %p25977_p6, %p25974_p5 }
  0x3b   : > { %25982 = shalt.err (!%p25979_p9)
}
  0x3c   : > { %s25983_s13 = scalar_lea.vmem %s26270_s16, 32  ;;  %p25991_p0 = scmp.lt.s32.totalorder %s26270_s16, %s26270_s16 }
  0x3d   : > { %p25984_p11 = scmp.ne.s32.totalorder %s26270_s16, %s25983_s13  ;;  %p25992_p2 = scmp.lt.s32.totalorder %s25983_s13, %s25983_s13 }
  0x3f   : > { %p25986_p12 = pnand %p25984_p11, %p26280_p10  ;;  %p25993_p3 = por %p25992_p2, %p25991_p0 }
  0x41   : > { %p25987_p13 = pneg %p25986_p12 }
  0x43   : > { %p25994_p7 = pnand %p25993_p3, %p25987_p13 }
  0x45   : > { %25997 = shalt.err (!%p25994_p7)
}
  0x46   : > { %24171 = dma.hbm_to_vmem [thread:$0]  (!%p26266_p8), %s30461_s2, 32, %s26270_s16, [#allocation6]  }
  0x47   : > { %s26323_s15 = sadd.s32 1, %s26160_s30   ;;  %s133_s17 = sadd.s32 1, %s26156_s29 }
  0x48   : > { %30462 = sst [smem:[#allocation16_spill]] %s26323_s15  ;;  %s130_s18 = ssub.s32 %s26160_s30, %s26323_s15 }
  0x49   : > { %p140_p1 = scmp.ne.s32.totalorder %s26156_s29, %s26152_s28  ;;  %p131_p4 = scmp.eq.s32.totalorder %s130_s18, 0 }
  0x4a   : > { %p141_p5 = scmp.eq.s32.totalorder %s26160_s30, 0  ;;  %p24189_p6 = scmp.lt.s32.totalorder %s26160_s30, 2 }
  0x4b   : > { %s299_s19 = sand.u32 1, %s26160_s30   ;;  %s30443_s21 = sand.u32 1, %s26156_s29  }
  0x4c   : > { %s26334_s20 = scalar_select %p131_p4, %s26156_s29, %s133_s17  }
  0x4d   : > { %p142_p9 = por %p141_p5, %p140_p1  ;;  %s24143_s23 = smul.u32 107520, %s26160_s30 }
  0x4e   : > { %30463 = sst [smem:[#allocation17_spill]] %s26334_s20  ;;  %s24142_s24 = smul.u32 6720, %s30443_s21 }
  0x4f   : > { %p26340_p11 = pnand %p24189_p6, %p142_p9  ;;  %s30465_s5 = sld [smem:[#allocation20_spill]] }
  0x50   : > { %s303_s17 = scalar_lea.vmem [#allocation10], %s24142_s24  ;;  %s26351_s21 = scalar_lea.sflag [#allocation4], %s299_s19 }
  0x51   : > { %s30464_s13 = scalar_select %p26340_p11, 1, 0 }
  0x52   : > { %s310_s18 = sshll.u32 %s303_s17, 4  ;;  %p30450_p13 = pneg %p26340_p11  ;;  %s26349_s18 = int_to_ptr.vmem [resolvable:$true] %s310_s18 }
  0x55   : > { %s26347_s12 = scalar_lea.hbm %s30465_s5, %s24143_s23  ;;  %s26003_s25 = scalar_lea.hbm %s30465_s5, 215040 }
  0x56   : > { %s25998_s26 = scalar_lea.hbm %s26347_s12, 107520  ;;  %p26004_p3 = scmp.lt.u32.totalorder %s26347_s12, %s30465_s5 }
  0x57   : > { %p25999_p12 = scmp.ne.s32.totalorder %s26347_s12, %s25998_s26  ;;  %p26005_p7 = scmp.lt.u32.totalorder %s26003_s25, %s25998_s26 }
  0x58   : > { %p26007_p4 = scmp.lt.u32.totalorder %s25998_s26, %s26347_s12 }
  0x59   : > { %p26001_p0 = pnand %p30450_p13, %p25999_p12  ;;  %p26006_p1 = por %p26005_p7, %p26004_p3 }
  0x5b   : > { %p26002_p2 = pneg %p26001_p0  ;;  %p26008_p5 = por %p26007_p4, %p26006_p1 }
  0x5d   : > { %p26009_p6 = pnand %p26008_p5, %p26002_p2 }
  0x5f   : > { %26012 = shalt.err (!%p26009_p6)
}
  0x60   : > { %s26013_s19 = scalar_lea.vmem %s26349_s18, 107520  ;;  %s26166_s24 = smov [#allocation10]  }
  0x61   : > { %p26014_p9 = scmp.ne.s32.totalorder %s26349_s18, %s26013_s19  ;;  %s26018_s17 = sshll.u32 %s26166_s24, 4  ;;  %s26019_s17 = int_to_ptr.vmem [resolvable:$false] %s26018_s17 }
  0x62   : > { %s26020_s1 = scalar_lea.vmem %s26019_s17, 215040  ;;  %p26021_p8 = scmp.lt.s32.totalorder %s26349_s18, %s26019_s17 }
  0x63   : > { %p26016_p12 = pnand %p26014_p9, %p30450_p13  ;;  %p26022_p3 = scmp.lt.s32.totalorder %s26020_s1, %s26013_s19 }
  0x65   : > { %p26017_p0 = pneg %p26016_p12  ;;  %p26023_p7 = por %p26022_p3, %p26021_p8 }
  0x67   : > { %p26024_p1 = pnand %p26023_p7, %p26017_p0 }
  0x69   : > { %26027 = shalt.err (!%p26024_p1)
}
  0x6a   : > { %s26167_s26 = smov 64   ;;  %s26168_s27 = smov 4  }
  0x6b   : > { %24181 = dma.hbm_to_vmem [thread:$0]  (!%p26340_p11), %s26347_s12, 107520, %s26349_s18, %s26351_s21, %s26167_s26, %s26167_s26, %s26168_s27  }
  0x6c   : > { %s26169_s23 = smov [#allocation7]   ;;  %s26170_s25 = smov [#allocation8]  }
  0x6d   : > { %s274_s16 = sshll.u32 %s26169_s23, 4  ;;  %s288_s24 = sshll.u32 %s26170_s25, 4  ;;  %s275_s16 = int_to_ptr.vmem [resolvable:$true] %s274_s16  ;;  %s289_s24 = int_to_ptr.vmem [resolvable:$true] %s288_s24 }
  0x6e   : > { %s26028_s19 = scalar_lea.hbm %s30434_s3, 16128 }
  0x6f   : > { %p26029_p8 = scmp.ne.s32.totalorder %s30434_s3, %s26028_s19  ;;  %p26035_p5 = scmp.lt.u32.totalorder %s26028_s19, %s30434_s3 }
  0x71   : > { %p26031_p2 = pnand %p26029_p8, %p26280_p10 }
  0x73   : > { %p26032_p4 = pneg %p26031_p2 }
  0x75   : > { %p26037_p6 = pnand %p26035_p5, %p26032_p4 }
  0x77   : > { %26040 = shalt.err (!%p26037_p6)
}
  0x78   : > { %s26041_s12 = scalar_lea.vmem %s275_s16, 16128  ;;  %p26049_p3 = scmp.lt.s32.totalorder %s275_s16, %s275_s16 }
  0x79   : > { %p26042_p9 = scmp.ne.s32.totalorder %s275_s16, %s26041_s12  ;;  %p26050_p7 = scmp.lt.s32.totalorder %s26041_s12, %s26041_s12 }
  0x7b   : > { %p26044_p12 = pnand %p26042_p9, %p26280_p10  ;;  %p26051_p1 = por %p26050_p7, %p26049_p3 }
  0x7d   : > { %p26045_p0 = pneg %p26044_p12 }
  0x7f   : > { %p26052_p13 = pnand %p26051_p1, %p26045_p0 }
  0x81   : > { %26055 = shalt.err (!%p26052_p13)
}
  0x82   : > { %p30466_p8 = scmp.ne.s32.totalorder %s30458_s14, 0  ;;  %s30467_s2 = smov 8  }
  0x83   : > { %s30468_s5 = smov 128   ;;  %s26056_s27 = scalar_lea.hbm %s30435_s4, 32 }
  0x84   : > { %24174 = dma.hbm_to_vmem [thread:$0]  (!%p30466_p8), %s30434_s3, 16128, %s275_s16, [#allocation6], %s30468_s5, %s30468_s5, %s30467_s2  }
  0x85   : > { %p26057_p2 = scmp.ne.s32.totalorder %s30435_s4, %s26056_s27  ;;  %p26063_p5 = scmp.lt.u32.totalorder %s26056_s27, %s30435_s4 }
  0x87   : > { %p26059_p13 = pnand %p26057_p2, %p26280_p10 }
  0x89   : > { %p26060_p4 = pneg %p26059_p13 }
  0x8b   : > { %p26065_p6 = pnand %p26063_p5, %p26060_p4 }
  0x8d   : > { %26068 = shalt.err (!%p26065_p6)
}
  0x8e   : > { %s26069_s1 = scalar_lea.vmem %s289_s24, 32  ;;  %p26077_p3 = scmp.lt.s32.totalorder %s289_s24, %s289_s24 }
  0x8f   : > { %p26070_p9 = scmp.ne.s32.totalorder %s289_s24, %s26069_s1  ;;  %p26078_p7 = scmp.lt.s32.totalorder %s26069_s1, %s26069_s1 }
  0x91   : > { %p26072_p12 = pnand %p26070_p9, %p26280_p10  ;;  %p26079_p1 = por %p26078_p7, %p26077_p3 }
  0x93   : > { %p26073_p0 = pneg %p26072_p12 }
  0x95   : > { %p26080_p11 = pnand %p26079_p1, %p26073_p0 }
  0x97   : > { %26083 = shalt.err (!%p26080_p11)
}
  0x98   : > { %24177 = dma.hbm_to_vmem [thread:$0]  (!%p30466_p8), %s30435_s4, 32, %s289_s24, [#allocation9]  }
  0x99   : > { %s19563_s2 = sshll.u32 %s26160_s30, 4  ;;  %s30469_s5 = sand.u32 1, %s26156_s29  }
  0x9a   : > { %s323_s15 = scalar_lea.vmem [#allocation11], %s30469_s5  ;;  %s328_s26 = scalar_lea.hbm %s30437_s6, %s19563_s2 }
  0x9b   : > { %s330_s22 = sshll.u32 %s323_s15, 4  ;;  %s26084_s27 = scalar_lea.hbm %s328_s26, 16  ;;  %s331_s22 = int_to_ptr.vmem [resolvable:$true] %s330_s22 }
  0x9c   : > { %p26085_p10 = scmp.ne.s32.totalorder %s328_s26, %s26084_s27  ;;  %p30470_p11 = scmp.ne.s32.totalorder %s30464_s13, 0 }
  0x9d   : > { %s26089_s25 = scalar_lea.hbm %s30437_s6, 32  ;;  %p26090_p8 = scmp.lt.u32.totalorder %s328_s26, %s30437_s6 }
  0x9e   : > { %p30471_p2 = pneg %p30470_p11  ;;  %p26091_p5 = scmp.lt.u32.totalorder %s26089_s25, %s26084_s27 }
  0x9f   : > { %p26093_p9 = scmp.lt.u32.totalorder %s26084_s27, %s328_s26 }
  0xa0   : > { %p26087_p13 = pnand %p26085_p10, %p30471_p2  ;;  %p26092_p6 = por %p26091_p5, %p26090_p8 }
  0xa2   : > { %p26088_p4 = pneg %p26087_p13  ;;  %p26094_p12 = por %p26093_p9, %p26092_p6 }
  0xa4   : > { %p26095_p0 = pnand %p26094_p12, %p26088_p4 }
  0xa6   : > { %26098 = shalt.err (!%p26095_p0)
}
  0xa7   : > { %s26099_s17 = scalar_lea.vmem %s331_s22, 16  ;;  %p30472_p7 = pmov %p30471_p2 }
  0xa8   : > { %p26100_p3 = scmp.ne.s32.totalorder %s331_s22, %s26099_s17  ;;  %s26171_s19 = smov [#allocation11]  }
  0xa9   : > { %s26104_s1 = sshll.u32 %s26171_s19, 4  ;;  %s26105_s1 = int_to_ptr.vmem [resolvable:$false] %s26104_s1 }
  0xaa   : > { %p26102_p1 = pnand %p26100_p3, %p30472_p7  ;;  %s26106_s16 = scalar_lea.vmem %s26105_s1, 32 }
  0xab   : > { %p26107_p2 = scmp.lt.s32.totalorder %s331_s22, %s26105_s1  ;;  %p26108_p13 = scmp.lt.s32.totalorder %s26106_s16, %s26099_s17 }
  0xac   : > { %p26103_p10 = pneg %p26102_p1 }
  0xad   : > { %p26109_p5 = por %p26108_p13, %p26107_p2 }
  0xaf   : > { %p26110_p8 = pnand %p26109_p5, %p26103_p10 }
  0xb1   : > { %26113 = shalt.err (!%p26110_p8)
}
  0xb2   : > { %24184 = dma.hbm_to_vmem [thread:$0]  (!%p30470_p11), %s328_s26, 16, %s331_s22, %s26351_s21  }
  0xb3   : > { %p30473_p4 = scmp.ne.s32.totalorder %s30457_s11, 0 }
  0xb4   : > { %p30474_p6 = scmp.eq.s32.totalorder (!%p30473_p4), %s26245_s9, 0 }
  0xb5   : > { %348 = sbr.rel (%p30473_p4) target bundleno = 3825 (0xef1), region = 52 }
  0xbc   : > { %26131 = dma.done.wait (%p30474_p6), [#allocation4], 13824   ;;  %p30475_p9 = pmov %p30474_p6 }
  0xbd   : > { %p30476_p12 = pmov %p30474_p6 }
  0xbe   : > { %26133 = vsyncadd (%p30475_p9), [#allocation4], 4294953472 }
  0xbf   : > { %26135 = dma.done.wait (%p30476_p12), [#allocation6], 16160   ;;  %p30477_p0 = pmov %p30474_p6 }
  0xc1   : > { %26137 = vsyncadd (%p30477_p0), [#allocation6], 4294951136  ;;  %p30478_p3 = pmov %p30477_p0 }
  0xc2   : > { %p30479_p11 = pmov %p30477_p0 }
  0xc3   : > { %26139 = dma.done.wait (%p30478_p3), [#allocation9], 32  }
  0xc4   : > { %26141 = vsyncadd (%p30479_p11), [#allocation9], 4294967264  ;;  %s366_s11 = sand.u32 1, %s26245_s9   ;;  %s368_s21 = sand.u32 1, %s26152_s28  }
  0xc5   : > { %s24144_s13 = smul.u32 6720, %s368_s21  ;;  %s367_s12 = scalar_lea.sflag [#allocation4], %s366_s11 }
  0xc6   : > { %p30480_p7 = scmp.ne.s32.totalorder %s30456_s10, 0 }
  0xc7   : > { %s26455_s2 = scalar_lea.vmem [#allocation10], %s24144_s13 }
  0xc8   : > { %26143 = dma.done.wait (%p30480_p7), %s367_s12, 107536  }
  0xc9   : > { %26145 = vsyncadd (%p30480_p7), %s367_s12, 4294859760  ;;  %s19569_s5 = sshll.u32 %s26245_s9, 4  ;;  %p425_p10 = scmp.lt.s32.totalorder %s26245_s9, 1 }
  0xca   : > { %p420_p1 = scmp.lt.s32.totalorder %s19569_s5, 31  ;;  %s26474_s25 = scalar_lea.vmem [#allocation11], %s368_s21 }
  0xcb   : > { %s426_s15 = scalar_select %p425_p10, %s26245_s9, 1 }
  0xcc   : > { %s30496_s5 = smov (!%p420_p1, %s19569_s5), 31  ;;  %p30481_p2 = scmp.ne.s32.totalorder %s26245_s9, 0 }
  0xcd   : > { %s19570_s22 = sshll.u32 %s30496_s5, 2  ;;  %s19571_s27 = sshll.u32 %s426_s15, 1  ;;  %v26481_v0 = vld [vmem:[%s30431_s0] sm:$0xff] (!%p30481_p2)   ;;  %v26486_v1 = vld [vmem:[%s30431_s0 + $0x8] sm:$0xff] (!%p30481_p2)   ;;  %v24248_v6 = vld [vmem:[#allocation3 + $0x74] ss:$8 sps:$4 sm:$0xff] (!%p30481_p2)  }
  0xce   : > { %s26467_s26 = scalar_lea.vmem %s30438_s7, %s19570_s22  ;;  %s26472_s10 = scalar_lea.vmem %s30439_s8, %s19571_s27  ;;  %v24245_v2 = vld [vmem:[#allocation3 + $0x64] ss:$8 sps:$4 sm:$0xff] (!%p30481_p2)   ;;  %v24247_v3 = vld [vmem:[#allocation3 + $0x60] ss:$8 sps:$4 sm:$0xff] (!%p30481_p2)   ;;  %v878_v4 = vshrl.u32 (!%p30481_p2), %v26481_v0, 16  ;;  %v880_v5 = vshll.u32 (!%p30481_p2), %v26481_v0, 16 }
  0xcf   : > { %433 = sbr.rel (%p30481_p2) target bundleno = 2171 (0x87b), region = 80  ;;  %s26172_s1 = smov (!%p30481_p2), 122   ;;  %545 = vmatprep.subr.bf16.mxu0 (!%p30481_p2), %v24245_v2  ;;  %v884_v7 = vshll.u32 (!%p30481_p2), %v26486_v1, 16  ;;  %v24250_v8 = vld [vmem:[#allocation3 + $0x70] ss:$8 sps:$4 sm:$0xff] (!%p30481_p2)   ;;  %v888_v13 = vshrl.u32 (!%p30481_p2), %v26486_v1, 16 }
  0xd0   : > { %474 = vrot.lane.b32.xlu0 (!%p30481_p2), %v26481_v0, %s26172_s1  ;;  %s26173_s16 = smov (!%p30481_p2), 116   ;;  %546 = vmatpush1.bf16.msra.mxu0 (!%p30481_p2), %v24247_v3  ;;  %vm877_vm0 = vsmask.f32 (!%p30481_p2), 7424  ;;  %v882_v9 = vrot.slane (!%p30481_p2), %v880_v5, 1  ;;  %v24251_v11 = vld [vmem:[#allocation3 + $0x84] ss:$8 sps:$4 sm:$0xff] (!%p30481_p2)  }
  0xd1   : > { %730 = vrot.lane.b32.xlu1 (!%p30481_p2), %v26481_v0, %s26173_s16  ;;  %v886_v10 = vrot.slane (!%p30481_p2), %v884_v7, 1  ;;  %547 = vmatprep.subr.bf16.mxu0 (!%p30481_p2), %v24248_v6  ;;  %v26174_v14 = vmov (!%p30481_p2), 0   ;;  %v24253_v16 = vld [vmem:[#allocation3 + $0x80] ss:$8 sps:$4 sm:$0xff] (!%p30481_p2)   ;;  %v24254_v17 = vld [vmem:[#allocation3 + $0x94] ss:$8 sps:$4 sm:$0xff] (!%p30481_p2)  }
  0xd2   : > { %v883_v12 = vor.u32 (!%p30481_p2), %v882_v9, %v878_v4  ;;  %577 = vmatprep.mubr.bf16.mxu0 (!%p30481_p2), %v26174_v14  ;;  %1921 = vmatprep.mubr.bf16.mxu1 (!%p30481_p2), %v26174_v14  ;;  %v24263_v18 = vld [vmem:[%s30431_s0 + $0x10] ss:$0 sps:$4 sm:$0x11] (!%p30481_p2)   ;;  %v24257_v22 = vld [vmem:[#allocation3 + $0xa4] ss:$8 sps:$4 sm:$0xff] (!%p30481_p2)   ;;  %v1325_v29 = vrot.slane (!%p30481_p2), %v26481_v0, 1 }
  0xd3   : > { %v890_v19 = vor.u32 (!%p30481_p2), %v888_v13, %v886_v10  ;;  %v892_v20 = vshll.u32 (!%p30481_p2), %v24263_v18, 16  ;;  %v24256_v21 = vld [vmem:[#allocation3 + $0x90] ss:$8 sps:$4 sm:$0xff] (!%p30481_p2)   ;;  %v24259_v25 = vld [vmem:[#allocation3 + $0xa0] ss:$8 sps:$4 sm:$0xff] (!%p30481_p2)   ;;  %v1326_v30 = vrot.slane (!%p30481_p2), %v26486_v1, 1 }
  0xd4   : > { %476 = vrot.lane.b32.xlu0 (!%p30481_p2), %v26486_v1, %s26172_s1  ;;  %548 = vmatpush1.bf16.msra.mxu0 (!%p30481_p2), %v24250_v8  ;;  %v26503_v15 = vsel (!%p30481_p2), %vm877_vm0, %v883_v12, %v886_v10  ;;  %v24260_v26 = vld [vmem:[#allocation3 + $0xb4] ss:$8 sps:$4 sm:$0xff] (!%p30481_p2)   ;;  %v24262_v27 = vld [vmem:[#allocation3 + $0xb0] ss:$8 sps:$4 sm:$0xff] (!%p30481_p2)   ;;  %v24266_v28 = vld [vmem:[#allocation3 + $0x4] ss:$8 sps:$4 sm:$0xff] (!%p30481_p2)  }
  0xd5   : > { %732 = vrot.lane.b32.xlu1 (!%p30481_p2), %v26486_v1, %s26173_s16  ;;  %549 = vmatprep.subr.bf16.mxu0 (!%p30481_p2), %v24251_v11  ;;  %v894_v23 = vrot.slane (!%p30481_p2), %v892_v20, 1  ;;  %vm1324_vm1 = vcmask (!%p30481_p2), 1046528   ;;  %v1328_v32 = vrot.slane (!%p30481_p2), %v24263_v18, 1  ;;  %v24264_v34 = vld [vmem:[#allocation3] ss:$8 sps:$4 sm:$0xff] (!%p30481_p2)   ;;  %vm538_vm2 = vcmask (!%p30481_p2), 785408  }
  0xd6   : > { %v26522_v31 = vsel %vm1324_vm1, %v1325_v29, %v1326_v30  ;;  %v24269_v35 = vld [vmem:[#allocation3 + $0x14] ss:$8 sps:$4 sm:$0xff]   ;;  %v24267_v37 = vld [vmem:[#allocation3 + $0x10] ss:$8 sps:$4 sm:$0xff]   ;;  %v24272_v38 = vld [vmem:[#allocation3 + $0x24] ss:$8 sps:$4 sm:$0xff]  }
  0xd7   : > { %v26513_v24 = vsel %vm877_vm0, %v890_v19, %v894_v23  ;;  %v26529_v33 = vsel %vm1324_vm1, %v1326_v30, %v1328_v32  ;;  %v24270_v39 = vld [vmem:[#allocation3 + $0x20] ss:$8 sps:$4 sm:$0xff]   ;;  %v24275_v40 = vld [vmem:[#allocation3 + $0x34] ss:$8 sps:$4 sm:$0xff]   ;;  %v24273_v42 = vld [vmem:[#allocation3 + $0x30] ss:$8 sps:$4 sm:$0xff]  }
  0xd8   : > { %1036 = vrot.lane.b32.xlu0 %v26503_v15, %s26172_s1  ;;  %550 = vmatpush1.bf16.msra.mxu0 %v24253_v16  ;;  %v24278_v43 = vld [vmem:[#allocation3 + $0x44] ss:$8 sps:$4 sm:$0xff]   ;;  %v24276_v44 = vld [vmem:[#allocation3 + $0x40] ss:$8 sps:$4 sm:$0xff]   ;;  %v24281_v45 = vld [vmem:[#allocation3 + $0x54] ss:$8 sps:$4 sm:$0xff]  }
  0xd9   : > { %551 = vmatprep.subr.bf16.mxu0 %v24254_v17  ;;  %1038 = vrot.lane.b32.xlu1 %v26513_v24, %s26172_s1  ;;  %v24279_v46 = vld [vmem:[#allocation3 + $0x50] ss:$8 sps:$4 sm:$0xff]   ;;  %v24284_v47 = vld [vmem:[#allocation3 + $0xc4] ss:$8 sps:$4 sm:$0xff]   ;;  %v24282_v48 = vld [vmem:[#allocation3 + $0xc0] ss:$8 sps:$4 sm:$0xff]  }
  0xda   : > { %v24287_v49 = vld [vmem:[#allocation3 + $0xd4] ss:$8 sps:$4 sm:$0xff]   ;;  %v24285_v50 = vld [vmem:[#allocation3 + $0xd0] ss:$8 sps:$4 sm:$0xff]   ;;  %v24290_v51 = vld [vmem:[#allocation3 + $0xe4] ss:$8 sps:$4 sm:$0xff]  }
  0xdb   : > { %v24288_v52 = vld [vmem:[#allocation3 + $0xe0] ss:$8 sps:$4 sm:$0xff]   ;;  %v24293_v53 = vld [vmem:[#allocation3 + $0xf4] ss:$8 sps:$4 sm:$0xff]   ;;  %v24291_v54 = vld [vmem:[#allocation3 + $0xf0] ss:$8 sps:$4 sm:$0xff]  }
  0xdc   : > { %1180 = vrot.lane.b32.xlu0 %v26503_v15, %s26173_s16  ;;  %552 = vmatpush1.bf16.msra.mxu0 %v24256_v21  ;;  %v24296_v55 = vld [vmem:[#allocation3 + $0x104] ss:$8 sps:$4 sm:$0xff]   ;;  %v24294_v56 = vld [vmem:[#allocation3 + $0x100] ss:$8 sps:$4 sm:$0xff]   ;;  %v24299_v57 = vld [vmem:[#allocation3 + $0x114] ss:$8 sps:$4 sm:$0xff]  }
  0xdd   : > { %553 = vmatprep.subr.bf16.mxu0 %v24257_v22  ;;  %1182 = vrot.lane.b32.xlu1 %v26513_v24, %s26173_s16  ;;  %v24297_v58 = vld [vmem:[#allocation3 + $0x110] ss:$8 sps:$4 sm:$0xff]   ;;  %v24302_v59 = vld [vmem:[#allocation3 + $0x124] ss:$8 sps:$4 sm:$0xff]   ;;  %v24300_v61 = vld [vmem:[#allocation3 + $0x120] ss:$8 sps:$4 sm:$0xff]  }
  0xde   : > { %v24305_v62 = vld [vmem:[#allocation3 + $0x134] ss:$8 sps:$4 sm:$0xff]   ;;  %v24303_v63 = vld [vmem:[#allocation3 + $0x130] ss:$8 sps:$4 sm:$0xff]   ;;  %v24314_v5 = vld [vmem:[#allocation3 + $0x164] ss:$8 sps:$4 sm:$0xff]  }
  0xdf   : > { %v24311_v2 = vld [vmem:[#allocation3 + $0x154] ss:$8 sps:$4 sm:$0xff]   ;;  %v24309_v4 = vld [vmem:[#allocation3 + $0x150] ss:$8 sps:$4 sm:$0xff]   ;;  %v24312_v6 = vld [vmem:[#allocation3 + $0x160] ss:$8 sps:$4 sm:$0xff]  }
  0xe0   : > { %554 = vmatpush1.bf16.msra.mxu0 %v24259_v25  ;;  %1470 = vrot.lane.b32.xlu0 %v26522_v31, %s26172_s1  ;;  %v24317_v7 = vld [vmem:[#allocation3 + $0x174] ss:$8 sps:$4 sm:$0xff]   ;;  %v24315_v8 = vld [vmem:[#allocation3 + $0x170] ss:$8 sps:$4 sm:$0xff]   ;;  %v24320_v9 = vld [vmem:[#allocation3 + $0x184] ss:$8 sps:$4 sm:$0xff]  }
  0xe1   : > { %555 = vmatprep.subr.bf16.mxu0 %v24260_v26  ;;  %1472 = vrot.lane.b32.xlu1 %v26529_v33, %s26172_s1  ;;  %v24318_v10 = vld [vmem:[#allocation3 + $0x180] ss:$8 sps:$4 sm:$0xff]   ;;  %v24323_v11 = vld [vmem:[#allocation3 + $0x194] ss:$8 sps:$4 sm:$0xff]   ;;  %v24321_v13 = vld [vmem:[#allocation3 + $0x190] ss:$8 sps:$4 sm:$0xff]  }
  0xe2   : > { %v26551_v12 = vld [vmem:[#allocation7 + $0x74] ss:$8 sps:$4 sm:$0xff]   ;;  %v26554_v16 = vld [vmem:[#allocation7 + $0x70] ss:$8 sps:$4 sm:$0xff]   ;;  %v24326_v17 = vld [vmem:[#allocation3 + $0x1a4] ss:$8 sps:$4 sm:$0xff]  }
  0xe3   : > { %v26556_v18 = vld [vmem:[#allocation7 + $0x84] ss:$8 sps:$4 sm:$0xff]   ;;  %1889 = vmatprep.subr.bf16.mxu1 %v26551_v12  ;;  %v24329_v20 = vld [vmem:[#allocation3 + $0x1b4] ss:$8 sps:$4 sm:$0xff]   ;;  %vm1882_vm3 = vcmask 916480   ;;  %s26175_s21 = smov 112  }
  0xe4   : > { %556 = vmatpush1.bf16.msra.mxu0 %v24262_v27  ;;  %1614 = vrot.lane.b32.xlu0 %v26522_v31, %s26173_s16  ;;  %v24324_v19 = vld [vmem:[#allocation3 + $0x1a0] ss:$8 sps:$4 sm:$0xff]   ;;  %v24327_v22 = vld [vmem:[#allocation3 + $0x1b0] ss:$8 sps:$4 sm:$0xff]   ;;  %v24332_v25 = vld [vmem:[#allocation3 + $0x1c4] ss:$8 sps:$4 sm:$0xff]  }
  0xe5   : > { %664 = vmatprep.subr.bf16.mxu0 %v24266_v28  ;;  %1616 = vrot.lane.b32.xlu1 %v26529_v33, %s26173_s16  ;;  %v26563_v21 = vld [vmem:[#allocation7 + $0x94] ss:$8 sps:$4 sm:$0xff]   ;;  %v26565_v23 = vld [vmem:[#allocation7 + $0x90] ss:$8 sps:$4 sm:$0xff]   ;;  %v26570_v26 = vld [vmem:[#allocation7 + $0xa4] ss:$8 sps:$4 sm:$0xff]  }
  0xe6   : > { %1890 = vmatpush1.bf16.msra.mxu1 %v26554_v16  ;;  %v24330_v27 = vld [vmem:[#allocation3 + $0x1c0] ss:$8 sps:$4 sm:$0xff]   ;;  %v24335_v29 = vld [vmem:[#allocation3 + $0x1d4] ss:$8 sps:$4 sm:$0xff]   ;;  %s26176_s13 = smov 96   ;;  %s26177_s27 = smov 16  }
  0xe7   : > { %1891 = vmatprep.subr.bf16.mxu1 %v26556_v18  ;;  %v26574_v28 = vld [vmem:[#allocation7 + $0xa0] ss:$8 sps:$4 sm:$0xff]   ;;  %v26577_v30 = vld [vmem:[#allocation7 + $0xb4] ss:$8 sps:$4 sm:$0xff]   ;;  %v26582_v32 = vld [vmem:[#allocation7 + $0xb0] ss:$8 sps:$4 sm:$0xff]  }
  0xe8   : > { %vm3435_vm4 = vcmask 130048   ;;  %vm3262_vm5 = vcmask 1043456   ;;  %vm3263_vm6 = vcmask 785412   ;;  %vm3268_vm8 = vcmask 1042432  }
  0xe9   : > { %vm27375_vm7 = vmor %vm3263_vm6, %vm3262_vm5  ;;  %vm3269_vm9 = vcmask 784388   ;;  %vm4728_vm11 = vcmask 1044224   ;;  %vm4729_vm12 = vcmask 1047556   ;;  %vm4732_vm13 = vcmask 519168  }
  0xea   : > { %vm27404_vm10 = vmor %vm3269_vm9, %vm3268_vm8  ;;  %vm4738_vm15 = vcmask 1043200  }
  0xeb   : > { %vm28109_vm14 = vmor %vm4729_vm12, %vm4728_vm11 }
 0x142   : > { %v475_v36 = vpop.permute.xlu0 %474 }
 0x143   : > { %19587 = vmatmul.mubr.msk.bf16.vlgmr.msra.gmra.mrb[0].mxu0 %vm538_vm2, %v475_v36  ;;  %v731_v60 = vpop.permute.xlu1 %730  ;;  %v24336_v36 = vld [vmem:[#allocation3 + $0x1e0] ss:$8 sps:$4 sm:$0xff]  }
 0x144   : > { %665 = vmatpush1.bf16.msra.mxu0 %v24264_v34  ;;  %587 = vmatprep.mubr.bf16.mxu0 %v26174_v14  ;;  %v24338_v34 = vld [vmem:[#allocation3 + $0x1e4] ss:$8 sps:$4 sm:$0xff]  }
 0x145   : > { %666 = vmatprep.subr.bf16.mxu0 %v24269_v35 }
 0x146   : > { %v477_v41 = vpop.permute.xlu0 %476 }
 0x147   : > { %v733_v3 = vpop.permute.xlu1 %732 }
 0x148   : > { %667 = vmatpush1.bf16.msra.mxu0 %v24267_v37  ;;  %v24341_v37 = vld [vmem:[#allocation3 + $0x1f4] ss:$8 sps:$4 sm:$0xff]  }
 0x149   : > { %668 = vmatprep.subr.bf16.mxu0 %v24272_v38  ;;  %v24339_v38 = vld [vmem:[#allocation3 + $0x1f0] ss:$8 sps:$4 sm:$0xff]  }
 0x14a   : > { %v1037_v35 = vpop.permute.xlu0 %1036 }
 0x14b   : > { %19588 = vmatmul.mubr.msk.bf16.gmra.mrb[4].mxu0 %vm538_vm2, %v477_v41  ;;  %v1039_v41 = vpop.permute.xlu1 %1038 }
 0x14c   : > { %669 = vmatpush1.bf16.msra.mxu0 %v24270_v39  ;;  %696 = vmatprep.mubr.bf16.mxu0 %v26174_v14  ;;  %v24344_v39 = vld [vmem:[#allocation3 + $0x204] ss:$8 sps:$4 sm:$0xff]  }
 0x14d   : > { %670 = vmatprep.subr.bf16.mxu0 %v24275_v40  ;;  %v24342_v40 = vld [vmem:[#allocation3 + $0x200] ss:$8 sps:$4 sm:$0xff]  }
 0x150   : > { %671 = vmatpush1.bf16.msra.mxu0 %v24273_v42  ;;  %v24347_v42 = vld [vmem:[#allocation3 + $0x214] ss:$8 sps:$4 sm:$0xff]  }
 0x151   : > { %672 = vmatprep.subr.bf16.mxu0 %v24278_v43  ;;  %v24345_v43 = vld [vmem:[#allocation3 + $0x210] ss:$8 sps:$4 sm:$0xff]  }
 0x154   : > { %673 = vmatpush1.bf16.msra.mxu0 %v24276_v44  ;;  %v24350_v44 = vld [vmem:[#allocation3 + $0x224] ss:$8 sps:$4 sm:$0xff]  }
 0x155   : > { %674 = vmatprep.subr.bf16.mxu0 %v24281_v45  ;;  %v24348_v45 = vld [vmem:[#allocation3 + $0x220] ss:$8 sps:$4 sm:$0xff]  }
 0x158   : > { %675 = vmatpush1.bf16.msra.mxu0 %v24279_v46  ;;  %v24353_v46 = vld [vmem:[#allocation3 + $0x234] ss:$8 sps:$4 sm:$0xff]  }
 0x159   : > { %800 = vmatprep.subr.bf16.mxu0 %v24284_v47  ;;  %v24351_v47 = vld [vmem:[#allocation3 + $0x230] ss:$8 sps:$4 sm:$0xff]  }
 0x15b   : > { %19601 = vmatmul.mubr.msk.bf16.vlgmr.msra.gmra.mrb[0].mxu0 %vm538_vm2, %v26481_v0  ;;  %v24308_v0 = vld [vmem:[#allocation3 + $0x144] ss:$8 sps:$4 sm:$0xff]  }
 0x15c   : > { %801 = vmatpush1.bf16.msra.mxu0 %v24282_v48  ;;  %706 = vmatprep.mubr.bf16.mxu0 %v26174_v14  ;;  %v24356_v48 = vld [vmem:[#allocation3 + $0x244] ss:$8 sps:$4 sm:$0xff]  }
 0x15d   : > { %802 = vmatprep.subr.bf16.mxu0 %v24287_v49  ;;  %v1181_v49 = vpop.permute.xlu0 %1180 }
 0x160   : > { %803 = vmatpush1.bf16.msra.mxu0 %v24285_v50  ;;  %v24354_v50 = vld [vmem:[#allocation3 + $0x240] ss:$8 sps:$4 sm:$0xff]  }
 0x161   : > { %804 = vmatprep.subr.bf16.mxu0 %v24290_v51  ;;  %v24359_v51 = vld [vmem:[#allocation3 + $0x254] ss:$8 sps:$4 sm:$0xff]  }
 0x163   : > { %19602 = vmatmul.mubr.msk.bf16.gmra.mrb[4].mxu0 %vm538_vm2, %v26486_v1  ;;  %v24306_v1 = vld [vmem:[#allocation3 + $0x140] ss:$8 sps:$4 sm:$0xff]  }
 0x164   : > { %805 = vmatpush1.bf16.msra.mxu0 %v24288_v52  ;;  %832 = vmatprep.mubr.bf16.mxu0 %v26174_v14  ;;  %v24357_v52 = vld [vmem:[#allocation3 + $0x250] ss:$8 sps:$4 sm:$0xff]  }
 0x165   : > { %806 = vmatprep.subr.bf16.mxu0 %v24293_v53  ;;  %v24362_v53 = vld [vmem:[#allocation3 + $0x264] ss:$8 sps:$4 sm:$0xff]  }
 0x168   : > { %807 = vmatpush1.bf16.msra.mxu0 %v24291_v54  ;;  %v24360_v54 = vld [vmem:[#allocation3 + $0x260] ss:$8 sps:$4 sm:$0xff]  }
 0x169   : > { %808 = vmatprep.subr.bf16.mxu0 %v24296_v55  ;;  %v1183_v55 = vpop.permute.xlu1 %1182 }
 0x16c   : > { %809 = vmatpush1.bf16.msra.mxu0 %v24294_v56  ;;  %v24365_v56 = vld [vmem:[#allocation3 + $0x274] ss:$8 sps:$4 sm:$0xff]  }
 0x16d   : > { %810 = vmatprep.subr.bf16.mxu0 %v24299_v57  ;;  %v24363_v57 = vld [vmem:[#allocation3 + $0x270] ss:$8 sps:$4 sm:$0xff]  }
 0x170   : > { %811 = vmatpush1.bf16.msra.mxu0 %v24297_v58  ;;  %v24368_v58 = vld [vmem:[#allocation3 + $0x284] ss:$8 sps:$4 sm:$0xff]  }
 0x171   : > { %962 = vmatprep.subr.bf16.mxu0 %v24302_v59  ;;  %v24366_v59 = vld [vmem:[#allocation3 + $0x280] ss:$8 sps:$4 sm:$0xff]  }
 0x173   : > { %19615 = vmatmul.mubr.msk.bf16.vlgmr.msra.gmra.mrb[0].mxu0 %vm538_vm2, %v731_v60  ;;  %v24371_v60 = vld [vmem:[#allocation3 + $0x294] ss:$8 sps:$4 sm:$0xff]  }
 0x174   : > { %963 = vmatpush1.bf16.msra.mxu0 %v24300_v61  ;;  %842 = vmatprep.mubr.bf16.mxu0 %v26174_v14  ;;  %v24369_v61 = vld [vmem:[#allocation3 + $0x290] ss:$8 sps:$4 sm:$0xff]  }
 0x175   : > { %964 = vmatprep.subr.bf16.mxu0 %v24305_v62  ;;  %v24374_v62 = vld [vmem:[#allocation3 + $0x2a4] ss:$8 sps:$4 sm:$0xff]  }
 0x178   : > { %965 = vmatpush1.bf16.msra.mxu0 %v24303_v63  ;;  %v24372_v63 = vld [vmem:[#allocation3 + $0x2a0] ss:$8 sps:$4 sm:$0xff]  }
 0x179   : > { %966 = vmatprep.subr.bf16.mxu0 %v24308_v0  ;;  %v24377_v0 = vld [vmem:[#allocation3 + $0x2b4] ss:$8 sps:$4 sm:$0xff]  }
 0x17b   : > { %19616 = vmatmul.mubr.msk.bf16.gmra.mrb[4].mxu0 %vm538_vm2, %v733_v3  ;;  %v24378_v3 = vld [vmem:[#allocation3 + $0x2c0] ss:$8 sps:$4 sm:$0xff]  }
 0x17c   : > { %967 = vmatpush1.bf16.msra.mxu0 %v24306_v1  ;;  %994 = vmatprep.mubr.bf16.mxu0 %v26174_v14  ;;  %v24375_v1 = vld [vmem:[#allocation3 + $0x2b0] ss:$8 sps:$4 sm:$0xff]  }
 0x17d   : > { %968 = vmatprep.subr.bf16.mxu0 %v24311_v2  ;;  %v24380_v2 = vld [vmem:[#allocation3 + $0x2c4] ss:$8 sps:$4 sm:$0xff]  }
 0x180   : > { %969 = vmatpush1.bf16.msra.mxu0 %v24309_v4  ;;  %v24383_v4 = vld [vmem:[#allocation3 + $0x2d4] ss:$8 sps:$4 sm:$0xff]  }
 0x181   : > { %970 = vmatprep.subr.bf16.mxu0 %v24314_v5  ;;  %v24381_v5 = vld [vmem:[#allocation3 + $0x2d0] ss:$8 sps:$4 sm:$0xff]  }
 0x184   : > { %971 = vmatpush1.bf16.msra.mxu0 %v24312_v6  ;;  %v24386_v6 = vld [vmem:[#allocation3 + $0x2e4] ss:$8 sps:$4 sm:$0xff]  }
 0x185   : > { %972 = vmatprep.subr.bf16.mxu0 %v24317_v7  ;;  %v24389_v7 = vld [vmem:[#allocation3 + $0x2f4] ss:$8 sps:$4 sm:$0xff]  }
 0x188   : > { %973 = vmatpush1.bf16.msra.mxu0 %v24315_v8  ;;  %v24387_v8 = vld [vmem:[#allocation3 + $0x2f0] ss:$8 sps:$4 sm:$0xff]  }
 0x189   : > { %1106 = vmatprep.subr.bf16.mxu0 %v24320_v9  ;;  %v24392_v9 = vld [vmem:[#allocation3 + $0x304] ss:$8 sps:$4 sm:$0xff]  }
 0x18b   : > { %19630 = vmatmul.mubr.msk.bf16.vlgmr.msra.gmra.mrb[0].mxu0 %vm538_vm2, %v26503_v15  ;;  %v26561_v15 = vld [vmem:[#allocation7 + $0x80] ss:$8 sps:$4 sm:$0xff]  }
 0x18c   : > { %1107 = vmatpush1.bf16.msra.mxu0 %v24318_v10  ;;  %1004 = vmatprep.mubr.bf16.mxu0 %v26174_v14  ;;  %v1471_v10 = vpop.permute.xlu0 %1470 }
 0x18d   : > { %1108 = vmatprep.subr.bf16.mxu0 %v24323_v11  ;;  %1892 = vmatpush1.bf16.msra.mxu1 %v26561_v15  ;;  %v24390_v11 = vld [vmem:[#allocation3 + $0x300] ss:$8 sps:$4 sm:$0xff]  }
 0x18e   : > { %1893 = vmatprep.subr.bf16.mxu1 %v26563_v21 }
 0x190   : > { %1109 = vmatpush1.bf16.msra.mxu0 %v24321_v13  ;;  %v24395_v13 = vld [vmem:[#allocation3 + $0x314] ss:$8 sps:$4 sm:$0xff]  }
 0x191   : > { %1110 = vmatprep.subr.bf16.mxu0 %v24326_v17  ;;  %1894 = vmatpush1.bf16.msra.mxu1 %v26565_v23  ;;  %v24398_v17 = vld [vmem:[#allocation3 + $0x324] ss:$8 sps:$4 sm:$0xff]  }
 0x192   : > { %1895 = vmatprep.subr.bf16.mxu1 %v26570_v26 }
 0x193   : > { %19631 = vmatmul.mubr.msk.bf16.gmra.mrb[4].mxu0 %vm538_vm2, %v26513_v24  ;;  %v24333_v24 = vld [vmem:[#allocation3 + $0x1d0] ss:$8 sps:$4 sm:$0xff]  }
 0x194   : > { %1111 = vmatpush1.bf16.msra.mxu0 %v24324_v19  ;;  %1138 = vmatprep.mubr.bf16.mxu0 %v26174_v14  ;;  %v24396_v19 = vld [vmem:[#allocation3 + $0x320] ss:$8 sps:$4 sm:$0xff]  }
 0x195   : > { %1112 = vmatprep.subr.bf16.mxu0 %v24329_v20  ;;  %1896 = vmatpush1.bf16.msra.mxu1 %v26574_v28  ;;  %v1473_v20 = vpop.permute.xlu1 %1472 }
 0x196   : > { %1897 = vmatprep.subr.bf16.mxu1 %v26577_v30 }
 0x198   : > { %1113 = vmatpush1.bf16.msra.mxu0 %v24327_v22  ;;  %v24401_v22 = vld [vmem:[#allocation3 + $0x334] ss:$8 sps:$4 sm:$0xff]  }
 0x199   : > { %1114 = vmatprep.subr.bf16.mxu0 %v24332_v25  ;;  %1898 = vmatpush1.bf16.msra.mxu1 %v26582_v32  ;;  %v24399_v25 = vld [vmem:[#allocation3 + $0x330] ss:$8 sps:$4 sm:$0xff]  }
 0x19c   : > { %1115 = vmatpush1.bf16.msra.mxu0 %v24330_v27  ;;  %v24404_v27 = vld [vmem:[#allocation3 + $0x344] ss:$8 sps:$4 sm:$0xff]  }
 0x19d   : > { %1116 = vmatprep.subr.bf16.mxu0 %v24335_v29  ;;  %v24402_v29 = vld [vmem:[#allocation3 + $0x340] ss:$8 sps:$4 sm:$0xff]  }
 0x1a0   : > { %1117 = vmatpush1.bf16.msra.mxu0 %v24333_v24  ;;  %v24407_v24 = vld [vmem:[#allocation3 + $0x354] ss:$8 sps:$4 sm:$0xff]  }
 0x1a1   : > { %1250 = vmatprep.subr.bf16.mxu0 %v24338_v34  ;;  %v24405_v34 = vld [vmem:[#allocation3 + $0x350] ss:$8 sps:$4 sm:$0xff]  }
 0x1a3   : > { %19644 = vmatmul.mubr.msk.bf16.vlgmr.msra.gmra.mrb[0].mxu0 %vm538_vm2, %v1037_v35  ;;  %v1615_v35 = vpop.permute.xlu0 %1614 }
 0x1a4   : > { %1251 = vmatpush1.bf16.msra.mxu0 %v24336_v36  ;;  %1148 = vmatprep.mubr.bf16.mxu0 %v26174_v14  ;;  %v1617_v36 = vpop.permute.xlu1 %1616 }
 0x1a5   : > { %1252 = vmatprep.subr.bf16.mxu0 %v24341_v37 }
 0x1a8   : > { %1253 = vmatpush1.bf16.msra.mxu0 %v24339_v38 }
 0x1a9   : > { %1254 = vmatprep.subr.bf16.mxu0 %v24344_v39 }
 0x1ab   : > { %19645 = vmatmul.mubr.msk.bf16.gmra.mrb[4].mxu0 %vm538_vm2, %v1039_v41 }
 0x1ac   : > { %1255 = vmatpush1.bf16.msra.mxu0 %v24342_v40  ;;  %1282 = vmatprep.mubr.bf16.mxu0 %v26174_v14 }
 0x1ad   : > { %1256 = vmatprep.subr.bf16.mxu0 %v24347_v42 }
 0x1b0   : > { %1257 = vmatpush1.bf16.msra.mxu0 %v24345_v43 }
 0x1b1   : > { %1258 = vmatprep.subr.bf16.mxu0 %v24350_v44 }
 0x1b4   : > { %1259 = vmatpush1.bf16.msra.mxu0 %v24348_v45 }
 0x1b5   : > { %1260 = vmatprep.subr.bf16.mxu0 %v24353_v46 }
 0x1b8   : > { %1261 = vmatpush1.bf16.msra.mxu0 %v24351_v47 }
 0x1b9   : > { %1396 = vmatprep.subr.bf16.mxu0 %v24356_v48 }
 0x1bb   : > { %19658 = vmatmul.mubr.msk.bf16.vlgmr.msra.gmra.mrb[0].mxu0 %vm538_vm2, %v1181_v49 }
 0x1bc   : > { %1397 = vmatpush1.bf16.msra.mxu0 %v24354_v50  ;;  %1292 = vmatprep.mubr.bf16.mxu0 %v26174_v14 }
 0x1bd   : > { %1398 = vmatprep.subr.bf16.mxu0 %v24359_v51 }
 0x1c0   : > { %1399 = vmatpush1.bf16.msra.mxu0 %v24357_v52 }
 0x1c1   : > { %1400 = vmatprep.subr.bf16.mxu0 %v24362_v53 }
 0x1c3   : > { %19659 = vmatmul.mubr.msk.bf16.gmra.mrb[4].mxu0 %vm538_vm2, %v1183_v55 }
 0x1c4   : > { %1401 = vmatpush1.bf16.msra.mxu0 %v24360_v54  ;;  %1428 = vmatprep.mubr.bf16.mxu0 %v26174_v14 }
 0x1c5   : > { %1402 = vmatprep.subr.bf16.mxu0 %v24365_v56  ;;  %v26629_v56 = vld [vmem:[#allocation7] ss:$8 sps:$4 sm:$0xff]  }
 0x1c8   : > { %1403 = vmatpush1.bf16.msra.mxu0 %v24363_v57 }
 0x1c9   : > { %1404 = vmatprep.subr.bf16.mxu0 %v24368_v58 }
 0x1cc   : > { %1405 = vmatpush1.bf16.msra.mxu0 %v24366_v59  ;;  %v26633_v59 = vld [vmem:[#allocation7 + $0x14] ss:$8 sps:$4 sm:$0xff]  }
 0x1cd   : > { %1406 = vmatprep.subr.bf16.mxu0 %v24371_v60 }
 0x1d0   : > { %1407 = vmatpush1.bf16.msra.mxu0 %v24369_v61 }
 0x1d1   : > { %1540 = vmatprep.subr.bf16.mxu0 %v24374_v62 }
 0x1d3   : > { %19672 = vmatmul.mubr.msk.bf16.vlgmr.msra.gmra.mrb[0].mxu0 %vm538_vm2, %v26522_v31  ;;  %v24384_v31 = vld [vmem:[#allocation3 + $0x2e0] ss:$8 sps:$4 sm:$0xff]  }
 0x1d4   : > { %1541 = vmatpush1.bf16.msra.mxu0 %v24372_v63  ;;  %1438 = vmatprep.mubr.bf16.mxu0 %v26174_v14 }
 0x1d5   : > { %1542 = vmatprep.subr.bf16.mxu0 %v24377_v0 }
 0x1d8   : > { %1543 = vmatpush1.bf16.msra.mxu0 %v24375_v1 }
 0x1d9   : > { %1544 = vmatprep.subr.bf16.mxu0 %v24380_v2  ;;  %v26641_v2 = vld [vmem:[#allocation7 + $0x10] ss:$8 sps:$4 sm:$0xff]  }
 0x1db   : > { %19673 = vmatmul.mubr.msk.bf16.gmra.mrb[4].mxu0 %vm538_vm2, %v26529_v33  ;;  %v24393_v33 = vld [vmem:[#allocation3 + $0x310] ss:$8 sps:$4 sm:$0xff]  }
 0x1dc   : > { %1545 = vmatpush1.bf16.msra.mxu0 %v24378_v3  ;;  %1572 = vmatprep.mubr.bf16.mxu0 %v26174_v14 }
 0x1dd   : > { %1546 = vmatprep.subr.bf16.mxu0 %v24383_v4 }
 0x1e0   : > { %1547 = vmatpush1.bf16.msra.mxu0 %v24381_v5  ;;  %v26643_v5 = vld [vmem:[#allocation7 + $0x24] ss:$8 sps:$4 sm:$0xff]  }
 0x1e1   : > { %1548 = vmatprep.subr.bf16.mxu0 %v24386_v6 }
 0x1e4   : > { %1549 = vmatpush1.bf16.msra.mxu0 %v24384_v31 }
 0x1e5   : > { %1550 = vmatprep.subr.bf16.mxu0 %v24389_v7 }
 0x1e8   : > { %1551 = vmatpush1.bf16.msra.mxu0 %v24387_v8 }
 0x1e9   : > { %1684 = vmatprep.subr.bf16.mxu0 %v24392_v9 }
 0x1eb   : > { %19686 = vmatmul.mubr.msk.bf16.vlgmr.msra.gmra.mrb[0].mxu0 %vm538_vm2, %v1471_v10  ;;  %v26657_v10 = vld [vmem:[#allocation7 + $0x20] ss:$8 sps:$4 sm:$0xff]  }
 0x1ec   : > { %1685 = vmatpush1.bf16.msra.mxu0 %v24390_v11  ;;  %1582 = vmatprep.mubr.bf16.mxu0 %v26174_v14  ;;  %v26661_v11 = vld [vmem:[#allocation7 + $0x34] ss:$8 sps:$4 sm:$0xff]  }
 0x1ed   : > { %1686 = vmatprep.subr.bf16.mxu0 %v24395_v13 }
 0x1f0   : > { %1687 = vmatpush1.bf16.msra.mxu0 %v24393_v33 }
 0x1f1   : > { %1688 = vmatprep.subr.bf16.mxu0 %v24398_v17 }
 0x1f3   : > { %19687 = vmatmul.mubr.msk.bf16.gmra.mrb[4].mxu0 %vm538_vm2, %v1473_v20 }
 0x1f4   : > { %1689 = vmatpush1.bf16.msra.mxu0 %v24396_v19  ;;  %1716 = vmatprep.mubr.bf16.mxu0 %v26174_v14  ;;  %v26671_v19 = vld [vmem:[#allocation7 + $0x30] ss:$8 sps:$4 sm:$0xff]  }
 0x1f5   : > { %1690 = vmatprep.subr.bf16.mxu0 %v24401_v22  ;;  %v26676_v22 = vld [vmem:[#allocation7 + $0x44] ss:$8 sps:$4 sm:$0xff]  }
 0x1f8   : > { %1691 = vmatpush1.bf16.msra.mxu0 %v24399_v25 }
 0x1f9   : > { %1692 = vmatprep.subr.bf16.mxu0 %v24404_v27 }
 0x1fc   : > { %1693 = vmatpush1.bf16.msra.mxu0 %v24402_v29  ;;  %v26684_v29 = vld [vmem:[#allocation7 + $0x40] ss:$8 sps:$4 sm:$0xff]  }
 0x1fd   : > { %1694 = vmatprep.subr.bf16.mxu0 %v24407_v24 }
 0x200   : > { %1695 = vmatpush1.bf16.msra.mxu0 %v24405_v34  ;;  %v26688_v34 = vld [vmem:[#allocation7 + $0x54] ss:$8 sps:$4 sm:$0xff]  }
 0x201   : > { %3374 = vmatprep.subr.bf16.mxu0 %v26551_v12  ;;  %v24425_v12 = vld [vmem:[#allocation7 + $0xc4] ss:$8 sps:$4 sm:$0xff]  }
 0x202   : > { %1899 = vmatprep.subr.bf16.mxu1 %v24425_v12 }
 0x203   : > { %19700 = vmatmul.mubr.msk.bf16.vlgmr.msra.gmra.mrb[0].mxu0 %vm538_vm2, %v1615_v35 }
 0x204   : > { %1726 = vmatprep.mubr.bf16.mxu0 %v26174_v14  ;;  %3375 = vmatpush1.bf16.msra.mxu0 %v26554_v16  ;;  %v24423_v16 = vld [vmem:[#allocation7 + $0xc0] ss:$8 sps:$4 sm:$0xff]  }
 0x205   : > { %3376 = vmatprep.subr.bf16.mxu0 %v26556_v18  ;;  %1900 = vmatpush1.bf16.msra.mxu1 %v24423_v16  ;;  %v24428_v18 = vld [vmem:[#allocation7 + $0xd4] ss:$8 sps:$4 sm:$0xff]  }
 0x206   : > { %1901 = vmatprep.subr.bf16.mxu1 %v24428_v18 }
 0x208   : > { %3377 = vmatpush1.bf16.msra.mxu0 %v26561_v15  ;;  %v24426_v15 = vld [vmem:[#allocation7 + $0xd0] ss:$8 sps:$4 sm:$0xff]  }
 0x209   : > { %3378 = vmatprep.subr.bf16.mxu0 %v26563_v21  ;;  %1902 = vmatpush1.bf16.msra.mxu1 %v24426_v15  ;;  %v24434_v21 = vld [vmem:[#allocation7 + $0x4] ss:$8 sps:$4 sm:$0xff]  }
 0x20a   : > { %2018 = vmatprep.subr.bf16.mxu1 %v24434_v21 }
 0x20b   : > { %19701 = vmatmul.mubr.msk.bf16.gmra.mrb[4].mxu0 %vm538_vm2, %v1617_v36 }
 0x20c   : > { %3379 = vmatpush1.bf16.msra.mxu0 %v26565_v23  ;;  %3406 = vmatprep.mubr.bf16.mxu0 %v26174_v14  ;;  %v1747_v23 = vlaneseq }
 0x20d   : > { %3380 = vmatprep.subr.bf16.mxu0 %v26570_v26 }
 0x20e   : > { %v1748_v26 = vshrl.u32 %v1747_v23, 7 }
 0x210   : > { %3381 = vmatpush1.bf16.msra.mxu0 %v26574_v28  ;;  %v26617_v28 = vsub.s32 0, %v1748_v26 }
 0x211   : > { %3382 = vmatprep.subr.bf16.mxu0 %v26577_v30  ;;  %v1745_v30 = vld [vmem:[#allocation5] sm:$0x3] }
 0x212   : > { %v1750_v37 = vrot.slane %v1745_v30, %v26617_v28 }
 0x214   : > { %3383 = vmatpush1.bf16.msra.mxu0 %v26582_v32  ;;  %v26619_v32 = vsub.s32 1, %v1748_v26 }
 0x215   : > { %3384 = vmatprep.subr.bf16.mxu0 %v24425_v12 }
 0x216   : > { %v1754_v38 = vrot.slane %v1745_v30, %v26619_v32 }
 0x218   : > { %3385 = vmatpush1.bf16.msra.mxu0 %v24423_v16 }
 0x219   : > { %3386 = vmatprep.subr.bf16.mxu0 %v24428_v18  ;;  %v26700_v18 = vld [vmem:[#allocation7 + $0x50] ss:$8 sps:$4 sm:$0xff]  }
 0x21c   : > { %3387 = vmatpush1.bf16.msra.mxu0 %v24426_v15 }
 0x21d   : > { %3514 = vmatprep.subr.bf16.mxu0 %v24434_v21  ;;  %v26704_v21 = vld [vmem:[#allocation7 + $0x64] ss:$8 sps:$4 sm:$0xff]  }
 0x2d6   : > { %v1718_v39 = vpop.f32.mrb[0].mxu0 }
 0x2d7   : > { %v1757_v40 = vadd.f32 %v1750_v37, %v1718_v39  ;;  %v1720_v41 = vpop.f32.mrb[1].mxu0  ;;  %v26723_v39 = vld [vmem:[#allocation7 + $0xe4] ss:$8 sps:$4 sm:$0xff]  }
 0x2d8   : > { %v1758_v42 = vadd.f32 %v1754_v38, %v1720_v41  ;;  %v1722_v43 = vpop.f32.mrb[2].mxu0  ;;  %v24429_v41 = vld [vmem:[%s30431_s0 + $0x14] sm:$0xff]  }
 0x2d9   : > { %v1759_v44 = vadd.f32 %v1750_v37, %v1722_v43  ;;  %v1724_v45 = vpop.f32.mrb[3].mxu0  ;;  %v1765_v47 = vmax.f32 %v1757_v40, 0.0  ;;  %v5186_v43 = vshll.u32 %v24429_v41, 16 }
 0x2da   : > { %v1760_v46 = vadd.f32 %v1754_v38, %v1724_v45  ;;  %v1766_v49 = vmax.f32 %v1758_v42, 0.0  ;;  %v24430_v42 = vld [vmem:[%s30431_s0 + $0x1c] sm:$0xff]  }
 0x2db   : > { %v1767_v48 = vmax.f32 %v1759_v44, 0.0 }
 0x2dc   : > { %v1768_v50 = vmax.f32 %v1760_v46, 0.0  ;;  %v5184_v46 = vshrl.u32 %v24429_v41, 16 }
 0x2dd   : > { %v26623_v51 = vpack.c.bf16 %v1767_v48, %v1765_v47  ;;  %v5188_v47 = vrot.slane %v5186_v43, 1  ;;  %v5190_v48 = vshll.u32 %v24430_v42, 16 }
 0x2de   : > { %v26625_v52 = vpack.c.bf16 %v1768_v50, %v1766_v49  ;;  %v1728_v53 = vpop.f32.mrb[4].mxu0  ;;  %v24431_v50 = vld [vmem:[%s30431_s0 + $0x24] ss:$0 sps:$4 sm:$0x11]  }
 0x2df   : > { %v1761_v54 = vadd.f32 %v1750_v37, %v1728_v53  ;;  %1808 = vrot.lane.b32.xlu0 %v26623_v51, %s26175_s21  ;;  %v1730_v55 = vpop.f32.mrb[5].mxu0  ;;  %v2253_v62 = vshll.u32 %v26623_v51, 16  ;;  %v2251_v8 = vshrl.u32 %v26623_v51, 16  ;;  %v2749_v23 = vrot.slane %v26623_v51, 1 }
 0x2e0   : > { %v1762_v57 = vadd.f32 %v1754_v38, %v1730_v55  ;;  %v1732_v58 = vpop.f32.mrb[6].mxu0  ;;  %19864 = vmatmul.mubr.msk.bf16.vlgmr.msra.gmra.mrb[8].mxu0 %vm1882_vm3, %v26625_v52  ;;  %v2575_v20 = vshll.u32 %v26625_v52, 16  ;;  %v2573_v36 = vshrl.u32 %v26625_v52, 16  ;;  %v3060_v45 = vrot.slane %v26625_v52, 1 }
 0x2e1   : > { %v1763_v60 = vadd.f32 %v1750_v37, %v1732_v58  ;;  %v1734_v61 = vpop.f32.mrb[7].mxu0  ;;  %3416 = vmatprep.mubr.bf16.mxu0 %v26174_v14  ;;  %3515 = vmatpush1.bf16.msra.mxu0 %v26629_v56  ;;  %v1769_v0 = vmax.f32 %v1761_v54, 0.0  ;;  %v2255_v31 = vrot.slane %v2253_v62, 1  ;;  %v5189_v53 = vor.u32 %v5188_v47, %v5184_v46  ;;  %v26911_v46 = vld [vmem:[#allocation7 + $0x130] ss:$8 sps:$4 sm:$0xff]  }
 0x2e2   : > { %v1764_v63 = vadd.f32 %v1754_v38, %v1734_v61  ;;  %3516 = vmatprep.subr.bf16.mxu0 %v26633_v59  ;;  %v1770_v3 = vmax.f32 %v1762_v57, 0.0  ;;  %v2577_v24 = vrot.slane %v2575_v20, 1  ;;  %v26719_v38 = vld [vmem:[#allocation7 + $0x60] ss:$8 sps:$4 sm:$0xff]   ;;  %v5192_v54 = vrot.slane %v5190_v48, 1 }
 0x2e3   : > { %v1771_v1 = vmax.f32 %v1763_v60, 0.0  ;;  %2088 = vrot.lane.b32.xlu0 %v26623_v51, %s26176_s13  ;;  %v2256_v13 = vor.u32 %v2255_v31, %v2251_v8  ;;  %v5194_v55 = vshrl.u32 %v24430_v42, 16  ;;  %v5198_v57 = vshll.u32 %v24431_v50, 16  ;;  %v26859_v20 = vld [vmem:[#allocation7 + $0xf4] ss:$8 sps:$4 sm:$0xff]  }
 0x2e4   : > { %v1772_v4 = vmax.f32 %v1764_v63, 0.0  ;;  %v2578_v15 = vor.u32 %v2577_v24, %v2573_v36  ;;  %v26761_v58 = vsel %vm877_vm0, %v5189_v53, %v5192_v54  ;;  %v5627_v62 = vrot.slane %v24429_v41, 1  ;;  %v26871_v24 = vld [vmem:[#allocation7 + $0x104] ss:$8 sps:$4 sm:$0xff]   ;;  %v26921_v53 = vld [vmem:[#allocation7 + $0x140] ss:$8 sps:$4 sm:$0xff]  }
 0x2e5   : > { %v26645_v6 = vpack.c.bf16 %v1771_v1, %v1769_v0  ;;  %3517 = vmatpush1.bf16.msra.mxu0 %v26641_v2  ;;  %v5196_v60 = vor.u32 %v5194_v55, %v5192_v54  ;;  %v5200_v61 = vrot.slane %v5198_v57, 1  ;;  %v5628_v63 = vrot.slane %v24430_v42, 1  ;;  %v26914_v47 = vld [vmem:[#allocation7 + $0x144] ss:$8 sps:$4 sm:$0xff]   ;;  %v26924_v54 = vld [vmem:[#allocation7 + $0x154] ss:$8 sps:$4 sm:$0xff]  }
 0x2e6   : > { %v26648_v7 = vpack.c.bf16 %v1772_v4, %v1770_v3  ;;  %3518 = vmatprep.subr.bf16.mxu0 %v26643_v5  ;;  %v5630_v3 = vrot.slane %v24431_v50, 1  ;;  %v26929_v57 = vld [vmem:[#allocation7 + $0x150] ss:$8 sps:$4 sm:$0xff]  }
 0x2e7   : > { %2092 = vrot.lane.b32.xlu0 %v26645_v6, %s26176_s13  ;;  %1810 = vrot.lane.b32.xlu1 %v26645_v6, %s26175_s21  ;;  %v2257_v9 = vshll.u32 %v26645_v6, 16  ;;  %v2261_v27 = vshrl.u32 %v26645_v6, 16  ;;  %v26698_v16 = vrot.slane %v26645_v6, 1  ;;  %v26770_v0 = vsel %vm877_vm0, %v5196_v60, %v5200_v61  ;;  %v26932_v60 = vld [vmem:[#allocation7 + $0x164] ss:$8 sps:$4 sm:$0xff]  }
 0x2e8   : > { %19865 = vmatmul.mubr.msk.bf16.gmra.mrb[12].mxu0 %vm1882_vm3, %v26648_v7  ;;  %v2580_v25 = vshll.u32 %v26648_v7, 16  ;;  %v2584_v37 = vshrl.u32 %v26648_v7, 16  ;;  %v26740_v44 = vrot.slane %v26648_v7, 1  ;;  %v26773_v1 = vsel %vm1324_vm1, %v5627_v62, %v5628_v63 }
 0x2e9   : > { %v2259_v33 = vrot.slane %v2257_v9, 1  ;;  %3519 = vmatpush1.bf16.msra.mxu0 %v26657_v10  ;;  %3546 = vmatprep.mubr.bf16.mxu0 %v26174_v14  ;;  %v26716_v30 = vsel %vm1324_vm1, %v2749_v23, %v26698_v16  ;;  %v26784_v4 = vsel %vm1324_vm1, %v5628_v63, %v5630_v3  ;;  %v26889_v23 = vld [vmem:[#allocation7 + $0x110] ss:$8 sps:$4 sm:$0xff]   ;;  %v26943_v3 = vld [vmem:[#allocation7 + $0x160] ss:$8 sps:$4 sm:$0xff]  }
 0x2ea   : > { %3520 = vmatprep.subr.bf16.mxu0 %v26661_v11  ;;  %v2582_v12 = vrot.slane %v2580_v25, 1  ;;  %v26749_v49 = vsel %vm1324_vm1, %v3060_v45, %v26740_v44 }
 0x2eb   : > { %2090 = vrot.lane.b32.xlu1 %v26625_v52, %s26176_s13  ;;  %v26669_v17 = vsel %vm877_vm0, %v2256_v13, %v2259_v33  ;;  %v26690_v35 = vor.u32 %v2261_v27, %v2259_v33 }
 0x2ec   : > { %2416 = vrot.lane.b32.xlu0 %v26669_v17, %s26175_s21  ;;  %v26709_v26 = vsel %vm877_vm0, %v2578_v15, %v2582_v12  ;;  %v26725_v40 = vor.u32 %v2584_v37, %v2582_v12  ;;  %v26879_v12 = vld [vmem:[#allocation7 + $0x114] ss:$8 sps:$4 sm:$0xff]   ;;  %v26893_v37 = vld [vmem:[#allocation7 + $0x124] ss:$8 sps:$4 sm:$0xff]  }
 0x2ed   : > { %3521 = vmatpush1.bf16.msra.mxu0 %v26671_v19 }
 0x2ee   : > { %3522 = vmatprep.subr.bf16.mxu0 %v26676_v22 }
 0x2ef   : > { %2094 = vrot.lane.b32.xlu1 %v26648_v7, %s26176_s13 }
 0x2f0   : > { %2587 = vrot.lane.b32.xlu0 %v26669_v17, %s26176_s13 }
 0x2f1   : > { %3523 = vmatpush1.bf16.msra.mxu0 %v26684_v29 }
 0x2f2   : > { %3524 = vmatprep.subr.bf16.mxu0 %v26688_v34 }
 0x2f3   : > { %2418 = vrot.lane.b32.xlu1 %v26690_v35, %s26175_s21 }
 0x2f4   : > { %2591 = vrot.lane.b32.xlu0 %v26690_v35, %s26176_s13 }
 0x2f5   : > { %3525 = vmatpush1.bf16.msra.mxu0 %v26700_v18 }
 0x2f6   : > { %3526 = vmatprep.subr.bf16.mxu0 %v26704_v21 }
 0x2f7   : > { %2589 = vrot.lane.b32.xlu1 %v26709_v26, %s26176_s13 }
 0x2f8   : > { %2904 = vrot.lane.b32.xlu0 %v26716_v30, %s26175_s21 }
 0x2f9   : > { %3527 = vmatpush1.bf16.msra.mxu0 %v26719_v38 }
 0x2fa   : > { %3661 = vmatprep.subr.bf16.mxu0 %v26723_v39 }
 0x2fb   : > { %2593 = vrot.lane.b32.xlu1 %v26725_v40, %s26176_s13 }
 0x2fc   : > { %3063 = vrot.lane.b32.xlu0 %v26716_v30, %s26176_s13 }
 0x2ff   : > { %2906 = vrot.lane.b32.xlu1 %v26698_v16, %s26175_s21 }
 0x300   : > { %3067 = vrot.lane.b32.xlu0 %v26698_v16, %s26176_s13 }
 0x303   : > { %3065 = vrot.lane.b32.xlu1 %v26749_v49, %s26176_s13 }
 0x304   : > { %4784 = vrot.lane.b32.xlu0 %v24429_v41, %s26172_s1 }
 0x307   : > { %3069 = vrot.lane.b32.xlu1 %v26740_v44, %s26176_s13 }
 0x308   : > { %5038 = vrot.lane.b32.xlu0 %v24429_v41, %s26173_s16  ;;  %v26901_v41 = vld [vmem:[#allocation7 + $0x120] ss:$8 sps:$4 sm:$0xff]  }
 0x30b   : > { %4786 = vrot.lane.b32.xlu1 %v24430_v42, %s26172_s1 }
 0x30c   : > { %5341 = vrot.lane.b32.xlu0 %v26761_v58, %s26172_s1 }
 0x30f   : > { %5040 = vrot.lane.b32.xlu1 %v24430_v42, %s26173_s16  ;;  %v26904_v42 = vld [vmem:[#allocation7 + $0x134] ss:$8 sps:$4 sm:$0xff]  }
 0x310   : > { %5484 = vrot.lane.b32.xlu0 %v26761_v58, %s26173_s16 }
 0x313   : > { %5343 = vrot.lane.b32.xlu1 %v26770_v0, %s26172_s1 }
 0x314   : > { %5771 = vrot.lane.b32.xlu0 %v26773_v1, %s26172_s1 }
 0x317   : > { %5486 = vrot.lane.b32.xlu1 %v26770_v0, %s26173_s16 }
 0x318   : > { %5914 = vrot.lane.b32.xlu0 %v26773_v1, %s26173_s16 }
 0x31b   : > { %5773 = vrot.lane.b32.xlu1 %v26784_v4, %s26172_s1 }
 0x31c   : > { %3427 = vrot.lane.b32.xlu0 %v26623_v51, %s26177_s27 }
 0x31f   : > { %5916 = vrot.lane.b32.xlu1 %v26784_v4, %s26173_s16 }
 0x320   : > { %3431 = vrot.lane.b32.xlu0 %v26645_v6, %s26177_s27 }
 0x323   : > { %3429 = vrot.lane.b32.xlu1 %v26625_v52, %s26177_s27 }
 0x324   : > { %3581 = vrot.lane.b32.xlu0 %v26625_v52, %s26175_s21 }
 0x327   : > { %3433 = vrot.lane.b32.xlu1 %v26648_v7, %s26177_s27 }
 0x328   : > { %3736 = vrot.lane.b32.xlu0 %v26669_v17, %s26177_s27 }
 0x32b   : > { %3583 = vrot.lane.b32.xlu1 %v26648_v7, %s26175_s21 }
 0x32c   : > { %3740 = vrot.lane.b32.xlu0 %v26690_v35, %s26177_s27 }
 0x32f   : > { %3738 = vrot.lane.b32.xlu1 %v26709_v26, %s26177_s27 }
 0x330   : > { %4048 = vrot.lane.b32.xlu0 %v26709_v26, %s26175_s21 }
 0x333   : > { %3742 = vrot.lane.b32.xlu1 %v26725_v40, %s26177_s27 }
 0x334   : > { %4203 = vrot.lane.b32.xlu0 %v26716_v30, %s26177_s27 }
 0x337   : > { %4050 = vrot.lane.b32.xlu1 %v26725_v40, %s26175_s21 }
 0x338   : > { %4207 = vrot.lane.b32.xlu0 %v26698_v16, %s26177_s27 }
 0x33b   : > { %4205 = vrot.lane.b32.xlu1 %v26749_v49, %s26177_s27 }
 0x33f   : > { %4209 = vrot.lane.b32.xlu1 %v26740_v44, %s26177_s27 }
 0x351   : > { %v1809_v52 = vpop.permute.xlu0 %1808 }
 0x352   : > { %19716 = vmatmul.mubr.msk.bf16.vlgmr.msra.gmra.mrb[0].mxu1 %vm1882_vm3, %v1809_v52  ;;  %v26947_v52 = vld [vmem:[#allocation7 + $0x174] ss:$8 sps:$4 sm:$0xff]  }
 0x353   : > { %2019 = vmatpush1.bf16.msra.mxu1 %v26629_v56  ;;  %1931 = vmatprep.mubr.bf16.mxu1 %v26174_v14 }
 0x354   : > { %2020 = vmatprep.subr.bf16.mxu1 %v26633_v59 }
 0x355   : > { %v26826_v31 = vpop.permute.xlu0 %2088 }
 0x357   : > { %2021 = vmatpush1.bf16.msra.mxu1 %v26641_v2 }
 0x358   : > { %2022 = vmatprep.subr.bf16.mxu1 %v26643_v5 }
 0x359   : > { %v26830_v7 = vpop.permute.xlu0 %2092  ;;  %v1811_v8 = vpop.permute.xlu1 %1810 }
 0x35a   : > { %19717 = vmatmul.mubr.msk.bf16.gmra.mrb[4].mxu1 %vm1882_vm3, %v1811_v8 }
 0x35b   : > { %2023 = vmatpush1.bf16.msra.mxu1 %v26657_v10  ;;  %2050 = vmatprep.mubr.bf16.mxu1 %v26174_v14 }
 0x35c   : > { %2024 = vmatprep.subr.bf16.mxu1 %v26661_v11 }
 0x35d   : > { %v26836_v56 = vpop.permute.xlu1 %2090 }
 0x35e   : > { %v26838_v59 = vpop.permute.xlu0 %2416  ;;  %v2097_v61 = vsel %vm538_vm2, %v26826_v31, %v26836_v56  ;;  %v26954_v31 = vld [vmem:[#allocation7 + $0x170] ss:$8 sps:$4 sm:$0xff]   ;;  %v26957_v56 = vld [vmem:[#allocation7 + $0x184] ss:$8 sps:$4 sm:$0xff]  }
 0x35f   : > { %2025 = vmatpush1.bf16.msra.mxu1 %v26671_v19  ;;  %v26856_v19 = vld [vmem:[#allocation7 + $0xe0] ss:$8 sps:$4 sm:$0xff]  }
 0x360   : > { %2026 = vmatprep.subr.bf16.mxu1 %v26676_v22 }
 0x361   : > { %v26842_v2 = vpop.permute.xlu1 %2094 }
 0x362   : > { %v2588_v5 = vpop.permute.xlu0 %2587 }
 0x363   : > { %2027 = vmatpush1.bf16.msra.mxu1 %v26684_v29  ;;  %v26867_v29 = vld [vmem:[#allocation7 + $0xf0] ss:$8 sps:$4 sm:$0xff]  }
 0x364   : > { %2028 = vmatprep.subr.bf16.mxu1 %v26688_v34 }
 0x365   : > { %v26846_v9 = vpop.permute.xlu1 %2418 }
 0x366   : > { %v2592_v10 = vpop.permute.xlu0 %2591 }
 0x367   : > { %2029 = vmatpush1.bf16.msra.mxu1 %v26700_v18 }
 0x368   : > { %2030 = vmatprep.subr.bf16.mxu1 %v26704_v21 }
 0x369   : > { %v2590_v11 = vpop.permute.xlu1 %2589 }
 0x36a   : > { %v26851_v13 = vsel %vm538_vm2, %v2588_v5, %v2590_v11  ;;  %v26853_v33 = vpop.permute.xlu0 %2904 }
 0x36b   : > { %2031 = vmatpush1.bf16.msra.mxu1 %v26719_v38 }
 0x36c   : > { %2175 = vmatprep.subr.bf16.mxu1 %v26723_v39 }
 0x36d   : > { %v2594_v22 = vpop.permute.xlu1 %2593 }
 0x36e   : > { %19732 = vmatmul.mubr.msk.bf16.vlgmr.msra.gmra.mrb[0].mxu1 %vm1882_vm3, %v26623_v51  ;;  %v26864_v25 = vsel %vm538_vm2, %v2592_v10, %v2594_v22  ;;  %v3064_v27 = vpop.permute.xlu0 %3063  ;;  %v26876_v51 = vld [vmem:[#allocation7 + $0x100] ss:$8 sps:$4 sm:$0xff]   ;;  %v2098_v10 = vsel %vm538_vm2, %v26830_v7, %v26842_v2  ;;  %v26975_v7 = vld [vmem:[#allocation7 + $0x190] ss:$8 sps:$4 sm:$0xff]   ;;  %v26979_v2 = vld [vmem:[#allocation7 + $0x1a4] ss:$8 sps:$4 sm:$0xff]  }
 0x36f   : > { %2176 = vmatpush1.bf16.msra.mxu1 %v26856_v19  ;;  %2060 = vmatprep.mubr.bf16.mxu1 %v26174_v14  ;;  %v26966_v22 = vld [vmem:[#allocation7 + $0x180] ss:$8 sps:$4 sm:$0xff]  }
 0x370   : > { %2177 = vmatprep.subr.bf16.mxu1 %v26859_v20 }
 0x371   : > { %v26873_v34 = vpop.permute.xlu1 %2906 }
 0x372   : > { %v3068_v36 = vpop.permute.xlu0 %3067 }
 0x373   : > { %2178 = vmatpush1.bf16.msra.mxu1 %v26867_v29 }
 0x374   : > { %2179 = vmatprep.subr.bf16.mxu1 %v26871_v24 }
 0x375   : > { %v3066_v18 = vpop.permute.xlu1 %3065 }
 0x376   : > { %19733 = vmatmul.mubr.msk.bf16.gmra.mrb[4].mxu1 %vm1882_vm3, %v26645_v6  ;;  %v26884_v15 = vsel %vm538_vm2, %v3064_v27, %v3066_v18  ;;  %v26886_v21 = vpop.permute.xlu0 %4784  ;;  %v26970_v27 = vld [vmem:[#allocation7 + $0x194] ss:$8 sps:$4 sm:$0xff]  }
 0x377   : > { %2180 = vmatpush1.bf16.msra.mxu1 %v26876_v51  ;;  %2207 = vmatprep.mubr.bf16.mxu1 %v26174_v14 }
 0x378   : > { %2181 = vmatprep.subr.bf16.mxu1 %v26879_v12 }
 0x379   : > { %v3070_v38 = vpop.permute.xlu1 %3069 }
 0x37a   : > { %v26896_v39 = vsel %vm538_vm2, %v3068_v36, %v3070_v38  ;;  %v26898_v6 = vpop.permute.xlu0 %5038 }
 0x37b   : > { %2182 = vmatpush1.bf16.msra.mxu1 %v26889_v23 }
 0x37c   : > { %2183 = vmatprep.subr.bf16.mxu1 %v26893_v37 }
 0x37d   : > { %v26906_v43 = vpop.permute.xlu1 %4786 }
 0x37e   : > { %v26908_v45 = vpop.permute.xlu0 %5341 }
 0x37f   : > { %2184 = vmatpush1.bf16.msra.mxu1 %v26901_v41 }
 0x380   : > { %2185 = vmatprep.subr.bf16.mxu1 %v26904_v42 }
 0x381   : > { %v26916_v48 = vpop.permute.xlu1 %5040 }
 0x382   : > { %v26919_v50 = vpop.permute.xlu0 %5484 }
 0x383   : > { %2186 = vmatpush1.bf16.msra.mxu1 %v26911_v46 }
 0x384   : > { %2187 = vmatprep.subr.bf16.mxu1 %v26914_v47 }
 0x385   : > { %v26926_v55 = vpop.permute.xlu1 %5343 }
 0x386   : > { %v26937_v62 = vpop.permute.xlu0 %5771 }
 0x387   : > { %2188 = vmatpush1.bf16.msra.mxu1 %v26921_v53 }
 0x388   : > { %2340 = vmatprep.subr.bf16.mxu1 %v26924_v54 }
 0x389   : > { %v26939_v63 = vpop.permute.xlu1 %5486 }
 0x38a   : > { %19748 = vmatmul.mubr.msk.bf16.vlgmr.msra.gmra.mrb[0].mxu1 %vm1882_vm3, %v2097_v61  ;;  %v26951_v5 = vpop.permute.xlu0 %5914 }
 0x38b   : > { %2341 = vmatpush1.bf16.msra.mxu1 %v26929_v57  ;;  %2217 = vmatprep.mubr.bf16.mxu1 %v26174_v14 }
 0x38c   : > { %2342 = vmatprep.subr.bf16.mxu1 %v26932_v60 }
 0x38d   : > { %v26949_v8 = vpop.permute.xlu1 %5773 }
 0x38e   : > { %v3428_v36 = vpop.permute.xlu0 %3427 }
 0x38f   : > { %2343 = vmatpush1.bf16.msra.mxu1 %v26943_v3 }
 0x390   : > { %2344 = vmatprep.subr.bf16.mxu1 %v26947_v52 }
 0x391   : > { %v26962_v11 = vpop.permute.xlu1 %5916 }
 0x392   : > { %19749 = vmatmul.mubr.msk.bf16.gmra.mrb[4].mxu1 %vm1882_vm3, %v2098_v10  ;;  %v26984_v10 = vld [vmem:[#allocation7 + $0x1a0] ss:$8 sps:$4 sm:$0xff]  }
 0x393   : > { %2345 = vmatpush1.bf16.msra.mxu1 %v26954_v31  ;;  %2372 = vmatprep.mubr.bf16.mxu1 %v26174_v14 }
 0x394   : > { %2346 = vmatprep.subr.bf16.mxu1 %v26957_v56 }
 0x395   : > { %v3430_v18 = vpop.permute.xlu1 %3429 }
 0x396   : > { %v3436_v38 = vsel %vm3435_vm4, %v3428_v36, %v3430_v18  ;;  %v26988_v36 = vld [vmem:[#allocation7 + $0x1b4] ss:$8 sps:$4 sm:$0xff]  }
 0x397   : > { %2347 = vmatpush1.bf16.msra.mxu1 %v26966_v22  ;;  %19880 = vmatmul.mubr.msk.bf16.vlgmr.msra.gmra.mrb[8].mxu0 %vm1882_vm3, %v3436_v38  ;;  %v27007_v38 = vld [vmem:[#allocation7 + $0x1d4] ss:$8 sps:$4 sm:$0xff]  }
 0x398   : > { %3662 = vmatpush1.bf16.msra.mxu0 %v26856_v19  ;;  %2348 = vmatprep.subr.bf16.mxu1 %v26970_v27  ;;  %v3432_v19 = vpop.permute.xlu0 %3431 }
 0x399   : > { %3663 = vmatprep.subr.bf16.mxu0 %v26859_v20  ;;  %3556 = vmatprep.mubr.bf16.mxu0 %v26174_v14  ;;  %v3434_v61 = vpop.permute.xlu1 %3433  ;;  %v26994_v20 = vld [vmem:[#allocation7 + $0x1b0] ss:$8 sps:$4 sm:$0xff]  }
 0x39a   : > { %v3437_v18 = vsel %vm3435_vm4, %v3432_v19, %v3434_v61 }
 0x39b   : > { %2349 = vmatpush1.bf16.msra.mxu1 %v26975_v7 }
 0x39c   : > { %3664 = vmatpush1.bf16.msra.mxu0 %v26867_v29  ;;  %2350 = vmatprep.subr.bf16.mxu1 %v26979_v2  ;;  %v26998_v29 = vld [vmem:[#allocation7 + $0x1c4] ss:$8 sps:$4 sm:$0xff]  }
 0x39d   : > { %3665 = vmatprep.subr.bf16.mxu0 %v26871_v24  ;;  %v27003_v24 = vld [vmem:[#allocation7 + $0x1c0] ss:$8 sps:$4 sm:$0xff]  }
 0x39f   : > { %2351 = vmatpush1.bf16.msra.mxu1 %v26984_v10  ;;  %19881 = vmatmul.mubr.msk.bf16.gmra.mrb[12].mxu0 %vm1882_vm3, %v3437_v18  ;;  %v27118_v18 = vld [vmem:[#allocation7 + $0x280] ss:$8 sps:$4 sm:$0xff]  }
 0x3a0   : > { %3666 = vmatpush1.bf16.msra.mxu0 %v26876_v51  ;;  %2352 = vmatprep.subr.bf16.mxu1 %v26988_v36  ;;  %v27013_v51 = vld [vmem:[#allocation7 + $0x1d0] ss:$8 sps:$4 sm:$0xff]  }
 0x3a1   : > { %3667 = vmatprep.subr.bf16.mxu0 %v26879_v12  ;;  %3693 = vmatprep.mubr.bf16.mxu0 %v26174_v14  ;;  %v27018_v12 = vld [vmem:[#allocation7 + $0x1e4] ss:$8 sps:$4 sm:$0xff]  }
 0x3a3   : > { %2353 = vmatpush1.bf16.msra.mxu1 %v26994_v20 }
 0x3a4   : > { %3668 = vmatpush1.bf16.msra.mxu0 %v26889_v23  ;;  %2496 = vmatprep.subr.bf16.mxu1 %v26998_v29  ;;  %v27022_v23 = vld [vmem:[#allocation7 + $0x1e0] ss:$8 sps:$4 sm:$0xff]  }
 0x3a5   : > { %3669 = vmatprep.subr.bf16.mxu0 %v26893_v37  ;;  %v27032_v37 = vld [vmem:[#allocation7 + $0x1f0] ss:$8 sps:$4 sm:$0xff]  }
 0x3a6   : > { %19764 = vmatmul.mubr.msk.bf16.vlgmr.msra.gmra.mrb[0].mxu1 %vm1882_vm3, %v26669_v17  ;;  %v27026_v17 = vld [vmem:[#allocation7 + $0x1f4] ss:$8 sps:$4 sm:$0xff]  }
 0x3a7   : > { %2497 = vmatpush1.bf16.msra.mxu1 %v27003_v24  ;;  %2382 = vmatprep.mubr.bf16.mxu1 %v26174_v14 }
 0x3a8   : > { %3670 = vmatpush1.bf16.msra.mxu0 %v26901_v41  ;;  %2498 = vmatprep.subr.bf16.mxu1 %v27007_v38  ;;  %v27037_v41 = vld [vmem:[#allocation7 + $0x204] ss:$8 sps:$4 sm:$0xff]  }
 0x3a9   : > { %3671 = vmatprep.subr.bf16.mxu0 %v26904_v42  ;;  %v3582_v42 = vpop.permute.xlu0 %3581 }
 0x3ab   : > { %2499 = vmatpush1.bf16.msra.mxu1 %v27013_v51 }
 0x3ac   : > { %3672 = vmatpush1.bf16.msra.mxu0 %v26911_v46  ;;  %2500 = vmatprep.subr.bf16.mxu1 %v27018_v12  ;;  %v27046_v46 = vld [vmem:[#allocation7 + $0x214] ss:$8 sps:$4 sm:$0xff]  }
 0x3ad   : > { %3673 = vmatprep.subr.bf16.mxu0 %v26914_v47  ;;  %v27051_v47 = vld [vmem:[#allocation7 + $0x210] ss:$8 sps:$4 sm:$0xff]   ;;  %v3737_v61 = vpop.permute.xlu0 %3736 }
 0x3ae   : > { %19765 = vmatmul.mubr.msk.bf16.gmra.mrb[4].mxu1 %vm1882_vm3, %v26690_v35  ;;  %v27042_v35 = vld [vmem:[#allocation7 + $0x200] ss:$8 sps:$4 sm:$0xff]  }
 0x3af   : > { %2501 = vmatpush1.bf16.msra.mxu1 %v27022_v23  ;;  %2528 = vmatprep.mubr.bf16.mxu1 %v26174_v14 }
 0x3b0   : > { %3674 = vmatpush1.bf16.msra.mxu0 %v26921_v53  ;;  %2502 = vmatprep.subr.bf16.mxu1 %v27026_v17  ;;  %v27055_v53 = vld [vmem:[#allocation7 + $0x224] ss:$8 sps:$4 sm:$0xff]  }
 0x3b1   : > { %3822 = vmatprep.subr.bf16.mxu0 %v26924_v54  ;;  %v3584_v54 = vpop.permute.xlu1 %3583 }
 0x3b3   : > { %2503 = vmatpush1.bf16.msra.mxu1 %v27032_v37  ;;  %19896 = vmatmul.mubr.msk.bf16.vlgmr.msra.gmra.mrb[8].mxu0 %vm1882_vm3, %v3582_v42  ;;  %v27141_v42 = vld [vmem:[#allocation7 + $0x2b4] ss:$8 sps:$4 sm:$0xff]  }
 0x3b4   : > { %3823 = vmatpush1.bf16.msra.mxu0 %v26929_v57  ;;  %2504 = vmatprep.subr.bf16.mxu1 %v27037_v41  ;;  %v27060_v57 = vld [vmem:[#allocation7 + $0x220] ss:$8 sps:$4 sm:$0xff]  }
 0x3b5   : > { %3824 = vmatprep.subr.bf16.mxu0 %v26932_v60  ;;  %3703 = vmatprep.mubr.bf16.mxu0 %v26174_v14  ;;  %v27064_v60 = vld [vmem:[#allocation7 + $0x234] ss:$8 sps:$4 sm:$0xff]  }
 0x3b7   : > { %2505 = vmatpush1.bf16.msra.mxu1 %v27042_v35 }
 0x3b8   : > { %3825 = vmatpush1.bf16.msra.mxu0 %v26943_v3  ;;  %2506 = vmatprep.subr.bf16.mxu1 %v27046_v46  ;;  %v27069_v3 = vld [vmem:[#allocation7 + $0x230] ss:$8 sps:$4 sm:$0xff]  }
 0x3b9   : > { %3826 = vmatprep.subr.bf16.mxu0 %v26947_v52  ;;  %v27073_v52 = vld [vmem:[#allocation7 + $0x244] ss:$8 sps:$4 sm:$0xff]  }
 0x3bb   : > { %2507 = vmatpush1.bf16.msra.mxu1 %v27051_v47  ;;  %19897 = vmatmul.mubr.msk.bf16.gmra.mrb[12].mxu0 %vm1882_vm3, %v3584_v54  ;;  %v27200_v54 = vld [vmem:[#allocation7 + $0x314] ss:$8 sps:$4 sm:$0xff]  }
 0x3bc   : > { %3827 = vmatpush1.bf16.msra.mxu0 %v26954_v31  ;;  %2508 = vmatprep.subr.bf16.mxu1 %v27055_v53  ;;  %v27079_v31 = vld [vmem:[#allocation7 + $0x240] ss:$8 sps:$4 sm:$0xff]  }
 0x3bd   : > { %3828 = vmatprep.subr.bf16.mxu0 %v26957_v56  ;;  %3854 = vmatprep.mubr.bf16.mxu0 %v26174_v14  ;;  %v27084_v56 = vld [vmem:[#allocation7 + $0x254] ss:$8 sps:$4 sm:$0xff]  }
 0x3bf   : > { %2509 = vmatpush1.bf16.msra.mxu1 %v27060_v57 }
 0x3c0   : > { %3829 = vmatpush1.bf16.msra.mxu0 %v26966_v22  ;;  %2673 = vmatprep.subr.bf16.mxu1 %v27064_v60  ;;  %v27088_v22 = vld [vmem:[#allocation7 + $0x250] ss:$8 sps:$4 sm:$0xff]  }
 0x3c1   : > { %3830 = vmatprep.subr.bf16.mxu0 %v26970_v27  ;;  %v3739_v27 = vpop.permute.xlu1 %3738 }
 0x3c2   : > { %19780 = vmatmul.mubr.msk.bf16.vlgmr.msra.gmra.mrb[0].mxu1 %vm1882_vm3, %v26838_v59  ;;  %v27092_v59 = vld [vmem:[#allocation7 + $0x264] ss:$8 sps:$4 sm:$0xff]  }
 0x3c3   : > { %2674 = vmatpush1.bf16.msra.mxu1 %v27069_v3  ;;  %2538 = vmatprep.mubr.bf16.mxu1 %v26174_v14 }
 0x3c4   : > { %3831 = vmatpush1.bf16.msra.mxu0 %v26975_v7  ;;  %2675 = vmatprep.subr.bf16.mxu1 %v27073_v52  ;;  %v27098_v7 = vld [vmem:[#allocation7 + $0x260] ss:$8 sps:$4 sm:$0xff]  }
 0x3c5   : > { %3832 = vmatprep.subr.bf16.mxu0 %v26979_v2  ;;  %v27103_v2 = vld [vmem:[#allocation7 + $0x274] ss:$8 sps:$4 sm:$0xff]   ;;  %v3743_v19 = vpop.permute.xlu1 %3742 }
 0x3c7   : > { %2676 = vmatpush1.bf16.msra.mxu1 %v27079_v31 }
 0x3c8   : > { %3833 = vmatpush1.bf16.msra.mxu0 %v26984_v10  ;;  %2677 = vmatprep.subr.bf16.mxu1 %v27084_v56  ;;  %v3744_v10 = vsel %vm3435_vm4, %v3737_v61, %v3739_v27  ;;  %v27253_v27 = vld [vmem:[#allocation7 + $0x360] ss:$8 sps:$4 sm:$0xff]   ;;  %v27262_v61 = vld [vmem:[#allocation7 + $0x370] ss:$8 sps:$4 sm:$0xff]  }
 0x3c9   : > { %3834 = vmatprep.subr.bf16.mxu0 %v26988_v36  ;;  %v27113_v36 = vld [vmem:[#allocation7 + $0x284] ss:$8 sps:$4 sm:$0xff]  }
 0x3ca   : > { %19781 = vmatmul.mubr.msk.bf16.gmra.mrb[4].mxu1 %vm1882_vm3, %v26846_v9  ;;  %v27109_v9 = vld [vmem:[#allocation7 + $0x270] ss:$8 sps:$4 sm:$0xff]  }
 0x3cb   : > { %2678 = vmatpush1.bf16.msra.mxu1 %v27088_v22  ;;  %2705 = vmatprep.mubr.bf16.mxu1 %v26174_v14 }
 0x3cc   : > { %3835 = vmatpush1.bf16.msra.mxu0 %v26994_v20  ;;  %2679 = vmatprep.subr.bf16.mxu1 %v27092_v59  ;;  %v27122_v20 = vld [vmem:[#allocation7 + $0x294] ss:$8 sps:$4 sm:$0xff]  }
 0x3cd   : > { %3973 = vmatprep.subr.bf16.mxu0 %v26998_v29  ;;  %v3741_v29 = vpop.permute.xlu0 %3740 }
 0x3cf   : > { %2680 = vmatpush1.bf16.msra.mxu1 %v27098_v7  ;;  %19912 = vmatmul.mubr.msk.bf16.vlgmr.msra.gmra.mrb[8].mxu0 %vm1882_vm3, %v3744_v10  ;;  %v24581_v10 = vld [vmem:[#allocation7 + $0x384] ss:$8 sps:$4 sm:$0xff]  }
 0x3d0   : > { %3974 = vmatpush1.bf16.msra.mxu0 %v27003_v24  ;;  %2681 = vmatprep.subr.bf16.mxu1 %v27103_v2  ;;  %v3745_v24 = vsel %vm3435_vm4, %v3741_v29, %v3743_v19  ;;  %v24582_v19 = vld [vmem:[#allocation7 + $0x390] ss:$8 sps:$4 sm:$0xff]   ;;  %v24590_v29 = vld [vmem:[#allocation7 + $0x3b4] ss:$8 sps:$4 sm:$0xff]  }
 0x3d1   : > { %3975 = vmatprep.subr.bf16.mxu0 %v27007_v38  ;;  %3864 = vmatprep.mubr.bf16.mxu0 %v26174_v14  ;;  %v27128_v38 = vld [vmem:[#allocation7 + $0x290] ss:$8 sps:$4 sm:$0xff]  }
 0x3d3   : > { %2682 = vmatpush1.bf16.msra.mxu1 %v27109_v9 }
 0x3d4   : > { %3976 = vmatpush1.bf16.msra.mxu0 %v27013_v51  ;;  %2683 = vmatprep.subr.bf16.mxu1 %v27113_v36  ;;  %v27132_v51 = vld [vmem:[#allocation7 + $0x2a4] ss:$8 sps:$4 sm:$0xff]  }
 0x3d5   : > { %3977 = vmatprep.subr.bf16.mxu0 %v27018_v12  ;;  %v27137_v12 = vld [vmem:[#allocation7 + $0x2a0] ss:$8 sps:$4 sm:$0xff]  }
 0x3d7   : > { %2684 = vmatpush1.bf16.msra.mxu1 %v27118_v18  ;;  %19913 = vmatmul.mubr.msk.bf16.gmra.mrb[12].mxu0 %vm1882_vm3, %v3745_v24  ;;  %v24588_v24 = vld [vmem:[#allocation7 + $0x3b0] ss:$8 sps:$4 sm:$0xff]  }
 0x3d8   : > { %3978 = vmatpush1.bf16.msra.mxu0 %v27022_v23  ;;  %2685 = vmatprep.subr.bf16.mxu1 %v27122_v20  ;;  %v27147_v23 = vld [vmem:[#allocation7 + $0x2b0] ss:$8 sps:$4 sm:$0xff]  }
 0x3d9   : > { %3979 = vmatprep.subr.bf16.mxu0 %v27026_v17  ;;  %4005 = vmatprep.mubr.bf16.mxu0 %v26174_v14  ;;  %v27152_v17 = vld [vmem:[#allocation7 + $0x2c4] ss:$8 sps:$4 sm:$0xff]  }
 0x3db   : > { %2686 = vmatpush1.bf16.msra.mxu1 %v27128_v38 }
 0x3dc   : > { %3980 = vmatpush1.bf16.msra.mxu0 %v27032_v37  ;;  %2828 = vmatprep.subr.bf16.mxu1 %v27132_v51  ;;  %v27156_v37 = vld [vmem:[#allocation7 + $0x2c0] ss:$8 sps:$4 sm:$0xff]  }
 0x3dd   : > { %3981 = vmatprep.subr.bf16.mxu0 %v27037_v41  ;;  %v27166_v41 = vld [vmem:[#allocation7 + $0x2d0] ss:$8 sps:$4 sm:$0xff]  }
 0x3de   : > { %19796 = vmatmul.mubr.msk.bf16.vlgmr.msra.gmra.mrb[0].mxu1 %vm1882_vm3, %v26851_v13  ;;  %v27160_v13 = vld [vmem:[#allocation7 + $0x2d4] ss:$8 sps:$4 sm:$0xff]  }
 0x3df   : > { %2829 = vmatpush1.bf16.msra.mxu1 %v27137_v12  ;;  %2715 = vmatprep.mubr.bf16.mxu1 %v26174_v14 }
 0x3e0   : > { %3982 = vmatpush1.bf16.msra.mxu0 %v27042_v35  ;;  %2830 = vmatprep.subr.bf16.mxu1 %v27141_v42  ;;  %v27171_v35 = vld [vmem:[#allocation7 + $0x2e4] ss:$8 sps:$4 sm:$0xff]  }
 0x3e1   : > { %3983 = vmatprep.subr.bf16.mxu0 %v27046_v46  ;;  %v27181_v46 = vld [vmem:[#allocation7 + $0x2f4] ss:$8 sps:$4 sm:$0xff]  }
 0x3e3   : > { %2831 = vmatpush1.bf16.msra.mxu1 %v27147_v23 }
 0x3e4   : > { %3984 = vmatpush1.bf16.msra.mxu0 %v27051_v47  ;;  %2832 = vmatprep.subr.bf16.mxu1 %v27152_v17  ;;  %v27186_v47 = vld [vmem:[#allocation7 + $0x2f0] ss:$8 sps:$4 sm:$0xff]  }
 0x3e5   : > { %3985 = vmatprep.subr.bf16.mxu0 %v27055_v53  ;;  %v27196_v53 = vld [vmem:[#allocation7 + $0x300] ss:$8 sps:$4 sm:$0xff]  }
 0x3e6   : > { %19797 = vmatmul.mubr.msk.bf16.gmra.mrb[4].mxu1 %vm1882_vm3, %v26864_v25  ;;  %v27177_v25 = vld [vmem:[#allocation7 + $0x2e0] ss:$8 sps:$4 sm:$0xff]  }
 0x3e7   : > { %2833 = vmatpush1.bf16.msra.mxu1 %v27156_v37  ;;  %2860 = vmatprep.mubr.bf16.mxu1 %v26174_v14 }
 0x3e8   : > { %3986 = vmatpush1.bf16.msra.mxu0 %v27060_v57  ;;  %2834 = vmatprep.subr.bf16.mxu1 %v27160_v13  ;;  %v27205_v57 = vld [vmem:[#allocation7 + $0x310] ss:$8 sps:$4 sm:$0xff]  }
 0x3e9   : > { %4128 = vmatprep.subr.bf16.mxu0 %v27064_v60  ;;  %v27215_v60 = vld [vmem:[#allocation7 + $0x320] ss:$8 sps:$4 sm:$0xff]  }
 0x3eb   : > { %2835 = vmatpush1.bf16.msra.mxu1 %v27166_v41  ;;  %19928 = vmatmul.mubr.msk.bf16.vlgmr.msra.gmra.mrb[8].mxu0 %vm1882_vm3, %v26709_v26  ;;  %v27190_v26 = vld [vmem:[#allocation7 + $0x304] ss:$8 sps:$4 sm:$0xff]  }
 0x3ec   : > { %4129 = vmatpush1.bf16.msra.mxu0 %v27069_v3  ;;  %2836 = vmatprep.subr.bf16.mxu1 %v27171_v35  ;;  %v27220_v3 = vld [vmem:[#allocation7 + $0x334] ss:$8 sps:$4 sm:$0xff]  }
 0x3ed   : > { %4130 = vmatprep.subr.bf16.mxu0 %v27073_v52  ;;  %4015 = vmatprep.mubr.bf16.mxu0 %v26174_v14  ;;  %v27224_v52 = vld [vmem:[#allocation7 + $0x330] ss:$8 sps:$4 sm:$0xff]  }
 0x3ef   : > { %2837 = vmatpush1.bf16.msra.mxu1 %v27177_v25 }
 0x3f0   : > { %4131 = vmatpush1.bf16.msra.mxu0 %v27079_v31  ;;  %2838 = vmatprep.subr.bf16.mxu1 %v27181_v46  ;;  %v27234_v31 = vld [vmem:[#allocation7 + $0x340] ss:$8 sps:$4 sm:$0xff]  }
 0x3f1   : > { %4132 = vmatprep.subr.bf16.mxu0 %v27084_v56  ;;  %v27239_v56 = vld [vmem:[#allocation7 + $0x354] ss:$8 sps:$4 sm:$0xff]  }
 0x3f3   : > { %2839 = vmatpush1.bf16.msra.mxu1 %v27186_v47  ;;  %19929 = vmatmul.mubr.msk.bf16.gmra.mrb[12].mxu0 %vm1882_vm3, %v26725_v40  ;;  %v27209_v40 = vld [vmem:[#allocation7 + $0x324] ss:$8 sps:$4 sm:$0xff]  }
 0x3f4   : > { %4133 = vmatpush1.bf16.msra.mxu0 %v27088_v22  ;;  %2840 = vmatprep.subr.bf16.mxu1 %v27190_v26  ;;  %v4049_v22 = vpop.permute.xlu0 %4048 }
 0x3f5   : > { %4134 = vmatprep.subr.bf16.mxu0 %v27092_v59  ;;  %4160 = vmatprep.mubr.bf16.mxu0 %v26174_v14  ;;  %v27248_v59 = vld [vmem:[#allocation7 + $0x364] ss:$8 sps:$4 sm:$0xff]  }
 0x3f7   : > { %2841 = vmatpush1.bf16.msra.mxu1 %v27196_v53 }
 0x3f8   : > { %4135 = vmatpush1.bf16.msra.mxu0 %v27098_v7  ;;  %2984 = vmatprep.subr.bf16.mxu1 %v27200_v54  ;;  %v27257_v7 = vld [vmem:[#allocation7 + $0x374] ss:$8 sps:$4 sm:$0xff]  }
 0x3f9   : > { %4136 = vmatprep.subr.bf16.mxu0 %v27103_v2  ;;  %v4051_v2 = vpop.permute.xlu1 %4050 }
 0x3fa   : > { %19812 = vmatmul.mubr.msk.bf16.vlgmr.msra.gmra.mrb[0].mxu1 %vm1882_vm3, %v26716_v30  ;;  %v27228_v30 = vld [vmem:[#allocation7 + $0x344] ss:$8 sps:$4 sm:$0xff]  }
 0x3fb   : > { %2985 = vmatpush1.bf16.msra.mxu1 %v27205_v57  ;;  %2870 = vmatprep.mubr.bf16.mxu1 %v26174_v14 }
 0x3fc   : > { %4137 = vmatpush1.bf16.msra.mxu0 %v27109_v9  ;;  %2986 = vmatprep.subr.bf16.mxu1 %v27209_v40  ;;  %v24579_v9 = vld [vmem:[#allocation7 + $0x380] ss:$8 sps:$4 sm:$0xff]  }
 0x3fd   : > { %4138 = vmatprep.subr.bf16.mxu0 %v27113_v36  ;;  %v24584_v36 = vld [vmem:[#allocation7 + $0x394] ss:$8 sps:$4 sm:$0xff]  }
 0x3ff   : > { %2987 = vmatpush1.bf16.msra.mxu1 %v27215_v60 }
 0x400   : > { %4139 = vmatpush1.bf16.msra.mxu0 %v27118_v18  ;;  %2988 = vmatprep.subr.bf16.mxu1 %v27220_v3  ;;  %v24587_v18 = vld [vmem:[#allocation7 + $0x3a4] ss:$8 sps:$4 sm:$0xff]  }
 0x401   : > { %4140 = vmatprep.subr.bf16.mxu0 %v27122_v20  ;;  %v24585_v20 = vld [vmem:[#allocation7 + $0x3a0] ss:$8 sps:$4 sm:$0xff]  }
 0x402   : > { %19813 = vmatmul.mubr.msk.bf16.gmra.mrb[4].mxu1 %vm1882_vm3, %v26698_v16  ;;  %v27244_v16 = vld [vmem:[#allocation7 + $0x350] ss:$8 sps:$4 sm:$0xff]  }
 0x403   : > { %2989 = vmatpush1.bf16.msra.mxu1 %v27224_v52  ;;  %3016 = vmatprep.mubr.bf16.mxu1 %v26174_v14 }
 0x404   : > { %4141 = vmatpush1.bf16.msra.mxu0 %v27128_v38  ;;  %2990 = vmatprep.subr.bf16.mxu1 %v27228_v30  ;;  %v24593_v38 = vld [vmem:[#allocation7 + $0x3c4] ss:$8 sps:$4 sm:$0xff]  }
 0x405   : > { %4289 = vmatprep.subr.bf16.mxu0 %v27132_v51  ;;  %v4204_v51 = vpop.permute.xlu0 %4203 }
 0x407   : > { %2991 = vmatpush1.bf16.msra.mxu1 %v27234_v31  ;;  %19944 = vmatmul.mubr.msk.bf16.vlgmr.msra.gmra.mrb[8].mxu0 %vm1882_vm3, %v4049_v22  ;;  %v24626_v22 = vld [vmem:[#allocation3 + $0x24] ss:$8 sps:$4 sm:$0xff]  }
 0x408   : > { %4290 = vmatpush1.bf16.msra.mxu0 %v27137_v12  ;;  %2992 = vmatprep.subr.bf16.mxu1 %v27239_v56 }
 0x409   : > { %4291 = vmatprep.subr.bf16.mxu0 %v27141_v42  ;;  %4170 = vmatprep.mubr.bf16.mxu0 %v26174_v14  ;;  %v24591_v42 = vld [vmem:[#allocation7 + $0x3c0] ss:$8 sps:$4 sm:$0xff]  }
 0x40b   : > { %2993 = vmatpush1.bf16.msra.mxu1 %v27244_v16 }
 0x40c   : > { %4292 = vmatpush1.bf16.msra.mxu0 %v27147_v23  ;;  %2994 = vmatprep.subr.bf16.mxu1 %v27248_v59 }
 0x40d   : > { %4293 = vmatprep.subr.bf16.mxu0 %v27152_v17  ;;  %v24594_v17 = vld [vmem:[#allocation7 + $0x3d0] ss:$8 sps:$4 sm:$0xff]  }
 0x40f   : > { %2995 = vmatpush1.bf16.msra.mxu1 %v27253_v27  ;;  %19945 = vmatmul.mubr.msk.bf16.gmra.mrb[12].mxu0 %vm1882_vm3, %v4051_v2  ;;  %v24635_v2 = vld [vmem:[#allocation3 + $0x54] ss:$8 sps:$4 sm:$0xff]  }
 0x410   : > { %4294 = vmatpush1.bf16.msra.mxu0 %v27156_v37  ;;  %2996 = vmatprep.subr.bf16.mxu1 %v27257_v7  ;;  %v24599_v37 = vld [vmem:[#allocation7 + $0x3e4] ss:$8 sps:$4 sm:$0xff]  }
 0x411   : > { %4295 = vmatprep.subr.bf16.mxu0 %v27160_v13  ;;  %4321 = vmatprep.mubr.bf16.mxu0 %v26174_v14  ;;  %v4208_v13 = vpop.permute.xlu0 %4207 }
 0x413   : > { %2997 = vmatpush1.bf16.msra.mxu1 %v27262_v61 }
 0x414   : > { %4296 = vmatpush1.bf16.msra.mxu0 %v27166_v41  ;;  %3149 = vmatprep.subr.bf16.mxu1 %v24581_v10  ;;  %v24638_v10 = vld [vmem:[#allocation3 + $0xc4] ss:$8 sps:$4 sm:$0xff]  }
 0x415   : > { %4297 = vmatprep.subr.bf16.mxu0 %v27171_v35  ;;  %v24597_v35 = vld [vmem:[#allocation7 + $0x3e0] ss:$8 sps:$4 sm:$0xff]  }
 0x416   : > { %19828 = vmatmul.mubr.msk.bf16.vlgmr.msra.gmra.mrb[0].mxu1 %vm1882_vm3, %v26853_v33  ;;  %v4206_v33 = vpop.permute.xlu1 %4205 }
 0x417   : > { %3150 = vmatpush1.bf16.msra.mxu1 %v24579_v9  ;;  %3026 = vmatprep.mubr.bf16.mxu1 %v26174_v14  ;;  %v4211_v12 = vsel %vm3435_vm4, %v4204_v51, %v4206_v33  ;;  %v24636_v9 = vld [vmem:[#allocation3 + $0xc0] ss:$8 sps:$4 sm:$0xff]  }
 0x418   : > { %4298 = vmatpush1.bf16.msra.mxu0 %v27177_v25  ;;  %3151 = vmatprep.subr.bf16.mxu1 %v24584_v36  ;;  %v24602_v25 = vld [vmem:[#allocation3 + $0x64] ss:$8 sps:$4 sm:$0xff]   ;;  %v24641_v36 = vld [vmem:[#allocation3 + $0xd4] ss:$8 sps:$4 sm:$0xff]   ;;  %v24648_v51 = vld [vmem:[#allocation3 + $0x100] ss:$8 sps:$4 sm:$0xff]  }
 0x419   : > { %4299 = vmatprep.subr.bf16.mxu0 %v27181_v46  ;;  %v24600_v46 = vld [vmem:[#allocation3 + $0x60] ss:$8 sps:$4 sm:$0xff]  }
 0x41a   : > { %v4210_v23 = vpop.permute.xlu1 %4209  ;;  %v24973_v33 = vld [vmem:[%s30431_s0 + $0x1c] sm:$0xff]  }
 0x41b   : > { %3152 = vmatpush1.bf16.msra.mxu1 %v24582_v19  ;;  %v4212_v41 = vsel %vm3435_vm4, %v4208_v13, %v4210_v23  ;;  %v24639_v19 = vld [vmem:[#allocation3 + $0xd0] ss:$8 sps:$4 sm:$0xff]   ;;  %v24654_v23 = vld [vmem:[#allocation3 + $0x120] ss:$8 sps:$4 sm:$0xff]   ;;  %v24662_v13 = vld [vmem:[#allocation3 + $0x144] ss:$8 sps:$4 sm:$0xff]  }
 0x41c   : > { %4300 = vmatpush1.bf16.msra.mxu0 %v27186_v47  ;;  %3153 = vmatprep.subr.bf16.mxu1 %v24587_v18  ;;  %v24605_v47 = vld [vmem:[#allocation3 + $0x74] ss:$8 sps:$4 sm:$0xff]   ;;  %v24644_v18 = vld [vmem:[#allocation3 + $0xe4] ss:$8 sps:$4 sm:$0xff]  }
 0x41d   : > { %4301 = vmatprep.subr.bf16.mxu0 %v27190_v26  ;;  %v24603_v26 = vld [vmem:[#allocation3 + $0x70] ss:$8 sps:$4 sm:$0xff]  }
 0x41e   : > { %19829 = vmatmul.mubr.msk.bf16.gmra.mrb[4].mxu1 %vm1882_vm3, %v26873_v34  ;;  %v24596_v34 = vld [vmem:[#allocation7 + $0x3d4] ss:$8 sps:$4 sm:$0xff]  }
 0x41f   : > { %3154 = vmatpush1.bf16.msra.mxu1 %v24585_v20  ;;  %3181 = vmatprep.mubr.bf16.mxu1 %v26174_v14  ;;  %v24642_v20 = vld [vmem:[#allocation3 + $0xe0] ss:$8 sps:$4 sm:$0xff]  }
 0x420   : > { %4302 = vmatpush1.bf16.msra.mxu0 %v27196_v53  ;;  %3155 = vmatprep.subr.bf16.mxu1 %v24590_v29  ;;  %v24608_v53 = vld [vmem:[#allocation3 + $0x84] ss:$8 sps:$4 sm:$0xff]   ;;  %v24647_v29 = vld [vmem:[#allocation3 + $0xf4] ss:$8 sps:$4 sm:$0xff]  }
 0x421   : > { %4440 = vmatprep.subr.bf16.mxu0 %v27200_v54  ;;  %v24606_v54 = vld [vmem:[#allocation3 + $0x80] ss:$8 sps:$4 sm:$0xff]  }
 0x423   : > { %3156 = vmatpush1.bf16.msra.mxu1 %v24588_v24  ;;  %19960 = vmatmul.mubr.msk.bf16.vlgmr.msra.gmra.mrb[8].mxu0 %vm1882_vm3, %v4211_v12  ;;  %v24645_v24 = vld [vmem:[#allocation3 + $0xf0] ss:$8 sps:$4 sm:$0xff]   ;;  %v24653_v12 = vld [vmem:[#allocation3 + $0x114] ss:$8 sps:$4 sm:$0xff]  }
 0x424   : > { %4441 = vmatpush1.bf16.msra.mxu0 %v27205_v57  ;;  %3157 = vmatprep.subr.bf16.mxu1 %v24593_v38  ;;  %v24611_v57 = vld [vmem:[#allocation3 + $0x94] ss:$8 sps:$4 sm:$0xff]   ;;  %v24650_v38 = vld [vmem:[#allocation3 + $0x104] ss:$8 sps:$4 sm:$0xff]  }
 0x425   : > { %4442 = vmatprep.subr.bf16.mxu0 %v27209_v40  ;;  %4331 = vmatprep.mubr.bf16.mxu0 %v26174_v14  ;;  %v24614_v40 = vld [vmem:[#allocation3 + $0xa4] ss:$8 sps:$4 sm:$0xff]  }
 0x427   : > { %3158 = vmatpush1.bf16.msra.mxu1 %v24591_v42  ;;  %v24651_v42 = vld [vmem:[#allocation3 + $0x110] ss:$8 sps:$4 sm:$0xff]  }
 0x428   : > { %4443 = vmatpush1.bf16.msra.mxu0 %v27215_v60  ;;  %3159 = vmatprep.subr.bf16.mxu1 %v24596_v34  ;;  %v24612_v60 = vld [vmem:[#allocation3 + $0xa0] ss:$8 sps:$4 sm:$0xff]   ;;  %v24656_v34 = vld [vmem:[#allocation3 + $0x124] ss:$8 sps:$4 sm:$0xff]  }
 0x429   : > { %4444 = vmatprep.subr.bf16.mxu0 %v27220_v3  ;;  %v24617_v3 = vld [vmem:[#allocation3 + $0xb4] ss:$8 sps:$4 sm:$0xff]  }
 0x42b   : > { %3160 = vmatpush1.bf16.msra.mxu1 %v24594_v17  ;;  %19961 = vmatmul.mubr.msk.bf16.gmra.mrb[12].mxu0 %vm1882_vm3, %v4212_v41  ;;  %v24659_v17 = vld [vmem:[#allocation3 + $0x134] ss:$8 sps:$4 sm:$0xff]   ;;  %v24660_v41 = vld [vmem:[#allocation3 + $0x140] ss:$8 sps:$4 sm:$0xff]  }
 0x42c   : > { %4445 = vmatpush1.bf16.msra.mxu0 %v27224_v52  ;;  %3161 = vmatprep.subr.bf16.mxu1 %v24599_v37  ;;  %v24615_v52 = vld [vmem:[#allocation3 + $0xb0] ss:$8 sps:$4 sm:$0xff]  }
 0x42d   : > { %4446 = vmatprep.subr.bf16.mxu0 %v27228_v30  ;;  %4472 = vmatprep.mubr.bf16.mxu0 %v26174_v14  ;;  %v24618_v30 = vld [vmem:[#allocation3] ss:$8 sps:$4 sm:$0xff]   ;;  %v24657_v37 = vld [vmem:[#allocation3 + $0x130] ss:$8 sps:$4 sm:$0xff]  }
 0x42f   : > { %3162 = vmatpush1.bf16.msra.mxu1 %v24597_v35  ;;  %v24665_v35 = vld [vmem:[#allocation3 + $0x154] ss:$8 sps:$4 sm:$0xff]  }
 0x430   : > { %4447 = vmatpush1.bf16.msra.mxu0 %v27234_v31  ;;  %4854 = vmatprep.subr.bf16.mxu1 %v24602_v25  ;;  %v24623_v31 = vld [vmem:[#allocation3 + $0x14] ss:$8 sps:$4 sm:$0xff]   ;;  %v24663_v25 = vld [vmem:[#allocation3 + $0x150] ss:$8 sps:$4 sm:$0xff]  }
 0x431   : > { %4448 = vmatprep.subr.bf16.mxu0 %v27239_v56  ;;  %v24621_v56 = vld [vmem:[#allocation3 + $0x10] ss:$8 sps:$4 sm:$0xff]  }
 0x432   : > { %19844 = vmatmul.mubr.msk.bf16.vlgmr.msra.gmra.mrb[0].mxu1 %vm1882_vm3, %v26884_v15  ;;  %v24609_v15 = vld [vmem:[#allocation3 + $0x90] ss:$8 sps:$4 sm:$0xff]  }
 0x433   : > { %4855 = vmatpush1.bf16.msra.mxu1 %v24600_v46  ;;  %3191 = vmatprep.mubr.bf16.mxu1 %v26174_v14  ;;  %v24668_v46 = vld [vmem:[#allocation3 + $0x164] ss:$8 sps:$4 sm:$0xff]  }
 0x434   : > { %4449 = vmatpush1.bf16.msra.mxu0 %v27244_v16  ;;  %4856 = vmatprep.subr.bf16.mxu1 %v24605_v47  ;;  %v24624_v16 = vld [vmem:[#allocation3 + $0x20] ss:$8 sps:$4 sm:$0xff]   ;;  %v24671_v47 = vld [vmem:[#allocation3 + $0x174] ss:$8 sps:$4 sm:$0xff]  }
 0x435   : > { %4450 = vmatprep.subr.bf16.mxu0 %v27248_v59  ;;  %v24629_v59 = vld [vmem:[#allocation3 + $0x34] ss:$8 sps:$4 sm:$0xff]  }
 0x437   : > { %4857 = vmatpush1.bf16.msra.mxu1 %v24603_v26  ;;  %v24669_v26 = vld [vmem:[#allocation3 + $0x170] ss:$8 sps:$4 sm:$0xff]  }
 0x438   : > { %4451 = vmatpush1.bf16.msra.mxu0 %v27253_v27  ;;  %4858 = vmatprep.subr.bf16.mxu1 %v24608_v53  ;;  %v24627_v27 = vld [vmem:[#allocation3 + $0x30] ss:$8 sps:$4 sm:$0xff]   ;;  %v24674_v53 = vld [vmem:[#allocation3 + $0x184] ss:$8 sps:$4 sm:$0xff]  }
 0x439   : > { %4452 = vmatprep.subr.bf16.mxu0 %v27257_v7  ;;  %v24632_v7 = vld [vmem:[#allocation3 + $0x44] ss:$8 sps:$4 sm:$0xff]  }
 0x43a   : > { %19845 = vmatmul.mubr.msk.bf16.gmra.mrb[4].mxu1 %vm1882_vm3, %v26896_v39  ;;  %v24620_v39 = vld [vmem:[#allocation3 + $0x4] ss:$8 sps:$4 sm:$0xff]  }
 0x43b   : > { %4859 = vmatpush1.bf16.msra.mxu1 %v24606_v54  ;;  %4886 = vmatprep.mubr.bf16.mxu1 %v26174_v14  ;;  %v24672_v54 = vld [vmem:[#allocation3 + $0x180] ss:$8 sps:$4 sm:$0xff]  }
 0x43c   : > { %4453 = vmatpush1.bf16.msra.mxu0 %v27262_v61  ;;  %4860 = vmatprep.subr.bf16.mxu1 %v24611_v57  ;;  %v24633_v61 = vld [vmem:[#allocation3 + $0x50] ss:$8 sps:$4 sm:$0xff]   ;;  %v24677_v57 = vld [vmem:[#allocation3 + $0x194] ss:$8 sps:$4 sm:$0xff]  }
 0x43f   : > { %19976 = vmatmul.mubr.msk.bf16.vlgmr.msra.gmra.mrb[8].mxu0 %vm1882_vm3, %v26749_v49  ;;  %4861 = vmatpush1.bf16.msra.mxu1 %v24609_v15  ;;  %v24680_v15 = vld [vmem:[#allocation3 + $0x1a4] ss:$8 sps:$4 sm:$0xff]  }
 0x440   : > { %4862 = vmatprep.subr.bf16.mxu1 %v24614_v40  ;;  %4482 = vmatprep.mubr.bf16.mxu0 %v26174_v14  ;;  %v24678_v40 = vld [vmem:[#allocation3 + $0x1a0] ss:$8 sps:$4 sm:$0xff]  }
 0x443   : > { %4863 = vmatpush1.bf16.msra.mxu1 %v24612_v60  ;;  %v24683_v60 = vld [vmem:[#allocation3 + $0x1b4] ss:$8 sps:$4 sm:$0xff]  }
 0x444   : > { %4864 = vmatprep.subr.bf16.mxu1 %v24617_v3  ;;  %v24681_v3 = vld [vmem:[#allocation3 + $0x1b0] ss:$8 sps:$4 sm:$0xff]  }
 0x447   : > { %19977 = vmatmul.mubr.msk.bf16.gmra.mrb[12].mxu0 %vm1882_vm3, %v26740_v44  ;;  %4865 = vmatpush1.bf16.msra.mxu1 %v24615_v52  ;;  %v24686_v52 = vld [vmem:[#allocation3 + $0x1c4] ss:$8 sps:$4 sm:$0xff]  }
 0x448   : > { %4973 = vmatprep.subr.bf16.mxu1 %v24620_v39  ;;  %4627 = vmatprep.mubr.bf16.mxu0 %v26174_v14  ;;  %v24689_v39 = vld [vmem:[#allocation3 + $0x1d4] ss:$8 sps:$4 sm:$0xff]  }
 0x44a   : > { %20017 = vmatmul.mubr.msk.bf16.vlgmr.msra.gmra.mrb[8].mxu1 %vm538_vm2, %v26886_v21  ;;  %v24630_v21 = vld [vmem:[#allocation3 + $0x40] ss:$8 sps:$4 sm:$0xff]  }
 0x44b   : > { %4974 = vmatpush1.bf16.msra.mxu1 %v24618_v30  ;;  %4896 = vmatprep.mubr.bf16.mxu1 %v26174_v14  ;;  %v24687_v30 = vld [vmem:[#allocation3 + $0x1d0] ss:$8 sps:$4 sm:$0xff]  }
 0x44c   : > { %4975 = vmatprep.subr.bf16.mxu1 %v24623_v31  ;;  %v24692_v31 = vld [vmem:[#allocation3 + $0x1e4] ss:$8 sps:$4 sm:$0xff]  }
 0x44f   : > { %4976 = vmatpush1.bf16.msra.mxu1 %v24621_v56  ;;  %v24690_v56 = vld [vmem:[#allocation3 + $0x1e0] ss:$8 sps:$4 sm:$0xff]  }
 0x450   : > { %4977 = vmatprep.subr.bf16.mxu1 %v24626_v22  ;;  %v24695_v22 = vld [vmem:[#allocation3 + $0x1f4] ss:$8 sps:$4 sm:$0xff]  }
 0x452   : > { %20018 = vmatmul.mubr.msk.bf16.gmra.mrb[12].mxu1 %vm538_vm2, %v26906_v43  ;;  %v24972_v43 = vld [vmem:[%s30431_s0 + $0x14] sm:$0xff]  }
 0x453   : > { %4978 = vmatpush1.bf16.msra.mxu1 %v24624_v16  ;;  %5005 = vmatprep.mubr.bf16.mxu1 %v26174_v14  ;;  %v24698_v16 = vld [vmem:[#allocation3 + $0x204] ss:$8 sps:$4 sm:$0xff]  }
 0x454   : > { %4979 = vmatprep.subr.bf16.mxu1 %v24629_v59  ;;  %v24696_v59 = vld [vmem:[#allocation3 + $0x200] ss:$8 sps:$4 sm:$0xff]  }
 0x457   : > { %4980 = vmatpush1.bf16.msra.mxu1 %v24627_v27  ;;  %v24701_v27 = vld [vmem:[#allocation3 + $0x214] ss:$8 sps:$4 sm:$0xff]  }
 0x458   : > { %4981 = vmatprep.subr.bf16.mxu1 %v24632_v7  ;;  %v24699_v7 = vld [vmem:[#allocation3 + $0x210] ss:$8 sps:$4 sm:$0xff]  }
 0x45b   : > { %4982 = vmatpush1.bf16.msra.mxu1 %v24630_v21  ;;  %v24704_v21 = vld [vmem:[#allocation3 + $0x224] ss:$8 sps:$4 sm:$0xff]  }
 0x45c   : > { %4983 = vmatprep.subr.bf16.mxu1 %v24635_v2  ;;  %v24707_v2 = vld [vmem:[#allocation3 + $0x234] ss:$8 sps:$4 sm:$0xff]  }
 0x45f   : > { %4984 = vmatpush1.bf16.msra.mxu1 %v24633_v61  ;;  %v24705_v61 = vld [vmem:[#allocation3 + $0x230] ss:$8 sps:$4 sm:$0xff]  }
 0x460   : > { %5108 = vmatprep.subr.bf16.mxu1 %v24638_v10  ;;  %v24710_v10 = vld [vmem:[#allocation3 + $0x244] ss:$8 sps:$4 sm:$0xff]  }
 0x462   : > { %20031 = vmatmul.mubr.msk.bf16.vlgmr.msra.gmra.mrb[8].mxu1 %vm538_vm2, %v24972_v43  ;;  %v24716_v43 = vld [vmem:[#allocation3 + $0x264] ss:$8 sps:$4 sm:$0xff]  }
 0x463   : > { %5109 = vmatpush1.bf16.msra.mxu1 %v24636_v9  ;;  %5015 = vmatprep.mubr.bf16.mxu1 %v26174_v14  ;;  %v24708_v9 = vld [vmem:[#allocation3 + $0x240] ss:$8 sps:$4 sm:$0xff]  }
 0x464   : > { %5110 = vmatprep.subr.bf16.mxu1 %v24641_v36  ;;  %v24713_v36 = vld [vmem:[#allocation3 + $0x254] ss:$8 sps:$4 sm:$0xff]  }
 0x467   : > { %5111 = vmatpush1.bf16.msra.mxu1 %v24639_v19  ;;  %v24714_v19 = vld [vmem:[#allocation3 + $0x260] ss:$8 sps:$4 sm:$0xff]  }
 0x468   : > { %5112 = vmatprep.subr.bf16.mxu1 %v24644_v18  ;;  %v24719_v18 = vld [vmem:[#allocation3 + $0x274] ss:$8 sps:$4 sm:$0xff]  }
 0x46a   : > { %20032 = vmatmul.mubr.msk.bf16.gmra.mrb[12].mxu1 %vm538_vm2, %v24973_v33  ;;  %v24725_v33 = vld [vmem:[#allocation3 + $0x294] ss:$8 sps:$4 sm:$0xff]  }
 0x46b   : > { %5113 = vmatpush1.bf16.msra.mxu1 %v24642_v20  ;;  %5140 = vmatprep.mubr.bf16.mxu1 %v26174_v14  ;;  %v24717_v20 = vld [vmem:[#allocation3 + $0x270] ss:$8 sps:$4 sm:$0xff]  }
 0x46c   : > { %5114 = vmatprep.subr.bf16.mxu1 %v24647_v29  ;;  %v24722_v29 = vld [vmem:[#allocation3 + $0x284] ss:$8 sps:$4 sm:$0xff]  }
 0x46f   : > { %5115 = vmatpush1.bf16.msra.mxu1 %v24645_v24  ;;  %v24723_v24 = vld [vmem:[#allocation3 + $0x290] ss:$8 sps:$4 sm:$0xff]  }
 0x470   : > { %5116 = vmatprep.subr.bf16.mxu1 %v24650_v38  ;;  %v24728_v38 = vld [vmem:[#allocation3 + $0x2a4] ss:$8 sps:$4 sm:$0xff]  }
 0x473   : > { %5117 = vmatpush1.bf16.msra.mxu1 %v24648_v51  ;;  %v24726_v51 = vld [vmem:[#allocation3 + $0x2a0] ss:$8 sps:$4 sm:$0xff]  }
 0x474   : > { %5118 = vmatprep.subr.bf16.mxu1 %v24653_v12  ;;  %v24731_v12 = vld [vmem:[#allocation3 + $0x2b4] ss:$8 sps:$4 sm:$0xff]  }
 0x477   : > { %5119 = vmatpush1.bf16.msra.mxu1 %v24651_v42  ;;  %v24734_v42 = vld [vmem:[#allocation3 + $0x2c4] ss:$8 sps:$4 sm:$0xff]  }
 0x478   : > { %5268 = vmatprep.subr.bf16.mxu1 %v24656_v34  ;;  %v24732_v34 = vld [vmem:[#allocation3 + $0x2c0] ss:$8 sps:$4 sm:$0xff]  }
 0x47a   : > { %20045 = vmatmul.mubr.msk.bf16.vlgmr.msra.gmra.mrb[8].mxu1 %vm538_vm2, %v26898_v6  ;;  %v24666_v6 = vld [vmem:[#allocation3 + $0x160] ss:$8 sps:$4 sm:$0xff]  }
 0x47b   : > { %5269 = vmatpush1.bf16.msra.mxu1 %v24654_v23  ;;  %5150 = vmatprep.mubr.bf16.mxu1 %v26174_v14  ;;  %v24737_v23 = vld [vmem:[#allocation3 + $0x2d4] ss:$8 sps:$4 sm:$0xff]  }
 0x47c   : > { %5270 = vmatprep.subr.bf16.mxu1 %v24659_v17  ;;  %v24735_v17 = vld [vmem:[#allocation3 + $0x2d0] ss:$8 sps:$4 sm:$0xff]  }
 0x47f   : > { %5271 = vmatpush1.bf16.msra.mxu1 %v24657_v37  ;;  %v24740_v37 = vld [vmem:[#allocation3 + $0x2e4] ss:$8 sps:$4 sm:$0xff]  }
 0x480   : > { %5272 = vmatprep.subr.bf16.mxu1 %v24662_v13  ;;  %v24743_v13 = vld [vmem:[#allocation3 + $0x2f4] ss:$8 sps:$4 sm:$0xff]  }
 0x482   : > { %20046 = vmatmul.mubr.msk.bf16.gmra.mrb[12].mxu1 %vm538_vm2, %v26916_v48  ;;  %v24675_v48 = vld [vmem:[#allocation3 + $0x190] ss:$8 sps:$4 sm:$0xff]  }
 0x483   : > { %5273 = vmatpush1.bf16.msra.mxu1 %v24660_v41  ;;  %5300 = vmatprep.mubr.bf16.mxu1 %v26174_v14  ;;  %v24741_v41 = vld [vmem:[#allocation3 + $0x2f0] ss:$8 sps:$4 sm:$0xff]  }
 0x484   : > { %5274 = vmatprep.subr.bf16.mxu1 %v24665_v35  ;;  %v24746_v35 = vld [vmem:[#allocation3 + $0x304] ss:$8 sps:$4 sm:$0xff]  }
 0x487   : > { %5275 = vmatpush1.bf16.msra.mxu1 %v24663_v25  ;;  %v24744_v25 = vld [vmem:[#allocation3 + $0x300] ss:$8 sps:$4 sm:$0xff]  }
 0x488   : > { %5276 = vmatprep.subr.bf16.mxu1 %v24668_v46  ;;  %v24749_v46 = vld [vmem:[#allocation3 + $0x314] ss:$8 sps:$4 sm:$0xff]  }
 0x48b   : > { %5277 = vmatpush1.bf16.msra.mxu1 %v24666_v6  ;;  %v24752_v6 = vld [vmem:[#allocation3 + $0x324] ss:$8 sps:$4 sm:$0xff]  }
 0x48c   : > { %5278 = vmatprep.subr.bf16.mxu1 %v24671_v47  ;;  %v24750_v47 = vld [vmem:[#allocation3 + $0x320] ss:$8 sps:$4 sm:$0xff]  }
 0x48f   : > { %5279 = vmatpush1.bf16.msra.mxu1 %v24669_v26  ;;  %v24755_v26 = vld [vmem:[#allocation3 + $0x334] ss:$8 sps:$4 sm:$0xff]  }
 0x490   : > { %5411 = vmatprep.subr.bf16.mxu1 %v24674_v53  ;;  %v24753_v53 = vld [vmem:[#allocation3 + $0x330] ss:$8 sps:$4 sm:$0xff]  }
 0x492   : > { %20060 = vmatmul.mubr.msk.bf16.vlgmr.msra.gmra.mrb[8].mxu1 %vm538_vm2, %v26761_v58  ;;  %v24684_v58 = vld [vmem:[#allocation3 + $0x1c0] ss:$8 sps:$4 sm:$0xff]  }
 0x493   : > { %5412 = vmatpush1.bf16.msra.mxu1 %v24672_v54  ;;  %5310 = vmatprep.mubr.bf16.mxu1 %v26174_v14  ;;  %v24758_v54 = vld [vmem:[#allocation3 + $0x344] ss:$8 sps:$4 sm:$0xff]  }
 0x494   : > { %5413 = vmatprep.subr.bf16.mxu1 %v24677_v57  ;;  %v3210_v57 = vld [vmem:[#allocation8] sm:$0x3] }
 0x497   : > { %5414 = vmatpush1.bf16.msra.mxu1 %v24675_v48  ;;  %v24761_v48 = vld [vmem:[#allocation3 + $0x354] ss:$8 sps:$4 sm:$0xff]  }
 0x498   : > { %5415 = vmatprep.subr.bf16.mxu1 %v24680_v15  ;;  %v3215_v15 = vrot.slane %v3210_v57, %v26617_v28 }
 0x49a   : > { %20061 = vmatmul.mubr.msk.bf16.gmra.mrb[12].mxu1 %vm538_vm2, %v26770_v0  ;;  %v24693_v0 = vld [vmem:[#allocation3 + $0x1f0] ss:$8 sps:$4 sm:$0xff]  }
 0x49b   : > { %5416 = vmatpush1.bf16.msra.mxu1 %v24678_v40  ;;  %5443 = vmatprep.mubr.bf16.mxu1 %v26174_v14  ;;  %v3219_v40 = vrot.slane %v3210_v57, %v26619_v32  ;;  %v24810_v57 = vld [vmem:[#allocation7 + $0x3c0] ss:$8 sps:$4 sm:$0xff]  }
 0x49c   : > { %5417 = vmatprep.subr.bf16.mxu1 %v24683_v60  ;;  %v24759_v60 = vld [vmem:[#allocation3 + $0x350] ss:$8 sps:$4 sm:$0xff]  }
 0x49f   : > { %5418 = vmatpush1.bf16.msra.mxu1 %v24681_v3  ;;  %v27368_v3 = vld [vmem:[#allocation7 + $0x74] ss:$8 sps:$4 sm:$0xff]  }
 0x4a0   : > { %5419 = vmatprep.subr.bf16.mxu1 %v24686_v52 }
 0x4a3   : > { %5420 = vmatpush1.bf16.msra.mxu1 %v24684_v58 }
 0x4a4   : > { %5421 = vmatprep.subr.bf16.mxu1 %v24689_v39 }
 0x4a7   : > { %5422 = vmatpush1.bf16.msra.mxu1 %v24687_v30 }
 0x4a8   : > { %5554 = vmatprep.subr.bf16.mxu1 %v24692_v31  ;;  %v27370_v31 = vld [vmem:[#allocation7 + $0x70] ss:$8 sps:$4 sm:$0xff]  }
 0x4aa   : > { %20074 = vmatmul.mubr.msk.bf16.vlgmr.msra.gmra.mrb[8].mxu1 %vm538_vm2, %v26908_v45  ;;  %v24702_v45 = vld [vmem:[#allocation3 + $0x220] ss:$8 sps:$4 sm:$0xff]  }
 0x4ab   : > { %5555 = vmatpush1.bf16.msra.mxu1 %v24690_v56  ;;  %5453 = vmatprep.mubr.bf16.mxu1 %v26174_v14 }
 0x4ac   : > { %5556 = vmatprep.subr.bf16.mxu1 %v24695_v22 }
 0x4af   : > { %5557 = vmatpush1.bf16.msra.mxu1 %v24693_v0 }
 0x4b0   : > { %5558 = vmatprep.subr.bf16.mxu1 %v24698_v16  ;;  %v27373_v16 = vld [vmem:[#allocation7 + $0x84] ss:$8 sps:$4 sm:$0xff]  }
 0x4b2   : > { %20075 = vmatmul.mubr.msk.bf16.gmra.mrb[12].mxu1 %vm538_vm2, %v26926_v55  ;;  %v24711_v55 = vld [vmem:[#allocation3 + $0x250] ss:$8 sps:$4 sm:$0xff]  }
 0x4b3   : > { %5559 = vmatpush1.bf16.msra.mxu1 %v24696_v59  ;;  %5586 = vmatprep.mubr.bf16.mxu1 %v26174_v14 }
 0x4b4   : > { %5560 = vmatprep.subr.bf16.mxu1 %v24701_v27 }
 0x4b7   : > { %5561 = vmatpush1.bf16.msra.mxu1 %v24699_v7 }
 0x4b8   : > { %5562 = vmatprep.subr.bf16.mxu1 %v24704_v21 }
 0x4bb   : > { %5563 = vmatpush1.bf16.msra.mxu1 %v24702_v45 }
 0x4bc   : > { %5564 = vmatprep.subr.bf16.mxu1 %v24707_v2 }
 0x4bf   : > { %5565 = vmatpush1.bf16.msra.mxu1 %v24705_v61  ;;  %v27383_v61 = vld [vmem:[#allocation7 + $0x80] ss:$8 sps:$4 sm:$0xff]  }
 0x4c0   : > { %5698 = vmatprep.subr.bf16.mxu1 %v24710_v10  ;;  %v27386_v10 = vld [vmem:[#allocation7 + $0x94] ss:$8 sps:$4 sm:$0xff]  }
 0x4c2   : > { %20088 = vmatmul.mubr.msk.bf16.vlgmr.msra.gmra.mrb[8].mxu1 %vm538_vm2, %v26919_v50  ;;  %v24720_v50 = vld [vmem:[#allocation3 + $0x280] ss:$8 sps:$4 sm:$0xff]  }
 0x4c3   : > { %5699 = vmatpush1.bf16.msra.mxu1 %v24708_v9  ;;  %5596 = vmatprep.mubr.bf16.mxu1 %v26174_v14 }
 0x4c4   : > { %5700 = vmatprep.subr.bf16.mxu1 %v24713_v36 }
 0x4c7   : > { %5701 = vmatpush1.bf16.msra.mxu1 %v24711_v55 }
 0x4c8   : > { %5702 = vmatprep.subr.bf16.mxu1 %v24716_v43 }
 0x4ca   : > { %20089 = vmatmul.mubr.msk.bf16.gmra.mrb[12].mxu1 %vm538_vm2, %v26939_v63  ;;  %v24729_v63 = vld [vmem:[#allocation3 + $0x2b0] ss:$8 sps:$4 sm:$0xff]  }
 0x4cb   : > { %5703 = vmatpush1.bf16.msra.mxu1 %v24714_v19  ;;  %5730 = vmatprep.mubr.bf16.mxu1 %v26174_v14 }
 0x4cc   : > { %5704 = vmatprep.subr.bf16.mxu1 %v24719_v18  ;;  %v27393_v18 = vld [vmem:[#allocation7 + $0x90] ss:$8 sps:$4 sm:$0xff]  }
 0x4cf   : > { %5705 = vmatpush1.bf16.msra.mxu1 %v24717_v20 }
 0x4d0   : > { %5706 = vmatprep.subr.bf16.mxu1 %v24722_v29 }
 0x4d3   : > { %5707 = vmatpush1.bf16.msra.mxu1 %v24720_v50 }
 0x4d4   : > { %5708 = vmatprep.subr.bf16.mxu1 %v24725_v33  ;;  %v27396_v33 = vld [vmem:[#allocation7 + $0xa4] ss:$8 sps:$4 sm:$0xff]  }
 0x4d7   : > { %5709 = vmatpush1.bf16.msra.mxu1 %v24723_v24 }
 0x4d8   : > { %5841 = vmatprep.subr.bf16.mxu1 %v24728_v38 }
 0x4da   : > { %20102 = vmatmul.mubr.msk.bf16.vlgmr.msra.gmra.mrb[8].mxu1 %vm538_vm2, %v26773_v1  ;;  %v24738_v1 = vld [vmem:[#allocation3 + $0x2e0] ss:$8 sps:$4 sm:$0xff]  }
 0x4db   : > { %5842 = vmatpush1.bf16.msra.mxu1 %v24726_v51  ;;  %5740 = vmatprep.mubr.bf16.mxu1 %v26174_v14 }
 0x4dc   : > { %5843 = vmatprep.subr.bf16.mxu1 %v24731_v12 }
 0x4df   : > { %5844 = vmatpush1.bf16.msra.mxu1 %v24729_v63 }
 0x4e0   : > { %5845 = vmatprep.subr.bf16.mxu1 %v24734_v42  ;;  %v27401_v42 = vld [vmem:[#allocation7 + $0xa0] ss:$8 sps:$4 sm:$0xff]  }
 0x4e2   : > { %20103 = vmatmul.mubr.msk.bf16.gmra.mrb[12].mxu1 %vm538_vm2, %v26784_v4  ;;  %v24747_v4 = vld [vmem:[#allocation3 + $0x310] ss:$8 sps:$4 sm:$0xff]  }
 0x4e3   : > { %5846 = vmatpush1.bf16.msra.mxu1 %v24732_v34  ;;  %5873 = vmatprep.mubr.bf16.mxu1 %v26174_v14 }
 0x4e4   : > { %5847 = vmatprep.subr.bf16.mxu1 %v24737_v23  ;;  %v27409_v23 = vld [vmem:[#allocation7 + $0xb4] ss:$8 sps:$4 sm:$0xff]  }
 0x4e7   : > { %5848 = vmatpush1.bf16.msra.mxu1 %v24735_v17  ;;  %v27416_v17 = vld [vmem:[#allocation7 + $0xb0] ss:$8 sps:$4 sm:$0xff]  }
 0x4e8   : > { %5849 = vmatprep.subr.bf16.mxu1 %v24740_v37  ;;  %v27420_v37 = vld [vmem:[#allocation7 + $0xc4] ss:$8 sps:$4 sm:$0xff]  }
 0x4eb   : > { %5850 = vmatpush1.bf16.msra.mxu1 %v24738_v1  ;;  %v27422_v1 = vld [vmem:[#allocation7 + $0xc0] ss:$8 sps:$4 sm:$0xff]  }
 0x4ec   : > { %5851 = vmatprep.subr.bf16.mxu1 %v24743_v13  ;;  %v27426_v13 = vld [vmem:[#allocation7 + $0xd4] ss:$8 sps:$4 sm:$0xff]  }
 0x4ef   : > { %5852 = vmatpush1.bf16.msra.mxu1 %v24741_v41  ;;  %v27428_v41 = vld [vmem:[#allocation7 + $0xd0] ss:$8 sps:$4 sm:$0xff]  }
 0x4f0   : > { %5984 = vmatprep.subr.bf16.mxu1 %v24746_v35  ;;  %v27432_v35 = vld [vmem:[#allocation7 + $0x4] ss:$8 sps:$4 sm:$0xff]  }
 0x4f2   : > { %20116 = vmatmul.mubr.msk.bf16.vlgmr.msra.gmra.mrb[8].mxu1 %vm538_vm2, %v26937_v62  ;;  %v24756_v62 = vld [vmem:[#allocation3 + $0x340] ss:$8 sps:$4 sm:$0xff]  }
 0x4f3   : > { %5985 = vmatpush1.bf16.msra.mxu1 %v24744_v25  ;;  %5883 = vmatprep.mubr.bf16.mxu1 %v26174_v14  ;;  %v24786_v25 = vld [vmem:[#allocation7 + $0x380] ss:$8 sps:$4 sm:$0xff]  }
 0x4f4   : > { %5986 = vmatprep.subr.bf16.mxu1 %v24749_v46  ;;  %v24788_v46 = vld [vmem:[#allocation7 + $0x384] ss:$8 sps:$4 sm:$0xff]  }
 0x4f5   : > { %4595 = vmatprep.subr.bf16.mxu0 %v24788_v46 }
 0x4f6   : > { %4596 = vmatpush1.bf16.msra.mxu0 %v24786_v25  ;;  %v27458_v25 = vld [vmem:[#allocation7 + $0x24] ss:$8 sps:$4 sm:$0xff]  }
 0x4f7   : > { %5987 = vmatpush1.bf16.msra.mxu1 %v24747_v4  ;;  %v24794_v4 = vld [vmem:[#allocation7 + $0x394] ss:$8 sps:$4 sm:$0xff]  }
 0x4f8   : > { %5988 = vmatprep.subr.bf16.mxu1 %v24752_v6  ;;  %v24792_v6 = vld [vmem:[#allocation7 + $0x390] ss:$8 sps:$4 sm:$0xff]   ;;  %4597 = vmatprep.subr.bf16.mxu0 %v24794_v4 }
 0x4fa   : > { %20117 = vmatmul.mubr.msk.bf16.gmra.mrb[12].mxu1 %vm538_vm2, %v26949_v8  ;;  %4598 = vmatpush1.bf16.msra.mxu0 %v24792_v6 }
 0x4fb   : > { %5989 = vmatpush1.bf16.msra.mxu1 %v24750_v47  ;;  %6016 = vmatprep.mubr.bf16.mxu1 %v26174_v14  ;;  %v24800_v47 = vld [vmem:[#allocation7 + $0x3a4] ss:$8 sps:$4 sm:$0xff]  }
 0x4fc   : > { %5990 = vmatprep.subr.bf16.mxu1 %v24755_v26  ;;  %v24798_v26 = vld [vmem:[#allocation7 + $0x3a0] ss:$8 sps:$4 sm:$0xff]   ;;  %4599 = vmatprep.subr.bf16.mxu0 %v24800_v47 }
 0x4fe   : > { %4600 = vmatpush1.bf16.msra.mxu0 %v24798_v26 }
 0x4ff   : > { %5991 = vmatpush1.bf16.msra.mxu1 %v24753_v53  ;;  %v24806_v53 = vld [vmem:[#allocation7 + $0x3b4] ss:$8 sps:$4 sm:$0xff]  }
 0x500   : > { %5992 = vmatprep.subr.bf16.mxu1 %v24758_v54  ;;  %v24804_v54 = vld [vmem:[#allocation7 + $0x3b0] ss:$8 sps:$4 sm:$0xff]   ;;  %4601 = vmatprep.subr.bf16.mxu0 %v24806_v53  ;;  %v27465_v53 = vld [vmem:[#allocation7 + $0x20] ss:$8 sps:$4 sm:$0xff]  }
 0x502   : > { %4602 = vmatpush1.bf16.msra.mxu0 %v24804_v54 }
 0x503   : > { %5993 = vmatpush1.bf16.msra.mxu1 %v24756_v62  ;;  %v24812_v62 = vld [vmem:[#allocation7 + $0x3c4] ss:$8 sps:$4 sm:$0xff]  }
 0x504   : > { %5994 = vmatprep.subr.bf16.mxu1 %v24761_v48  ;;  %4603 = vmatprep.subr.bf16.mxu0 %v24812_v62  ;;  %v24818_v48 = vld [vmem:[#allocation7 + $0x3d4] ss:$8 sps:$4 sm:$0xff]  }
 0x505   : > { %v3183_v8 = vpop.f32.mrb[0].mxu1 }
 0x506   : > { %v3222_v52 = vadd.f32 %v3215_v15, %v3183_v8  ;;  %v3185_v58 = vpop.f32.mrb[1].mxu1  ;;  %4604 = vmatpush1.bf16.msra.mxu0 %v24810_v57  ;;  %v24822_v8 = vld [vmem:[#allocation7 + $0x3e0] ss:$8 sps:$4 sm:$0xff]   ;;  %v27468_v57 = vld [vmem:[#allocation7 + $0x34] ss:$8 sps:$4 sm:$0xff]  }
 0x507   : > { %v3223_v39 = vadd.f32 %v3219_v40, %v3185_v58  ;;  %v3187_v30 = vpop.f32.mrb[2].mxu1  ;;  %5995 = vmatpush1.bf16.msra.mxu1 %v24759_v60  ;;  %4605 = vmatprep.subr.bf16.mxu0 %v24818_v48  ;;  %v6045_v60 = vld [vmem:[#allocation5] sm:$0x3] }
 0x508   : > { %v3230_v56 = vmax.f32 %v3222_v52, 0.0  ;;  %v3224_v22 = vadd.f32 %v3215_v15, %v3187_v30  ;;  %v3189_v0 = vpop.f32.mrb[3].mxu1  ;;  %7659 = vmatprep.subr.bf16.mxu1 %v27368_v3  ;;  %v6050_v52 = vrot.slane %v6045_v60, %v26617_v28  ;;  %v6054_v58 = vrot.slane %v6045_v60, %v26619_v32 }
 0x509   : > { %v3231_v59 = vmax.f32 %v3223_v39, 0.0  ;;  %v3225_v27 = vadd.f32 %v3219_v40, %v3189_v0 }
 0x50a   : > { %v3232_v21 = vmax.f32 %v3224_v22, 0.0  ;;  %20130 = vmatmul.mubr.msk.bf16.vlgmr.msra.gmra.mrb[8].mxu1 %vm538_vm2, %v26951_v5 }
 0x50b   : > { %v23053_v45 = vpack.c.bf16 %v3231_v59, %v3230_v56  ;;  %v3233_v2 = vmax.f32 %v3225_v27, 0.0  ;;  %6026 = vmatprep.mubr.bf16.mxu1 %v26174_v14  ;;  %7660 = vmatpush1.bf16.msra.mxu1 %v27370_v31 }
 0x50c   : > { %7661 = vmatprep.subr.bf16.mxu1 %v27373_v16 }
 0x50d   : > { %3265 = vst.msk [vmem:[#allocation2] sm:$0xff] %vm27375_vm7, %v23053_v45  ;;  %v23054_v9 = vpack.c.bf16 %v3233_v2, %v3232_v21  ;;  %v3193_v36 = vpop.f32.mrb[4].mxu1 }
 0x50e   : > { %v3226_v55 = vadd.f32 %v3215_v15, %v3193_v36  ;;  %v3195_v43 = vpop.f32.mrb[5].mxu1 }
 0x50f   : > { %3266 = vst.msk [vmem:[#allocation2 + $0x10] sm:$0xff] %vm27375_vm7, %v23054_v9  ;;  %v3227_v5 = vadd.f32 %v3219_v40, %v3195_v43  ;;  %v3197_v19 = vpop.f32.mrb[6].mxu1  ;;  %7662 = vmatpush1.bf16.msra.mxu1 %v27383_v61  ;;  %v27440_v43 = vld [vmem:[#allocation7] ss:$8 sps:$4 sm:$0xff]  }
 0x510   : > { %v3234_v20 = vmax.f32 %v3226_v55, 0.0  ;;  %v3228_v29 = vadd.f32 %v3215_v15, %v3197_v19  ;;  %v3199_v50 = vpop.f32.mrb[7].mxu1  ;;  %7663 = vmatprep.subr.bf16.mxu1 %v27386_v10  ;;  %v24816_v15 = vld [vmem:[#allocation7 + $0x3d0] ss:$8 sps:$4 sm:$0xff]   ;;  %v27444_v19 = vld [vmem:[#allocation7 + $0x14] ss:$8 sps:$4 sm:$0xff]  }
 0x511   : > { %v3235_v24 = vmax.f32 %v3227_v5, 0.0  ;;  %v3229_v38 = vadd.f32 %v3219_v40, %v3199_v50  ;;  %4606 = vmatpush1.bf16.msra.mxu0 %v24816_v15  ;;  %v24824_v40 = vld [vmem:[#allocation7 + $0x3e4] ss:$8 sps:$4 sm:$0xff]  }
 0x512   : > { %v3236_v51 = vmax.f32 %v3228_v29, 0.0  ;;  %20131 = vmatmul.mubr.msk.bf16.gmra.mrb[12].mxu1 %vm538_vm2, %v26962_v11  ;;  %4607 = vmatprep.subr.bf16.mxu0 %v24824_v40  ;;  %v27477_v40 = vld [vmem:[#allocation7 + $0x30] ss:$8 sps:$4 sm:$0xff]  }
 0x513   : > { %v23055_v12 = vpack.c.bf16 %v3235_v24, %v3234_v20  ;;  %v3237_v63 = vmax.f32 %v3229_v38, 0.0  ;;  %7664 = vmatpush1.bf16.msra.mxu1 %v27393_v18  ;;  %7691 = vmatprep.mubr.bf16.mxu1 %v26174_v14 }
 0x514   : > { %7665 = vmatprep.subr.bf16.mxu1 %v27396_v33 }
 0x515   : > { %3267 = vst.msk [vmem:[#allocation2 + $0x20] sm:$0xff] %vm27375_vm7, %v23055_v12  ;;  %v23056_v11 = vpack.c.bf16 %v3237_v63, %v3236_v51  ;;  %4608 = vmatpush1.bf16.msra.mxu0 %v24822_v8  ;;  %v27454_v12 = vld [vmem:[#allocation7 + $0x10] ss:$8 sps:$4 sm:$0xff]  }
 0x516   : > { %6187 = vmatprep.subr.bf16.mxu0 %v27368_v3 }
 0x517   : > { %3271 = vst.msk [vmem:[#allocation2 + $0x30] sm:$0x77] %vm27404_vm10, %v23056_v11  ;;  %7666 = vmatpush1.bf16.msra.mxu1 %v27401_v42 }
 0x518   : > { %7667 = vmatprep.subr.bf16.mxu1 %v27409_v23 }
 0x51b   : > { %7668 = vmatpush1.bf16.msra.mxu1 %v27416_v17 }
 0x51c   : > { %7669 = vmatprep.subr.bf16.mxu1 %v27420_v37 }
 0x51f   : > { %7670 = vmatpush1.bf16.msra.mxu1 %v27422_v1 }
 0x520   : > { %7671 = vmatprep.subr.bf16.mxu1 %v27426_v13 }
 0x523   : > { %7672 = vmatpush1.bf16.msra.mxu1 %v27428_v41 }
 0x524   : > { %7798 = vmatprep.subr.bf16.mxu1 %v27432_v35 }
 0x5dd   : > { %v6018_v39 = vpop.f32.mrb[8].mxu1 }
 0x5de   : > { %v6057_v30 = vadd.f32 %v6050_v52, %v6018_v39  ;;  %v6020_v56 = vpop.f32.mrb[9].mxu1 }
 0x5df   : > { %v6058_v22 = vadd.f32 %v6054_v58, %v6020_v56  ;;  %v6022_v0 = vpop.f32.mrb[10].mxu1  ;;  %v27492_v56 = vld [vmem:[#allocation7 + $0x40] ss:$8 sps:$4 sm:$0xff]  }
 0x5e0   : > { %v6059_v59 = vadd.f32 %v6050_v52, %v6022_v0  ;;  %v6024_v27 = vpop.f32.mrb[11].mxu1  ;;  %v6065_v45 = vmax.f32 %v6057_v30, 0.0 }
 0x5e1   : > { %v6060_v21 = vadd.f32 %v6054_v58, %v6024_v27  ;;  %v6066_v9 = vmax.f32 %v6058_v22, 0.0  ;;  %v27495_v22 = vld [vmem:[#allocation7 + $0x54] ss:$8 sps:$4 sm:$0xff]   ;;  %v27502_v27 = vld [vmem:[#allocation7 + $0x50] ss:$8 sps:$4 sm:$0xff]  }
 0x5e2   : > { %v6067_v2 = vmax.f32 %v6059_v59, 0.0 }
 0x5e3   : > { %v6068_v36 = vmax.f32 %v6060_v21, 0.0  ;;  %v27505_v21 = vld [vmem:[#allocation7 + $0x64] ss:$8 sps:$4 sm:$0xff]  }
 0x5e4   : > { %v27438_v55 = vpack.c.bf16 %v6067_v2, %v6065_v45 }
 0x5e5   : > { %v27442_v5 = vpack.c.bf16 %v6068_v36, %v6066_v9  ;;  %v6028_v3 = vpop.f32.mrb[12].mxu1  ;;  %v27516_v9 = vld [vmem:[#allocation7 + $0x60] ss:$8 sps:$4 sm:$0xff]  }
 0x5e6   : > { %v6061_v20 = vadd.f32 %v6050_v52, %v6028_v3  ;;  %7712 = vrot.lane.b32.xlu0 %v27438_v55, %s26177_s27  ;;  %v6030_v29 = vpop.f32.mrb[13].mxu1  ;;  %v6548_v15 = vshll.u32 %v27438_v55, 16  ;;  %v27521_v3 = vld [vmem:[#allocation7 + $0xe4] ss:$8 sps:$4 sm:$0xff]  }
 0x5e7   : > { %v6062_v50 = vadd.f32 %v6054_v58, %v6030_v29  ;;  %7714 = vrot.lane.b32.xlu1 %v27442_v5, %s26177_s27  ;;  %v6032_v24 = vpop.f32.mrb[14].mxu1  ;;  %20294 = vmatmul.mubr.msk.bf16.vlgmr.msra.gmra.mrb[16].mxu1 %vm1882_vm3, %v27442_v5  ;;  %v6868_v11 = vshll.u32 %v27442_v5, 16 }
 0x5e8   : > { %v6063_v38 = vadd.f32 %v6050_v52, %v6032_v24  ;;  %v6034_v51 = vpop.f32.mrb[15].mxu1  ;;  %7701 = vmatprep.mubr.bf16.mxu1 %v26174_v14  ;;  %7799 = vmatpush1.bf16.msra.mxu1 %v27440_v43  ;;  %v6069_v46 = vmax.f32 %v6061_v20, 0.0  ;;  %v27481_v52 = vld [vmem:[#allocation7 + $0x44] ss:$8 sps:$4 sm:$0xff]   ;;  %v6550_v30 = vrot.slane %v6548_v15, 1  ;;  %v7041_v24 = vrot.slane %v27438_v55, 1 }
 0x5e9   : > { %v6064_v63 = vadd.f32 %v6054_v58, %v6034_v51  ;;  %7800 = vmatprep.subr.bf16.mxu1 %v27444_v19  ;;  %v6070_v6 = vmax.f32 %v6062_v50, 0.0  ;;  %v6870_v62 = vrot.slane %v6868_v11, 1  ;;  %v27613_v15 = vld [vmem:[#allocation7 + $0x100] ss:$8 sps:$4 sm:$0xff]  }
 0x5ea   : > { %v6071_v4 = vmax.f32 %v6063_v38, 0.0  ;;  %4515 = vrot.lane.b32.xlu0 %v26749_v49, %s26175_s21  ;;  %v6866_v49 = vshrl.u32 %v27442_v5, 16 }
 0x5eb   : > { %v6072_v47 = vmax.f32 %v6064_v63, 0.0  ;;  %v7350_v63 = vrot.slane %v27442_v5, 1 }
 0x5ec   : > { %v27462_v26 = vpack.c.bf16 %v6071_v4, %v6069_v46  ;;  %7801 = vmatpush1.bf16.msra.mxu1 %v27454_v12  ;;  %v6871_v60 = vor.u32 %v6870_v62, %v6866_v49  ;;  %v27595_v46 = vld [vmem:[#allocation7 + $0xe0] ss:$8 sps:$4 sm:$0xff]   ;;  %v27602_v62 = vld [vmem:[#allocation7 + $0xf0] ss:$8 sps:$4 sm:$0xff]   ;;  %v27607_v49 = vld [vmem:[#allocation7 + $0x104] ss:$8 sps:$4 sm:$0xff]  }
 0x5ed   : > { %v6076_v54 = vpack.c.bf16 %v6072_v47, %v6070_v6  ;;  %7802 = vmatprep.subr.bf16.mxu1 %v27458_v25  ;;  %v27597_v6 = vld [vmem:[#allocation7 + $0xf4] ss:$8 sps:$4 sm:$0xff]  }
 0x5ee   : > { %7716 = vrot.lane.b32.xlu1 %v27462_v26, %s26177_s27  ;;  %v6552_v58 = vshll.u32 %v27462_v26, 16  ;;  %v6556_v2 = vshrl.u32 %v27462_v26, 16  ;;  %v27541_v50 = vrot.slane %v27462_v26, 1 }
 0x5ef   : > { %7718 = vrot.lane.b32.xlu0 %v6076_v54, %s26177_s27  ;;  %20295 = vmatmul.mubr.msk.bf16.gmra.mrb[20].mxu1 %vm1882_vm3, %v6076_v54  ;;  %v6873_v48 = vshll.u32 %v6076_v54, 16  ;;  %v6877_v20 = vshrl.u32 %v6076_v54, 16  ;;  %v27546_v38 = vrot.slane %v6076_v54, 1 }
 0x5f0   : > { %7803 = vmatpush1.bf16.msra.mxu1 %v27465_v53  ;;  %7830 = vmatprep.mubr.bf16.mxu1 %v26174_v14  ;;  %v6554_v0 = vrot.slane %v6552_v58, 1  ;;  %v27552_v51 = vsel %vm1324_vm1, %v7041_v24, %v27541_v50  ;;  %v27722_v24 = vld [vmem:[#allocation7 + $0x1c0] ss:$8 sps:$4 sm:$0xff]  }
 0x5f1   : > { %v6875_v8 = vrot.slane %v6873_v48, 1  ;;  %7804 = vmatprep.subr.bf16.mxu1 %v27468_v57  ;;  %v27559_v11 = vsel %vm1324_vm1, %v7350_v63, %v27546_v38  ;;  %vm4742_vm1 = vcmask 518144  }
 0x5f2   : > { %4517 = vrot.lane.b32.xlu1 %v26740_v44, %s26175_s21  ;;  %v6546_v44 = vshrl.u32 %v27438_v55, 16  ;;  %v27518_v36 = vor.u32 %v6556_v2, %v6554_v0  ;;  %v27687_v2 = vld [vmem:[#allocation7 + $0x180] ss:$8 sps:$4 sm:$0xff]  }
 0x5f3   : > { %7865 = vrot.lane.b32.xlu0 %v27442_v5, %s26175_s21  ;;  %v27489_v39 = vsel %vm877_vm0, %v6871_v60, %v6875_v8  ;;  %v27527_v29 = vor.u32 %v6877_v20, %v6875_v8  ;;  %v27616_v8 = vld [vmem:[#allocation7 + $0x114] ss:$8 sps:$4 sm:$0xff]   ;;  %v27706_v20 = vld [vmem:[#allocation7 + $0x1a0] ss:$8 sps:$4 sm:$0xff]  }
 0x5f4   : > { %7805 = vmatpush1.bf16.msra.mxu1 %v27477_v40  ;;  %v6551_v59 = vor.u32 %v6550_v30, %v6546_v44  ;;  %v27628_v30 = vld [vmem:[#allocation7 + $0x124] ss:$8 sps:$4 sm:$0xff]   ;;  %v27642_v44 = vld [vmem:[#allocation7 + $0x130] ss:$8 sps:$4 sm:$0xff]  }
 0x5f5   : > { %7806 = vmatprep.subr.bf16.mxu1 %v27481_v52 }
 0x5f6   : > { %6107 = vrot.lane.b32.xlu1 %v27438_v55, %s26175_s21  ;;  %v27510_v45 = vsel %vm877_vm0, %v6551_v59, %v6554_v0  ;;  %vm4739_vm0 = vcmask 1046532  }
 0x5f7   : > { %7867 = vrot.lane.b32.xlu0 %v6076_v54, %s26175_s21 }
 0x5f8   : > { %7807 = vmatpush1.bf16.msra.mxu1 %v27492_v56 }
 0x5f9   : > { %7808 = vmatprep.subr.bf16.mxu1 %v27495_v22 }
 0x5fa   : > { %6109 = vrot.lane.b32.xlu1 %v27462_v26, %s26175_s21 }
 0x5fb   : > { %8020 = vrot.lane.b32.xlu0 %v27510_v45, %s26177_s27 }
 0x5fc   : > { %7809 = vmatpush1.bf16.msra.mxu1 %v27502_v27 }
 0x5fd   : > { %7810 = vmatprep.subr.bf16.mxu1 %v27505_v21 }
 0x5fe   : > { %8022 = vrot.lane.b32.xlu1 %v27489_v39, %s26177_s27 }
 0x5ff   : > { %8024 = vrot.lane.b32.xlu0 %v27518_v36, %s26177_s27 }
 0x600   : > { %7811 = vmatpush1.bf16.msra.mxu1 %v27516_v9 }
 0x601   : > { %7945 = vmatprep.subr.bf16.mxu1 %v27521_v3 }
 0x602   : > { %8026 = vrot.lane.b32.xlu1 %v27527_v29, %s26177_s27 }
 0x603   : > { %6385 = vrot.lane.b32.xlu0 %v27438_v55, %s26176_s13 }
 0x606   : > { %6387 = vrot.lane.b32.xlu1 %v27442_v5, %s26176_s13 }
 0x607   : > { %6389 = vrot.lane.b32.xlu0 %v27462_v26, %s26176_s13 }
 0x60a   : > { %6391 = vrot.lane.b32.xlu1 %v6076_v54, %s26176_s13 }
 0x60b   : > { %8332 = vrot.lane.b32.xlu0 %v27489_v39, %s26175_s21 }
 0x60e   : > { %8334 = vrot.lane.b32.xlu1 %v27527_v29, %s26175_s21 }
 0x60f   : > { %8487 = vrot.lane.b32.xlu0 %v27552_v51, %s26177_s27 }
 0x612   : > { %8489 = vrot.lane.b32.xlu1 %v27559_v11, %s26177_s27 }
 0x613   : > { %6710 = vrot.lane.b32.xlu0 %v27510_v45, %s26175_s21 }
 0x616   : > { %8491 = vrot.lane.b32.xlu1 %v27541_v50, %s26177_s27 }
 0x617   : > { %8493 = vrot.lane.b32.xlu0 %v27546_v38, %s26177_s27 }
 0x61a   : > { %6712 = vrot.lane.b32.xlu1 %v27518_v36, %s26175_s21 }
 0x61b   : > { %6880 = vrot.lane.b32.xlu0 %v27510_v45, %s26176_s13 }
 0x61e   : > { %6882 = vrot.lane.b32.xlu1 %v27489_v39, %s26176_s13 }
 0x61f   : > { %6884 = vrot.lane.b32.xlu0 %v27518_v36, %s26176_s13 }
 0x622   : > { %6886 = vrot.lane.b32.xlu1 %v27527_v29, %s26176_s13 }
 0x623   : > { %8799 = vrot.lane.b32.xlu0 %v27559_v11, %s26175_s21 }
 0x626   : > { %8801 = vrot.lane.b32.xlu1 %v27546_v38, %s26175_s21 }
 0x627   : > { %7195 = vrot.lane.b32.xlu0 %v27552_v51, %s26175_s21 }
 0x62a   : > { %7197 = vrot.lane.b32.xlu1 %v27541_v50, %s26175_s21 }
 0x62b   : > { %7353 = vrot.lane.b32.xlu0 %v27552_v51, %s26176_s13 }
 0x62e   : > { %7355 = vrot.lane.b32.xlu1 %v27559_v11, %s26176_s13 }
 0x62f   : > { %7357 = vrot.lane.b32.xlu0 %v27541_v50, %s26176_s13 }
 0x632   : > { %7359 = vrot.lane.b32.xlu1 %v27546_v38, %s26176_s13 }
 0x658   : > { %v7713_v5 = vpop.permute.xlu0 %7712 }
 0x659   : > { %v7715_v4 = vpop.permute.xlu1 %7714 }
 0x65a   : > { %v7720_v47 = vsel %vm3435_vm4, %v7713_v5, %v7715_v4  ;;  %v27747_v4 = vld [vmem:[#allocation7 + $0x1f4] ss:$8 sps:$4 sm:$0xff]  }
 0x65b   : > { %20310 = vmatmul.mubr.msk.bf16.vlgmr.msra.gmra.mrb[16].mxu1 %vm1882_vm3, %v7720_v47  ;;  %v27766_v47 = vld [vmem:[#allocation7 + $0x200] ss:$8 sps:$4 sm:$0xff]  }
 0x65c   : > { %7946 = vmatpush1.bf16.msra.mxu1 %v27595_v46  ;;  %v4516_v54 = vpop.permute.xlu0 %4515  ;;  %7840 = vmatprep.mubr.bf16.mxu1 %v26174_v14 }
 0x65d   : > { %19992 = vmatmul.mubr.msk.bf16.vlgmr.msra.gmra.mrb[8].mxu0 %vm1882_vm3, %v4516_v54  ;;  %7947 = vmatprep.subr.bf16.mxu1 %v27597_v6  ;;  %v27769_v54 = vld [vmem:[#allocation7 + $0x214] ss:$8 sps:$4 sm:$0xff]  }
 0x65e   : > { %6188 = vmatpush1.bf16.msra.mxu0 %v27370_v31  ;;  %4637 = vmatprep.mubr.bf16.mxu0 %v26174_v14 }
 0x65f   : > { %6189 = vmatprep.subr.bf16.mxu0 %v27373_v16  ;;  %v27623_v16 = vld [vmem:[#allocation7 + $0x110] ss:$8 sps:$4 sm:$0xff]  }
 0x660   : > { %7948 = vmatpush1.bf16.msra.mxu1 %v27602_v62  ;;  %v7717_v48 = vpop.permute.xlu1 %7716 }
 0x661   : > { %v7719_v60 = vpop.permute.xlu0 %7718  ;;  %7949 = vmatprep.subr.bf16.mxu1 %v27607_v49 }
 0x662   : > { %v7721_v58 = vsel %vm3435_vm4, %v7717_v48, %v7719_v60  ;;  %6190 = vmatpush1.bf16.msra.mxu0 %v27383_v61  ;;  %v27634_v61 = vld [vmem:[#allocation7 + $0x120] ss:$8 sps:$4 sm:$0xff]   ;;  %v27785_v48 = vld [vmem:[#allocation7 + $0x234] ss:$8 sps:$4 sm:$0xff]  }
 0x663   : > { %20311 = vmatmul.mubr.msk.bf16.gmra.mrb[20].mxu1 %vm1882_vm3, %v7721_v58  ;;  %6191 = vmatprep.subr.bf16.mxu0 %v27386_v10  ;;  %v27637_v10 = vld [vmem:[#allocation7 + $0x134] ss:$8 sps:$4 sm:$0xff]  }
 0x664   : > { %7950 = vmatpush1.bf16.msra.mxu1 %v27613_v15  ;;  %v4518_v31 = vpop.permute.xlu1 %4517  ;;  %7977 = vmatprep.mubr.bf16.mxu1 %v26174_v14 }
 0x665   : > { %19993 = vmatmul.mubr.msk.bf16.gmra.mrb[12].mxu0 %vm1882_vm3, %v4518_v31  ;;  %7951 = vmatprep.subr.bf16.mxu1 %v27616_v8 }
 0x666   : > { %6192 = vmatpush1.bf16.msra.mxu0 %v27393_v18  ;;  %6219 = vmatprep.mubr.bf16.mxu0 %v26174_v14  ;;  %v27645_v18 = vld [vmem:[#allocation7 + $0x144] ss:$8 sps:$4 sm:$0xff]  }
 0x667   : > { %6193 = vmatprep.subr.bf16.mxu0 %v27396_v33  ;;  %v27650_v33 = vld [vmem:[#allocation7 + $0x140] ss:$8 sps:$4 sm:$0xff]  }
 0x668   : > { %7952 = vmatpush1.bf16.msra.mxu1 %v27623_v16  ;;  %v6108_v0 = vpop.permute.xlu1 %6107 }
 0x669   : > { %7953 = vmatprep.subr.bf16.mxu1 %v27628_v30 }
 0x66a   : > { %6194 = vmatpush1.bf16.msra.mxu0 %v27401_v42  ;;  %v27653_v42 = vld [vmem:[#allocation7 + $0x154] ss:$8 sps:$4 sm:$0xff]  }
 0x66b   : > { %6195 = vmatprep.subr.bf16.mxu0 %v27409_v23  ;;  %v27658_v23 = vld [vmem:[#allocation7 + $0x150] ss:$8 sps:$4 sm:$0xff]  }
 0x66c   : > { %7954 = vmatpush1.bf16.msra.mxu1 %v27634_v61 }
 0x66d   : > { %7955 = vmatprep.subr.bf16.mxu1 %v27637_v10 }
 0x66e   : > { %6196 = vmatpush1.bf16.msra.mxu0 %v27416_v17  ;;  %v27661_v17 = vld [vmem:[#allocation7 + $0x164] ss:$8 sps:$4 sm:$0xff]  }
 0x66f   : > { %6197 = vmatprep.subr.bf16.mxu0 %v27420_v37  ;;  %v7866_v37 = vpop.permute.xlu0 %7865 }
 0x670   : > { %7956 = vmatpush1.bf16.msra.mxu1 %v27642_v44 }
 0x671   : > { %7957 = vmatprep.subr.bf16.mxu1 %v27645_v18 }
 0x672   : > { %6198 = vmatpush1.bf16.msra.mxu0 %v27422_v1  ;;  %v27667_v1 = vld [vmem:[#allocation7 + $0x160] ss:$8 sps:$4 sm:$0xff]  }
 0x673   : > { %6199 = vmatprep.subr.bf16.mxu0 %v27426_v13  ;;  %v27672_v13 = vld [vmem:[#allocation7 + $0x174] ss:$8 sps:$4 sm:$0xff]   ;;  %v7868_v59 = vpop.permute.xlu0 %7867 }
 0x674   : > { %7958 = vmatpush1.bf16.msra.mxu1 %v27650_v33 }
 0x675   : > { %8106 = vmatprep.subr.bf16.mxu1 %v27653_v42 }
 0x676   : > { %6200 = vmatpush1.bf16.msra.mxu0 %v27428_v41  ;;  %v27678_v41 = vld [vmem:[#allocation7 + $0x170] ss:$8 sps:$4 sm:$0xff]  }
 0x677   : > { %20326 = vmatmul.mubr.msk.bf16.vlgmr.msra.gmra.mrb[16].mxu1 %vm1882_vm3, %v7866_v37  ;;  %6316 = vmatprep.subr.bf16.mxu0 %v27432_v35  ;;  %v27681_v35 = vld [vmem:[#allocation7 + $0x184] ss:$8 sps:$4 sm:$0xff]   ;;  %v27845_v37 = vld [vmem:[#allocation7 + $0x294] ss:$8 sps:$4 sm:$0xff]  }
 0x678   : > { %8107 = vmatpush1.bf16.msra.mxu1 %v27658_v23  ;;  %7987 = vmatprep.mubr.bf16.mxu1 %v26174_v14 }
 0x679   : > { %20146 = vmatmul.mubr.msk.bf16.vlgmr.msra.gmra.mrb[16].mxu0 %vm1882_vm3, %v6108_v0  ;;  %8108 = vmatprep.subr.bf16.mxu1 %v27661_v17  ;;  %v27850_v0 = vld [vmem:[#allocation7 + $0x290] ss:$8 sps:$4 sm:$0xff]  }
 0x67a   : > { %6317 = vmatpush1.bf16.msra.mxu0 %v27440_v43  ;;  %6229 = vmatprep.mubr.bf16.mxu0 %v26174_v14  ;;  %v6110_v43 = vpop.permute.xlu1 %6109 }
 0x67b   : > { %6318 = vmatprep.subr.bf16.mxu0 %v27444_v19  ;;  %v27692_v19 = vld [vmem:[#allocation7 + $0x194] ss:$8 sps:$4 sm:$0xff]  }
 0x67c   : > { %8109 = vmatpush1.bf16.msra.mxu1 %v27667_v1 }
 0x67d   : > { %8110 = vmatprep.subr.bf16.mxu1 %v27672_v13 }
 0x67e   : > { %6319 = vmatpush1.bf16.msra.mxu0 %v27454_v12  ;;  %v27698_v12 = vld [vmem:[#allocation7 + $0x190] ss:$8 sps:$4 sm:$0xff]  }
 0x67f   : > { %20327 = vmatmul.mubr.msk.bf16.gmra.mrb[20].mxu1 %vm1882_vm3, %v7868_v59  ;;  %6320 = vmatprep.subr.bf16.mxu0 %v27458_v25  ;;  %v27701_v25 = vld [vmem:[#allocation7 + $0x1a4] ss:$8 sps:$4 sm:$0xff]   ;;  %v27867_v59 = vld [vmem:[#allocation7 + $0x2b0] ss:$8 sps:$4 sm:$0xff]  }
 0x680   : > { %8111 = vmatpush1.bf16.msra.mxu1 %v27678_v41  ;;  %8138 = vmatprep.mubr.bf16.mxu1 %v26174_v14 }
 0x681   : > { %20147 = vmatmul.mubr.msk.bf16.gmra.mrb[20].mxu0 %vm1882_vm3, %v6110_v43  ;;  %8112 = vmatprep.subr.bf16.mxu1 %v27681_v35  ;;  %v27873_v43 = vld [vmem:[#allocation7 + $0x2c4] ss:$8 sps:$4 sm:$0xff]  }
 0x682   : > { %6321 = vmatpush1.bf16.msra.mxu0 %v27465_v53  ;;  %6348 = vmatprep.mubr.bf16.mxu0 %v26174_v14  ;;  %v27709_v53 = vld [vmem:[#allocation7 + $0x1b4] ss:$8 sps:$4 sm:$0xff]  }
 0x683   : > { %6322 = vmatprep.subr.bf16.mxu0 %v27468_v57  ;;  %v27714_v57 = vld [vmem:[#allocation7 + $0x1b0] ss:$8 sps:$4 sm:$0xff]  }
 0x684   : > { %8113 = vmatpush1.bf16.msra.mxu1 %v27687_v2 }
 0x685   : > { %8114 = vmatprep.subr.bf16.mxu1 %v27692_v19 }
 0x686   : > { %6323 = vmatpush1.bf16.msra.mxu0 %v27477_v40  ;;  %v27717_v40 = vld [vmem:[#allocation7 + $0x1c4] ss:$8 sps:$4 sm:$0xff]  }
 0x687   : > { %6324 = vmatprep.subr.bf16.mxu0 %v27481_v52  ;;  %v8023_v52 = vpop.permute.xlu1 %8022 }
 0x688   : > { %8115 = vmatpush1.bf16.msra.mxu1 %v27698_v12 }
 0x689   : > { %8116 = vmatprep.subr.bf16.mxu1 %v27701_v25 }
 0x68a   : > { %6325 = vmatpush1.bf16.msra.mxu0 %v27492_v56  ;;  %v8021_v56 = vpop.permute.xlu0 %8020 }
 0x68b   : > { %6326 = vmatprep.subr.bf16.mxu0 %v27495_v22  ;;  %v27725_v22 = vld [vmem:[#allocation7 + $0x1d4] ss:$8 sps:$4 sm:$0xff]   ;;  %v8028_v63 = vsel %vm3435_vm4, %v8021_v56, %v8023_v52  ;;  %v27916_v52 = vld [vmem:[#allocation7 + $0x300] ss:$8 sps:$4 sm:$0xff]  }
 0x68c   : > { %8117 = vmatpush1.bf16.msra.mxu1 %v27706_v20 }
 0x68d   : > { %8118 = vmatprep.subr.bf16.mxu1 %v27709_v53 }
 0x68e   : > { %6327 = vmatpush1.bf16.msra.mxu0 %v27502_v27  ;;  %v27732_v27 = vld [vmem:[#allocation7 + $0x1d0] ss:$8 sps:$4 sm:$0xff]   ;;  %v8025_v5 = vpop.permute.xlu0 %8024 }
 0x68f   : > { %6328 = vmatprep.subr.bf16.mxu0 %v27505_v21  ;;  %v27738_v21 = vld [vmem:[#allocation7 + $0x1e4] ss:$8 sps:$4 sm:$0xff]  }
 0x690   : > { %8119 = vmatpush1.bf16.msra.mxu1 %v27714_v57 }
 0x691   : > { %8257 = vmatprep.subr.bf16.mxu1 %v27717_v40 }
 0x692   : > { %6329 = vmatpush1.bf16.msra.mxu0 %v27516_v9  ;;  %v8027_v9 = vpop.permute.xlu1 %8026  ;;  %v6386_v58 = vpop.permute.xlu0 %6385 }
 0x693   : > { %20342 = vmatmul.mubr.msk.bf16.vlgmr.msra.gmra.mrb[16].mxu1 %vm1882_vm3, %v8028_v63  ;;  %6471 = vmatprep.subr.bf16.mxu0 %v27521_v3  ;;  %v27744_v3 = vld [vmem:[#allocation7 + $0x1e0] ss:$8 sps:$4 sm:$0xff]  }
 0x694   : > { %8258 = vmatpush1.bf16.msra.mxu1 %v27722_v24  ;;  %8148 = vmatprep.mubr.bf16.mxu1 %v26174_v14 }
 0x695   : > { %20162 = vmatmul.mubr.msk.bf16.vlgmr.msra.gmra.mrb[16].mxu0 %vm1882_vm3, %v27438_v55  ;;  %8259 = vmatprep.subr.bf16.mxu1 %v27725_v22  ;;  %v8029_v55 = vsel %vm3435_vm4, %v8025_v5, %v8027_v9  ;;  %v27934_v9 = vld [vmem:[#allocation7 + $0x320] ss:$8 sps:$4 sm:$0xff]  }
 0x696   : > { %6472 = vmatpush1.bf16.msra.mxu0 %v27595_v46  ;;  %6358 = vmatprep.mubr.bf16.mxu0 %v26174_v14  ;;  %v27754_v46 = vld [vmem:[#allocation7 + $0x1f0] ss:$8 sps:$4 sm:$0xff]   ;;  %v6388_v60 = vpop.permute.xlu1 %6387 }
 0x697   : > { %6473 = vmatprep.subr.bf16.mxu0 %v27597_v6  ;;  %v27760_v6 = vld [vmem:[#allocation7 + $0x204] ss:$8 sps:$4 sm:$0xff]   ;;  %v6393_v31 = vsel %vm538_vm2, %v6386_v58, %v6388_v60  ;;  %v27982_v60 = vld [vmem:[#allocation7 + $0x370] ss:$8 sps:$4 sm:$0xff]   ;;  %v27990_v58 = vld [vmem:[#allocation7 + $0x380] ss:$8 sps:$4 sm:$0xff]  }
 0x698   : > { %8260 = vmatpush1.bf16.msra.mxu1 %v27732_v27 }
 0x699   : > { %8261 = vmatprep.subr.bf16.mxu1 %v27738_v21 }
 0x69a   : > { %6474 = vmatpush1.bf16.msra.mxu0 %v27602_v62  ;;  %v27777_v62 = vld [vmem:[#allocation7 + $0x224] ss:$8 sps:$4 sm:$0xff]  }
 0x69b   : > { %20343 = vmatmul.mubr.msk.bf16.gmra.mrb[20].mxu1 %vm1882_vm3, %v8029_v55  ;;  %6475 = vmatprep.subr.bf16.mxu0 %v27607_v49  ;;  %v27782_v49 = vld [vmem:[#allocation7 + $0x220] ss:$8 sps:$4 sm:$0xff]   ;;  %v27945_v55 = vld [vmem:[#allocation7 + $0x330] ss:$8 sps:$4 sm:$0xff]  }
 0x69c   : > { %8262 = vmatpush1.bf16.msra.mxu1 %v27744_v3  ;;  %8289 = vmatprep.mubr.bf16.mxu1 %v26174_v14 }
 0x69d   : > { %20163 = vmatmul.mubr.msk.bf16.gmra.mrb[20].mxu0 %vm1882_vm3, %v27462_v26  ;;  %8263 = vmatprep.subr.bf16.mxu1 %v27747_v4  ;;  %v27774_v26 = vld [vmem:[#allocation7 + $0x210] ss:$8 sps:$4 sm:$0xff]  }
 0x69e   : > { %6476 = vmatpush1.bf16.msra.mxu0 %v27613_v15  ;;  %6503 = vmatprep.mubr.bf16.mxu0 %v26174_v14  ;;  %v27790_v15 = vld [vmem:[#allocation7 + $0x230] ss:$8 sps:$4 sm:$0xff]  }
 0x69f   : > { %6477 = vmatprep.subr.bf16.mxu0 %v27616_v8  ;;  %v27793_v8 = vld [vmem:[#allocation7 + $0x244] ss:$8 sps:$4 sm:$0xff]  }
 0x6a0   : > { %8264 = vmatpush1.bf16.msra.mxu1 %v27754_v46 }
 0x6a1   : > { %8265 = vmatprep.subr.bf16.mxu1 %v27760_v6 }
 0x6a2   : > { %6478 = vmatpush1.bf16.msra.mxu0 %v27623_v16  ;;  %v27801_v16 = vld [vmem:[#allocation7 + $0x240] ss:$8 sps:$4 sm:$0xff]  }
 0x6a3   : > { %6479 = vmatprep.subr.bf16.mxu0 %v27628_v30  ;;  %v27806_v30 = vld [vmem:[#allocation7 + $0x254] ss:$8 sps:$4 sm:$0xff]  }
 0x6a4   : > { %8266 = vmatpush1.bf16.msra.mxu1 %v27766_v47 }
 0x6a5   : > { %8267 = vmatprep.subr.bf16.mxu1 %v27769_v54 }
 0x6a6   : > { %6480 = vmatpush1.bf16.msra.mxu0 %v27634_v61  ;;  %v6392_v61 = vpop.permute.xlu1 %6391 }
 0x6a7   : > { %6481 = vmatprep.subr.bf16.mxu0 %v27637_v10  ;;  %v27815_v10 = vld [vmem:[#allocation7 + $0x264] ss:$8 sps:$4 sm:$0xff]  }
 0x6a8   : > { %8268 = vmatpush1.bf16.msra.mxu1 %v27774_v26 }
 0x6a9   : > { %8269 = vmatprep.subr.bf16.mxu1 %v27777_v62 }
 0x6aa   : > { %6482 = vmatpush1.bf16.msra.mxu0 %v27642_v44  ;;  %v6390_v44 = vpop.permute.xlu0 %6389 }
 0x6ab   : > { %6483 = vmatprep.subr.bf16.mxu0 %v27645_v18  ;;  %v6394_v18 = vsel %vm538_vm2, %v6390_v44, %v6392_v61  ;;  %v28001_v61 = vld [vmem:[#allocation7 + $0x390] ss:$8 sps:$4 sm:$0xff]  }
 0x6ac   : > { %8270 = vmatpush1.bf16.msra.mxu1 %v27782_v49 }
 0x6ad   : > { %8412 = vmatprep.subr.bf16.mxu1 %v27785_v48 }
 0x6ae   : > { %6484 = vmatpush1.bf16.msra.mxu0 %v27650_v33  ;;  %v27823_v33 = vld [vmem:[#allocation7 + $0x260] ss:$8 sps:$4 sm:$0xff]  }
 0x6af   : > { %20358 = vmatmul.mubr.msk.bf16.vlgmr.msra.gmra.mrb[16].mxu1 %vm1882_vm3, %v27489_v39  ;;  %6635 = vmatprep.subr.bf16.mxu0 %v27653_v42  ;;  %v27812_v39 = vld [vmem:[#allocation7 + $0x250] ss:$8 sps:$4 sm:$0xff]   ;;  %v27828_v42 = vld [vmem:[#allocation7 + $0x274] ss:$8 sps:$4 sm:$0xff]  }
 0x6b0   : > { %8413 = vmatpush1.bf16.msra.mxu1 %v27790_v15  ;;  %8299 = vmatprep.mubr.bf16.mxu1 %v26174_v14 }
 0x6b1   : > { %20178 = vmatmul.mubr.msk.bf16.vlgmr.msra.gmra.mrb[16].mxu0 %vm1882_vm3, %v6393_v31  ;;  %8414 = vmatprep.subr.bf16.mxu1 %v27793_v8 }
 0x6b2   : > { %6636 = vmatpush1.bf16.msra.mxu0 %v27658_v23  ;;  %6513 = vmatprep.mubr.bf16.mxu0 %v26174_v14  ;;  %v27837_v23 = vld [vmem:[#allocation7 + $0x284] ss:$8 sps:$4 sm:$0xff]  }
 0x6b3   : > { %6637 = vmatprep.subr.bf16.mxu0 %v27661_v17  ;;  %v27842_v17 = vld [vmem:[#allocation7 + $0x280] ss:$8 sps:$4 sm:$0xff]  }
 0x6b4   : > { %8415 = vmatpush1.bf16.msra.mxu1 %v27801_v16 }
 0x6b5   : > { %8416 = vmatprep.subr.bf16.mxu1 %v27806_v30 }
 0x6b6   : > { %6638 = vmatpush1.bf16.msra.mxu0 %v27667_v1  ;;  %v27853_v1 = vld [vmem:[#allocation7 + $0x2a4] ss:$8 sps:$4 sm:$0xff]  }
 0x6b7   : > { %20359 = vmatmul.mubr.msk.bf16.gmra.mrb[20].mxu1 %vm1882_vm3, %v27527_v29  ;;  %6639 = vmatprep.subr.bf16.mxu0 %v27672_v13  ;;  %v27834_v29 = vld [vmem:[#allocation7 + $0x270] ss:$8 sps:$4 sm:$0xff]   ;;  %v27858_v13 = vld [vmem:[#allocation7 + $0x2a0] ss:$8 sps:$4 sm:$0xff]  }
 0x6b8   : > { %8417 = vmatpush1.bf16.msra.mxu1 %v27812_v39  ;;  %8444 = vmatprep.mubr.bf16.mxu1 %v26174_v14 }
 0x6b9   : > { %20179 = vmatmul.mubr.msk.bf16.gmra.mrb[20].mxu0 %vm1882_vm3, %v6394_v18  ;;  %8418 = vmatprep.subr.bf16.mxu1 %v27815_v10  ;;  %v28015_v18 = vld [vmem:[#allocation7 + $0x3b4] ss:$8 sps:$4 sm:$0xff]  }
 0x6ba   : > { %6640 = vmatpush1.bf16.msra.mxu0 %v27678_v41  ;;  %6667 = vmatprep.mubr.bf16.mxu0 %v26174_v14  ;;  %v27861_v41 = vld [vmem:[#allocation7 + $0x2b4] ss:$8 sps:$4 sm:$0xff]  }
 0x6bb   : > { %6641 = vmatprep.subr.bf16.mxu0 %v27681_v35  ;;  %v8333_v35 = vpop.permute.xlu0 %8332 }
 0x6bc   : > { %8419 = vmatpush1.bf16.msra.mxu1 %v27823_v33 }
 0x6bd   : > { %8420 = vmatprep.subr.bf16.mxu1 %v27828_v42 }
 0x6be   : > { %6642 = vmatpush1.bf16.msra.mxu0 %v27687_v2  ;;  %v27879_v2 = vld [vmem:[#allocation7 + $0x2c0] ss:$8 sps:$4 sm:$0xff]  }
 0x6bf   : > { %6643 = vmatprep.subr.bf16.mxu0 %v27692_v19  ;;  %v27882_v19 = vld [vmem:[#allocation7 + $0x2d4] ss:$8 sps:$4 sm:$0xff]  }
 0x6c0   : > { %8421 = vmatpush1.bf16.msra.mxu1 %v27834_v29 }
 0x6c1   : > { %8422 = vmatprep.subr.bf16.mxu1 %v27837_v23 }
 0x6c2   : > { %6644 = vmatpush1.bf16.msra.mxu0 %v27698_v12  ;;  %v8335_v12 = vpop.permute.xlu1 %8334 }
 0x6c3   : > { %6645 = vmatprep.subr.bf16.mxu0 %v27701_v25  ;;  %v27894_v25 = vld [vmem:[#allocation7 + $0x2e4] ss:$8 sps:$4 sm:$0xff]  }
 0x6c4   : > { %8423 = vmatpush1.bf16.msra.mxu1 %v27842_v17 }
 0x6c5   : > { %8424 = vmatprep.subr.bf16.mxu1 %v27845_v37 }
 0x6c6   : > { %6646 = vmatpush1.bf16.msra.mxu0 %v27706_v20  ;;  %v27900_v20 = vld [vmem:[#allocation7 + $0x2e0] ss:$8 sps:$4 sm:$0xff]   ;;  %v8490_v56 = vpop.permute.xlu1 %8489 }
 0x6c7   : > { %6647 = vmatprep.subr.bf16.mxu0 %v27709_v53  ;;  %v27903_v53 = vld [vmem:[#allocation7 + $0x2f4] ss:$8 sps:$4 sm:$0xff]  }
 0x6c8   : > { %8425 = vmatpush1.bf16.msra.mxu1 %v27850_v0 }
 0x6c9   : > { %8573 = vmatprep.subr.bf16.mxu1 %v27853_v1 }
 0x6ca   : > { %6648 = vmatpush1.bf16.msra.mxu0 %v27714_v57  ;;  %v27911_v57 = vld [vmem:[#allocation7 + $0x304] ss:$8 sps:$4 sm:$0xff]   ;;  %v8492_v5 = vpop.permute.xlu1 %8491 }
 0x6cb   : > { %20374 = vmatmul.mubr.msk.bf16.vlgmr.msra.gmra.mrb[16].mxu1 %vm1882_vm3, %v8333_v35  ;;  %6790 = vmatprep.subr.bf16.mxu0 %v27717_v40  ;;  %v8488_v40 = vpop.permute.xlu0 %8487  ;;  %v4656_v35 = vld [vmem:[#allocation8] sm:$0x3] }
 0x6cc   : > { %8574 = vmatpush1.bf16.msra.mxu1 %v27858_v13  ;;  %8454 = vmatprep.mubr.bf16.mxu1 %v26174_v14 }
 0x6cd   : > { %20194 = vmatmul.mubr.msk.bf16.vlgmr.msra.gmra.mrb[16].mxu0 %vm1882_vm3, %v27510_v45  ;;  %8575 = vmatprep.subr.bf16.mxu1 %v27861_v41  ;;  %v27888_v45 = vld [vmem:[#allocation7 + $0x2d0] ss:$8 sps:$4 sm:$0xff]  }
 0x6ce   : > { %6791 = vmatpush1.bf16.msra.mxu0 %v27722_v24  ;;  %6677 = vmatprep.mubr.bf16.mxu0 %v26174_v14  ;;  %v27919_v24 = vld [vmem:[#allocation7 + $0x314] ss:$8 sps:$4 sm:$0xff]  }
 0x6cf   : > { %6792 = vmatprep.subr.bf16.mxu0 %v27725_v22  ;;  %v27924_v22 = vld [vmem:[#allocation7 + $0x310] ss:$8 sps:$4 sm:$0xff]   ;;  %v6711_v63 = vpop.permute.xlu0 %6710 }
 0x6d0   : > { %8576 = vmatpush1.bf16.msra.mxu1 %v27867_v59 }
 0x6d1   : > { %8577 = vmatprep.subr.bf16.mxu1 %v27873_v43 }
 0x6d2   : > { %6793 = vmatpush1.bf16.msra.mxu0 %v27732_v27  ;;  %v27927_v27 = vld [vmem:[#allocation7 + $0x324] ss:$8 sps:$4 sm:$0xff]  }
 0x6d3   : > { %20375 = vmatmul.mubr.msk.bf16.gmra.mrb[20].mxu1 %vm1882_vm3, %v8335_v12  ;;  %6794 = vmatprep.subr.bf16.mxu0 %v27738_v21  ;;  %v8495_v21 = vsel %vm3435_vm4, %v8488_v40, %v8490_v56 }
 0x6d4   : > { %8578 = vmatpush1.bf16.msra.mxu1 %v27879_v2  ;;  %8605 = vmatprep.mubr.bf16.mxu1 %v26174_v14 }
 0x6d5   : > { %20195 = vmatmul.mubr.msk.bf16.gmra.mrb[20].mxu0 %vm1882_vm3, %v27518_v36  ;;  %8579 = vmatprep.subr.bf16.mxu1 %v27882_v19  ;;  %v27908_v36 = vld [vmem:[#allocation7 + $0x2f0] ss:$8 sps:$4 sm:$0xff]  }
 0x6d6   : > { %6795 = vmatpush1.bf16.msra.mxu0 %v27744_v3  ;;  %6822 = vmatprep.mubr.bf16.mxu0 %v26174_v14  ;;  %v27939_v3 = vld [vmem:[#allocation7 + $0x334] ss:$8 sps:$4 sm:$0xff]  }
 0x6d7   : > { %6796 = vmatprep.subr.bf16.mxu0 %v27747_v4  ;;  %v8494_v4 = vpop.permute.xlu0 %8493 }
 0x6d8   : > { %8580 = vmatpush1.bf16.msra.mxu1 %v27888_v45 }
 0x6d9   : > { %8581 = vmatprep.subr.bf16.mxu1 %v27894_v25 }
 0x6da   : > { %6797 = vmatpush1.bf16.msra.mxu0 %v27754_v46  ;;  %v27948_v46 = vld [vmem:[#allocation7 + $0x344] ss:$8 sps:$4 sm:$0xff]  }
 0x6db   : > { %6798 = vmatprep.subr.bf16.mxu0 %v27760_v6  ;;  %v8496_v6 = vsel %vm3435_vm4, %v8492_v5, %v8494_v4 }
 0x6dc   : > { %8582 = vmatpush1.bf16.msra.mxu1 %v27900_v20 }
 0x6dd   : > { %8583 = vmatprep.subr.bf16.mxu1 %v27903_v53 }
 0x6de   : > { %6799 = vmatpush1.bf16.msra.mxu0 %v27766_v47  ;;  %v6713_v47 = vpop.permute.xlu1 %6712 }
 0x6df   : > { %6800 = vmatprep.subr.bf16.mxu0 %v27769_v54  ;;  %v27955_v54 = vld [vmem:[#allocation7 + $0x340] ss:$8 sps:$4 sm:$0xff]  }
 0x6e0   : > { %8584 = vmatpush1.bf16.msra.mxu1 %v27908_v36 }
 0x6e1   : > { %8585 = vmatprep.subr.bf16.mxu1 %v27911_v57 }
 0x6e2   : > { %6801 = vmatpush1.bf16.msra.mxu0 %v27774_v26  ;;  %v27960_v26 = vld [vmem:[#allocation7 + $0x354] ss:$8 sps:$4 sm:$0xff]   ;;  %v6883_v31 = vpop.permute.xlu1 %6882 }
 0x6e3   : > { %6802 = vmatprep.subr.bf16.mxu0 %v27777_v62  ;;  %v27966_v62 = vld [vmem:[#allocation7 + $0x350] ss:$8 sps:$4 sm:$0xff]  }
 0x6e4   : > { %8586 = vmatpush1.bf16.msra.mxu1 %v27916_v52 }
 0x6e5   : > { %8724 = vmatprep.subr.bf16.mxu1 %v27919_v24 }
 0x6e6   : > { %6803 = vmatpush1.bf16.msra.mxu0 %v27782_v49  ;;  %v27969_v49 = vld [vmem:[#allocation7 + $0x364] ss:$8 sps:$4 sm:$0xff]   ;;  %v6887_v44 = vpop.permute.xlu1 %6886 }
 0x6e7   : > { %20390 = vmatmul.mubr.msk.bf16.vlgmr.msra.gmra.mrb[16].mxu1 %vm1882_vm3, %v8495_v21  ;;  %6966 = vmatprep.subr.bf16.mxu0 %v27785_v48  ;;  %v27974_v48 = vld [vmem:[#allocation7 + $0x360] ss:$8 sps:$4 sm:$0xff]  }
 0x6e8   : > { %8725 = vmatpush1.bf16.msra.mxu1 %v27924_v22  ;;  %8615 = vmatprep.mubr.bf16.mxu1 %v26174_v14 }
 0x6e9   : > { %20210 = vmatmul.mubr.msk.bf16.vlgmr.msra.gmra.mrb[16].mxu0 %vm1882_vm3, %v6711_v63  ;;  %8726 = vmatprep.subr.bf16.mxu1 %v27927_v27 }
 0x6ea   : > { %6967 = vmatpush1.bf16.msra.mxu0 %v27790_v15  ;;  %6832 = vmatprep.mubr.bf16.mxu0 %v26174_v14  ;;  %v27977_v15 = vld [vmem:[#allocation7 + $0x374] ss:$8 sps:$4 sm:$0xff]  }
 0x6eb   : > { %6968 = vmatprep.subr.bf16.mxu0 %v27793_v8  ;;  %v27985_v8 = vld [vmem:[#allocation7 + $0x384] ss:$8 sps:$4 sm:$0xff]  }
 0x6ec   : > { %8727 = vmatpush1.bf16.msra.mxu1 %v27934_v9 }
 0x6ed   : > { %8728 = vmatprep.subr.bf16.mxu1 %v27939_v3 }
 0x6ee   : > { %6969 = vmatpush1.bf16.msra.mxu0 %v27801_v16  ;;  %v27993_v16 = vld [vmem:[#allocation7 + $0x394] ss:$8 sps:$4 sm:$0xff]  }
 0x6ef   : > { %20391 = vmatmul.mubr.msk.bf16.gmra.mrb[20].mxu1 %vm1882_vm3, %v8496_v6  ;;  %6970 = vmatprep.subr.bf16.mxu0 %v27806_v30  ;;  %v6881_v30 = vpop.permute.xlu0 %6880 }
 0x6f0   : > { %8729 = vmatpush1.bf16.msra.mxu1 %v27945_v55  ;;  %8756 = vmatprep.mubr.bf16.mxu1 %v26174_v14 }
 0x6f1   : > { %20211 = vmatmul.mubr.msk.bf16.gmra.mrb[20].mxu0 %vm1882_vm3, %v6713_v47  ;;  %8730 = vmatprep.subr.bf16.mxu1 %v27948_v46 }
 0x6f2   : > { %6971 = vmatpush1.bf16.msra.mxu0 %v27812_v39  ;;  %6998 = vmatprep.mubr.bf16.mxu0 %v26174_v14  ;;  %v6888_v39 = vsel %vm538_vm2, %v6881_v30, %v6883_v31 }
 0x6f3   : > { %6972 = vmatprep.subr.bf16.mxu0 %v27815_v10  ;;  %v28006_v10 = vld [vmem:[#allocation7 + $0x3a4] ss:$8 sps:$4 sm:$0xff]  }
 0x6f4   : > { %8731 = vmatpush1.bf16.msra.mxu1 %v27955_v54 }
 0x6f5   : > { %8732 = vmatprep.subr.bf16.mxu1 %v27960_v26 }
 0x6f6   : > { %6973 = vmatpush1.bf16.msra.mxu0 %v27823_v33  ;;  %v6885_v33 = vpop.permute.xlu0 %6884 }
 0x6f7   : > { %6974 = vmatprep.subr.bf16.mxu0 %v27828_v42  ;;  %v6889_v42 = vsel %vm538_vm2, %v6885_v33, %v6887_v44 }
 0x6f8   : > { %8733 = vmatpush1.bf16.msra.mxu1 %v27966_v62 }
 0x6f9   : > { %8734 = vmatprep.subr.bf16.mxu1 %v27969_v49 }
 0x6fa   : > { %6975 = vmatpush1.bf16.msra.mxu0 %v27834_v29  ;;  %v28023_v29 = vld [vmem:[#allocation7 + $0x3b0] ss:$8 sps:$4 sm:$0xff]  }
 0x6fb   : > { %6976 = vmatprep.subr.bf16.mxu0 %v27837_v23  ;;  %v28028_v23 = vld [vmem:[#allocation7 + $0x3c4] ss:$8 sps:$4 sm:$0xff]  }
 0x6fc   : > { %8735 = vmatpush1.bf16.msra.mxu1 %v27974_v48 }
 0x6fd   : > { %8736 = vmatprep.subr.bf16.mxu1 %v27977_v15 }
 0x6fe   : > { %6977 = vmatpush1.bf16.msra.mxu0 %v27842_v17  ;;  %v28037_v17 = vld [vmem:[#allocation7 + $0x3d4] ss:$8 sps:$4 sm:$0xff]  }
 0x6ff   : > { %6978 = vmatprep.subr.bf16.mxu0 %v27845_v37  ;;  %v28042_v37 = vld [vmem:[#allocation7 + $0x3d0] ss:$8 sps:$4 sm:$0xff]  }
 0x700   : > { %8737 = vmatpush1.bf16.msra.mxu1 %v27982_v60 }
 0x701   : > { %8879 = vmatprep.subr.bf16.mxu1 %v27985_v8 }
 0x702   : > { %6979 = vmatpush1.bf16.msra.mxu0 %v27850_v0  ;;  %v28045_v0 = vld [vmem:[#allocation7 + $0x3e4] ss:$8 sps:$4 sm:$0xff]  }
 0x703   : > { %20406 = vmatmul.mubr.msk.bf16.vlgmr.msra.gmra.mrb[16].mxu1 %vm1882_vm3, %v27559_v11  ;;  %7120 = vmatprep.subr.bf16.mxu0 %v27853_v1  ;;  %v28012_v11 = vld [vmem:[#allocation7 + $0x3a0] ss:$8 sps:$4 sm:$0xff]  }
 0x704   : > { %8880 = vmatpush1.bf16.msra.mxu1 %v27990_v58  ;;  %8766 = vmatprep.mubr.bf16.mxu1 %v26174_v14  ;;  %v28050_v1 = vld [vmem:[#allocation7 + $0x3e0] ss:$8 sps:$4 sm:$0xff]  }
 0x705   : > { %20226 = vmatmul.mubr.msk.bf16.vlgmr.msra.gmra.mrb[16].mxu0 %vm1882_vm3, %v6888_v39  ;;  %8881 = vmatprep.subr.bf16.mxu1 %v27993_v16 }
 0x706   : > { %7121 = vmatpush1.bf16.msra.mxu0 %v27858_v13  ;;  %7008 = vmatprep.mubr.bf16.mxu0 %v26174_v14  ;;  %v8800_v13 = vpop.permute.xlu0 %8799 }
 0x707   : > { %7122 = vmatprep.subr.bf16.mxu0 %v27861_v41  ;;  %v8802_v41 = vpop.permute.xlu1 %8801 }
 0x708   : > { %8882 = vmatpush1.bf16.msra.mxu1 %v28001_v61 }
 0x709   : > { %8883 = vmatprep.subr.bf16.mxu1 %v28006_v10 }
 0x70a   : > { %7123 = vmatpush1.bf16.msra.mxu0 %v27867_v59  ;;  %v4665_v59 = vrot.slane %v4656_v35, %v26619_v32  ;;  %v7196_v4 = vpop.permute.xlu0 %7195 }
 0x70b   : > { %20407 = vmatmul.mubr.msk.bf16.gmra.mrb[20].mxu1 %vm1882_vm3, %v27546_v38  ;;  %7124 = vmatprep.subr.bf16.mxu0 %v27873_v43  ;;  %v28034_v38 = vld [vmem:[#allocation7 + $0x3c0] ss:$8 sps:$4 sm:$0xff]  }
 0x70c   : > { %8884 = vmatpush1.bf16.msra.mxu1 %v28012_v11  ;;  %8911 = vmatprep.mubr.bf16.mxu1 %v26174_v14 }
 0x70d   : > { %20227 = vmatmul.mubr.msk.bf16.gmra.mrb[20].mxu0 %vm1882_vm3, %v6889_v42  ;;  %8885 = vmatprep.subr.bf16.mxu1 %v28015_v18 }
 0x70e   : > { %7125 = vmatpush1.bf16.msra.mxu0 %v27879_v2  ;;  %7152 = vmatprep.mubr.bf16.mxu0 %v26174_v14 }
 0x70f   : > { %7126 = vmatprep.subr.bf16.mxu0 %v27882_v19 }
 0x710   : > { %8886 = vmatpush1.bf16.msra.mxu1 %v28023_v29 }
 0x711   : > { %8887 = vmatprep.subr.bf16.mxu1 %v28028_v23 }
 0x712   : > { %7127 = vmatpush1.bf16.msra.mxu0 %v27888_v45 }
 0x713   : > { %7128 = vmatprep.subr.bf16.mxu0 %v27894_v25 }
 0x714   : > { %8888 = vmatpush1.bf16.msra.mxu1 %v28034_v38 }
 0x715   : > { %8889 = vmatprep.subr.bf16.mxu1 %v28037_v17 }
 0x716   : > { %7129 = vmatpush1.bf16.msra.mxu0 %v27900_v20 }
 0x717   : > { %7130 = vmatprep.subr.bf16.mxu0 %v27903_v53 }
 0x718   : > { %8890 = vmatpush1.bf16.msra.mxu1 %v28042_v37 }
 0x719   : > { %8891 = vmatprep.subr.bf16.mxu1 %v28045_v0 }
 0x71a   : > { %7131 = vmatpush1.bf16.msra.mxu0 %v27908_v36 }
 0x71b   : > { %7132 = vmatprep.subr.bf16.mxu0 %v27911_v57 }
 0x71c   : > { %8892 = vmatpush1.bf16.msra.mxu1 %v28050_v1 }
 0x71e   : > { %7133 = vmatpush1.bf16.msra.mxu0 %v27916_v52 }
 0x71f   : > { %20422 = vmatmul.mubr.msk.bf16.vlgmr.msra.gmra.mrb[16].mxu1 %vm1882_vm3, %v8800_v13  ;;  %7275 = vmatprep.subr.bf16.mxu0 %v27919_v24 }
 0x720   : > { %8921 = vmatprep.mubr.bf16.mxu1 %v26174_v14 }
 0x721   : > { %20242 = vmatmul.mubr.msk.bf16.vlgmr.msra.gmra.mrb[16].mxu0 %vm1882_vm3, %v27552_v51  ;;  %v4661_v51 = vrot.slane %v4656_v35, %v26617_v28 }
 0x722   : > { %7276 = vmatpush1.bf16.msra.mxu0 %v27924_v22  ;;  %7162 = vmatprep.mubr.bf16.mxu0 %v26174_v14 }
 0x723   : > { %7277 = vmatprep.subr.bf16.mxu0 %v27927_v27 }
 0x726   : > { %7278 = vmatpush1.bf16.msra.mxu0 %v27934_v9 }
 0x727   : > { %20423 = vmatmul.mubr.msk.bf16.gmra.mrb[20].mxu1 %vm1882_vm3, %v8802_v41  ;;  %7279 = vmatprep.subr.bf16.mxu0 %v27939_v3 }
 0x729   : > { %20243 = vmatmul.mubr.msk.bf16.gmra.mrb[20].mxu0 %vm1882_vm3, %v27541_v50 }
 0x72a   : > { %7280 = vmatpush1.bf16.msra.mxu0 %v27945_v55  ;;  %7307 = vmatprep.mubr.bf16.mxu0 %v26174_v14 }
 0x72b   : > { %7281 = vmatprep.subr.bf16.mxu0 %v27948_v46 }
 0x72e   : > { %7282 = vmatpush1.bf16.msra.mxu0 %v27955_v54 }
 0x72f   : > { %7283 = vmatprep.subr.bf16.mxu0 %v27960_v26 }
 0x730   : > { %v4629_v43 = vpop.f32.mrb[8].mxu0 }
 0x731   : > { %v4668_v2 = vadd.f32 %v4661_v51, %v4629_v43  ;;  %v4631_v19 = vpop.f32.mrb[9].mxu0 }
 0x732   : > { %v4669_v12 = vadd.f32 %v4665_v59, %v4631_v19  ;;  %7284 = vmatpush1.bf16.msra.mxu0 %v27966_v62  ;;  %v4633_v50 = vpop.f32.mrb[10].mxu0  ;;  %v7198_v62 = vpop.permute.xlu1 %7197 }
 0x733   : > { %v4676_v45 = vmax.f32 %v4668_v2, 0.0  ;;  %v4670_v25 = vadd.f32 %v4661_v51, %v4633_v50  ;;  %v4635_v20 = vpop.f32.mrb[11].mxu0  ;;  %7285 = vmatprep.subr.bf16.mxu0 %v27969_v49 }
 0x734   : > { %v4677_v53 = vmax.f32 %v4669_v12, 0.0  ;;  %v4671_v36 = vadd.f32 %v4665_v59, %v4635_v20 }
 0x735   : > { %v4678_v57 = vmax.f32 %v4670_v25, 0.0 }
 0x736   : > { %v23057_v40 = vpack.c.bf16 %v4677_v53, %v4676_v45  ;;  %v4679_v52 = vmax.f32 %v4671_v36, 0.0  ;;  %7286 = vmatpush1.bf16.msra.mxu0 %v27974_v48  ;;  %v7356_v49 = vpop.permute.xlu1 %7355  ;;  %v7354_v48 = vpop.permute.xlu0 %7353 }
 0x737   : > { %7287 = vmatprep.subr.bf16.mxu0 %v27977_v15  ;;  %v7361_v15 = vsel %vm538_vm2, %v7354_v48, %v7356_v49 }
 0x738   : > { %v23058_v24 = vpack.c.bf16 %v4679_v52, %v4678_v57  ;;  %4704 = vrot.lane.b32.xlu0 %v23057_v40, %s26176_s13  ;;  %v4639_v56 = vpop.f32.mrb[12].mxu0 }
 0x739   : > { %v4672_v22 = vadd.f32 %v4661_v51, %v4639_v56  ;;  %v4641_v63 = vpop.f32.mrb[13].mxu0 }
 0x73a   : > { %v4673_v27 = vadd.f32 %v4665_v59, %v4641_v63  ;;  %7288 = vmatpush1.bf16.msra.mxu0 %v27982_v60  ;;  %4706 = vrot.lane.b32.xlu1 %v23058_v24, %s26176_s13  ;;  %v4643_v21 = vpop.f32.mrb[14].mxu0  ;;  %v7360_v60 = vpop.permute.xlu1 %7359 }
 0x73b   : > { %v4680_v9 = vmax.f32 %v4672_v22, 0.0  ;;  %v4674_v3 = vadd.f32 %v4661_v51, %v4643_v21  ;;  %v4645_v5 = vpop.f32.mrb[15].mxu0  ;;  %7439 = vmatprep.subr.bf16.mxu0 %v27985_v8  ;;  %v7358_v8 = vpop.permute.xlu0 %7357 }
 0x73c   : > { %v4681_v55 = vmax.f32 %v4673_v27, 0.0  ;;  %v4675_v46 = vadd.f32 %v4665_v59, %v4645_v5  ;;  %v7500_v5 = vld [vmem:[#allocation8] sm:$0x3] }
 0x73d   : > { %v4682_v6 = vmax.f32 %v4674_v3, 0.0  ;;  %20258 = vmatmul.mubr.msk.bf16.vlgmr.msra.gmra.mrb[16].mxu0 %vm1882_vm3, %v7196_v4  ;;  %v7505_v4 = vrot.slane %v7500_v5, %v26617_v28 }
 0x73e   : > { %v23059_v47 = vpack.c.bf16 %v4681_v55, %v4680_v9  ;;  %v4683_v54 = vmax.f32 %v4675_v46, 0.0  ;;  %7440 = vmatpush1.bf16.msra.mxu0 %v27990_v58  ;;  %7317 = vmatprep.mubr.bf16.mxu0 %v26174_v14  ;;  %v7362_v58 = vsel %vm538_vm2, %v7358_v8, %v7360_v60  ;;  %v7509_v55 = vrot.slane %v7500_v5, %v26619_v32 }
 0x73f   : > { %7441 = vmatprep.subr.bf16.mxu0 %v27993_v16 }
 0x740   : > { %v23060_v26 = vpack.c.bf16 %v4683_v54, %v4682_v6  ;;  %4708 = vrot.lane.b32.xlu0 %v23059_v47, %s26176_s13 }
 0x742   : > { %7442 = vmatpush1.bf16.msra.mxu0 %v28001_v61  ;;  %4710 = vrot.lane.b32.xlu1 %v23060_v26, %s26176_s13 }
 0x743   : > { %7443 = vmatprep.subr.bf16.mxu0 %v28006_v10 }
 0x745   : > { %20259 = vmatmul.mubr.msk.bf16.gmra.mrb[20].mxu0 %vm1882_vm3, %v7198_v62 }
 0x746   : > { %7444 = vmatpush1.bf16.msra.mxu0 %v28012_v11  ;;  %7471 = vmatprep.mubr.bf16.mxu0 %v26174_v14 }
 0x747   : > { %7445 = vmatprep.subr.bf16.mxu0 %v28015_v18 }
 0x74a   : > { %7446 = vmatpush1.bf16.msra.mxu0 %v28023_v29 }
 0x74b   : > { %7447 = vmatprep.subr.bf16.mxu0 %v28028_v23 }
 0x74e   : > { %7448 = vmatpush1.bf16.msra.mxu0 %v28034_v38  ;;  %v8940_v38 = vld [vmem:[#allocation8] sm:$0x3] }
 0x74f   : > { %7449 = vmatprep.subr.bf16.mxu0 %v28037_v17  ;;  %v8945_v17 = vrot.slane %v8940_v38, %v26617_v28 }
 0x752   : > { %7450 = vmatpush1.bf16.msra.mxu0 %v28042_v37  ;;  %v8949_v37 = vrot.slane %v8940_v38, %v26619_v32 }
 0x753   : > { %7451 = vmatprep.subr.bf16.mxu0 %v28045_v0 }
 0x756   : > { %7452 = vmatpush1.bf16.msra.mxu0 %v28050_v1 }
 0x759   : > { %20274 = vmatmul.mubr.msk.bf16.vlgmr.msra.gmra.mrb[16].mxu0 %vm1882_vm3, %v7361_v15 }
 0x75a   : > { %7481 = vmatprep.mubr.bf16.mxu0 %v26174_v14 }
 0x761   : > { %20275 = vmatmul.mubr.msk.bf16.gmra.mrb[20].mxu0 %vm1882_vm3, %v7362_v58  ;;  %vm28123_vm3 = vmor %vm4739_vm0, %vm4738_vm15 }
 0x7aa   : > { %v4705_v31 = vpop.permute.xlu0 %4704 }
 0x7ab   : > { %v4712_v30 = vrot.slane %v4705_v31, 4 }
 0x7ac   : > { %v4707_v39 = vpop.permute.xlu1 %4706 }
 0x7ad   : > { %v4716_v61 = vsel %vm538_vm2, %v4712_v30, %v4705_v31  ;;  %4733 = vst.msk [vmem:[#allocation2 + $0xc] sm:$0xf] %vm4732_vm13, %v4712_v30  ;;  %v4713_v14 = vrot.slane %v4707_v39, 4 }
 0x7ae   : > { %4731 = vst.msk [vmem:[#allocation2 + $0x4] sm:$0xff] %vm28109_vm14, %v4716_v61 }
 0x7af   : > { %v4717_v10 = vsel %vm538_vm2, %v4713_v14, %v4707_v39  ;;  %4735 = vst.msk [vmem:[#allocation2 + $0x1c] sm:$0xf] %vm4732_vm13, %v4713_v14 }
 0x7b0   : > { %4734 = vst.msk [vmem:[#allocation2 + $0x14] sm:$0xff] %vm28109_vm14, %v4717_v10 }
 0x7b2   : > { %v4709_v11 = vpop.permute.xlu0 %4708 }
 0x7b3   : > { %v4714_v44 = vrot.slane %v4709_v11, 4 }
 0x7b4   : > { %v4711_v18 = vpop.permute.xlu1 %4710 }
 0x7b5   : > { %v4718_v33 = vsel %vm538_vm2, %v4714_v44, %v4709_v11  ;;  %4737 = vst.msk [vmem:[#allocation2 + $0x2c] sm:$0xf] %vm4732_vm13, %v4714_v44  ;;  %v4715_v29 = vrot.slane %v4711_v18, 4 }
 0x7b6   : > { %4736 = vst.msk [vmem:[#allocation2 + $0x24] sm:$0xff] %vm28109_vm14, %v4718_v33 }
 0x7b7   : > { %v4719_v23 = vsel %vm538_vm2, %v4715_v29, %v4711_v18  ;;  %4743 = vst.msk [vmem:[#allocation2 + $0x3c] sm:$0x7] %vm4742_vm1, %v4715_v29 }
 0x7b8   : > { %4741 = vst.msk [vmem:[#allocation2 + $0x34] sm:$0x77] %vm28123_vm3, %v4719_v23 }
 0x7f2   : > { %v8913_v0 = vpop.f32.mrb[16].mxu1 }
 0x7f3   : > { %v8952_v1 = vadd.f32 %v8945_v17, %v8913_v0  ;;  %v8915_v13 = vpop.f32.mrb[17].mxu1 }
 0x7f4   : > { %v8953_v41 = vadd.f32 %v8949_v37, %v8915_v13  ;;  %v8917_v35 = vpop.f32.mrb[18].mxu1 }
 0x7f5   : > { %v8960_v51 = vmax.f32 %v8952_v1, 0.0  ;;  %v8954_v59 = vadd.f32 %v8945_v17, %v8917_v35  ;;  %v8919_v43 = vpop.f32.mrb[19].mxu1 }
 0x7f6   : > { %v8961_v2 = vmax.f32 %v8953_v41, 0.0  ;;  %v8955_v19 = vadd.f32 %v8949_v37, %v8919_v43 }
 0x7f7   : > { %v8962_v12 = vmax.f32 %v8954_v59, 0.0 }
 0x7f8   : > { %v23065_v50 = vpack.c.bf16 %v8961_v2, %v8960_v51  ;;  %v8963_v45 = vmax.f32 %v8955_v19, 0.0 }
 0x7fa   : > { %v23066_v25 = vpack.c.bf16 %v8963_v45, %v8962_v12  ;;  %8988 = vrot.lane.b32.xlu0 %v23065_v50, %s26176_s13  ;;  %v8923_v20 = vpop.f32.mrb[20].mxu1 }
 0x7fb   : > { %v8956_v53 = vadd.f32 %v8945_v17, %v8923_v20  ;;  %v8925_v36 = vpop.f32.mrb[21].mxu1 }
 0x7fc   : > { %v8957_v57 = vadd.f32 %v8949_v37, %v8925_v36  ;;  %8990 = vrot.lane.b32.xlu1 %v23066_v25, %s26176_s13  ;;  %v8927_v40 = vpop.f32.mrb[22].mxu1 }
 0x7fd   : > { %v8964_v52 = vmax.f32 %v8956_v53, 0.0  ;;  %v8958_v24 = vadd.f32 %v8945_v17, %v8927_v40  ;;  %v8929_v56 = vpop.f32.mrb[23].mxu1 }
 0x7fe   : > { %v8965_v22 = vmax.f32 %v8957_v57, 0.0  ;;  %v8959_v63 = vadd.f32 %v8949_v37, %v8929_v56 }
 0x7ff   : > { %v8966_v27 = vmax.f32 %v8958_v24, 0.0 }
 0x800   : > { %v23067_v21 = vpack.c.bf16 %v8965_v22, %v8964_v52  ;;  %v8967_v9 = vmax.f32 %v8959_v63, 0.0 }
 0x802   : > { %v23068_v3 = vpack.c.bf16 %v8967_v9, %v8966_v27  ;;  %8992 = vrot.lane.b32.xlu0 %v23067_v21, %s26176_s13 }
 0x804   : > { %8994 = vrot.lane.b32.xlu1 %v23068_v3, %s26176_s13 }
 0x82c   : > { %v7473_v46 = vpop.f32.mrb[16].mxu0 }
 0x82d   : > { %v7512_v6 = vadd.f32 %v7505_v4, %v7473_v46  ;;  %v7475_v47 = vpop.f32.mrb[17].mxu0 }
 0x82e   : > { %v7513_v54 = vadd.f32 %v7509_v55, %v7475_v47  ;;  %v7477_v26 = vpop.f32.mrb[18].mxu0 }
 0x82f   : > { %v7520_v62 = vmax.f32 %v7512_v6, 0.0  ;;  %v7514_v49 = vadd.f32 %v7505_v4, %v7477_v26  ;;  %v7479_v48 = vpop.f32.mrb[19].mxu0 }
 0x830   : > { %v7521_v15 = vmax.f32 %v7513_v54, 0.0  ;;  %v7515_v60 = vadd.f32 %v7509_v55, %v7479_v48 }
 0x831   : > { %v7522_v8 = vmax.f32 %v7514_v49, 0.0 }
 0x832   : > { %v23061_v58 = vpack.c.bf16 %v7521_v15, %v7520_v62  ;;  %v7523_v31 = vmax.f32 %v7515_v60, 0.0 }
 0x834   : > { %7553 = vst.msk [vmem:[#allocation2 + $0x40] sm:$0xff] %vm27375_vm7, %v23061_v58  ;;  %v23062_v30 = vpack.c.bf16 %v7523_v31, %v7522_v8  ;;  %v7483_v28 = vpop.f32.mrb[20].mxu0 }
 0x835   : > { %v7516_v39 = vadd.f32 %v7505_v4, %v7483_v28  ;;  %v7485_v32 = vpop.f32.mrb[21].mxu0 }
 0x836   : > { %7554 = vst.msk [vmem:[#allocation2 + $0x50] sm:$0xff] %vm27375_vm7, %v23062_v30  ;;  %v7517_v61 = vadd.f32 %v7509_v55, %v7485_v32  ;;  %v7487_v14 = vpop.f32.mrb[22].mxu0 }
 0x837   : > { %v7524_v10 = vmax.f32 %v7516_v39, 0.0  ;;  %v7518_v11 = vadd.f32 %v7505_v4, %v7487_v14  ;;  %v7489_v44 = vpop.f32.mrb[23].mxu0 }
 0x838   : > { %v7525_v18 = vmax.f32 %v7517_v61, 0.0  ;;  %v7519_v33 = vadd.f32 %v7509_v55, %v7489_v44 }
 0x839   : > { %v7526_v29 = vmax.f32 %v7518_v11, 0.0 }
 0x83a   : > { %v23063_v23 = vpack.c.bf16 %v7525_v18, %v7524_v10  ;;  %v7527_v38 = vmax.f32 %v7519_v33, 0.0 }
 0x83c   : > { %7555 = vst.msk [vmem:[#allocation2 + $0x60] sm:$0xff] %vm27375_vm7, %v23063_v23  ;;  %v23064_v17 = vpack.c.bf16 %v7527_v38, %v7526_v29 }
 0x83e   : > { %7556 = vst.msk [vmem:[#allocation2 + $0x70] sm:$0x77] %vm27404_vm10, %v23064_v17 }
 0x86c   : > { %v8989_v37 = vpop.permute.xlu0 %8988 }
 0x86d   : > { %v8996_v0 = vrot.slane %v8989_v37, 4 }
 0x86e   : > { %v8991_v1 = vpop.permute.xlu1 %8990 }
 0x86f   : > { %v9000_v13 = vsel %vm538_vm2, %v8996_v0, %v8989_v37  ;;  %9013 = vst.msk [vmem:[#allocation2 + $0x4c] sm:$0xf] %vm4732_vm13, %v8996_v0  ;;  %v8997_v41 = vrot.slane %v8991_v1, 4 }
 0x870   : > { %9012 = vst.msk [vmem:[#allocation2 + $0x44] sm:$0xff] %vm28109_vm14, %v9000_v13 }
 0x871   : > { %v9001_v35 = vsel %vm538_vm2, %v8997_v41, %v8991_v1  ;;  %9015 = vst.msk [vmem:[#allocation2 + $0x5c] sm:$0xf] %vm4732_vm13, %v8997_v41 }
 0x872   : > { %9014 = vst.msk [vmem:[#allocation2 + $0x54] sm:$0xff] %vm28109_vm14, %v9001_v35 }
 0x874   : > { %v8993_v7 = vpop.permute.xlu0 %8992 }
 0x875   : > { %v8998_v34 = vrot.slane %v8993_v7, 4 }
 0x876   : > { %v8995_v51 = vpop.permute.xlu1 %8994 }
 0x877   : > { %v9002_v59 = vsel %vm538_vm2, %v8998_v34, %v8993_v7  ;;  %9017 = vst.msk [vmem:[#allocation2 + $0x6c] sm:$0xf] %vm4732_vm13, %v8998_v34  ;;  %v8999_v43 = vrot.slane %v8995_v51, 4 }
 0x878   : > { %9016 = vst.msk [vmem:[#allocation2 + $0x64] sm:$0xff] %vm28109_vm14, %v9002_v59 }
 0x879   : > { %v9003_v2 = vsel %vm538_vm2, %v8999_v43, %v8995_v51  ;;  %9019 = vst.msk [vmem:[#allocation2 + $0x7c] sm:$0x7] %vm4742_vm1, %v8999_v43 }
 0x87a   : > { %9018 = vst.msk [vmem:[#allocation2 + $0x74] sm:$0x77] %vm28123_vm3, %v9003_v2 }
 0x87b PF: > { %v24974_v19 = vld [vmem:[%s26455_s2 + $0x120] sm:$0xff]   ;;  %v26178_v12 = vmov 0   ;;  %v24977_v42 = vld [vmem:[%s26455_s2 + $0x128] sm:$0xff]   ;;  %v24980_v20 = vld [vmem:[%s26455_s2 + $0x130] sm:$0xff]   ;;  %vm9166_vm2 = vcmask 1041409   ;;  %vm9349_vm4 = vcmask 523264  }
 0x87c   : > { %9393 = vmatprep.subr.bf16.mxu1 %v26178_v12  ;;  %v24975_v16 = vld [vmem:[%s26455_s2 + $0x160] sm:$0xff]   ;;  %23069 = vmatprep.subr.bf16.mxu0 %v24974_v19  ;;  %v24978_v45 = vld [vmem:[%s26455_s2 + $0x168] sm:$0xff]   ;;  %v24981_v53 = vld [vmem:[%s26455_s2 + $0x170] sm:$0xff]   ;;  %vm26180_vm5 = vmmov 0   ;;  %vm19421_vm6 = vcmask 33792  }
 0x87d   : > { %v24976_v50 = vld [vmem:[%s26455_s2 + $0xe0] sm:$0xff]   ;;  %9394 = vmatpush1.bf16.msra.mxu1 %v24975_v16  ;;  %v24979_v25 = vld [vmem:[%s26455_s2 + $0xe8] sm:$0xff]   ;;  %v24982_v36 = vld [vmem:[%s26455_s2 + $0xf0] sm:$0xff]  }
 0x87e   : > { %23070 = vmatpush3.bf16.msra.mxu0 %v24976_v50  ;;  %9395 = vmatprep.subr.bf16.mxu1 %v26178_v12  ;;  %v24983_v57 = vld [vmem:[%s26455_s2 + $0x138] sm:$0xff]   ;;  %v24986_v24 = vld [vmem:[%s26455_s2 + $0x140] sm:$0xff]   ;;  %v24989_v63 = vld [vmem:[%s26455_s2 + $0x148] sm:$0xff]  }
 0x87f   : > { %23071 = vmatprep.subr.bf16.mxu0 %v24977_v42  ;;  %v24984_v40 = vld [vmem:[%s26455_s2 + $0x178] sm:$0xff]   ;;  %v24987_v56 = vld [vmem:[%s26455_s2 + $0x180] sm:$0xff]   ;;  %v24990_v27 = vld [vmem:[%s26455_s2 + $0x188] sm:$0xff]  }
 0x880   : > { %v24985_v52 = vld [vmem:[%s26455_s2 + $0xf8] sm:$0xff]   ;;  %v24988_v22 = vld [vmem:[%s26455_s2 + $0x100] sm:$0xff]   ;;  %v24991_v21 = vld [vmem:[%s26455_s2 + $0x108] sm:$0xff]  }
 0x881   : > { %9396 = vmatpush1.bf16.msra.mxu1 %v24978_v45  ;;  %v24992_v9 = vld [vmem:[%s26455_s2 + $0x150] sm:$0xff]   ;;  %v24995_v46 = vld [vmem:[%s26455_s2 + $0x158] sm:$0xff]   ;;  %v25003_v30 = vld [vmem:[%s26455_s2 + $0x40] sm:$0xff]  }
 0x882   : > { %23072 = vmatpush3.bf16.msra.mxu0 %v24979_v25  ;;  %9397 = vmatprep.subr.bf16.mxu1 %v26178_v12  ;;  %v24993_v3 = vld [vmem:[%s26455_s2 + $0x190] sm:$0xff]   ;;  %v24996_v62 = vld [vmem:[%s26455_s2 + $0x198] sm:$0xff]   ;;  %v25002_v32 = vld [vmem:[%s26455_s2 + $0x1a0] sm:$0xff]  }
 0x883   : > { %23073 = vmatprep.subr.bf16.mxu0 %v24980_v20  ;;  %v24994_v5 = vld [vmem:[%s26455_s2 + $0x110] sm:$0xff]   ;;  %v24997_v8 = vld [vmem:[%s26455_s2 + $0x118] sm:$0xff]   ;;  %v25004_v44 = vld [vmem:[%s26455_s2] sm:$0xff]  }
 0x884   : > { %v9020_v4 = vld [vmem:[#allocation2] sm:$0x11]  ;;  %v9021_v17 = vld [vmem:[#allocation2 + $0x8] sm:$0x11] }
 0x885   : > { %9398 = vmatpush1.bf16.msra.mxu1 %v24981_v53  ;;  %v9022_v55 = vld [vmem:[#allocation2 + $0x40] sm:$0x11]  ;;  %v20484_v6 = vcombine.low %v9020_v4, %v9020_v4  ;;  %v20485_v47 = vcombine.high %v9020_v4, %v9020_v4  ;;  %v9023_v37 = vld [vmem:[#allocation2 + $0x48] sm:$0x11]  ;;  %v20486_v0 = vcombine.low %v9021_v17, %v9021_v17  ;;  %v20487_v1 = vcombine.high %v9021_v17, %v9021_v17 }
 0x886   : > { %23074 = vmatpush3.bf16.msra.mxu0 %v24982_v36  ;;  %9399 = vmatprep.subr.bf16.mxu1 %v26178_v12  ;;  %v20488_v54 = vcombine.low %v9022_v55, %v9022_v55  ;;  %v20489_v26 = vcombine.high %v9022_v55, %v9022_v55  ;;  %v25006_v18 = vld [vmem:[%s26455_s2 + $0x48] sm:$0xff]   ;;  %v25009_v38 = vld [vmem:[%s26455_s2 + $0x50] sm:$0xff]   ;;  %v20490_v13 = vcombine.low %v9023_v37, %v9023_v37  ;;  %v25012_v2 = vld [vmem:[%s26455_s2 + $0x58] sm:$0xff]  }
 0x887   : > { %23075 = vmatprep.subr.bf16.mxu0 %v24983_v57  ;;  %v28195_v49 = vunpack.c.l.b16 %v20484_v6  ;;  %v9158_v48 = vunpack.c.l.b16 %v20485_v47  ;;  %v25005_v29 = vld [vmem:[%s26455_s2 + $0x1a8] sm:$0xff]   ;;  %v20491_v41 = vcombine.high %v9023_v37, %v9023_v37  ;;  %v25008_v35 = vld [vmem:[%s26455_s2 + $0x1b0] sm:$0xff]   ;;  %v9160_v34 = vunpack.c.l.b16 %v20487_v1  ;;  %v25011_v42 = vld [vmem:[%s26455_s2 + $0x1b8] sm:$0xff]  }
 0x888   : > { %v28197_v15 = vunpack.c.l.b16 %v20488_v54  ;;  %v9162_v60 = vunpack.c.l.b16 %v20489_v26  ;;  %v25007_v23 = vld [vmem:[%s26455_s2 + $0x8] sm:$0xff]   ;;  %v25010_v7 = vld [vmem:[%s26455_s2 + $0x10] sm:$0xff]   ;;  %v28218_v59 = vunpack.c.l.b16 %v20486_v0  ;;  %v28220_v43 = vunpack.c.l.b16 %v20490_v13  ;;  %v25013_v45 = vld [vmem:[%s26455_s2 + $0x18] sm:$0xff]  }
 0x889   : > { %9400 = vmatpush1.bf16.msra.mxu1 %v24984_v40  ;;  %v9168_v58 = vrot.slane %v9158_v48, 1  ;;  %v9165_v28 = vrot.slane %v28195_v49, 1  ;;  %v9164_v51 = vunpack.c.l.b16 %v20491_v41  ;;  %v9172_v19 = vrot.slane %v9160_v34, 1  ;;  %v25018_v57 = vld [vmem:[%s26455_s2 + $0x60] sm:$0xff]   ;;  %v25027_v4 = vld [vmem:[%s26455_s2 + $0x78] sm:$0xff]   ;;  %v25046_v17 = vld [vmem:[%s26455_s2 + $0x228] sm:$0xff]  }
 0x88a   : > { %23076 = vmatpush3.bf16.msra.mxu0 %v24985_v52  ;;  %9401 = vmatprep.subr.bf16.mxu1 %v26178_v12  ;;  %v9435_v31 = vrot.slane %v9162_v60, 7  ;;  %v9170_v50 = vrot.slane %v28218_v59, 1  ;;  %v25019_v52 = vld [vmem:[%s26455_s2 + $0x80] sm:$0xff]   ;;  %v25028_v55 = vld [vmem:[%s26455_s2 + $0x98] sm:$0xff]   ;;  %v25045_v0 = vld [vmem:[%s26455_s2 + $0xc8] sm:$0xff]  }
 0x88b   : > { %23077 = vmatprep.subr.bf16.mxu0 %v24986_v24  ;;  %v9169_v39 = vsel %vm9166_vm2, %v9162_v60, %v9168_v58  ;;  %v9167_v61 = vsel %vm9166_vm2, %v28197_v15, %v9165_v28  ;;  %v9439_v16 = vrot.slane %v9164_v51, 7  ;;  %v9173_v25 = vsel %vm9166_vm2, %v9164_v51, %v9172_v19  ;;  %v25031_v47 = vld [vmem:[%s26455_s2 + $0x200] sm:$0xff]   ;;  %v25037_v60 = vld [vmem:[%s26455_s2 + $0x210] sm:$0xff]   ;;  %v25041_v28 = vld [vmem:[%s26455_s2 + $0x1d8] sm:$0xff]  }
 0x88c   : > { %v9436_v14 = vsel %vm9166_vm2, %v9435_v31, %v9158_v48  ;;  %v9175_v10 = vpack.c.b16 %v9169_v39, %v9169_v39  ;;  %v9174_v11 = vpack.c.b16 %v9167_v61, %v9167_v61  ;;  %v9171_v20 = vsel %vm9166_vm2, %v28220_v43, %v9170_v50  ;;  %v25030_v26 = vld [vmem:[%s26455_s2 + $0xa0] sm:$0xff]   ;;  %v25034_v48 = vld [vmem:[%s26455_s2 + $0x208] sm:$0xff]   ;;  %v25038_v58 = vld [vmem:[%s26455_s2 + $0x1d0] sm:$0xff]  }
 0x88d   : > { %9402 = vmatpush1.bf16.msra.mxu1 %v24987_v56  ;;  %v9442_v33 = vpack.c.b16 %v9436_v14, %v9436_v14  ;;  %v9440_v53 = vsel %vm9166_vm2, %v9439_v16, %v9160_v34  ;;  %v9177_v36 = vpack.c.b16 %v9173_v25, %v9173_v25  ;;  %v9176_v40 = vpack.c.b16 %v9171_v20, %v9171_v20  ;;  %v25020_v56 = vld [vmem:[%s26455_s2 + $0x20] sm:$0xff]   ;;  %v25040_v31 = vld [vmem:[%s26455_s2 + $0x218] sm:$0xff]   ;;  %v9699_v39 = vld [vmem:[#allocation2] sm:$0x22] }
 0x88e   : > { %23078 = vmatpush3.bf16.msra.mxu0 %v24988_v22  ;;  %9403 = vmatprep.subr.bf16.mxu1 %v26178_v12  ;;  %v9444_v24 = vpack.c.b16 %v9440_v53, %v9440_v53  ;;  %v25021_v22 = vld [vmem:[%s26455_s2 + $0x68] sm:$0xff]   ;;  %v20607_v61 = vcombine.high %v9699_v39, %v9699_v39  ;;  %v25043_v14 = vld [vmem:[%s26455_s2 + $0x220] sm:$0xff]   ;;  %v25049_v34 = vld [vmem:[%s26455_s2 + $0x230] sm:$0xff]  }
 0x88f   : > { %23079 = vmatprep.subr.bf16.mxu0 %v24989_v63  ;;  %9385 = vmatprep.mubr.bf16.mxu0 %v9175_v10  ;;  %v25022_v63 = vld [vmem:[%s26455_s2 + $0x88] sm:$0xff]   ;;  %v25048_v51 = vld [vmem:[%s26455_s2 + $0xd0] sm:$0xff]  }
 0x890   : > { %20520 = vmatprep.mubr.msk.bf16.mxu1 %vm9349_vm4, %v9177_v36  ;;  %v25047_v13 = vld [vmem:[%s26455_s2 + $0x1e8] sm:$0xff]   ;;  %v25050_v19 = vld [vmem:[%s26455_s2 + $0x1f0] sm:$0xff]   ;;  %v25054_v36 = vld [vmem:[%s26455_s2 + $0x2e0] sm:$0xff]  }
 0x891   : > { %9404 = vmatpush1.bf16.msra.mxu1 %v24990_v27  ;;  %v25023_v27 = vld [vmem:[%s26455_s2 + $0x28] sm:$0xff]  }
 0x892   : > { %23080 = vmatpush3.bf16.msra.mxu0 %v24991_v21  ;;  %9405 = vmatprep.subr.bf16.mxu1 %v26178_v12  ;;  %v25024_v21 = vld [vmem:[%s26455_s2 + $0x70] sm:$0xff]  }
 0x893   : > { %23081 = vmatprep.subr.bf16.mxu0 %v24992_v9  ;;  %v25025_v9 = vld [vmem:[%s26455_s2 + $0x90] sm:$0xff]  }
 0x895   : > { %9406 = vmatpush1.bf16.msra.mxu1 %v24993_v3  ;;  %v9433_v3 = vrot.slane %v28197_v15, 7  ;;  %v25035_v15 = vld [vmem:[%s26455_s2 + $0x1c8] sm:$0xff]  }
 0x896   : > { %23082 = vmatpush3.bf16.msra.mxu0 %v24994_v5  ;;  %9407 = vmatprep.subr.bf16.mxu1 %v26178_v12  ;;  %v25026_v5 = vld [vmem:[%s26455_s2 + $0x30] sm:$0xff]  }
 0x897   : > { %23083 = vmatprep.subr.bf16.mxu0 %v24995_v46  ;;  %v25029_v46 = vld [vmem:[%s26455_s2 + $0x38] sm:$0xff]   ;;  %v9434_v6 = vsel %vm9166_vm2, %v9433_v3, %v28195_v49  ;;  %v25033_v49 = vld [vmem:[%s26455_s2 + $0xa8] sm:$0xff]   ;;  %v25065_v3 = vld [vmem:[%s26455_s2 + $0x2b0] sm:$0xff]  }
 0x898   : > { %v9441_v54 = vpack.c.b16 %v9434_v6, %v9434_v6  ;;  %v25070_v6 = vld [vmem:[%s26455_s2 + $0x300] sm:$0xff]  }
 0x899   : > { %9408 = vmatpush1.bf16.msra.mxu1 %v24996_v62  ;;  %v25032_v62 = vld [vmem:[%s26455_s2 + $0x1c0] sm:$0xff]  }
 0x89a   : > { %23084 = vmatpush3.bf16.msra.mxu0 %v24997_v8  ;;  %9409 = vmatprep.subr.bf16.mxu1 %v26178_v12  ;;  %v25036_v8 = vld [vmem:[%s26455_s2 + $0xb0] sm:$0xff]  }
 0x89b   : > { %23091 = vmatprep.subr.bf16.mxu0 %v25003_v30  ;;  %v25039_v30 = vld [vmem:[%s26455_s2 + $0xb8] sm:$0xff]  }
 0x89d   : > { %9410 = vmatpush1.bf16.msra.mxu1 %v25002_v32  ;;  %9386 = vmatmul.mubr.bf16.vlgmr.msra.gmra.mrb[0].mxu0 %v9174_v11  ;;  %v9701_v32 = vld [vmem:[#allocation2 + $0x40] sm:$0x22]  ;;  %v9781_v11 = vunpack.c.l.b16 %v20607_v61 }
 0x89e   : > { %23092 = vmatpush3.bf16.msra.mxu0 %v25004_v44  ;;  %9411 = vmatprep.subr.bf16.mxu1 %v26178_v12  ;;  %v20611_v10 = vcombine.high %v9701_v32, %v9701_v32  ;;  %v25042_v44 = vld [vmem:[%s26455_s2 + $0xc0] sm:$0xff]  }
 0x89f   : > { %23093 = vmatprep.subr.bf16.mxu0 %v25006_v18  ;;  %9651 = vmatprep.mubr.bf16.mxu0 %v9442_v33  ;;  %v25044_v33 = vld [vmem:[%s26455_s2 + $0x1e0] sm:$0xff]   ;;  %v10119_v25 = vrot.slane %v9781_v11, 3 }
 0x8a0   : > { %v9785_v18 = vunpack.c.l.b16 %v20611_v10  ;;  %v25078_v10 = vld [vmem:[%s26455_s2 + $0x270] sm:$0xff]  }
 0x8a1   : > { %9412 = vmatpush1.bf16.msra.mxu1 %v25005_v29  ;;  %v20606_v29 = vcombine.low %v9699_v39, %v9699_v39 }
 0x8a2   : > { %23094 = vmatpush3.bf16.msra.mxu0 %v25007_v23  ;;  %9413 = vmatprep.subr.bf16.mxu1 %v26178_v12  ;;  %v20610_v23 = vcombine.low %v9701_v32, %v9701_v32  ;;  %v9792_v37 = vrot.slane %v9785_v18, 1  ;;  %v10120_v20 = vrot.slane %v9785_v18, 2  ;;  %v25076_v32 = vld [vmem:[%s26455_s2 + $0x310] sm:$0xff]  }
 0x8a3   : > { %23095 = vmatprep.subr.bf16.mxu0 %v25009_v38  ;;  %v9791_v38 = vrot.slane %v9781_v11, 2  ;;  %v28277_v41 = vunpack.c.l.b16 %v20606_v29 }
 0x8a5   : > { %9414 = vmatpush1.bf16.msra.mxu1 %v25008_v35  ;;  %v9793_v1 = vsel %vm9166_vm2, %v9792_v37, %v9791_v38  ;;  %v28279_v35 = vunpack.c.l.b16 %v20610_v23  ;;  %v9788_v16 = vrot.slane %v28277_v41, 2  ;;  %v10116_v11 = vrot.slane %v28277_v41, 3  ;;  %v25080_v23 = vld [vmem:[%s26455_s2 + $0x2d8] sm:$0xff]   ;;  %v25083_v41 = vld [vmem:[%s26455_s2 + $0x280] sm:$0xff]  }
 0x8a6   : > { %23096 = vmatpush3.bf16.msra.mxu0 %v25010_v7  ;;  %9415 = vmatprep.subr.bf16.mxu1 %v26178_v12  ;;  %v9801_v7 = vpack.c.b16 %v9793_v1, %v9793_v1  ;;  %v25082_v1 = vld [vmem:[%s26455_s2 + $0x320] sm:$0xff]  }
 0x8a7   : > { %23097 = vmatprep.subr.bf16.mxu0 %v25012_v2  ;;  %v9437_v2 = vrot.slane %v28220_v43, 7  ;;  %v9789_v50 = vrot.slane %v28279_v35, 1  ;;  %v25053_v43 = vld [vmem:[%s26455_s2 + $0x1f8] sm:$0xff]   ;;  %v10117_v18 = vrot.slane %v28279_v35, 2 }
 0x8a9   : > { %9416 = vmatpush1.bf16.msra.mxu1 %v25011_v42  ;;  %v25051_v42 = vld [vmem:[%s26455_s2 + $0xd8] sm:$0xff]   ;;  %v9438_v53 = vsel %vm9166_vm2, %v9437_v2, %v28218_v59  ;;  %v25061_v59 = vld [vmem:[%s26455_s2 + $0x2e8] sm:$0xff]   ;;  %v10118_v38 = vsel %vm9166_vm2, %v10117_v18, %v10116_v11  ;;  %v25114_v18 = vld [vmem:[%s26455_s2 + $0x3b0] sm:$0xff]  }
 0x8aa   : > { %23098 = vmatpush3.bf16.msra.mxu0 %v25013_v45  ;;  %9659 = vmatprep.subr.bf16.mxu1 %v26178_v12  ;;  %v25052_v45 = vld [vmem:[%s26455_s2 + $0x238] sm:$0xff]  }
 0x8ab   : > { %23099 = vmatprep.subr.bf16.mxu0 %v25018_v57  ;;  %v9790_v57 = vsel %vm9166_vm2, %v9789_v50, %v9788_v16  ;;  %v25086_v16 = vld [vmem:[%s26455_s2 + $0x330] sm:$0xff]  }
 0x8ac   : > { %9426 = vmatmul.mubr.bf16.vlgmr.msra.gmra.mrb[0].mxu1 %v9176_v40  ;;  %v9443_v40 = vpack.c.b16 %v9438_v53, %v9438_v53  ;;  %v28354_v50 = vld [vmem:[#allocation2] sm:$0x44]  ;;  %v28416_v11 = vld [vmem:[#allocation2 + $0x48] sm:$0x44] }
 0x8ad   : > { %9660 = vmatpush1.bf16.msra.mxu1 %v25019_v52  ;;  %20549 = vmatprep.mubr.msk.bf16.mxu1 %vm9349_vm4, %v9444_v24  ;;  %v25059_v52 = vld [vmem:[%s26455_s2 + $0x2a0] sm:$0xff]   ;;  %v10121_v24 = vsel %vm9166_vm2, %v10120_v20, %v10119_v25  ;;  %v25087_v25 = vld [vmem:[%s26455_s2 + $0x290] sm:$0xff]  }
 0x8ae   : > { %23100 = vmatpush3.bf16.msra.mxu0 %v25020_v56  ;;  %9661 = vmatprep.subr.bf16.mxu1 %v26178_v12  ;;  %v9800_v56 = vpack.c.b16 %v9790_v57, %v9790_v57 }
 0x8af   : > { %23101 = vmatprep.subr.bf16.mxu0 %v25021_v22  ;;  %v25060_v22 = vld [vmem:[%s26455_s2 + $0x240] sm:$0xff]  }
 0x8b1   : > { %9662 = vmatpush1.bf16.msra.mxu1 %v25022_v63  ;;  %v10129_v63 = vpack.c.b16 %v10121_v24, %v10121_v24 }
 0x8b2   : > { %23102 = vmatpush3.bf16.msra.mxu0 %v25023_v27  ;;  %9663 = vmatprep.subr.bf16.mxu1 %v26178_v12  ;;  %v25062_v27 = vld [vmem:[%s26455_s2 + $0x2a8] sm:$0xff]  }
 0x8b3   : > { %23103 = vmatprep.subr.bf16.mxu0 %v25024_v21  ;;  %v25063_v21 = vld [vmem:[%s26455_s2 + $0x248] sm:$0xff]  }
 0x8b5   : > { %9664 = vmatpush1.bf16.msra.mxu1 %v25025_v9  ;;  %v25064_v9 = vld [vmem:[%s26455_s2 + $0x2f0] sm:$0xff]  }
 0x8b6   : > { %23104 = vmatpush3.bf16.msra.mxu0 %v25026_v5  ;;  %9665 = vmatprep.subr.bf16.mxu1 %v26178_v12  ;;  %v25066_v5 = vld [vmem:[%s26455_s2 + $0x250] sm:$0xff]  }
 0x8b7   : > { %23105 = vmatprep.subr.bf16.mxu0 %v25027_v4  ;;  %v25067_v4 = vld [vmem:[%s26455_s2 + $0x2f8] sm:$0xff]  }
 0x8b9   : > { %9666 = vmatpush1.bf16.msra.mxu1 %v25028_v55  ;;  %v25068_v55 = vld [vmem:[%s26455_s2 + $0x2b8] sm:$0xff]  }
 0x8ba   : > { %23106 = vmatpush3.bf16.msra.mxu0 %v25029_v46  ;;  %9667 = vmatprep.subr.bf16.mxu1 %v26178_v12  ;;  %v25069_v46 = vld [vmem:[%s26455_s2 + $0x258] sm:$0xff]  }
 0x8bb   : > { %23113 = vmatprep.subr.bf16.mxu0 %v25031_v47  ;;  %v28312_v47 = vld [vmem:[#allocation2 + $0x8] sm:$0x22] }
 0x8bc   : > { %v20608_v35 = vcombine.low %v28312_v47, %v28312_v47 }
 0x8bd   : > { %9652 = vmatmul.mubr.bf16.vlgmr.msra.gmra.mrb[4].mxu0 %v9441_v54  ;;  %9668 = vmatpush1.bf16.msra.mxu1 %v25030_v26  ;;  %v9702_v54 = vld [vmem:[#allocation2 + $0x48] sm:$0x22]  ;;  %v20609_v26 = vcombine.high %v28312_v47, %v28312_v47 }
 0x8be   : > { %23114 = vmatpush3.bf16.msra.mxu0 %v25032_v62  ;;  %9669 = vmatprep.subr.bf16.mxu1 %v26178_v12  ;;  %v20613_v62 = vcombine.high %v9702_v54, %v9702_v54  ;;  %v28348_v2 = vunpack.c.l.b16 %v20608_v35  ;;  %v25102_v47 = vld [vmem:[%s26455_s2 + $0x390] sm:$0xff]  }
 0x8bf   : > { %23115 = vmatprep.subr.bf16.mxu0 %v25034_v48  ;;  %10010 = vmatprep.mubr.bf16.mxu0 %v9801_v7  ;;  %v9783_v48 = vunpack.c.l.b16 %v20609_v26  ;;  %v20612_v7 = vcombine.low %v9702_v54, %v9702_v54  ;;  %v25104_v54 = vld [vmem:[%s26455_s2 + $0x3d8] sm:$0xff]  }
 0x8c0   : > { %v25103_v26 = vld [vmem:[%s26455_s2 + $0x358] sm:$0xff]  }
 0x8c1   : > { %9670 = vmatpush1.bf16.msra.mxu1 %v25033_v49  ;;  %v25071_v49 = vld [vmem:[%s26455_s2 + $0x2c0] sm:$0xff]  }
 0x8c2   : > { %23116 = vmatpush3.bf16.msra.mxu0 %v25035_v15  ;;  %9671 = vmatprep.subr.bf16.mxu1 %v26178_v12  ;;  %v9787_v15 = vunpack.c.l.b16 %v20613_v62  ;;  %v25105_v62 = vld [vmem:[%s26455_s2 + $0x398] sm:$0xff]  }
 0x8c3   : > { %23117 = vmatprep.subr.bf16.mxu0 %v25037_v60  ;;  %v25072_v60 = vld [vmem:[%s26455_s2 + $0x260] sm:$0xff]  }
 0x8c4   : > { %v10126_v29 = vrot.slane %v9787_v15, 2 }
 0x8c5   : > { %9672 = vmatpush1.bf16.msra.mxu1 %v25036_v8  ;;  %v25073_v8 = vld [vmem:[%s26455_s2 + $0x308] sm:$0xff]  }
 0x8c6   : > { %23118 = vmatpush3.bf16.msra.mxu0 %v25038_v58  ;;  %9673 = vmatprep.subr.bf16.mxu1 %v26178_v12  ;;  %v9797_v58 = vrot.slane %v9783_v48, 2 }
 0x8c7   : > { %23119 = vmatprep.subr.bf16.mxu0 %v25040_v31  ;;  %v9798_v31 = vrot.slane %v9787_v15, 1  ;;  %v25108_v15 = vld [vmem:[%s26455_s2 + $0x3a0] sm:$0xff]  }
 0x8c9   : > { %9674 = vmatpush1.bf16.msra.mxu1 %v25039_v30  ;;  %v25074_v30 = vld [vmem:[%s26455_s2 + $0x2c8] sm:$0xff]   ;;  %v9799_v39 = vsel %vm9166_vm2, %v9798_v31, %v9797_v58 }
 0x8ca   : > { %23120 = vmatpush3.bf16.msra.mxu0 %v25041_v28  ;;  %9675 = vmatprep.subr.bf16.mxu1 %v26178_v12  ;;  %v25075_v28 = vld [vmem:[%s26455_s2 + $0x268] sm:$0xff]   ;;  %v9803_v61 = vpack.c.b16 %v9799_v39, %v9799_v39 }
 0x8cb   : > { %23121 = vmatprep.subr.bf16.mxu0 %v25043_v14  ;;  %v25077_v14 = vld [vmem:[%s26455_s2 + $0x2d0] sm:$0xff]   ;;  %v25110_v58 = vld [vmem:[%s26455_s2 + $0x3e8] sm:$0xff]  }
 0x8cc   : > { %v25109_v31 = vld [vmem:[%s26455_s2 + $0x368] sm:$0xff]  }
 0x8cd   : > { %9676 = vmatpush1.bf16.msra.mxu1 %v25042_v44  ;;  %v25079_v44 = vld [vmem:[%s26455_s2 + $0x318] sm:$0xff]  }
 0x8ce   : > { %23122 = vmatpush3.bf16.msra.mxu0 %v25044_v33  ;;  %9677 = vmatprep.subr.bf16.mxu1 %v26178_v12  ;;  %v10125_v33 = vrot.slane %v9783_v48, 3  ;;  %v25107_v48 = vld [vmem:[%s26455_s2 + $0x3e0] sm:$0xff]  }
 0x8cf   : > { %23123 = vmatprep.subr.bf16.mxu0 %v25046_v17  ;;  %v25081_v17 = vld [vmem:[%s26455_s2 + $0x278] sm:$0xff]  }
 0x8d0   : > { %v10127_v37 = vsel %vm9166_vm2, %v10126_v29, %v10125_v33  ;;  %v20791_v29 = vcombine.high %v28416_v11, %v28416_v11 }
 0x8d1   : > { %9678 = vmatpush1.bf16.msra.mxu1 %v25045_v0  ;;  %v10128_v0 = vpack.c.b16 %v10118_v38, %v10118_v38 }
 0x8d2   : > { %23124 = vmatpush3.bf16.msra.mxu0 %v25047_v13  ;;  %9679 = vmatprep.subr.bf16.mxu1 %v26178_v12  ;;  %v10131_v13 = vpack.c.b16 %v10127_v37, %v10127_v37  ;;  %v25116_v37 = vld [vmem:[%s26455_s2 + $0x3f8] sm:$0xff]  }
 0x8d3   : > { %23125 = vmatprep.subr.bf16.mxu0 %v25049_v34  ;;  %v25084_v34 = vld [vmem:[%s26455_s2 + $0x328] sm:$0xff]  }
 0x8d5   : > { %9680 = vmatpush1.bf16.msra.mxu1 %v25048_v51  ;;  %v25085_v51 = vld [vmem:[%s26455_s2 + $0x288] sm:$0xff]  }
 0x8d6   : > { %23126 = vmatpush3.bf16.msra.mxu0 %v25050_v19  ;;  %9681 = vmatprep.subr.bf16.mxu1 %v26178_v12  ;;  %v28350_v19 = vunpack.c.l.b16 %v20612_v7 }
 0x8d7   : > { %23127 = vmatprep.subr.bf16.mxu0 %v25052_v45  ;;  %v20785_v45 = vcombine.high %v28354_v50, %v28354_v50 }
 0x8d8   : > { %v9795_v53 = vrot.slane %v28350_v19, 1  ;;  %v10123_v33 = vrot.slane %v28350_v19, 2 }
 0x8d9   : > { %9682 = vmatpush1.bf16.msra.mxu1 %v25051_v42  ;;  %v28356_v42 = vld [vmem:[#allocation2 + $0x40] sm:$0x44] }
 0x8da   : > { %23128 = vmatpush3.bf16.msra.mxu0 %v25053_v43  ;;  %23135 = vmatprep.subr.bf16.mxu1 %v25054_v36  ;;  %v20789_v20 = vcombine.high %v28356_v42, %v28356_v42  ;;  %v9794_v43 = vrot.slane %v28348_v2, 2  ;;  %v28366_v36 = vunpack.c.l.b16 %v20785_v45 }
 0x8db   : > { %10018 = vmatprep.subr.bf16.mxu0 %v26178_v12 }
 0x8dc   : > { %9692 = vmatmul.mubr.bf16.vlgmr.msra.gmra.mrb[4].mxu1 %v9443_v40  ;;  %v28369_v57 = vunpack.c.l.b16 %v20789_v20  ;;  %v10479_v40 = vrot.slane %v28366_v36, 4 }
 0x8dd   : > { %23136 = vmatpush3.bf16.msra.mxu1 %v25059_v52  ;;  %10011 = vmatmul.mubr.bf16.vlgmr.msra.gmra.mrb[8].mxu0 %v9800_v56  ;;  %v25088_v52 = vld [vmem:[%s26455_s2 + $0x338] sm:$0xff]  }
 0x8de   : > { %10019 = vmatpush1.bf16.msra.mxu0 %v25060_v22  ;;  %23137 = vmatprep.subr.bf16.mxu1 %v25061_v59  ;;  %v10480_v24 = vrot.slane %v28369_v57, 3  ;;  %v25089_v56 = vld [vmem:[%s26455_s2 + $0x298] sm:$0xff]   ;;  %v9796_v22 = vsel %vm9166_vm2, %v9795_v53, %v9794_v43  ;;  %v25095_v59 = vld [vmem:[%s26455_s2 + $0x3c0] sm:$0xff]   ;;  %v10808_v35 = vrot.slane %v28369_v57, 4  ;;  %v25125_v43 = vld [vmem:[%s26455_s2 + $0x4a8] sm:$0xff]  }
 0x8df   : > { %10020 = vmatprep.subr.bf16.mxu0 %v26178_v12  ;;  %10338 = vmatprep.mubr.bf16.mxu1 %v10129_v63 }
 0x8e0   : > { %20642 = vmatprep.mubr.msk.bf16.mxu0 %vm9349_vm4, %v9803_v61  ;;  %v10481_v63 = vsel %vm9166_vm2, %v10480_v24, %v10479_v40  ;;  %v25113_v61 = vld [vmem:[%s26455_s2 + $0x3f0] sm:$0xff]   ;;  %v25127_v40 = vld [vmem:[%s26455_s2 + $0x408] sm:$0xff]  }
 0x8e1   : > { %23138 = vmatpush3.bf16.msra.mxu1 %v25062_v27  ;;  %v9802_v27 = vpack.c.b16 %v9796_v22, %v9796_v22  ;;  %v25129_v24 = vld [vmem:[%s26455_s2 + $0x470] sm:$0xff]   ;;  %v25131_v22 = vld [vmem:[%s26455_s2 + $0x4b8] sm:$0xff]  }
 0x8e2   : > { %10021 = vmatpush1.bf16.msra.mxu0 %v25063_v21  ;;  %23139 = vmatprep.subr.bf16.mxu1 %v25064_v9  ;;  %v25094_v21 = vld [vmem:[%s26455_s2 + $0x340] sm:$0xff]  }
 0x8e3   : > { %10022 = vmatprep.subr.bf16.mxu0 %v26178_v12  ;;  %v25096_v9 = vld [vmem:[%s26455_s2 + $0x380] sm:$0xff]  }
 0x8e5   : > { %23140 = vmatpush3.bf16.msra.mxu1 %v25065_v3  ;;  %v25098_v3 = vld [vmem:[%s26455_s2 + $0x3c8] sm:$0xff]  }
 0x8e6   : > { %10023 = vmatpush1.bf16.msra.mxu0 %v25066_v5  ;;  %23141 = vmatprep.subr.bf16.mxu1 %v25067_v4  ;;  %v10489_v5 = vpack.c.b16 %v10481_v63, %v10481_v63  ;;  %v25097_v4 = vld [vmem:[%s26455_s2 + $0x348] sm:$0xff]   ;;  %v25133_v63 = vld [vmem:[%s26455_s2 + $0x418] sm:$0xff]  }
 0x8e7   : > { %10024 = vmatprep.subr.bf16.mxu0 %v26178_v12 }
 0x8e9   : > { %23142 = vmatpush3.bf16.msra.mxu1 %v25068_v55  ;;  %v25099_v55 = vld [vmem:[%s26455_s2 + $0x388] sm:$0xff]  }
 0x8ea   : > { %10025 = vmatpush1.bf16.msra.mxu0 %v25069_v46  ;;  %23143 = vmatprep.subr.bf16.mxu1 %v25070_v6  ;;  %v25101_v46 = vld [vmem:[%s26455_s2 + $0x3d0] sm:$0xff]  }
 0x8eb   : > { %10026 = vmatprep.subr.bf16.mxu0 %v26178_v12  ;;  %v25100_v6 = vld [vmem:[%s26455_s2 + $0x350] sm:$0xff]  }
 0x8ed   : > { %23144 = vmatpush3.bf16.msra.mxu1 %v25071_v49  ;;  %v25106_v49 = vld [vmem:[%s26455_s2 + $0x360] sm:$0xff]  }
 0x8ee   : > { %10027 = vmatpush1.bf16.msra.mxu0 %v25072_v60  ;;  %23145 = vmatprep.subr.bf16.mxu1 %v25073_v8  ;;  %v20784_v60 = vcombine.low %v28354_v50, %v28354_v50  ;;  %v20788_v8 = vcombine.low %v28356_v42, %v28356_v42  ;;  %v25123_v50 = vld [vmem:[%s26455_s2 + $0x460] sm:$0xff]  }
 0x8ef   : > { %10028 = vmatprep.subr.bf16.mxu0 %v26178_v12 }
 0x8f0   : > { %v28409_v39 = vunpack.c.l.b16 %v20788_v8 }
 0x8f1   : > { %23146 = vmatpush3.bf16.msra.mxu1 %v25074_v30  ;;  %v25111_v30 = vld [vmem:[%s26455_s2 + $0x3a8] sm:$0xff]  }
 0x8f2   : > { %10029 = vmatpush1.bf16.msra.mxu0 %v25075_v28  ;;  %23147 = vmatprep.subr.bf16.mxu1 %v25076_v32  ;;  %v28407_v28 = vunpack.c.l.b16 %v20784_v60  ;;  %v25112_v32 = vld [vmem:[%s26455_s2 + $0x370] sm:$0xff]   ;;  %v10477_v38 = vrot.slane %v28409_v39, 3  ;;  %v25145_v60 = vld [vmem:[%s26455_s2 + $0x438] sm:$0xff]  }
 0x8f3   : > { %10030 = vmatprep.subr.bf16.mxu0 %v26178_v12 }
 0x8f5   : > { %23148 = vmatpush3.bf16.msra.mxu1 %v25077_v14  ;;  %v10122_v14 = vrot.slane %v28348_v2, 3  ;;  %v25118_v2 = vld [vmem:[%s26455_s2 + $0x4a0] sm:$0xff]  }
 0x8f6   : > { %10031 = vmatpush1.bf16.msra.mxu0 %v25078_v10  ;;  %23149 = vmatprep.subr.bf16.mxu1 %v25079_v44  ;;  %v28414_v10 = vld [vmem:[#allocation2 + $0x8] sm:$0x44] }
 0x8f7   : > { %10032 = vmatprep.subr.bf16.mxu0 %v26178_v12  ;;  %v20787_v44 = vcombine.high %v28414_v10, %v28414_v10  ;;  %v10124_v7 = vsel %vm9166_vm2, %v10123_v33, %v10122_v14  ;;  %v20790_v14 = vcombine.low %v28416_v11, %v28416_v11  ;;  %v25148_v33 = vld [vmem:[%s26455_s2 + $0x4e8] sm:$0xff]  }
 0x8f9   : > { %23150 = vmatpush3.bf16.msra.mxu1 %v25080_v23  ;;  %v10476_v23 = vrot.slane %v28407_v28, 4  ;;  %v28504_v11 = vunpack.c.l.b16 %v20790_v14  ;;  %v25181_v14 = vld [vmem:[%s26455_s2 + $0x578] sm:$0xff]  }
 0x8fa   : > { %10033 = vmatpush1.bf16.msra.mxu0 %v25081_v17  ;;  %10346 = vmatprep.subr.bf16.mxu1 %v26178_v12  ;;  %v28427_v17 = vunpack.c.l.b16 %v20787_v44 }
 0x8fb   : > { %10034 = vmatprep.subr.bf16.mxu0 %v26178_v12  ;;  %v10478_v19 = vsel %vm9166_vm2, %v10477_v38, %v10476_v23  ;;  %v25150_v23 = vld [vmem:[%s26455_s2 + $0x4f0] sm:$0xff]  }
 0x8fc   : > { %10339 = vmatmul.mubr.bf16.vlgmr.msra.gmra.mrb[8].mxu1 %v10128_v0  ;;  %v28430_v0 = vunpack.c.l.b16 %v20791_v29  ;;  %v10488_v45 = vpack.c.b16 %v10478_v19, %v10478_v19 }
 0x8fd   : > { %10347 = vmatpush1.bf16.msra.mxu1 %v25082_v1  ;;  %20727 = vmatprep.mubr.msk.bf16.mxu1 %vm9349_vm4, %v10131_v13  ;;  %v25115_v1 = vld [vmem:[%s26455_s2 + $0x378] sm:$0xff]  }
 0x8fe   : > { %10035 = vmatpush1.bf16.msra.mxu0 %v25083_v41  ;;  %10348 = vmatprep.subr.bf16.mxu1 %v26178_v12  ;;  %v25117_v13 = vld [vmem:[%s26455_s2 + $0x3b8] sm:$0xff]   ;;  %v10807_v41 = vrot.slane %v28366_v36, 5  ;;  %v25126_v36 = vld [vmem:[%s26455_s2 + $0x468] sm:$0xff]  }
 0x8ff   : > { %10036 = vmatprep.subr.bf16.mxu0 %v26178_v12 }
 0x900   : > { %v10809_v42 = vsel %vm9166_vm2, %v10808_v35, %v10807_v41  ;;  %v25152_v35 = vld [vmem:[%s26455_s2 + $0x4f8] sm:$0xff]  }
 0x901   : > { %10349 = vmatpush1.bf16.msra.mxu1 %v25084_v34  ;;  %v10485_v34 = vrot.slane %v28427_v17, 4  ;;  %v10817_v53 = vpack.c.b16 %v10809_v42, %v10809_v42  ;;  %v25162_v42 = vld [vmem:[%s26455_s2 + $0x588] sm:$0xff]  }
 0x902   : > { %10037 = vmatpush1.bf16.msra.mxu0 %v25085_v51  ;;  %10350 = vmatprep.subr.bf16.mxu1 %v26178_v12  ;;  %v10486_v51 = vrot.slane %v28430_v0, 3 }
 0x903   : > { %10038 = vmatprep.subr.bf16.mxu0 %v26178_v12 }
 0x904   : > { %v10487_v20 = vsel %vm9166_vm2, %v10486_v51, %v10485_v34  ;;  %v25159_v51 = vld [vmem:[%s26455_s2 + $0x580] sm:$0xff]  }
 0x905   : > { %10351 = vmatpush1.bf16.msra.mxu1 %v25086_v16  ;;  %v10130_v16 = vpack.c.b16 %v10124_v7, %v10124_v7  ;;  %v10491_v57 = vpack.c.b16 %v10487_v20, %v10487_v20  ;;  %v25153_v7 = vld [vmem:[%s26455_s2 + $0x458] sm:$0xff]   ;;  %v25163_v20 = vld [vmem:[%s26455_s2 + $0x548] sm:$0xff]  }
 0x906   : > { %10039 = vmatpush1.bf16.msra.mxu0 %v25087_v25  ;;  %10352 = vmatprep.subr.bf16.mxu1 %v26178_v12  ;;  %v25124_v25 = vld [vmem:[%s26455_s2 + $0x400] sm:$0xff]  }
 0x907   : > { %10040 = vmatprep.subr.bf16.mxu0 %v26178_v12 }
 0x909   : > { %10353 = vmatpush1.bf16.msra.mxu1 %v25088_v52  ;;  %v25128_v52 = vld [vmem:[%s26455_s2 + $0x4b0] sm:$0xff]  }
 0x90a   : > { %10041 = vmatpush1.bf16.msra.mxu0 %v25089_v56  ;;  %10354 = vmatprep.subr.bf16.mxu1 %v26178_v12  ;;  %v25130_v56 = vld [vmem:[%s26455_s2 + $0x410] sm:$0xff]  }
 0x90b   : > { %23157 = vmatprep.subr.bf16.mxu0 %v25095_v59  ;;  %v25132_v59 = vld [vmem:[%s26455_s2 + $0x478] sm:$0xff]  }
 0x90d   : > { %10051 = vmatmul.mubr.bf16.vlgmr.msra.gmra.mrb[12].mxu0 %v9802_v27  ;;  %10355 = vmatpush1.bf16.msra.mxu1 %v25094_v21  ;;  %v25134_v27 = vld [vmem:[%s26455_s2 + $0x4c0] sm:$0xff]  }
 0x90e   : > { %23158 = vmatpush3.bf16.msra.mxu0 %v25096_v9  ;;  %10356 = vmatprep.subr.bf16.mxu1 %v26178_v12  ;;  %v25135_v21 = vld [vmem:[%s26455_s2 + $0x480] sm:$0xff]  }
 0x90f   : > { %23159 = vmatprep.subr.bf16.mxu0 %v25098_v3  ;;  %10698 = vmatprep.mubr.bf16.mxu0 %v10489_v5  ;;  %v25136_v9 = vld [vmem:[%s26455_s2 + $0x420] sm:$0xff]   ;;  %v25137_v3 = vld [vmem:[%s26455_s2 + $0x4c8] sm:$0xff]  }
 0x910   : > { %v25138_v5 = vld [vmem:[%s26455_s2 + $0x488] sm:$0xff]  }
 0x911   : > { %10357 = vmatpush1.bf16.msra.mxu1 %v25097_v4  ;;  %v25139_v4 = vld [vmem:[%s26455_s2 + $0x428] sm:$0xff]  }
 0x912   : > { %23160 = vmatpush3.bf16.msra.mxu0 %v25099_v55  ;;  %10358 = vmatprep.subr.bf16.mxu1 %v26178_v12  ;;  %v25140_v55 = vld [vmem:[%s26455_s2 + $0x4d0] sm:$0xff]  }
 0x913   : > { %23161 = vmatprep.subr.bf16.mxu0 %v25101_v46  ;;  %v25141_v46 = vld [vmem:[%s26455_s2 + $0x490] sm:$0xff]  }
 0x915   : > { %10359 = vmatpush1.bf16.msra.mxu1 %v25100_v6  ;;  %v25142_v6 = vld [vmem:[%s26455_s2 + $0x430] sm:$0xff]  }
 0x916   : > { %23162 = vmatpush3.bf16.msra.mxu0 %v25102_v47  ;;  %10360 = vmatprep.subr.bf16.mxu1 %v26178_v12  ;;  %v10804_v47 = vrot.slane %v28407_v28, 5 }
 0x917   : > { %23163 = vmatprep.subr.bf16.mxu0 %v25104_v54  ;;  %v25143_v54 = vld [vmem:[%s26455_s2 + $0x4d8] sm:$0xff]  }
 0x919   : > { %10361 = vmatpush1.bf16.msra.mxu1 %v25103_v26  ;;  %v10805_v26 = vrot.slane %v28409_v39, 4  ;;  %v28485_v39 = vld [vmem:[#allocation2 + $0x40] sm:$0x88] }
 0x91a   : > { %23164 = vmatpush3.bf16.msra.mxu0 %v25105_v62  ;;  %10362 = vmatprep.subr.bf16.mxu1 %v26178_v12  ;;  %v10813_v62 = vrot.slane %v28427_v17, 5 }
 0x91b   : > { %23165 = vmatprep.subr.bf16.mxu0 %v25107_v48  ;;  %v10814_v48 = vrot.slane %v28430_v0, 4 }
 0x91d   : > { %10363 = vmatpush1.bf16.msra.mxu1 %v25106_v49  ;;  %v25144_v49 = vld [vmem:[%s26455_s2 + $0x498] sm:$0xff]   ;;  %v10815_v8 = vsel %vm9166_vm2, %v10814_v48, %v10813_v62  ;;  %v10811_v62 = vrot.slane %v28504_v11, 4  ;;  %v25178_v48 = vld [vmem:[%s26455_s2 + $0x570] sm:$0xff]  }
 0x91e   : > { %23166 = vmatpush3.bf16.msra.mxu0 %v25108_v15  ;;  %10364 = vmatprep.subr.bf16.mxu1 %v26178_v12  ;;  %v10806_v15 = vsel %vm9166_vm2, %v10805_v26, %v10804_v47  ;;  %v10819_v28 = vpack.c.b16 %v10815_v8, %v10815_v8  ;;  %v25177_v26 = vld [vmem:[%s26455_s2 + $0x5b0] sm:$0xff]  }
 0x91f   : > { %23167 = vmatprep.subr.bf16.mxu0 %v25110_v58  ;;  %v25146_v58 = vld [vmem:[%s26455_s2 + $0x4e0] sm:$0xff]  }
 0x921   : > { %10365 = vmatpush1.bf16.msra.mxu1 %v25109_v31  ;;  %v10816_v31 = vpack.c.b16 %v10806_v15, %v10806_v15 }
 0x922   : > { %23168 = vmatpush3.bf16.msra.mxu0 %v25111_v30  ;;  %10366 = vmatprep.subr.bf16.mxu1 %v26178_v12  ;;  %v28483_v30 = vld [vmem:[#allocation2] sm:$0x88] }
 0x923   : > { %23169 = vmatprep.subr.bf16.mxu0 %v25113_v61  ;;  %v20786_v61 = vcombine.low %v28414_v10, %v28414_v10  ;;  %v20963_v44 = vcombine.high %v28483_v30, %v28483_v30  ;;  %v25149_v10 = vld [vmem:[%s26455_s2 + $0x448] sm:$0xff]  }
 0x925   : > { %10367 = vmatpush1.bf16.msra.mxu1 %v25112_v32  ;;  %v25147_v32 = vld [vmem:[%s26455_s2 + $0x440] sm:$0xff]   ;;  %v28502_v29 = vunpack.c.l.b16 %v20786_v61  ;;  %v28508_v38 = vunpack.c.l.b16 %v20963_v44 }
 0x926   : > { %23170 = vmatpush3.bf16.msra.mxu0 %v25114_v18  ;;  %10368 = vmatprep.subr.bf16.mxu1 %v26178_v12  ;;  %v20967_v18 = vcombine.high %v28485_v39, %v28485_v39 }
 0x927   : > { %23171 = vmatprep.subr.bf16.mxu0 %v25116_v37  ;;  %v25151_v37 = vld [vmem:[%s26455_s2 + $0x450] sm:$0xff]   ;;  %v10482_v0 = vrot.slane %v28502_v29, 4  ;;  %v11495_v44 = vrot.slane %v28508_v38, 7 }
 0x928   : > { %v28510_v17 = vunpack.c.l.b16 %v20967_v18 }
 0x929   : > { %10369 = vmatpush1.bf16.msra.mxu1 %v25115_v1  ;;  %v10483_v1 = vrot.slane %v28504_v11, 3  ;;  %v25182_v11 = vld [vmem:[%s26455_s2 + $0x660] sm:$0xff]  }
 0x92a   : > { %23172 = vmatpush3.bf16.msra.mxu0 %v25117_v13  ;;  %23179 = vmatprep.subr.bf16.mxu1 %v25118_v2  ;;  %v11167_v13 = vrot.slane %v28508_v38, 6  ;;  %v11168_v41 = vrot.slane %v28510_v17, 5  ;;  %v11496_v18 = vrot.slane %v28510_v17, 6 }
 0x92b   : > { %10706 = vmatprep.subr.bf16.mxu0 %v26178_v12  ;;  %v10484_v34 = vsel %vm9166_vm2, %v10483_v1, %v10482_v0  ;;  %v25188_v1 = vld [vmem:[%s26455_s2 + $0x5c0] sm:$0xff]  }
 0x92c   : > { %10379 = vmatmul.mubr.bf16.vlgmr.msra.gmra.mrb[12].mxu1 %v10130_v16  ;;  %v11169_v2 = vsel %vm9166_vm2, %v11168_v41, %v11167_v13  ;;  %v10490_v19 = vpack.c.b16 %v10484_v34, %v10484_v34  ;;  %v25158_v16 = vld [vmem:[%s26455_s2 + $0x500] sm:$0xff]   ;;  %v11497_v17 = vsel %vm9166_vm2, %v11496_v18, %v11495_v44  ;;  %v25189_v13 = vld [vmem:[%s26455_s2 + $0x668] sm:$0xff]  }
 0x92d   : > { %23180 = vmatpush3.bf16.msra.mxu1 %v25123_v50  ;;  %10699 = vmatmul.mubr.bf16.vlgmr.msra.gmra.mrb[16].mxu0 %v10488_v45  ;;  %v25160_v50 = vld [vmem:[%s26455_s2 + $0x540] sm:$0xff]   ;;  %v11177_v45 = vpack.c.b16 %v11169_v2, %v11169_v2  ;;  %v25192_v2 = vld [vmem:[%s26455_s2 + $0x670] sm:$0xff]  }
 0x92e   : > { %10707 = vmatpush1.bf16.msra.mxu0 %v25124_v25  ;;  %23181 = vmatprep.subr.bf16.mxu1 %v25125_v43  ;;  %v25161_v25 = vld [vmem:[%s26455_s2 + $0x508] sm:$0xff]   ;;  %v25165_v43 = vld [vmem:[%s26455_s2 + $0x590] sm:$0xff]   ;;  %v28644_v18 = vld [vmem:[#allocation2 + $0x10] sm:$0x11] }
 0x92f   : > { %10708 = vmatprep.subr.bf16.mxu0 %v26178_v12  ;;  %11026 = vmatprep.mubr.bf16.mxu1 %v10817_v53  ;;  %v25164_v53 = vld [vmem:[%s26455_s2 + $0x510] sm:$0xff]  }
 0x930   : > { %20820 = vmatprep.mubr.msk.bf16.mxu0 %vm9349_vm4, %v10491_v57  ;;  %v25168_v57 = vld [vmem:[%s26455_s2 + $0x598] sm:$0xff]  }
 0x931   : > { %23182 = vmatpush3.bf16.msra.mxu1 %v25126_v36  ;;  %v25166_v36 = vld [vmem:[%s26455_s2 + $0x550] sm:$0xff]  }
 0x932   : > { %10709 = vmatpush1.bf16.msra.mxu0 %v25127_v40  ;;  %23183 = vmatprep.subr.bf16.mxu1 %v25128_v52  ;;  %v25167_v40 = vld [vmem:[%s26455_s2 + $0x518] sm:$0xff]  }
 0x933   : > { %10710 = vmatprep.subr.bf16.mxu0 %v26178_v12  ;;  %v25169_v52 = vld [vmem:[%s26455_s2 + $0x558] sm:$0xff]  }
 0x935   : > { %23184 = vmatpush3.bf16.msra.mxu1 %v25129_v24  ;;  %v25170_v24 = vld [vmem:[%s26455_s2 + $0x520] sm:$0xff]  }
 0x936   : > { %10711 = vmatpush1.bf16.msra.mxu0 %v25130_v56  ;;  %23185 = vmatprep.subr.bf16.mxu1 %v25131_v22  ;;  %v25171_v56 = vld [vmem:[%s26455_s2 + $0x5a0] sm:$0xff]  }
 0x937   : > { %10712 = vmatprep.subr.bf16.mxu0 %v26178_v12  ;;  %v25172_v22 = vld [vmem:[%s26455_s2 + $0x560] sm:$0xff]  }
 0x939   : > { %23186 = vmatpush3.bf16.msra.mxu1 %v25132_v59  ;;  %v20962_v59 = vcombine.low %v28483_v30, %v28483_v30 }
 0x93a   : > { %10713 = vmatpush1.bf16.msra.mxu0 %v25133_v63  ;;  %23187 = vmatprep.subr.bf16.mxu1 %v25134_v27  ;;  %v28546_v63 = vld [vmem:[#allocation2 + $0x8] sm:$0x88]  ;;  %v20966_v27 = vcombine.low %v28485_v39, %v28485_v39 }
 0x93b   : > { %10714 = vmatprep.subr.bf16.mxu0 %v26178_v12  ;;  %v25179_v39 = vld [vmem:[%s26455_s2 + $0x538] sm:$0xff]  }
 0x93c   : > { %v28564_v47 = vunpack.c.l.b16 %v20966_v27 }
 0x93d   : > { %23188 = vmatpush3.bf16.msra.mxu1 %v25135_v21  ;;  %v28551_v21 = vld [vmem:[#allocation2 + $0x48] sm:$0x88] }
 0x93e   : > { %10715 = vmatpush1.bf16.msra.mxu0 %v25136_v9  ;;  %23189 = vmatprep.subr.bf16.mxu1 %v25137_v3  ;;  %v25174_v9 = vld [vmem:[%s26455_s2 + $0x5a8] sm:$0xff]   ;;  %v11165_v30 = vrot.slane %v28564_v47, 5 }
 0x93f   : > { %10716 = vmatprep.subr.bf16.mxu0 %v26178_v12  ;;  %v25173_v3 = vld [vmem:[%s26455_s2 + $0x528] sm:$0xff]  }
 0x941   : > { %23190 = vmatpush3.bf16.msra.mxu1 %v25138_v5  ;;  %v28555_v5 = vunpack.c.l.b16 %v20962_v59  ;;  %v25204_v59 = vld [vmem:[%s26455_s2 + $0x690] sm:$0xff]  }
 0x942   : > { %10717 = vmatpush1.bf16.msra.mxu0 %v25139_v4  ;;  %23191 = vmatprep.subr.bf16.mxu1 %v25140_v55  ;;  %v20965_v4 = vcombine.high %v28546_v63, %v28546_v63  ;;  %v20969_v55 = vcombine.high %v28551_v21, %v28551_v21 }
 0x943   : > { %10718 = vmatprep.subr.bf16.mxu0 %v26178_v12  ;;  %v11492_v27 = vrot.slane %v28555_v5, 7 }
 0x944   : > { %v28571_v8 = vunpack.c.l.b16 %v20965_v4 }
 0x945   : > { %23192 = vmatpush3.bf16.msra.mxu1 %v25141_v46  ;;  %v25175_v46 = vld [vmem:[%s26455_s2 + $0x568] sm:$0xff]  }
 0x946   : > { %10719 = vmatpush1.bf16.msra.mxu0 %v25142_v6  ;;  %23193 = vmatprep.subr.bf16.mxu1 %v25143_v54  ;;  %v10810_v6 = vrot.slane %v28502_v29, 5  ;;  %v25176_v54 = vld [vmem:[%s26455_s2 + $0x530] sm:$0xff]  }
 0x947   : > { %10720 = vmatprep.subr.bf16.mxu0 %v26178_v12 }
 0x949   : > { %23194 = vmatpush3.bf16.msra.mxu1 %v25144_v49 }
 0x94a   : > { %10721 = vmatpush1.bf16.msra.mxu0 %v25145_v60  ;;  %11034 = vmatprep.subr.bf16.mxu1 %v26178_v12  ;;  %v11164_v60 = vrot.slane %v28555_v5, 6 }
 0x94b   : > { %10722 = vmatprep.subr.bf16.mxu0 %v26178_v12 }
 0x94c   : > { %11027 = vmatmul.mubr.bf16.vlgmr.msra.gmra.mrb[16].mxu1 %v10816_v31 }
 0x94d   : > { %11035 = vmatpush1.bf16.msra.mxu1 %v25146_v58  ;;  %20905 = vmatprep.mubr.msk.bf16.mxu1 %vm9349_vm4, %v10819_v28  ;;  %v28573_v58 = vunpack.c.l.b16 %v20969_v55  ;;  %v25206_v55 = vld [vmem:[%s26455_s2 + $0x5f0] sm:$0xff]  }
 0x94e   : > { %10723 = vmatpush1.bf16.msra.mxu0 %v25147_v32  ;;  %11036 = vmatprep.subr.bf16.mxu1 %v26178_v12  ;;  %v25180_v32 = vld [vmem:[%s26455_s2 + $0x5b8] sm:$0xff]  }
 0x94f   : > { %10724 = vmatprep.subr.bf16.mxu0 %v26178_v12  ;;  %v11174_v29 = vrot.slane %v28573_v58, 5  ;;  %v11502_v5 = vrot.slane %v28573_v58, 6  ;;  %v25210_v58 = vld [vmem:[%s26455_s2 + $0x6a0] sm:$0xff]  }
 0x951   : > { %11037 = vmatpush1.bf16.msra.mxu1 %v25148_v33  ;;  %v10812_v33 = vsel %vm9166_vm2, %v10811_v62, %v10810_v6 }
 0x952   : > { %10725 = vmatpush1.bf16.msra.mxu0 %v25149_v10  ;;  %11038 = vmatprep.subr.bf16.mxu1 %v26178_v12  ;;  %v11173_v10 = vrot.slane %v28571_v8, 6  ;;  %v10818_v38 = vpack.c.b16 %v10812_v33, %v10812_v33 }
 0x953   : > { %10726 = vmatprep.subr.bf16.mxu0 %v26178_v12 }
 0x954   : > { %v11175_v41 = vsel %vm9166_vm2, %v11174_v29, %v11173_v10  ;;  %v25214_v10 = vld [vmem:[%s26455_s2 + $0x6b0] sm:$0xff]   ;;  %v21141_v29 = vcombine.high %v28644_v18, %v28644_v18 }
 0x955   : > { %11039 = vmatpush1.bf16.msra.mxu1 %v25150_v23  ;;  %v11166_v23 = vsel %vm9166_vm2, %v11165_v30, %v11164_v60  ;;  %v11179_v34 = vpack.c.b16 %v11175_v41, %v11175_v41  ;;  %v25209_v60 = vld [vmem:[%s26455_s2 + $0x5f8] sm:$0xff]  }
 0x956   : > { %10727 = vmatpush1.bf16.msra.mxu0 %v25151_v37  ;;  %11040 = vmatprep.subr.bf16.mxu1 %v26178_v12  ;;  %v25187_v37 = vld [vmem:[%s26455_s2 + $0x620] sm:$0xff]   ;;  %v11176_v0 = vpack.c.b16 %v11166_v23, %v11166_v23  ;;  %v25215_v23 = vld [vmem:[%s26455_s2 + $0x610] sm:$0xff]  }
 0x957   : > { %10728 = vmatprep.subr.bf16.mxu0 %v26178_v12 }
 0x959   : > { %11041 = vmatpush1.bf16.msra.mxu1 %v25152_v35  ;;  %v11505_v35 = vpack.c.b16 %v11497_v17, %v11497_v17  ;;  %v28663_v17 = vunpack.c.l.b16 %v21141_v29  ;;  %v25246_v29 = vld [vmem:[%s26455_s2 + $0x820] sm:$0xff]  }
 0x95a   : > { %10729 = vmatpush1.bf16.msra.mxu0 %v25153_v7  ;;  %11042 = vmatprep.subr.bf16.mxu1 %v26178_v12  ;;  %v25190_v7 = vld [vmem:[%s26455_s2 + $0x628] sm:$0xff]  }
 0x95b   : > { %23201 = vmatprep.subr.bf16.mxu0 %v25159_v51  ;;  %v25191_v51 = vld [vmem:[%s26455_s2 + $0x5c8] sm:$0xff]  }
 0x95d   : > { %10739 = vmatmul.mubr.bf16.vlgmr.msra.gmra.mrb[20].mxu0 %v10490_v19  ;;  %11043 = vmatpush1.bf16.msra.mxu1 %v25158_v16 }
 0x95e   : > { %23202 = vmatpush3.bf16.msra.mxu0 %v25160_v50  ;;  %11044 = vmatprep.subr.bf16.mxu1 %v26178_v12 }
 0x95f   : > { %23203 = vmatprep.subr.bf16.mxu0 %v25162_v42  ;;  %11386 = vmatprep.mubr.bf16.mxu0 %v11177_v45  ;;  %v25193_v42 = vld [vmem:[%s26455_s2 + $0x630] sm:$0xff]  }
 0x961   : > { %11045 = vmatpush1.bf16.msra.mxu1 %v25161_v25  ;;  %v25194_v25 = vld [vmem:[%s26455_s2 + $0x5d0] sm:$0xff]  }
 0x962   : > { %23204 = vmatpush3.bf16.msra.mxu0 %v25163_v20  ;;  %11046 = vmatprep.subr.bf16.mxu1 %v26178_v12 }
 0x963   : > { %23205 = vmatprep.subr.bf16.mxu0 %v25165_v43  ;;  %v25195_v43 = vld [vmem:[%s26455_s2 + $0x678] sm:$0xff]  }
 0x965   : > { %11047 = vmatpush1.bf16.msra.mxu1 %v25164_v53  ;;  %v25196_v53 = vld [vmem:[%s26455_s2 + $0x638] sm:$0xff]  }
 0x966   : > { %23206 = vmatpush3.bf16.msra.mxu0 %v25166_v36  ;;  %11048 = vmatprep.subr.bf16.mxu1 %v26178_v12  ;;  %v25197_v36 = vld [vmem:[%s26455_s2 + $0x5d8] sm:$0xff]  }
 0x967   : > { %23207 = vmatprep.subr.bf16.mxu0 %v25168_v57  ;;  %v25198_v57 = vld [vmem:[%s26455_s2 + $0x680] sm:$0xff]  }
 0x969   : > { %11049 = vmatpush1.bf16.msra.mxu1 %v25167_v40  ;;  %v25199_v40 = vld [vmem:[%s26455_s2 + $0x640] sm:$0xff]  }
 0x96a   : > { %23208 = vmatpush3.bf16.msra.mxu0 %v25169_v52  ;;  %11050 = vmatprep.subr.bf16.mxu1 %v26178_v12  ;;  %v25200_v52 = vld [vmem:[%s26455_s2 + $0x5e0] sm:$0xff]  }
 0x96b   : > { %23209 = vmatprep.subr.bf16.mxu0 %v25171_v56  ;;  %v25202_v56 = vld [vmem:[%s26455_s2 + $0x648] sm:$0xff]  }
 0x96d   : > { %11051 = vmatpush1.bf16.msra.mxu1 %v25170_v24  ;;  %v25201_v24 = vld [vmem:[%s26455_s2 + $0x688] sm:$0xff]  }
 0x96e   : > { %23210 = vmatpush3.bf16.msra.mxu0 %v25172_v22  ;;  %11052 = vmatprep.subr.bf16.mxu1 %v26178_v12  ;;  %v25203_v22 = vld [vmem:[%s26455_s2 + $0x5e8] sm:$0xff]  }
 0x96f   : > { %23211 = vmatprep.subr.bf16.mxu0 %v25174_v9  ;;  %v25205_v9 = vld [vmem:[%s26455_s2 + $0x650] sm:$0xff]  }
 0x970   : > { %v23085_v49 = vpop.f32.mrb[0].mxu0 }
 0x971   : > { %11053 = vmatpush1.bf16.msra.mxu1 %v25173_v3  ;;  %v23086_v15 = vpop.f32.mrb[1].mxu0  ;;  %v11493_v3 = vrot.slane %v28564_v47, 6 }
 0x972   : > { %23212 = vmatpush3.bf16.msra.mxu0 %v25175_v46  ;;  %11054 = vmatprep.subr.bf16.mxu1 %v26178_v12  ;;  %v23087_v31 = vadd.f32 %v23086_v15, %v23085_v49  ;;  %v23088_v28 = vpop.f32.mrb[2].mxu0  ;;  %v25207_v46 = vld [vmem:[%s26455_s2 + $0x698] sm:$0xff]  }
 0x973   : > { %23213 = vmatprep.subr.bf16.mxu0 %v25177_v26  ;;  %v23089_v61 = vpop.f32.mrb[3].mxu0  ;;  %v25208_v49 = vld [vmem:[%s26455_s2 + $0x658] sm:$0xff]   ;;  %v11494_v15 = vsel %vm9166_vm2, %v11493_v3, %v11492_v27 }
 0x974   : > { %v28631_v28 = vld [vmem:[#allocation2 + $0x50] sm:$0x11]  ;;  %v20968_v61 = vcombine.low %v28551_v21, %v28551_v21 }
 0x975   : > { %11055 = vmatpush1.bf16.msra.mxu1 %v25176_v54  ;;  %v11501_v54 = vrot.slane %v28571_v8, 7  ;;  %v21145_v44 = vcombine.high %v28631_v28, %v28631_v28  ;;  %v25233_v3 = vld [vmem:[%s26455_s2 + $0x718] sm:$0xff]  }
 0x976   : > { %23214 = vmatpush3.bf16.msra.mxu0 %v25178_v48  ;;  %11056 = vmatprep.subr.bf16.mxu1 %v26178_v12  ;;  %v28650_v21 = vunpack.c.l.b16 %v20968_v61 }
 0x977   : > { %23215 = vmatprep.subr.bf16.mxu0 %v25180_v32  ;;  %v11503_v8 = vsel %vm9166_vm2, %v11502_v5, %v11501_v54  ;;  %v20964_v32 = vcombine.low %v28546_v63, %v28546_v63  ;;  %v25213_v63 = vld [vmem:[%s26455_s2 + $0x608] sm:$0xff]  }
 0x978   : > { %v11507_v30 = vpack.c.b16 %v11503_v8, %v11503_v8  ;;  %v28700_v54 = vld [vmem:[#allocation2 + $0x58] sm:$0x11] }
 0x979   : > { %11057 = vmatpush1.bf16.msra.mxu1 %v25179_v39  ;;  %v25211_v39 = vld [vmem:[%s26455_s2 + $0x600] sm:$0xff]   ;;  %v28648_v33 = vunpack.c.l.b16 %v20964_v32  ;;  %v25239_v5 = vld [vmem:[%s26455_s2 + $0x728] sm:$0xff]  }
 0x97a   : > { %23216 = vmatpush3.bf16.msra.mxu0 %v25181_v14  ;;  %23223 = vmatprep.subr.bf16.mxu1 %v25182_v11  ;;  %v25212_v14 = vld [vmem:[%s26455_s2 + $0x6a8] sm:$0xff]   ;;  %v28656_v11 = vunpack.c.l.b16 %v21145_v44  ;;  %v25243_v44 = vld [vmem:[%s26455_s2 + $0x6f8] sm:$0xff]  }
 0x97b   : > { %11394 = vmatprep.subr.bf16.mxu0 %v26178_v12  ;;  %v11498_v8 = vrot.slane %v28648_v33, 7 }
 0x97c   : > { %11067 = vmatmul.mubr.bf16.vlgmr.msra.gmra.mrb[20].mxu1 %v10818_v38  ;;  %v11170_v38 = vrot.slane %v28648_v33, 6 }
 0x97d   : > { %23224 = vmatpush3.bf16.msra.mxu1 %v25187_v37  ;;  %11387 = vmatmul.mubr.bf16.vlgmr.msra.gmra.mrb[24].mxu0 %v11176_v0  ;;  %v11171_v37 = vrot.slane %v28650_v21, 5  ;;  %v11854_v0 = vrot.slane %v28656_v11, 7 }
 0x97e   : > { %11395 = vmatpush1.bf16.msra.mxu0 %v25188_v1  ;;  %23225 = vmatprep.subr.bf16.mxu1 %v25189_v13  ;;  %v25216_v1 = vld [vmem:[%s26455_s2 + $0x6b8] sm:$0xff]  }
 0x97f   : > { %v9427_v19 = vpop.f32.mrb[0].mxu1  ;;  %11396 = vmatprep.subr.bf16.mxu0 %v26178_v12  ;;  %11714 = vmatprep.mubr.bf16.mxu1 %v11505_v35  ;;  %v25217_v13 = vld [vmem:[%s26455_s2 + $0x618] sm:$0xff]   ;;  %v11172_v41 = vsel %vm9166_vm2, %v11171_v37, %v11170_v38  ;;  %v25223_v35 = vld [vmem:[%s26455_s2 + $0x740] sm:$0xff]  }
 0x980   : > { %v9428_v16 = vadd.f32 %v23087_v31, %v9427_v19  ;;  %v9429_v50 = vpop.f32.mrb[1].mxu1  ;;  %20998 = vmatprep.mubr.msk.bf16.mxu0 %vm9349_vm4, %v11179_v34  ;;  %v11504_v31 = vpack.c.b16 %v11494_v15, %v11494_v15  ;;  %v11178_v34 = vpack.c.b16 %v11172_v41, %v11172_v41  ;;  %v25226_v19 = vld [vmem:[%s26455_s2 + $0x748] sm:$0xff]   ;;  %v25251_v37 = vld [vmem:[%s26455_s2 + $0x7e0] sm:$0xff]  }
 0x981   : > { %v9430_v45 = vpop.f32.mrb[2].mxu1  ;;  %23226 = vmatpush3.bf16.msra.mxu1 %v25190_v7  ;;  %v11855_v7 = vsel %vm9166_vm2, %v11854_v0, %v28663_v17  ;;  %v25225_v50 = vld [vmem:[%s26455_s2 + $0x6c8] sm:$0xff]  }
 0x982   : > { %v9431_v20 = vpop.f32.mrb[3].mxu1  ;;  %11397 = vmatpush1.bf16.msra.mxu0 %v25191_v51  ;;  %23227 = vmatprep.subr.bf16.mxu1 %v25192_v2  ;;  %v25222_v51 = vld [vmem:[%s26455_s2 + $0x6c0] sm:$0xff]   ;;  %v25253_v41 = vld [vmem:[%s26455_s2 + $0x828] sm:$0xff]  }
 0x983   : > { %11398 = vmatprep.subr.bf16.mxu0 %v26178_v12  ;;  %v25224_v2 = vld [vmem:[%s26455_s2 + $0x700] sm:$0xff]  }
 0x984   : > { %v28712_v15 = vld [vmem:[#allocation2 + $0x18] sm:$0x11] }
 0x985   : > { %23228 = vmatpush3.bf16.msra.mxu1 %v25193_v42  ;;  %v25227_v42 = vld [vmem:[%s26455_s2 + $0x708] sm:$0xff]  }
 0x986   : > { %11399 = vmatpush1.bf16.msra.mxu0 %v25194_v25  ;;  %23229 = vmatprep.subr.bf16.mxu1 %v25195_v43  ;;  %v25229_v25 = vld [vmem:[%s26455_s2 + $0x750] sm:$0xff]  }
 0x987   : > { %11400 = vmatprep.subr.bf16.mxu0 %v26178_v12 }
 0x989   : > { %23230 = vmatpush3.bf16.msra.mxu1 %v25196_v53  ;;  %v25228_v53 = vld [vmem:[%s26455_s2 + $0x6d0] sm:$0xff]  }
 0x98a   : > { %11401 = vmatpush1.bf16.msra.mxu0 %v25197_v36  ;;  %23231 = vmatprep.subr.bf16.mxu1 %v25198_v57 }
 0x98b   : > { %11402 = vmatprep.subr.bf16.mxu0 %v26178_v12 }
 0x98d   : > { %23232 = vmatpush3.bf16.msra.mxu1 %v25199_v40 }
 0x98e   : > { %11403 = vmatpush1.bf16.msra.mxu0 %v25200_v52  ;;  %23233 = vmatprep.subr.bf16.mxu1 %v25201_v24  ;;  %v25230_v24 = vld [vmem:[%s26455_s2 + $0x710] sm:$0xff]  }
 0x98f   : > { %11404 = vmatprep.subr.bf16.mxu0 %v26178_v12 }
 0x990   : > { %v23107_v4 = vpop.f32.mrb[4].mxu0 }
 0x991   : > { %v23108_v6 = vpop.f32.mrb[5].mxu0  ;;  %23234 = vmatpush3.bf16.msra.mxu1 %v25202_v56 }
 0x992   : > { %v23109_v26 = vadd.f32 %v23108_v6, %v23107_v4  ;;  %11405 = vmatpush1.bf16.msra.mxu0 %v25203_v22  ;;  %23235 = vmatprep.subr.bf16.mxu1 %v25204_v59  ;;  %v23110_v62 = vpop.f32.mrb[6].mxu0  ;;  %v25232_v59 = vld [vmem:[%s26455_s2 + $0x758] sm:$0xff]   ;;  %v25235_v4 = vld [vmem:[%s26455_s2 + $0x760] sm:$0xff]   ;;  %v21144_v6 = vcombine.low %v28631_v28, %v28631_v28 }
 0x993   : > { %11406 = vmatprep.subr.bf16.mxu0 %v26178_v12  ;;  %v23111_v48 = vpop.f32.mrb[7].mxu0  ;;  %v25237_v62 = vld [vmem:[%s26455_s2 + $0x6e8] sm:$0xff]  }
 0x994   : > { %v28623_v47 = vadd.f32 %v23109_v26, %v9428_v16  ;;  %v11861_v16 = vpack.c.b16 %v11855_v7, %v11855_v7  ;;  %v25238_v26 = vld [vmem:[%s26455_s2 + $0x768] sm:$0xff]   ;;  %v21147_v48 = vcombine.high %v28700_v54, %v28700_v54 }
 0x995   : > { %23236 = vmatpush3.bf16.msra.mxu1 %v25205_v9  ;;  %v25231_v9 = vld [vmem:[%s26455_s2 + $0x6d8] sm:$0xff]  }
 0x996   : > { %11407 = vmatpush1.bf16.msra.mxu0 %v25206_v55  ;;  %23237 = vmatprep.subr.bf16.mxu1 %v25207_v46  ;;  %v25234_v55 = vld [vmem:[%s26455_s2 + $0x6e0] sm:$0xff]   ;;  %v28720_v28 = vunpack.c.l.b16 %v21147_v48 }
 0x997   : > { %11408 = vmatprep.subr.bf16.mxu0 %v26178_v12  ;;  %v25236_v46 = vld [vmem:[%s26455_s2 + $0x720] sm:$0xff]  }
 0x999   : > { %23238 = vmatpush3.bf16.msra.mxu1 %v25208_v49  ;;  %v28710_v49 = vunpack.c.l.b16 %v21144_v6  ;;  %v25271_v6 = vld [vmem:[%s26455_s2 + $0x858] sm:$0xff]  }
 0x99a   : > { %11409 = vmatpush1.bf16.msra.mxu0 %v25209_v60  ;;  %11722 = vmatprep.subr.bf16.mxu1 %v26178_v12  ;;  %v25241_v60 = vld [vmem:[%s26455_s2 + $0x770] sm:$0xff]  }
 0x99b   : > { %11410 = vmatprep.subr.bf16.mxu0 %v26178_v12  ;;  %v11852_v61 = vrot.slane %v28710_v49, 7 }
 0x99c   : > { %11715 = vmatmul.mubr.bf16.vlgmr.msra.gmra.mrb[24].mxu1 %v11504_v31  ;;  %v25240_v31 = vld [vmem:[%s26455_s2 + $0x6f0] sm:$0xff]  }
 0x99d   : > { %11723 = vmatpush1.bf16.msra.mxu1 %v25210_v58  ;;  %21083 = vmatprep.mubr.msk.bf16.mxu1 %vm9349_vm4, %v11507_v30  ;;  %v11499_v58 = vrot.slane %v28650_v21, 6  ;;  %v21143_v30 = vcombine.high %v28712_v15, %v28712_v15 }
 0x99e   : > { %11411 = vmatpush1.bf16.msra.mxu0 %v25211_v39  ;;  %11724 = vmatprep.subr.bf16.mxu1 %v26178_v12  ;;  %v25242_v39 = vld [vmem:[%s26455_s2 + $0x730] sm:$0xff]  }
 0x99f   : > { %11412 = vmatprep.subr.bf16.mxu0 %v26178_v12  ;;  %v11500_v33 = vsel %vm9166_vm2, %v11499_v58, %v11498_v8  ;;  %v28732_v21 = vunpack.c.l.b16 %v21143_v30  ;;  %v25273_v8 = vld [vmem:[%s26455_s2 + $0x7b8] sm:$0xff]   ;;  %v25274_v58 = vld [vmem:[%s26455_s2 + $0x860] sm:$0xff]  }
 0x9a0   : > { %v11506_v38 = vpack.c.b16 %v11500_v33, %v11500_v33  ;;  %v28788_v30 = vld [vmem:[#allocation2 + $0x10] sm:$0x22]  ;;  %v25278_v33 = vld [vmem:[%s26455_s2 + $0x870] sm:$0xff]  }
 0x9a1   : > { %11725 = vmatpush1.bf16.msra.mxu1 %v25212_v14  ;;  %v25244_v14 = vld [vmem:[%s26455_s2 + $0x778] sm:$0xff]  }
 0x9a2   : > { %11413 = vmatpush1.bf16.msra.mxu0 %v25213_v63  ;;  %11726 = vmatprep.subr.bf16.mxu1 %v26178_v12  ;;  %v25245_v63 = vld [vmem:[%s26455_s2 + $0x738] sm:$0xff]  }
 0x9a3   : > { %11414 = vmatprep.subr.bf16.mxu0 %v26178_v12 }
 0x9a5   : > { %11727 = vmatpush1.bf16.msra.mxu1 %v25214_v10  ;;  %v11858_v10 = vrot.slane %v28720_v28, 7 }
 0x9a6   : > { %11415 = vmatpush1.bf16.msra.mxu0 %v25215_v23  ;;  %11728 = vmatprep.subr.bf16.mxu1 %v26178_v12 }
 0x9a7   : > { %11416 = vmatprep.subr.bf16.mxu0 %v26178_v12 }
 0x9a9   : > { %11729 = vmatpush1.bf16.msra.mxu1 %v25216_v1  ;;  %v25252_v1 = vld [vmem:[%s26455_s2 + $0x780] sm:$0xff]  }
 0x9aa   : > { %11417 = vmatpush1.bf16.msra.mxu0 %v25217_v13  ;;  %11730 = vmatprep.subr.bf16.mxu1 %v26178_v12  ;;  %v11859_v13 = vsel %vm9166_vm2, %v11858_v10, %v28732_v21 }
 0x9ab   : > { %23245 = vmatprep.subr.bf16.mxu0 %v25223_v35  ;;  %v11863_v7 = vpack.c.b16 %v11859_v13, %v11859_v13  ;;  %v25287_v13 = vld [vmem:[%s26455_s2 + $0x900] sm:$0xff]  }
 0x9ad   : > { %11427 = vmatmul.mubr.bf16.vlgmr.msra.gmra.mrb[28].mxu0 %v11178_v34  ;;  %11731 = vmatpush1.bf16.msra.mxu1 %v25222_v51  ;;  %v25255_v34 = vld [vmem:[%s26455_s2 + $0x788] sm:$0xff]   ;;  %v25256_v51 = vld [vmem:[%s26455_s2 + $0x830] sm:$0xff]  }
 0x9ae   : > { %23246 = vmatpush3.bf16.msra.mxu0 %v25224_v2  ;;  %11732 = vmatprep.subr.bf16.mxu1 %v26178_v12 }
 0x9af   : > { %v9693_v45 = vpop.f32.mrb[4].mxu1  ;;  %23247 = vmatprep.subr.bf16.mxu0 %v25226_v19  ;;  %12070 = vmatprep.mubr.bf16.mxu0 %v11861_v16  ;;  %v25257_v16 = vld [vmem:[%s26455_s2 + $0x7f0] sm:$0xff]  }
 0x9b0   : > { %v28683_v20 = vadd.f32 %v9693_v45, %v28623_v47  ;;  %v9695_v43 = vpop.f32.mrb[5].mxu1  ;;  %v23129_v36 = vpop.f32.mrb[8].mxu0  ;;  %v21140_v47 = vcombine.low %v28644_v18, %v28644_v18  ;;  %v12178_v18 = vrot.slane %v28663_v17, 1  ;;  %v25258_v45 = vld [vmem:[%s26455_s2 + $0x790] sm:$0xff]  }
 0x9b1   : > { %v9696_v57 = vpop.f32.mrb[6].mxu1  ;;  %11733 = vmatpush1.bf16.msra.mxu1 %v25225_v50  ;;  %v23130_v40 = vpop.f32.mrb[9].mxu0  ;;  %v25259_v43 = vld [vmem:[%s26455_s2 + $0x838] sm:$0xff]  }
 0x9b2   : > { %v9697_v52 = vpop.f32.mrb[7].mxu1  ;;  %23248 = vmatpush3.bf16.msra.mxu0 %v25227_v42  ;;  %11734 = vmatprep.subr.bf16.mxu1 %v26178_v12  ;;  %v28688_v56 = vadd.f32 %v23130_v40, %v23129_v36  ;;  %v23132_v22 = vpop.f32.mrb[10].mxu0  ;;  %v28724_v32 = vunpack.c.l.b16 %v21140_v47  ;;  %v12179_v17 = vsel %vm9166_vm2, %v28656_v11, %v12178_v18  ;;  %v25254_v11 = vld [vmem:[%s26455_s2 + $0x7e8] sm:$0xff]   ;;  %v25261_v36 = vld [vmem:[%s26455_s2 + $0x798] sm:$0xff]   ;;  %v25262_v57 = vld [vmem:[%s26455_s2 + $0x840] sm:$0xff]  }
 0x9b3   : > { %23249 = vmatprep.subr.bf16.mxu0 %v25229_v25  ;;  %v23133_v27 = vpop.f32.mrb[11].mxu0  ;;  %v12185_v35 = vpack.c.b16 %v12179_v17, %v12179_v17  ;;  %v25263_v40 = vld [vmem:[%s26455_s2 + $0x800] sm:$0xff]   ;;  %v25266_v22 = vld [vmem:[%s26455_s2 + $0x808] sm:$0xff]  }
 0x9b4   : > { %v11853_v23 = vsel %vm9166_vm2, %v11852_v61, %v28724_v32  ;;  %v25264_v52 = vld [vmem:[%s26455_s2 + $0x7a0] sm:$0xff]   ;;  %v25268_v27 = vld [vmem:[%s26455_s2 + $0x850] sm:$0xff]   ;;  %v21319_v61 = vcombine.high %v28788_v30, %v28788_v30  ;;  %v25277_v18 = vld [vmem:[%s26455_s2 + $0x7c8] sm:$0xff]  }
 0x9b5   : > { %11735 = vmatpush1.bf16.msra.mxu1 %v25228_v53  ;;  %v11860_v0 = vpack.c.b16 %v11853_v23, %v11853_v23  ;;  %v25260_v53 = vld [vmem:[%s26455_s2 + $0x7f8] sm:$0xff]  }
 0x9b6   : > { %23250 = vmatpush3.bf16.msra.mxu0 %v25230_v24  ;;  %11736 = vmatprep.subr.bf16.mxu1 %v26178_v12  ;;  %v25265_v24 = vld [vmem:[%s26455_s2 + $0x848] sm:$0xff]  }
 0x9b7   : > { %23251 = vmatprep.subr.bf16.mxu0 %v25232_v59  ;;  %v25267_v59 = vld [vmem:[%s26455_s2 + $0x7a8] sm:$0xff]  }
 0x9b9   : > { %11737 = vmatpush1.bf16.msra.mxu1 %v25231_v9  ;;  %v25269_v9 = vld [vmem:[%s26455_s2 + $0x810] sm:$0xff]  }
 0x9ba   : > { %23252 = vmatpush3.bf16.msra.mxu0 %v25233_v3  ;;  %11738 = vmatprep.subr.bf16.mxu1 %v26178_v12  ;;  %v12176_v3 = vrot.slane %v28724_v32, 1  ;;  %v28790_v32 = vld [vmem:[#allocation2 + $0x50] sm:$0x22] }
 0x9bb   : > { %23253 = vmatprep.subr.bf16.mxu0 %v25235_v4 }
 0x9bd   : > { %11739 = vmatpush1.bf16.msra.mxu1 %v25234_v55  ;;  %v25270_v55 = vld [vmem:[%s26455_s2 + $0x7b0] sm:$0xff]  }
 0x9be   : > { %23254 = vmatpush3.bf16.msra.mxu0 %v25236_v46  ;;  %11740 = vmatprep.subr.bf16.mxu1 %v26178_v12 }
 0x9bf   : > { %23255 = vmatprep.subr.bf16.mxu0 %v25238_v26 }
 0x9c1   : > { %11741 = vmatpush1.bf16.msra.mxu1 %v25237_v62 }
 0x9c2   : > { %23256 = vmatpush3.bf16.msra.mxu0 %v25239_v5  ;;  %11742 = vmatprep.subr.bf16.mxu1 %v26178_v12  ;;  %v12182_v5 = vrot.slane %v28732_v21, 1  ;;  %v28811_v21 = vunpack.c.l.b16 %v21319_v61  ;;  %v25308_v61 = vld [vmem:[%s26455_s2 + $0x938] sm:$0xff]  }
 0x9c3   : > { %23257 = vmatprep.subr.bf16.mxu0 %v25241_v60  ;;  %v25272_v60 = vld [vmem:[%s26455_s2 + $0x818] sm:$0xff]  }
 0x9c5   : > { %11743 = vmatpush1.bf16.msra.mxu1 %v25240_v31  ;;  %v12183_v31 = vsel %vm9166_vm2, %v28720_v28, %v12182_v5  ;;  %v21146_v28 = vcombine.low %v28700_v54, %v28700_v54  ;;  %v21142_v54 = vcombine.low %v28712_v15, %v28712_v15  ;;  %v21322_v5 = vcombine.low %v28790_v32, %v28790_v32 }
 0x9c6   : > { %23258 = vmatpush3.bf16.msra.mxu0 %v25242_v39  ;;  %11744 = vmatprep.subr.bf16.mxu1 %v26178_v12  ;;  %v12187_v39 = vpack.c.b16 %v12183_v31, %v12183_v31 }
 0x9c7   : > { %23259 = vmatprep.subr.bf16.mxu0 %v25244_v14  ;;  %v21323_v14 = vcombine.high %v28790_v32, %v28790_v32  ;;  %v28817_v23 = vunpack.c.l.b16 %v21142_v54  ;;  %v12863_v54 = vrot.slane %v28811_v21, 3 }
 0x9c9   : > { %11745 = vmatpush1.bf16.msra.mxu1 %v25243_v44  ;;  %v25276_v44 = vld [vmem:[%s26455_s2 + $0x868] sm:$0xff]   ;;  %v28813_v10 = vunpack.c.l.b16 %v21323_v14 }
 0x9ca   : > { %23260 = vmatpush3.bf16.msra.mxu0 %v25245_v63  ;;  %23267 = vmatprep.subr.bf16.mxu1 %v25246_v29  ;;  %v28807_v63 = vunpack.c.l.b16 %v21146_v28  ;;  %v25279_v29 = vld [vmem:[%s26455_s2 + $0x7d0] sm:$0xff]  }
 0x9cb   : > { %12078 = vmatprep.subr.bf16.mxu0 %v26178_v12  ;;  %v12536_v17 = vrot.slane %v28813_v10, 1  ;;  %v25306_v28 = vld [vmem:[%s26455_s2 + $0x8f0] sm:$0xff]  }
 0x9cc   : > { %11755 = vmatmul.mubr.bf16.vlgmr.msra.gmra.mrb[28].mxu1 %v11506_v38  ;;  %v11856_v15 = vrot.slane %v28807_v63, 7  ;;  %v25280_v38 = vld [vmem:[%s26455_s2 + $0x878] sm:$0xff]  }
 0x9cd   : > { %23268 = vmatpush3.bf16.msra.mxu1 %v25251_v37  ;;  %12071 = vmatmul.mubr.bf16.vlgmr.msra.gmra.mrb[32].mxu0 %v11860_v0  ;;  %v12535_v37 = vrot.slane %v28811_v21, 2  ;;  %v25281_v0 = vld [vmem:[%s26455_s2 + $0x7d8] sm:$0xff]   ;;  %v25315_v21 = vld [vmem:[%s26455_s2 + $0x9a0] sm:$0xff]  }
 0x9ce   : > { %12079 = vmatpush1.bf16.msra.mxu0 %v25252_v1  ;;  %23269 = vmatprep.subr.bf16.mxu1 %v25253_v41  ;;  %v11857_v1 = vsel %vm9166_vm2, %v11856_v15, %v28817_v23  ;;  %v25286_v41 = vld [vmem:[%s26455_s2 + $0x880] sm:$0xff]  }
 0x9cf   : > { %v23151_v2 = vpop.f32.mrb[8].mxu1  ;;  %12080 = vmatprep.subr.bf16.mxu0 %v26178_v12  ;;  %12394 = vmatprep.mubr.bf16.mxu1 %v12185_v35  ;;  %v12537_v35 = vsel %vm9166_vm2, %v12536_v17, %v12535_v37 }
 0x9d0   : > { %v23152_v19 = vpop.f32.mrb[9].mxu1  ;;  %21176 = vmatprep.mubr.msk.bf16.mxu0 %vm9349_vm4, %v11863_v7  ;;  %v11862_v7 = vpack.c.b16 %v11857_v1, %v11857_v1  ;;  %v25317_v1 = vld [vmem:[%s26455_s2 + $0x9e8] sm:$0xff]  }
 0x9d1   : > { %v28753_v50 = vadd.f32 %v23152_v19, %v23151_v2  ;;  %v23154_v42 = vpop.f32.mrb[10].mxu1  ;;  %23270 = vmatpush3.bf16.msra.mxu1 %v25254_v11  ;;  %v25288_v11 = vld [vmem:[%s26455_s2 + $0x8c0] sm:$0xff]   ;;  %v25289_v2 = vld [vmem:[%s26455_s2 + $0x888] sm:$0xff]  }
 0x9d2   : > { %v23155_v25 = vpop.f32.mrb[11].mxu1  ;;  %12081 = vmatpush1.bf16.msra.mxu0 %v25255_v34  ;;  %23271 = vmatprep.subr.bf16.mxu1 %v25256_v51  ;;  %v25290_v34 = vld [vmem:[%s26455_s2 + $0x908] sm:$0xff]   ;;  %v12545_v51 = vpack.c.b16 %v12537_v35, %v12537_v35  ;;  %v25293_v42 = vld [vmem:[%s26455_s2 + $0x910] sm:$0xff]  }
 0x9d3   : > { %12082 = vmatprep.subr.bf16.mxu0 %v26178_v12  ;;  %v25291_v19 = vld [vmem:[%s26455_s2 + $0x8c8] sm:$0xff]  }
 0x9d5   : > { %23272 = vmatpush3.bf16.msra.mxu1 %v25257_v16 }
 0x9d6   : > { %12083 = vmatpush1.bf16.msra.mxu0 %v25258_v45  ;;  %23273 = vmatprep.subr.bf16.mxu1 %v25259_v43  ;;  %v25292_v43 = vld [vmem:[%s26455_s2 + $0x890] sm:$0xff]  }
 0x9d7   : > { %12084 = vmatprep.subr.bf16.mxu0 %v26178_v12 }
 0x9d9   : > { %23274 = vmatpush3.bf16.msra.mxu1 %v25260_v53 }
 0x9da   : > { %12085 = vmatpush1.bf16.msra.mxu0 %v25261_v36  ;;  %23275 = vmatprep.subr.bf16.mxu1 %v25262_v57 }
 0x9db   : > { %12086 = vmatprep.subr.bf16.mxu0 %v26178_v12 }
 0x9dd   : > { %23276 = vmatpush3.bf16.msra.mxu1 %v25263_v40 }
 0x9de   : > { %12087 = vmatpush1.bf16.msra.mxu0 %v25264_v52  ;;  %23277 = vmatprep.subr.bf16.mxu1 %v25265_v24  ;;  %v25294_v24 = vld [vmem:[%s26455_s2 + $0x8d0] sm:$0xff]  }
 0x9df   : > { %12088 = vmatprep.subr.bf16.mxu0 %v26178_v12 }
 0x9e0   : > { %v10052_v4 = vpop.f32.mrb[12].mxu0 }
 0x9e1   : > { %v10053_v46 = vadd.f32 %v28688_v56, %v10052_v4  ;;  %23278 = vmatpush3.bf16.msra.mxu1 %v25266_v22  ;;  %v10054_v26 = vpop.f32.mrb[13].mxu0  ;;  %v12177_v56 = vsel %vm9166_vm2, %v28710_v49, %v12176_v3  ;;  %v25275_v49 = vld [vmem:[%s26455_s2 + $0x7c0] sm:$0xff]   ;;  %v25297_v3 = vld [vmem:[%s26455_s2 + $0x8d8] sm:$0xff]  }
 0x9e2   : > { %12089 = vmatpush1.bf16.msra.mxu0 %v25267_v59  ;;  %23279 = vmatprep.subr.bf16.mxu1 %v25268_v27  ;;  %v10055_v62 = vpop.f32.mrb[14].mxu0  ;;  %v25296_v59 = vld [vmem:[%s26455_s2 + $0x918] sm:$0xff]   ;;  %v25298_v4 = vld [vmem:[%s26455_s2 + $0x8a0] sm:$0xff]  }
 0x9e3   : > { %v28777_v48 = vadd.f32 %v10053_v46, %v28683_v20  ;;  %12090 = vmatprep.subr.bf16.mxu0 %v26178_v12  ;;  %v10056_v47 = vpop.f32.mrb[15].mxu0  ;;  %v12184_v20 = vpack.c.b16 %v12177_v56, %v12177_v56  ;;  %v28854_v46 = vld [vmem:[#allocation2 + $0x18] sm:$0x22]  ;;  %v21318_v62 = vcombine.low %v28788_v30, %v28788_v30  ;;  %v25304_v30 = vld [vmem:[%s26455_s2 + $0x8b0] sm:$0xff]  }
 0x9e4   : > { %v28857_v26 = vld [vmem:[#allocation2 + $0x58] sm:$0x22]  ;;  %v21321_v56 = vcombine.high %v28854_v46, %v28854_v46 }
 0x9e5   : > { %23280 = vmatpush3.bf16.msra.mxu1 %v25269_v9  ;;  %v25295_v9 = vld [vmem:[%s26455_s2 + $0x898] sm:$0xff]   ;;  %v25302_v47 = vld [vmem:[%s26455_s2 + $0x928] sm:$0xff]   ;;  %v28872_v31 = vunpack.c.l.b16 %v21318_v62 }
 0x9e6   : > { %12091 = vmatpush1.bf16.msra.mxu0 %v25270_v55  ;;  %23281 = vmatprep.subr.bf16.mxu1 %v25271_v6  ;;  %v25299_v55 = vld [vmem:[%s26455_s2 + $0x920] sm:$0xff]   ;;  %v28879_v32 = vunpack.c.l.b16 %v21321_v56 }
 0x9e7   : > { %12092 = vmatprep.subr.bf16.mxu0 %v26178_v12  ;;  %v25300_v6 = vld [vmem:[%s26455_s2 + $0x8e0] sm:$0xff]   ;;  %v12532_v14 = vrot.slane %v28872_v31, 2 }
 0x9e8   : > { %v12541_v15 = vrot.slane %v28879_v32, 2  ;;  %v12869_v56 = vrot.slane %v28879_v32, 3 }
 0x9e9   : > { %23282 = vmatpush3.bf16.msra.mxu1 %v25272_v60  ;;  %v25303_v60 = vld [vmem:[%s26455_s2 + $0x8e8] sm:$0xff]  }
 0x9ea   : > { %12093 = vmatpush1.bf16.msra.mxu0 %v25273_v8  ;;  %12402 = vmatprep.subr.bf16.mxu1 %v26178_v12  ;;  %v21325_v8 = vcombine.high %v28857_v26, %v28857_v26 }
 0x9eb   : > { %12094 = vmatprep.subr.bf16.mxu0 %v26178_v12 }
 0x9ec   : > { %12395 = vmatmul.mubr.bf16.vlgmr.msra.gmra.mrb[32].mxu1 %v12184_v20  ;;  %v28874_v20 = vunpack.c.l.b16 %v21322_v5  ;;  %v25334_v5 = vld [vmem:[%s26455_s2 + $0x970] sm:$0xff]  }
 0x9ed   : > { %12403 = vmatpush1.bf16.msra.mxu1 %v25274_v58  ;;  %21261 = vmatprep.mubr.msk.bf16.mxu1 %vm9349_vm4, %v12187_v39  ;;  %v25305_v58 = vld [vmem:[%s26455_s2 + $0x930] sm:$0xff]   ;;  %v12180_v39 = vrot.slane %v28817_v23, 1  ;;  %v25310_v23 = vld [vmem:[%s26455_s2 + $0x9e0] sm:$0xff]  }
 0x9ee   : > { %12095 = vmatpush1.bf16.msra.mxu0 %v25275_v49  ;;  %12404 = vmatprep.subr.bf16.mxu1 %v26178_v12  ;;  %v28881_v49 = vunpack.c.l.b16 %v21325_v8 }
 0x9ef   : > { %12096 = vmatprep.subr.bf16.mxu0 %v26178_v12  ;;  %v12181_v37 = vsel %vm9166_vm2, %v28807_v63, %v12180_v39  ;;  %v25318_v63 = vld [vmem:[%s26455_s2 + $0x9a8] sm:$0xff]   ;;  %v25337_v39 = vld [vmem:[%s26455_s2 + $0x978] sm:$0xff]  }
 0x9f1   : > { %12405 = vmatpush1.bf16.msra.mxu1 %v25276_v44  ;;  %v12533_v44 = vrot.slane %v28874_v20, 1 }
 0x9f2   : > { %12097 = vmatpush1.bf16.msra.mxu0 %v25277_v18  ;;  %12406 = vmatprep.subr.bf16.mxu1 %v26178_v12  ;;  %v25307_v18 = vld [vmem:[%s26455_s2 + $0x8b8] sm:$0xff]  }
 0x9f3   : > { %12098 = vmatprep.subr.bf16.mxu0 %v26178_v12  ;;  %v12534_v17 = vsel %vm9166_vm2, %v12533_v44, %v12532_v14  ;;  %v28948_v14 = vld [vmem:[#allocation2 + $0x50] sm:$0x44] }
 0x9f4   : > { %v25339_v44 = vld [vmem:[%s26455_s2 + $0x980] sm:$0xff]  }
 0x9f5   : > { %12407 = vmatpush1.bf16.msra.mxu1 %v25278_v33  ;;  %v12864_v33 = vrot.slane %v28813_v10, 2  ;;  %v12186_v10 = vpack.c.b16 %v12181_v37, %v12181_v37  ;;  %v25343_v37 = vld [vmem:[%s26455_s2 + $0x990] sm:$0xff]  }
 0x9f6   : > { %12099 = vmatpush1.bf16.msra.mxu0 %v25279_v29  ;;  %12408 = vmatprep.subr.bf16.mxu1 %v26178_v12  ;;  %v25309_v29 = vld [vmem:[%s26455_s2 + $0x8f8] sm:$0xff]  }
 0x9f7   : > { %12100 = vmatprep.subr.bf16.mxu0 %v26178_v12 }
 0x9f9   : > { %12409 = vmatpush1.bf16.msra.mxu1 %v25280_v38  ;;  %v12542_v38 = vrot.slane %v28881_v49, 1 }
 0x9fa   : > { %12101 = vmatpush1.bf16.msra.mxu0 %v25281_v0  ;;  %12410 = vmatprep.subr.bf16.mxu1 %v26178_v12  ;;  %v25316_v0 = vld [vmem:[%s26455_s2 + $0x940] sm:$0xff]  }
 0x9fb   : > { %23289 = vmatprep.subr.bf16.mxu0 %v25287_v13  ;;  %v12865_v13 = vsel %vm9166_vm2, %v12864_v33, %v12863_v54  ;;  %v12543_v35 = vsel %vm9166_vm2, %v12542_v38, %v12541_v15  ;;  %v21324_v54 = vcombine.low %v28857_v26, %v28857_v26  ;;  %v25340_v33 = vld [vmem:[%s26455_s2 + $0xa28] sm:$0xff]   ;;  %v25342_v38 = vld [vmem:[%s26455_s2 + $0xa30] sm:$0xff]  }
 0x9fd   : > { %12111 = vmatmul.mubr.bf16.vlgmr.msra.gmra.mrb[36].mxu0 %v11862_v7  ;;  %12411 = vmatpush1.bf16.msra.mxu1 %v25286_v41  ;;  %v12544_v41 = vpack.c.b16 %v12534_v17, %v12534_v17  ;;  %v12873_v7 = vpack.c.b16 %v12865_v13, %v12865_v13  ;;  %v28967_v26 = vunpack.c.l.b16 %v21324_v54 }
 0x9fe   : > { %23290 = vmatpush3.bf16.msra.mxu0 %v25288_v11  ;;  %12412 = vmatprep.subr.bf16.mxu1 %v26178_v12  ;;  %v25319_v11 = vld [vmem:[%s26455_s2 + $0x948] sm:$0xff]  }
 0x9ff   : > { %v10380_v16 = vpop.f32.mrb[12].mxu1  ;;  %23291 = vmatprep.subr.bf16.mxu0 %v25290_v34  ;;  %12754 = vmatprep.mubr.bf16.mxu0 %v12545_v51  ;;  %v25320_v34 = vld [vmem:[%s26455_s2 + $0x9f0] sm:$0xff]   ;;  %v12547_v51 = vpack.c.b16 %v12543_v35, %v12543_v35  ;;  %v25345_v35 = vld [vmem:[%s26455_s2 + $0x998] sm:$0xff]  }
 0xa00   : > { %v10381_v45 = vadd.f32 %v28753_v50, %v10380_v16  ;;  %v10382_v25 = vpop.f32.mrb[13].mxu1  ;;  %v23173_v53 = vpop.f32.mrb[16].mxu0  ;;  %v25321_v16 = vld [vmem:[%s26455_s2 + $0x9b0] sm:$0xff]  }
 0xa01   : > { %v10383_v36 = vpop.f32.mrb[14].mxu1  ;;  %12413 = vmatpush1.bf16.msra.mxu1 %v25289_v2  ;;  %v23174_v57 = vpop.f32.mrb[17].mxu0  ;;  %v25322_v25 = vld [vmem:[%s26455_s2 + $0x950] sm:$0xff]  }
 0xa02   : > { %v28842_v40 = vadd.f32 %v10381_v45, %v28777_v48  ;;  %v10384_v52 = vpop.f32.mrb[15].mxu1  ;;  %23292 = vmatpush3.bf16.msra.mxu0 %v25291_v19  ;;  %12414 = vmatprep.subr.bf16.mxu1 %v26178_v12  ;;  %v28846_v50 = vadd.f32 %v23174_v57, %v23173_v53  ;;  %v23176_v22 = vpop.f32.mrb[18].mxu0  ;;  %v25301_v48 = vld [vmem:[%s26455_s2 + $0x8a8] sm:$0xff]   ;;  %v25323_v53 = vld [vmem:[%s26455_s2 + $0x9f8] sm:$0xff]  }
 0xa03   : > { %23293 = vmatprep.subr.bf16.mxu0 %v25293_v42  ;;  %v23177_v27 = vpop.f32.mrb[19].mxu0  ;;  %v25324_v36 = vld [vmem:[%s26455_s2 + $0x9b8] sm:$0xff]   ;;  %v25326_v52 = vld [vmem:[%s26455_s2 + $0xa00] sm:$0xff]  }
 0xa04   : > { %v25325_v57 = vld [vmem:[%s26455_s2 + $0x958] sm:$0xff]   ;;  %v25328_v22 = vld [vmem:[%s26455_s2 + $0x960] sm:$0xff]   ;;  %v25330_v27 = vld [vmem:[%s26455_s2 + $0x9c8] sm:$0xff]  }
 0xa05   : > { %12415 = vmatpush1.bf16.msra.mxu1 %v25292_v43 }
 0xa06   : > { %23294 = vmatpush3.bf16.msra.mxu0 %v25294_v24  ;;  %12416 = vmatprep.subr.bf16.mxu1 %v26178_v12  ;;  %v25327_v24 = vld [vmem:[%s26455_s2 + $0x9c0] sm:$0xff]  }
 0xa07   : > { %23295 = vmatprep.subr.bf16.mxu0 %v25296_v59  ;;  %v25329_v59 = vld [vmem:[%s26455_s2 + $0xa08] sm:$0xff]  }
 0xa09   : > { %12417 = vmatpush1.bf16.msra.mxu1 %v25295_v9  ;;  %v25331_v9 = vld [vmem:[%s26455_s2 + $0x968] sm:$0xff]  }
 0xa0a   : > { %23296 = vmatpush3.bf16.msra.mxu0 %v25297_v3  ;;  %12418 = vmatprep.subr.bf16.mxu1 %v26178_v12  ;;  %v25332_v3 = vld [vmem:[%s26455_s2 + $0xa10] sm:$0xff]  }
 0xa0b   : > { %23297 = vmatprep.subr.bf16.mxu0 %v25299_v55  ;;  %v25333_v55 = vld [vmem:[%s26455_s2 + $0x9d0] sm:$0xff]  }
 0xa0d   : > { %12419 = vmatpush1.bf16.msra.mxu1 %v25298_v4  ;;  %v12860_v4 = vrot.slane %v28872_v31, 3  ;;  %v12870_v31 = vrot.slane %v28881_v49, 2 }
 0xa0e   : > { %23298 = vmatpush3.bf16.msra.mxu0 %v25300_v6  ;;  %12420 = vmatprep.subr.bf16.mxu1 %v26178_v12  ;;  %v12861_v6 = vrot.slane %v28874_v20, 2 }
 0xa0f   : > { %23299 = vmatprep.subr.bf16.mxu0 %v25302_v47  ;;  %v12871_v32 = vsel %vm9166_vm2, %v12870_v31, %v12869_v56  ;;  %v25364_v56 = vld [vmem:[%s26455_s2 + $0xaa0] sm:$0xff]  }
 0xa11   : > { %12421 = vmatpush1.bf16.msra.mxu1 %v25301_v48  ;;  %v25335_v48 = vld [vmem:[%s26455_s2 + $0xa18] sm:$0xff]  }
 0xa12   : > { %23300 = vmatpush3.bf16.msra.mxu0 %v25303_v60  ;;  %12422 = vmatprep.subr.bf16.mxu1 %v26178_v12 }
 0xa13   : > { %23301 = vmatprep.subr.bf16.mxu0 %v25305_v58 }
 0xa15   : > { %12423 = vmatpush1.bf16.msra.mxu1 %v25304_v30  ;;  %v25336_v30 = vld [vmem:[%s26455_s2 + $0x9d8] sm:$0xff]  }
 0xa16   : > { %23302 = vmatpush3.bf16.msra.mxu0 %v25306_v28  ;;  %12424 = vmatprep.subr.bf16.mxu1 %v26178_v12  ;;  %v25338_v28 = vld [vmem:[%s26455_s2 + $0xa20] sm:$0xff]  }
 0xa17   : > { %23303 = vmatprep.subr.bf16.mxu0 %v25308_v61  ;;  %v12875_v61 = vpack.c.b16 %v12871_v32, %v12871_v32 }
 0xa19   : > { %12425 = vmatpush1.bf16.msra.mxu1 %v25307_v18  ;;  %v21320_v18 = vcombine.low %v28854_v46, %v28854_v46  ;;  %v25341_v46 = vld [vmem:[%s26455_s2 + $0x988] sm:$0xff]  }
 0xa1a   : > { %23304 = vmatpush3.bf16.msra.mxu0 %v25309_v29  ;;  %23311 = vmatprep.subr.bf16.mxu1 %v25310_v23  ;;  %v21501_v23 = vcombine.high %v28948_v14, %v28948_v14 }
 0xa1b   : > { %12762 = vmatprep.subr.bf16.mxu0 %v26178_v12  ;;  %v28965_v15 = vunpack.c.l.b16 %v21320_v18 }
 0xa1c   : > { %12435 = vmatmul.mubr.bf16.vlgmr.msra.gmra.mrb[36].mxu1 %v12186_v10 }
 0xa1d   : > { %23312 = vmatpush3.bf16.msra.mxu1 %v25315_v21  ;;  %12755 = vmatmul.mubr.bf16.vlgmr.msra.gmra.mrb[40].mxu0 %v12544_v41  ;;  %v28974_v21 = vunpack.c.l.b16 %v21501_v23  ;;  %v12538_v10 = vrot.slane %v28965_v15, 2 }
 0xa1e   : > { %12763 = vmatpush1.bf16.msra.mxu0 %v25316_v0  ;;  %23313 = vmatprep.subr.bf16.mxu1 %v25317_v1  ;;  %v12539_v0 = vrot.slane %v28967_v26, 1  ;;  %v25344_v1 = vld [vmem:[%s26455_s2 + $0xa38] sm:$0xff]  }
 0xa1f   : > { %v23195_v2 = vpop.f32.mrb[16].mxu1  ;;  %12764 = vmatprep.subr.bf16.mxu0 %v26178_v12  ;;  %13082 = vmatprep.mubr.bf16.mxu1 %v12873_v7  ;;  %v13224_v41 = vrot.slane %v28974_v21, 3  ;;  %v25351_v7 = vld [vmem:[%s26455_s2 + $0xac0] sm:$0xff]  }
 0xa20   : > { %v23196_v19 = vpop.f32.mrb[17].mxu1  ;;  %21354 = vmatprep.mubr.msk.bf16.mxu0 %vm9349_vm4, %v12547_v51 }
 0xa21   : > { %v28911_v42 = vadd.f32 %v23196_v19, %v23195_v2  ;;  %v23198_v45 = vpop.f32.mrb[18].mxu1  ;;  %23314 = vmatpush3.bf16.msra.mxu1 %v25318_v63  ;;  %v12540_v63 = vsel %vm9166_vm2, %v12539_v0, %v12538_v10  ;;  %v25352_v2 = vld [vmem:[%s26455_s2 + $0xa80] sm:$0xff]   ;;  %v25354_v19 = vld [vmem:[%s26455_s2 + $0xac8] sm:$0xff]  }
 0xa22   : > { %v23199_v43 = vpop.f32.mrb[19].mxu1  ;;  %12765 = vmatpush1.bf16.msra.mxu0 %v25319_v11  ;;  %23315 = vmatprep.subr.bf16.mxu1 %v25320_v34  ;;  %v25350_v11 = vld [vmem:[%s26455_s2 + $0xa40] sm:$0xff]   ;;  %v12546_v51 = vpack.c.b16 %v12540_v63, %v12540_v63  ;;  %v25353_v45 = vld [vmem:[%s26455_s2 + $0xa48] sm:$0xff]  }
 0xa23   : > { %12766 = vmatprep.subr.bf16.mxu0 %v26178_v12  ;;  %v25374_v10 = vld [vmem:[%s26455_s2 + $0xba0] sm:$0xff]   ;;  %v25381_v63 = vld [vmem:[%s26455_s2 + $0xba8] sm:$0xff]  }
 0xa25   : > { %23316 = vmatpush3.bf16.msra.mxu1 %v25321_v16 }
 0xa26   : > { %12767 = vmatpush1.bf16.msra.mxu0 %v25322_v25  ;;  %23317 = vmatprep.subr.bf16.mxu1 %v25323_v53  ;;  %v25355_v25 = vld [vmem:[%s26455_s2 + $0xa88] sm:$0xff]   ;;  %v25357_v53 = vld [vmem:[%s26455_s2 + $0xad0] sm:$0xff]  }
 0xa27   : > { %12768 = vmatprep.subr.bf16.mxu0 %v26178_v12 }
 0xa29   : > { %23318 = vmatpush3.bf16.msra.mxu1 %v25324_v36 }
 0xa2a   : > { %12769 = vmatpush1.bf16.msra.mxu0 %v25325_v57  ;;  %23319 = vmatprep.subr.bf16.mxu1 %v25326_v52  ;;  %v25356_v52 = vld [vmem:[%s26455_s2 + $0xa50] sm:$0xff]  }
 0xa2b   : > { %12770 = vmatprep.subr.bf16.mxu0 %v26178_v12 }
 0xa2d   : > { %23320 = vmatpush3.bf16.msra.mxu1 %v25327_v24 }
 0xa2e   : > { %12771 = vmatpush1.bf16.msra.mxu0 %v25328_v22  ;;  %23321 = vmatprep.subr.bf16.mxu1 %v25329_v59 }
 0xa2f   : > { %12772 = vmatprep.subr.bf16.mxu0 %v26178_v12 }
 0xa30   : > { %v10740_v62 = vpop.f32.mrb[20].mxu0 }
 0xa31   : > { %v10741_v47 = vadd.f32 %v28846_v50, %v10740_v62  ;;  %23322 = vmatpush3.bf16.msra.mxu1 %v25330_v27  ;;  %v10742_v60 = vpop.f32.mrb[21].mxu0  ;;  %v12862_v50 = vsel %vm9166_vm2, %v12861_v6, %v12860_v4  ;;  %v25359_v62 = vld [vmem:[%s26455_s2 + $0xa58] sm:$0xff]  }
 0xa32   : > { %12773 = vmatpush1.bf16.msra.mxu0 %v25331_v9  ;;  %23323 = vmatprep.subr.bf16.mxu1 %v25332_v3  ;;  %v10743_v8 = vpop.f32.mrb[22].mxu0  ;;  %v12872_v49 = vpack.c.b16 %v12862_v50, %v12862_v50  ;;  %v25358_v3 = vld [vmem:[%s26455_s2 + $0xa90] sm:$0xff]   ;;  %v29012_v60 = vld [vmem:[#allocation2 + $0x18] sm:$0x44] }
 0xa33   : > { %v28937_v58 = vadd.f32 %v10741_v47, %v28842_v40  ;;  %12774 = vmatprep.subr.bf16.mxu0 %v26178_v12  ;;  %v10744_v20 = vpop.f32.mrb[23].mxu0  ;;  %v28946_v40 = vld [vmem:[#allocation2 + $0x10] sm:$0x44]  ;;  %v29015_v8 = vld [vmem:[#allocation2 + $0x58] sm:$0x44] }
 0xa34   : > { %v21497_v29 = vcombine.high %v28946_v40, %v28946_v40  ;;  %v25363_v47 = vld [vmem:[%s26455_s2 + $0xae0] sm:$0xff]   ;;  %v21496_v31 = vcombine.low %v28946_v40, %v28946_v40  ;;  %v25365_v20 = vld [vmem:[%s26455_s2 + $0xa68] sm:$0xff]   ;;  %v21503_v32 = vcombine.high %v29015_v8, %v29015_v8  ;;  %v25368_v40 = vld [vmem:[%s26455_s2 + $0xa70] sm:$0xff]  }
 0xa35   : > { %23324 = vmatpush3.bf16.msra.mxu1 %v25333_v55  ;;  %v25360_v55 = vld [vmem:[%s26455_s2 + $0xad8] sm:$0xff]   ;;  %v25367_v50 = vld [vmem:[%s26455_s2 + $0xaa8] sm:$0xff]  }
 0xa36   : > { %12775 = vmatpush1.bf16.msra.mxu0 %v25334_v5  ;;  %23325 = vmatprep.subr.bf16.mxu1 %v25335_v48  ;;  %v28972_v17 = vunpack.c.l.b16 %v21497_v29  ;;  %v25361_v5 = vld [vmem:[%s26455_s2 + $0xa98] sm:$0xff]   ;;  %v25362_v48 = vld [vmem:[%s26455_s2 + $0xa60] sm:$0xff]   ;;  %v29040_v54 = vunpack.c.l.b16 %v21503_v32 }
 0xa37   : > { %12776 = vmatprep.subr.bf16.mxu0 %v26178_v12  ;;  %v25372_v29 = vld [vmem:[%s26455_s2 + $0xaf8] sm:$0xff]  }
 0xa38   : > { %v13223_v13 = vrot.slane %v28972_v17, 4 }
 0xa39   : > { %23326 = vmatpush3.bf16.msra.mxu1 %v25336_v30  ;;  %v25366_v30 = vld [vmem:[%s26455_s2 + $0xae8] sm:$0xff]  }
 0xa3a   : > { %12777 = vmatpush1.bf16.msra.mxu0 %v25337_v39  ;;  %13090 = vmatprep.subr.bf16.mxu1 %v26178_v12  ;;  %v13225_v34 = vsel %vm9166_vm2, %v13224_v41, %v13223_v13  ;;  %v21499_v39 = vcombine.high %v29012_v60, %v29012_v60 }
 0xa3b   : > { %12778 = vmatprep.subr.bf16.mxu0 %v26178_v12  ;;  %v13233_v16 = vpack.c.b16 %v13225_v34, %v13225_v34 }
 0xa3c   : > { %13083 = vmatmul.mubr.bf16.vlgmr.msra.gmra.mrb[40].mxu1 %v12872_v49  ;;  %v29030_v49 = vunpack.c.l.b16 %v21496_v31  ;;  %v29038_v18 = vunpack.c.l.b16 %v21499_v39 }
 0xa3d   : > { %13091 = vmatpush1.bf16.msra.mxu1 %v25338_v28  ;;  %21439 = vmatprep.mubr.msk.bf16.mxu1 %vm9349_vm4, %v12875_v61  ;;  %v25369_v61 = vld [vmem:[%s26455_s2 + $0xaf0] sm:$0xff]  }
 0xa3e   : > { %12779 = vmatpush1.bf16.msra.mxu0 %v25339_v44  ;;  %13092 = vmatprep.subr.bf16.mxu1 %v26178_v12  ;;  %v12867_v44 = vrot.slane %v28967_v26, 2  ;;  %v13220_v23 = vrot.slane %v29030_v49, 4  ;;  %v13551_v26 = vrot.slane %v28972_v17, 5  ;;  %v13229_v0 = vrot.slane %v29038_v18, 4  ;;  %v25379_v17 = vld [vmem:[%s26455_s2 + $0xb60] sm:$0xff]  }
 0xa3f   : > { %12780 = vmatprep.subr.bf16.mxu0 %v26178_v12  ;;  %v13557_v32 = vrot.slane %v29038_v18, 5 }
 0xa41   : > { %13093 = vmatpush1.bf16.msra.mxu1 %v25340_v33  ;;  %v25370_v33 = vld [vmem:[%s26455_s2 + $0xab0] sm:$0xff]  }
 0xa42   : > { %12781 = vmatpush1.bf16.msra.mxu0 %v25341_v46  ;;  %13094 = vmatprep.subr.bf16.mxu1 %v26178_v12 }
 0xa43   : > { %12782 = vmatprep.subr.bf16.mxu0 %v26178_v12 }
 0xa45   : > { %13095 = vmatpush1.bf16.msra.mxu1 %v25342_v38  ;;  %v13552_v38 = vrot.slane %v28974_v21, 4 }
 0xa46   : > { %12783 = vmatpush1.bf16.msra.mxu0 %v25343_v37  ;;  %13096 = vmatprep.subr.bf16.mxu1 %v26178_v12  ;;  %v25373_v37 = vld [vmem:[%s26455_s2 + $0xab8] sm:$0xff]  }
 0xa47   : > { %12784 = vmatprep.subr.bf16.mxu0 %v26178_v12 }
 0xa49   : > { %13097 = vmatpush1.bf16.msra.mxu1 %v25344_v1  ;;  %v13230_v1 = vrot.slane %v29040_v54, 3 }
 0xa4a   : > { %12785 = vmatpush1.bf16.msra.mxu0 %v25345_v35  ;;  %13098 = vmatprep.subr.bf16.mxu1 %v26178_v12  ;;  %v25380_v35 = vld [vmem:[%s26455_s2 + $0xb00] sm:$0xff]  }
 0xa4b   : > { %23333 = vmatprep.subr.bf16.mxu0 %v25351_v7  ;;  %v13553_v7 = vsel %vm9166_vm2, %v13552_v38, %v13551_v26  ;;  %v13231_v34 = vsel %vm9166_vm2, %v13230_v1, %v13229_v0  ;;  %v21502_v26 = vcombine.low %v29015_v8, %v29015_v8  ;;  %v25404_v38 = vld [vmem:[%s26455_s2 + $0xbe8] sm:$0xff]   ;;  %v25406_v1 = vld [vmem:[%s26455_s2 + $0xbf0] sm:$0xff]  }
 0xa4d   : > { %12795 = vmatmul.mubr.bf16.vlgmr.msra.gmra.mrb[44].mxu0 %v12546_v51  ;;  %13099 = vmatpush1.bf16.msra.mxu1 %v25350_v11  ;;  %v25382_v51 = vld [vmem:[%s26455_s2 + $0xb68] sm:$0xff]   ;;  %v29125_v8 = vunpack.c.l.b16 %v21502_v26 }
 0xa4e   : > { %23334 = vmatpush3.bf16.msra.mxu0 %v25352_v2  ;;  %13100 = vmatprep.subr.bf16.mxu1 %v26178_v12  ;;  %v13561_v2 = vpack.c.b16 %v13553_v7, %v13553_v7 }
 0xa4f   : > { %v11068_v43 = vpop.f32.mrb[20].mxu1  ;;  %23335 = vmatprep.subr.bf16.mxu0 %v25354_v19  ;;  %13442 = vmatprep.mubr.bf16.mxu0 %v13233_v16  ;;  %v25383_v19 = vld [vmem:[%s26455_s2 + $0xb08] sm:$0xff]   ;;  %v25384_v16 = vld [vmem:[%s26455_s2 + $0xbb0] sm:$0xff]  }
 0xa50   : > { %v11069_v36 = vadd.f32 %v28911_v42, %v11068_v43  ;;  %v11070_v57 = vpop.f32.mrb[21].mxu1  ;;  %v23217_v24 = vpop.f32.mrb[24].mxu0 }
 0xa51   : > { %v11071_v22 = vpop.f32.mrb[22].mxu1  ;;  %13101 = vmatpush1.bf16.msra.mxu1 %v25353_v45  ;;  %v23218_v59 = vpop.f32.mrb[25].mxu0  ;;  %v13235_v45 = vpack.c.b16 %v13231_v34, %v13231_v34  ;;  %v25409_v34 = vld [vmem:[%s26455_s2 + $0xb58] sm:$0xff]  }
 0xa52   : > { %v29000_v27 = vadd.f32 %v11069_v36, %v28937_v58  ;;  %v11072_v9 = vpop.f32.mrb[23].mxu1  ;;  %23336 = vmatpush3.bf16.msra.mxu0 %v25355_v25  ;;  %13102 = vmatprep.subr.bf16.mxu1 %v26178_v12  ;;  %v29004_v42 = vadd.f32 %v23218_v59, %v23217_v24  ;;  %v23220_v4 = vpop.f32.mrb[26].mxu0  ;;  %v21500_v58 = vcombine.low %v28948_v14, %v28948_v14  ;;  %v12866_v14 = vrot.slane %v28965_v15, 3  ;;  %v25371_v15 = vld [vmem:[%s26455_s2 + $0xa78] sm:$0xff]  }
 0xa53   : > { %23337 = vmatprep.subr.bf16.mxu0 %v25357_v53  ;;  %v23221_v6 = vpop.f32.mrb[27].mxu0  ;;  %v25385_v53 = vld [vmem:[%s26455_s2 + $0xb70] sm:$0xff]   ;;  %v25387_v22 = vld [vmem:[%s26455_s2 + $0xbb8] sm:$0xff]   ;;  %v25391_v4 = vld [vmem:[%s26455_s2 + $0xb80] sm:$0xff]  }
 0xa54   : > { %v29032_v28 = vunpack.c.l.b16 %v21500_v58  ;;  %v12868_v13 = vsel %vm9166_vm2, %v12867_v44, %v12866_v14  ;;  %v25388_v59 = vld [vmem:[%s26455_s2 + $0xb78] sm:$0xff]   ;;  %v25393_v6 = vld [vmem:[%s26455_s2 + $0xbc8] sm:$0xff]   ;;  %v25398_v58 = vld [vmem:[%s26455_s2 + $0xb30] sm:$0xff]  }
 0xa55   : > { %13103 = vmatpush1.bf16.msra.mxu1 %v25356_v52  ;;  %v12874_v21 = vpack.c.b16 %v12868_v13, %v12868_v13  ;;  %v25386_v52 = vld [vmem:[%s26455_s2 + $0xb10] sm:$0xff]   ;;  %v25389_v9 = vld [vmem:[%s26455_s2 + $0xb18] sm:$0xff]  }
 0xa56   : > { %23338 = vmatpush3.bf16.msra.mxu0 %v25358_v3  ;;  %13104 = vmatprep.subr.bf16.mxu1 %v26178_v12  ;;  %v13221_v46 = vrot.slane %v29032_v28, 3  ;;  %v25390_v3 = vld [vmem:[%s26455_s2 + $0xbc0] sm:$0xff]   ;;  %v25401_v44 = vld [vmem:[%s26455_s2 + $0xb38] sm:$0xff]   ;;  %v25407_v13 = vld [vmem:[%s26455_s2 + $0xb50] sm:$0xff]  }
 0xa57   : > { %23339 = vmatprep.subr.bf16.mxu0 %v25360_v55  ;;  %v25392_v55 = vld [vmem:[%s26455_s2 + $0xb20] sm:$0xff]  }
 0xa58   : > { %v13222_v41 = vsel %vm9166_vm2, %v13221_v46, %v13220_v23  ;;  %v29106_v23 = vld [vmem:[#allocation2 + $0x50] sm:$0x88] }
 0xa59   : > { %13105 = vmatpush1.bf16.msra.mxu1 %v25359_v62  ;;  %v13232_v11 = vpack.c.b16 %v13222_v41, %v13222_v41  ;;  %v25394_v62 = vld [vmem:[%s26455_s2 + $0xb88] sm:$0xff]   ;;  %v25403_v46 = vld [vmem:[%s26455_s2 + $0xb40] sm:$0xff]  }
 0xa5a   : > { %23340 = vmatpush3.bf16.msra.mxu0 %v25361_v5  ;;  %13106 = vmatprep.subr.bf16.mxu1 %v26178_v12  ;;  %v25395_v5 = vld [vmem:[%s26455_s2 + $0xb28] sm:$0xff]  }
 0xa5b   : > { %23341 = vmatprep.subr.bf16.mxu0 %v25363_v47  ;;  %v25397_v47 = vld [vmem:[%s26455_s2 + $0xb90] sm:$0xff]  }
 0xa5d   : > { %13107 = vmatpush1.bf16.msra.mxu1 %v25362_v48  ;;  %v25396_v48 = vld [vmem:[%s26455_s2 + $0xbd0] sm:$0xff]  }
 0xa5e   : > { %23342 = vmatpush3.bf16.msra.mxu0 %v25364_v56  ;;  %13108 = vmatprep.subr.bf16.mxu1 %v26178_v12  ;;  %v13548_v56 = vrot.slane %v29030_v49, 5 }
 0xa5f   : > { %23343 = vmatprep.subr.bf16.mxu0 %v25366_v30  ;;  %v13549_v30 = vrot.slane %v29032_v28, 4 }
 0xa61   : > { %13109 = vmatpush1.bf16.msra.mxu1 %v25365_v20  ;;  %v25399_v20 = vld [vmem:[%s26455_s2 + $0xbd8] sm:$0xff]   ;;  %v13550_v28 = vsel %vm9166_vm2, %v13549_v30, %v13548_v56  ;;  %v25427_v30 = vld [vmem:[%s26455_s2 + $0xca0] sm:$0xff]  }
 0xa62   : > { %23344 = vmatpush3.bf16.msra.mxu0 %v25367_v50  ;;  %13110 = vmatprep.subr.bf16.mxu1 %v26178_v12  ;;  %v25423_v56 = vld [vmem:[%s26455_s2 + $0xc18] sm:$0xff]  }
 0xa63   : > { %23345 = vmatprep.subr.bf16.mxu0 %v25369_v61  ;;  %v13558_v61 = vrot.slane %v29040_v54, 4  ;;  %v25402_v54 = vld [vmem:[%s26455_s2 + $0xbe0] sm:$0xff]  }
 0xa65   : > { %13111 = vmatpush1.bf16.msra.mxu1 %v25368_v40  ;;  %v13559_v18 = vsel %vm9166_vm2, %v13558_v61, %v13557_v32  ;;  %v25428_v32 = vld [vmem:[%s26455_s2 + $0xc60] sm:$0xff]  }
 0xa66   : > { %23346 = vmatpush3.bf16.msra.mxu0 %v25370_v33  ;;  %13112 = vmatprep.subr.bf16.mxu1 %v26178_v12  ;;  %v13560_v33 = vpack.c.b16 %v13550_v28, %v13550_v28  ;;  %v25431_v28 = vld [vmem:[%s26455_s2 + $0xc68] sm:$0xff]  }
 0xa67   : > { %23347 = vmatprep.subr.bf16.mxu0 %v25372_v29  ;;  %v13563_v29 = vpack.c.b16 %v13559_v18, %v13559_v18 }
 0xa69   : > { %13113 = vmatpush1.bf16.msra.mxu1 %v25371_v15  ;;  %v21498_v15 = vcombine.low %v29012_v60, %v29012_v60  ;;  %v25405_v60 = vld [vmem:[%s26455_s2 + $0xb48] sm:$0xff]  }
 0xa6a   : > { %23348 = vmatpush3.bf16.msra.mxu0 %v25373_v37  ;;  %23355 = vmatprep.subr.bf16.mxu1 %v25374_v10  ;;  %v21679_v10 = vcombine.high %v29106_v23, %v29106_v23 }
 0xa6b   : > { %13450 = vmatprep.subr.bf16.mxu0 %v26178_v12  ;;  %v29123_v0 = vunpack.c.l.b16 %v21498_v15  ;;  %v13555_v15 = vrot.slane %v29125_v8, 4 }
 0xa6c   : > { %13123 = vmatmul.mubr.bf16.vlgmr.msra.gmra.mrb[44].mxu1 %v12874_v21 }
 0xa6d   : > { %23356 = vmatpush3.bf16.msra.mxu1 %v25379_v17  ;;  %13443 = vmatmul.mubr.bf16.vlgmr.msra.gmra.mrb[48].mxu0 %v13232_v11  ;;  %v29132_v17 = vunpack.c.l.b16 %v21679_v10  ;;  %v13226_v21 = vrot.slane %v29123_v0, 4 }
 0xa6e   : > { %13451 = vmatpush1.bf16.msra.mxu0 %v25380_v35  ;;  %23357 = vmatprep.subr.bf16.mxu1 %v25381_v63  ;;  %v13227_v35 = vrot.slane %v29125_v8, 3  ;;  %v25408_v63 = vld [vmem:[%s26455_s2 + $0xbf8] sm:$0xff]   ;;  %v25438_v8 = vld [vmem:[%s26455_s2 + $0xd60] sm:$0xff]  }
 0xa6f   : > { %v23239_v25 = vpop.f32.mrb[24].mxu1  ;;  %13452 = vmatprep.subr.bf16.mxu0 %v26178_v12  ;;  %13770 = vmatprep.mubr.bf16.mxu1 %v13561_v2  ;;  %v13912_v11 = vrot.slane %v29132_v17, 5  ;;  %v25415_v2 = vld [vmem:[%s26455_s2 + $0xc80] sm:$0xff]  }
 0xa70   : > { %v23240_v43 = vpop.f32.mrb[25].mxu1  ;;  %21532 = vmatprep.mubr.msk.bf16.mxu0 %vm9349_vm4, %v13235_v45 }
 0xa71   : > { %v29069_v36 = vadd.f32 %v23240_v43, %v23239_v25  ;;  %v23242_v57 = vpop.f32.mrb[26].mxu1  ;;  %23358 = vmatpush3.bf16.msra.mxu1 %v25382_v51  ;;  %v13228_v51 = vsel %vm9166_vm2, %v13227_v35, %v13226_v21  ;;  %v25416_v25 = vld [vmem:[%s26455_s2 + $0xc40] sm:$0xff]   ;;  %v25418_v43 = vld [vmem:[%s26455_s2 + $0xc88] sm:$0xff]   ;;  %v14240_v21 = vrot.slane %v29132_v17, 6 }
 0xa72   : > { %v23243_v24 = vpop.f32.mrb[27].mxu1  ;;  %13453 = vmatpush1.bf16.msra.mxu0 %v25383_v19  ;;  %23359 = vmatprep.subr.bf16.mxu1 %v25384_v16  ;;  %v25414_v19 = vld [vmem:[%s26455_s2 + $0xc00] sm:$0xff]   ;;  %v13234_v45 = vpack.c.b16 %v13228_v51, %v13228_v51  ;;  %v25417_v57 = vld [vmem:[%s26455_s2 + $0xc08] sm:$0xff]  }
 0xa73   : > { %13454 = vmatprep.subr.bf16.mxu0 %v26178_v12  ;;  %v25444_v51 = vld [vmem:[%s26455_s2 + $0xcc0] sm:$0xff]   ;;  %v25445_v17 = vld [vmem:[%s26455_s2 + $0xd68] sm:$0xff]  }
 0xa75   : > { %23360 = vmatpush3.bf16.msra.mxu1 %v25385_v53 }
 0xa76   : > { %13455 = vmatpush1.bf16.msra.mxu0 %v25386_v52  ;;  %23361 = vmatprep.subr.bf16.mxu1 %v25387_v22  ;;  %v25419_v52 = vld [vmem:[%s26455_s2 + $0xc48] sm:$0xff]   ;;  %v25421_v22 = vld [vmem:[%s26455_s2 + $0xc90] sm:$0xff]  }
 0xa77   : > { %13456 = vmatprep.subr.bf16.mxu0 %v26178_v12 }
 0xa79   : > { %23362 = vmatpush3.bf16.msra.mxu1 %v25388_v59 }
 0xa7a   : > { %13457 = vmatpush1.bf16.msra.mxu0 %v25389_v9  ;;  %23363 = vmatprep.subr.bf16.mxu1 %v25390_v3  ;;  %v25420_v3 = vld [vmem:[%s26455_s2 + $0xc10] sm:$0xff]  }
 0xa7b   : > { %13458 = vmatprep.subr.bf16.mxu0 %v26178_v12 }
 0xa7d   : > { %23364 = vmatpush3.bf16.msra.mxu1 %v25391_v4 }
 0xa7e   : > { %13459 = vmatpush1.bf16.msra.mxu0 %v25392_v55  ;;  %23365 = vmatprep.subr.bf16.mxu1 %v25393_v6 }
 0xa7f   : > { %13460 = vmatprep.subr.bf16.mxu0 %v26178_v12 }
 0xa80   : > { %v11428_v31 = vpop.f32.mrb[28].mxu0 }
 0xa81   : > { %v11429_v50 = vadd.f32 %v29004_v42, %v11428_v31  ;;  %23366 = vmatpush3.bf16.msra.mxu1 %v25394_v62  ;;  %v11430_v39 = vpop.f32.mrb[29].mxu0  ;;  %v25400_v42 = vld [vmem:[%s26455_s2 + $0xb98] sm:$0xff]  }
 0xa82   : > { %13461 = vmatpush1.bf16.msra.mxu0 %v25395_v5  ;;  %23367 = vmatprep.subr.bf16.mxu1 %v25396_v48  ;;  %v11431_v40 = vpop.f32.mrb[30].mxu0  ;;  %v25422_v48 = vld [vmem:[%s26455_s2 + $0xc50] sm:$0xff]   ;;  %v25424_v31 = vld [vmem:[%s26455_s2 + $0xc98] sm:$0xff]   ;;  %v29170_v39 = vld [vmem:[#allocation2 + $0x18] sm:$0x88] }
 0xa83   : > { %v29095_v49 = vadd.f32 %v11429_v50, %v29000_v27  ;;  %13462 = vmatprep.subr.bf16.mxu0 %v26178_v12  ;;  %v11432_v14 = vpop.f32.mrb[31].mxu0  ;;  %v29104_v27 = vld [vmem:[#allocation2 + $0x10] sm:$0x88]  ;;  %v29173_v40 = vld [vmem:[#allocation2 + $0x58] sm:$0x88] }
 0xa84   : > { %v21675_v37 = vcombine.high %v29104_v27, %v29104_v27  ;;  %v25426_v50 = vld [vmem:[%s26455_s2 + $0xc20] sm:$0xff]   ;;  %v21674_v61 = vcombine.low %v29104_v27, %v29104_v27  ;;  %v25429_v14 = vld [vmem:[%s26455_s2 + $0xc28] sm:$0xff]   ;;  %v21681_v18 = vcombine.high %v29173_v40, %v29173_v40  ;;  %v25432_v27 = vld [vmem:[%s26455_s2 + $0xc30] sm:$0xff]  }
 0xa85   : > { %23368 = vmatpush3.bf16.msra.mxu1 %v25397_v47 }
 0xa86   : > { %13463 = vmatpush1.bf16.msra.mxu0 %v25398_v58  ;;  %23369 = vmatprep.subr.bf16.mxu1 %v25399_v20  ;;  %v29130_v41 = vunpack.c.l.b16 %v21675_v37  ;;  %v25425_v20 = vld [vmem:[%s26455_s2 + $0xc58] sm:$0xff]  }
 0xa87   : > { %13464 = vmatprep.subr.bf16.mxu0 %v26178_v12 }
 0xa88   : > { %v13911_v7 = vrot.slane %v29130_v41, 6 }
 0xa89   : > { %23370 = vmatpush3.bf16.msra.mxu1 %v25400_v42  ;;  %v25430_v42 = vld [vmem:[%s26455_s2 + $0xca8] sm:$0xff]  }
 0xa8a   : > { %13465 = vmatpush1.bf16.msra.mxu0 %v25401_v44  ;;  %13778 = vmatprep.subr.bf16.mxu1 %v26178_v12  ;;  %v13913_v16 = vsel %vm9166_vm2, %v13912_v11, %v13911_v7  ;;  %v21677_v44 = vcombine.high %v29170_v39, %v29170_v39 }
 0xa8b   : > { %13466 = vmatprep.subr.bf16.mxu0 %v26178_v12  ;;  %v13921_v53 = vpack.c.b16 %v13913_v16, %v13913_v16 }
 0xa8c   : > { %13771 = vmatmul.mubr.bf16.vlgmr.msra.gmra.mrb[48].mxu1 %v13560_v33  ;;  %v29197_v26 = vunpack.c.l.b16 %v21677_v44 }
 0xa8d   : > { %13779 = vmatpush1.bf16.msra.mxu1 %v25402_v54  ;;  %21617 = vmatprep.mubr.msk.bf16.mxu1 %vm9349_vm4, %v13563_v29  ;;  %v29188_v54 = vunpack.c.l.b16 %v21674_v61  ;;  %v25433_v29 = vld [vmem:[%s26455_s2 + $0xcb0] sm:$0xff]  }
 0xa8e   : > { %13467 = vmatpush1.bf16.msra.mxu0 %v25403_v46  ;;  %13780 = vmatprep.subr.bf16.mxu1 %v26178_v12  ;;  %v13554_v46 = vrot.slane %v29123_v0, 5  ;;  %v25437_v0 = vld [vmem:[%s26455_s2 + $0xc78] sm:$0xff]   ;;  %v13917_v35 = vrot.slane %v29197_v26, 6 }
 0xa8f   : > { %13468 = vmatprep.subr.bf16.mxu0 %v26178_v12  ;;  %v13908_v37 = vrot.slane %v29188_v54, 6 }
 0xa90   : > { %v13556_v7 = vsel %vm9166_vm2, %v13555_v15, %v13554_v46  ;;  %v25465_v46 = vld [vmem:[%s26455_s2 + $0xcf8] sm:$0xff]  }
 0xa91   : > { %13781 = vmatpush1.bf16.msra.mxu1 %v25404_v38  ;;  %v29199_v38 = vunpack.c.l.b16 %v21681_v18  ;;  %v14245_v18 = vrot.slane %v29197_v26, 7 }
 0xa92   : > { %13469 = vmatpush1.bf16.msra.mxu0 %v25405_v60  ;;  %13782 = vmatprep.subr.bf16.mxu1 %v26178_v12  ;;  %v25435_v60 = vld [vmem:[%s26455_s2 + $0xc38] sm:$0xff]  }
 0xa93   : > { %13470 = vmatprep.subr.bf16.mxu0 %v26178_v12 }
 0xa95   : > { %13783 = vmatpush1.bf16.msra.mxu1 %v25406_v1  ;;  %v25436_v1 = vld [vmem:[%s26455_s2 + $0xcb8] sm:$0xff]  }
 0xa96   : > { %13471 = vmatpush1.bf16.msra.mxu0 %v25407_v13  ;;  %13784 = vmatprep.subr.bf16.mxu1 %v26178_v12  ;;  %v14239_v13 = vrot.slane %v29130_v41, 7  ;;  %v13562_v41 = vpack.c.b16 %v13556_v7, %v13556_v7 }
 0xa97   : > { %13472 = vmatprep.subr.bf16.mxu0 %v26178_v12 }
 0xa99   : > { %13785 = vmatpush1.bf16.msra.mxu1 %v25408_v63  ;;  %v13918_v63 = vrot.slane %v29199_v38, 5 }
 0xa9a   : > { %13473 = vmatpush1.bf16.msra.mxu0 %v25409_v34  ;;  %13786 = vmatprep.subr.bf16.mxu1 %v26178_v12  ;;  %v25443_v34 = vld [vmem:[%s26455_s2 + $0xd20] sm:$0xff]  }
 0xa9b   : > { %23377 = vmatprep.subr.bf16.mxu0 %v25415_v2  ;;  %v14241_v2 = vsel %vm9166_vm2, %v14240_v21, %v14239_v13  ;;  %v13919_v16 = vsel %vm9166_vm2, %v13918_v63, %v13917_v35  ;;  %v25470_v35 = vld [vmem:[%s26455_s2 + $0xdb0] sm:$0xff]  }
 0xa9c   : > { %v25471_v63 = vld [vmem:[%s26455_s2 + $0xd10] sm:$0xff]  }
 0xa9d   : > { %13483 = vmatmul.mubr.bf16.vlgmr.msra.gmra.mrb[52].mxu0 %v13234_v45  ;;  %13787 = vmatpush1.bf16.msra.mxu1 %v25414_v19  ;;  %v25446_v45 = vld [vmem:[%s26455_s2 + $0xd28] sm:$0xff]  }
 0xa9e   : > { %23378 = vmatpush3.bf16.msra.mxu0 %v25416_v25  ;;  %13788 = vmatprep.subr.bf16.mxu1 %v26178_v12  ;;  %v14249_v25 = vpack.c.b16 %v14241_v2, %v14241_v2 }
 0xa9f   : > { %v11756_v24 = vpop.f32.mrb[28].mxu1  ;;  %23379 = vmatprep.subr.bf16.mxu0 %v25418_v43  ;;  %14130 = vmatprep.mubr.bf16.mxu0 %v13921_v53  ;;  %v25447_v43 = vld [vmem:[%s26455_s2 + $0xcc8] sm:$0xff]   ;;  %v25448_v53 = vld [vmem:[%s26455_s2 + $0xd70] sm:$0xff]  }
 0xaa0   : > { %v11757_v59 = vadd.f32 %v29069_v36, %v11756_v24  ;;  %v11758_v9 = vpop.f32.mrb[29].mxu1  ;;  %v23261_v4 = vpop.f32.mrb[32].mxu0 }
 0xaa1   : > { %v11759_v55 = vpop.f32.mrb[30].mxu1  ;;  %13789 = vmatpush1.bf16.msra.mxu1 %v25417_v57  ;;  %v23262_v6 = vpop.f32.mrb[33].mxu0  ;;  %v13923_v57 = vpack.c.b16 %v13919_v16, %v13919_v16 }
 0xaa2   : > { %v29158_v62 = vadd.f32 %v11757_v59, %v29095_v49  ;;  %v11760_v5 = vpop.f32.mrb[31].mxu1  ;;  %23380 = vmatpush3.bf16.msra.mxu0 %v25419_v52  ;;  %13790 = vmatprep.subr.bf16.mxu1 %v26178_v12  ;;  %v29162_v36 = vadd.f32 %v23262_v6, %v23261_v4  ;;  %v23264_v47 = vpop.f32.mrb[34].mxu0  ;;  %v21678_v49 = vcombine.low %v29106_v23, %v29106_v23  ;;  %v25434_v23 = vld [vmem:[%s26455_s2 + $0xc70] sm:$0xff]   ;;  %v25451_v55 = vld [vmem:[%s26455_s2 + $0xd78] sm:$0xff]  }
 0xaa3   : > { %23381 = vmatprep.subr.bf16.mxu0 %v25421_v22  ;;  %v23265_v58 = vpop.f32.mrb[35].mxu0  ;;  %v25449_v22 = vld [vmem:[%s26455_s2 + $0xd30] sm:$0xff]   ;;  %v25452_v6 = vld [vmem:[%s26455_s2 + $0xd38] sm:$0xff]   ;;  %v25455_v47 = vld [vmem:[%s26455_s2 + $0xd40] sm:$0xff]  }
 0xaa4   : > { %v29190_v33 = vunpack.c.l.b16 %v21678_v49  ;;  %v25453_v5 = vld [vmem:[%s26455_s2 + $0xcd8] sm:$0xff]   ;;  %v25458_v58 = vld [vmem:[%s26455_s2 + $0xd48] sm:$0xff]   ;;  %v25462_v49 = vld [vmem:[%s26455_s2 + $0xcf0] sm:$0xff]  }
 0xaa5   : > { %13791 = vmatpush1.bf16.msra.mxu1 %v25420_v3  ;;  %v25450_v3 = vld [vmem:[%s26455_s2 + $0xcd0] sm:$0xff]  }
 0xaa6   : > { %23382 = vmatpush3.bf16.msra.mxu0 %v25422_v48  ;;  %13792 = vmatprep.subr.bf16.mxu1 %v26178_v12  ;;  %v13909_v10 = vrot.slane %v29190_v33, 5  ;;  %v25454_v48 = vld [vmem:[%s26455_s2 + $0xd80] sm:$0xff]  }
 0xaa7   : > { %23383 = vmatprep.subr.bf16.mxu0 %v25424_v31  ;;  %v25457_v31 = vld [vmem:[%s26455_s2 + $0xd88] sm:$0xff]  }
 0xaa8   : > { %v13910_v11 = vsel %vm9166_vm2, %v13909_v10, %v13908_v37  ;;  %v29262_v37 = vld [vmem:[#allocation2 + $0x60] sm:$0x11]  ;;  %v25467_v10 = vld [vmem:[%s26455_s2 + $0xd00] sm:$0xff]  }
 0xaa9   : > { %13793 = vmatpush1.bf16.msra.mxu1 %v25423_v56  ;;  %v13920_v19 = vpack.c.b16 %v13910_v11, %v13910_v11  ;;  %v25456_v56 = vld [vmem:[%s26455_s2 + $0xce0] sm:$0xff]   ;;  %v21857_v13 = vcombine.high %v29262_v37, %v29262_v37 }
 0xaaa   : > { %23384 = vmatpush3.bf16.msra.mxu0 %v25425_v20  ;;  %13794 = vmatprep.subr.bf16.mxu1 %v26178_v12  ;;  %v25459_v20 = vld [vmem:[%s26455_s2 + $0xce8] sm:$0xff]  }
 0xaab   : > { %23385 = vmatprep.subr.bf16.mxu0 %v25427_v30  ;;  %v25460_v30 = vld [vmem:[%s26455_s2 + $0xd90] sm:$0xff]   ;;  %v29288_v11 = vunpack.c.l.b16 %v21857_v13  ;;  %v25500_v13 = vld [vmem:[%s26455_s2 + $0xe78] sm:$0xff]  }
 0xaad   : > { %13795 = vmatpush1.bf16.msra.mxu1 %v25426_v50  ;;  %v25461_v50 = vld [vmem:[%s26455_s2 + $0xd50] sm:$0xff]   ;;  %v14598_v2 = vrot.slane %v29288_v11, 7 }
 0xaae   : > { %23386 = vmatpush3.bf16.msra.mxu0 %v25428_v32  ;;  %13796 = vmatprep.subr.bf16.mxu1 %v26178_v12  ;;  %v14236_v32 = vrot.slane %v29188_v54, 7 }
 0xaaf   : > { %23387 = vmatprep.subr.bf16.mxu0 %v25430_v42  ;;  %v14237_v42 = vrot.slane %v29190_v33, 6  ;;  %v25464_v33 = vld [vmem:[%s26455_s2 + $0xd58] sm:$0xff]  }
 0xab1   : > { %13797 = vmatpush1.bf16.msra.mxu1 %v25429_v14  ;;  %v25463_v14 = vld [vmem:[%s26455_s2 + $0xd98] sm:$0xff]  }
 0xab2   : > { %23388 = vmatpush3.bf16.msra.mxu0 %v25431_v28  ;;  %13798 = vmatprep.subr.bf16.mxu1 %v26178_v12 }
 0xab3   : > { %23389 = vmatprep.subr.bf16.mxu0 %v25433_v29  ;;  %v14246_v29 = vrot.slane %v29199_v38, 6  ;;  %v25466_v38 = vld [vmem:[%s26455_s2 + $0xda0] sm:$0xff]  }
 0xab5   : > { %13799 = vmatpush1.bf16.msra.mxu1 %v25432_v27  ;;  %v14247_v15 = vsel %vm9166_vm2, %v14246_v29, %v14245_v18  ;;  %v21856_v18 = vcombine.low %v29262_v37, %v29262_v37  ;;  %v25494_v29 = vld [vmem:[%s26455_s2 + $0xe68] sm:$0xff]  }
 0xab6   : > { %23390 = vmatpush3.bf16.msra.mxu0 %v25434_v23  ;;  %13800 = vmatprep.subr.bf16.mxu1 %v26178_v12 }
 0xab7   : > { %23391 = vmatprep.subr.bf16.mxu0 %v25436_v1  ;;  %v21680_v1 = vcombine.low %v29173_v40, %v29173_v40 }
 0xab9   : > { %13801 = vmatpush1.bf16.msra.mxu1 %v25435_v60  ;;  %v21676_v60 = vcombine.low %v29170_v39, %v29170_v39  ;;  %v25469_v39 = vld [vmem:[%s26455_s2 + $0xd08] sm:$0xff]   ;;  %v29281_v40 = vunpack.c.l.b16 %v21680_v1 }
 0xaba   : > { %23392 = vmatpush3.bf16.msra.mxu0 %v25437_v0  ;;  %23399 = vmatprep.subr.bf16.mxu1 %v25438_v8  ;;  %v25468_v0 = vld [vmem:[%s26455_s2 + $0xda8] sm:$0xff]  }
 0xabb   : > { %14138 = vmatprep.subr.bf16.mxu0 %v26178_v12  ;;  %v29272_v8 = vld [vmem:[#allocation2 + $0x20] sm:$0x11]  ;;  %v29279_v21 = vunpack.c.l.b16 %v21676_v60 }
 0xabc   : > { %13811 = vmatmul.mubr.bf16.vlgmr.msra.gmra.mrb[52].mxu1 %v13562_v41  ;;  %v21853_v7 = vcombine.high %v29272_v8, %v29272_v8  ;;  %v13915_v41 = vrot.slane %v29281_v40, 5  ;;  %v25498_v60 = vld [vmem:[%s26455_s2 + $0xe30] sm:$0xff]  }
 0xabd   : > { %23400 = vmatpush3.bf16.msra.mxu1 %v25443_v34  ;;  %14131 = vmatmul.mubr.bf16.vlgmr.msra.gmra.mrb[56].mxu0 %v13920_v19  ;;  %v13914_v34 = vrot.slane %v29279_v21, 6  ;;  %v25473_v19 = vld [vmem:[%s26455_s2 + $0xd18] sm:$0xff]  }
 0xabe   : > { %14139 = vmatpush1.bf16.msra.mxu0 %v25444_v51  ;;  %23401 = vmatprep.subr.bf16.mxu1 %v25445_v17  ;;  %v25472_v51 = vld [vmem:[%s26455_s2 + $0xdb8] sm:$0xff]   ;;  %v29295_v17 = vunpack.c.l.b16 %v21853_v7 }
 0xabf   : > { %v23283_v52 = vpop.f32.mrb[32].mxu1  ;;  %14140 = vmatprep.subr.bf16.mxu0 %v26178_v12  ;;  %14458 = vmatprep.mubr.bf16.mxu1 %v14249_v25  ;;  %v13916_v16 = vsel %vm9166_vm2, %v13915_v41, %v13914_v34  ;;  %v25478_v25 = vld [vmem:[%s26455_s2 + $0xdc0] sm:$0xff]  }
 0xac0   : > { %v23284_v24 = vpop.f32.mrb[33].mxu1  ;;  %21710 = vmatprep.mubr.msk.bf16.mxu0 %vm9349_vm4, %v13923_v57  ;;  %v25480_v57 = vld [vmem:[%s26455_s2 + $0xe00] sm:$0xff]  }
 0xac1   : > { %v29227_v59 = vadd.f32 %v23284_v24, %v23283_v52  ;;  %v23286_v9 = vpop.f32.mrb[34].mxu1  ;;  %23402 = vmatpush3.bf16.msra.mxu1 %v25446_v45  ;;  %v25479_v45 = vld [vmem:[%s26455_s2 + $0xe40] sm:$0xff]   ;;  %v25482_v52 = vld [vmem:[%s26455_s2 + $0xe48] sm:$0xff]  }
 0xac2   : > { %v23287_v4 = vpop.f32.mrb[35].mxu1  ;;  %14141 = vmatpush1.bf16.msra.mxu0 %v25447_v43  ;;  %23403 = vmatprep.subr.bf16.mxu1 %v25448_v53  ;;  %v14599_v43 = vsel %vm9166_vm2, %v14598_v2, %v29295_v17  ;;  %v13922_v53 = vpack.c.b16 %v13916_v16, %v13916_v16  ;;  %v25483_v9 = vld [vmem:[%s26455_s2 + $0xe08] sm:$0xff]   ;;  %v25507_v41 = vld [vmem:[%s26455_s2 + $0xee0] sm:$0xff]  }
 0xac3   : > { %14142 = vmatprep.subr.bf16.mxu0 %v26178_v12  ;;  %v14605_v24 = vpack.c.b16 %v14599_v43, %v14599_v43  ;;  %v25485_v4 = vld [vmem:[%s26455_s2 + $0xe50] sm:$0xff]   ;;  %v25509_v2 = vld [vmem:[%s26455_s2 + $0xf28] sm:$0xff]  }
 0xac5   : > { %23404 = vmatpush3.bf16.msra.mxu1 %v25449_v22  ;;  %v25481_v22 = vld [vmem:[%s26455_s2 + $0xdc8] sm:$0xff]  }
 0xac6   : > { %14143 = vmatpush1.bf16.msra.mxu0 %v25450_v3  ;;  %23405 = vmatprep.subr.bf16.mxu1 %v25451_v55 }
 0xac7   : > { %14144 = vmatprep.subr.bf16.mxu0 %v26178_v12 }
 0xac9   : > { %23406 = vmatpush3.bf16.msra.mxu1 %v25452_v6 }
 0xaca   : > { %14145 = vmatpush1.bf16.msra.mxu0 %v25453_v5  ;;  %23407 = vmatprep.subr.bf16.mxu1 %v25454_v48  ;;  %v25484_v5 = vld [vmem:[%s26455_s2 + $0xdd0] sm:$0xff]  }
 0xacb   : > { %14146 = vmatprep.subr.bf16.mxu0 %v26178_v12 }
 0xacd   : > { %23408 = vmatpush3.bf16.msra.mxu1 %v25455_v47 }
 0xace   : > { %14147 = vmatpush1.bf16.msra.mxu0 %v25456_v56  ;;  %23409 = vmatprep.subr.bf16.mxu1 %v25457_v31 }
 0xacf   : > { %14148 = vmatprep.subr.bf16.mxu0 %v26178_v12 }
 0xad0   : > { %v12112_v61 = vpop.f32.mrb[36].mxu0 }
 0xad1   : > { %v12113_v28 = vadd.f32 %v29162_v36, %v12112_v61  ;;  %23410 = vmatpush3.bf16.msra.mxu1 %v25458_v58  ;;  %v12114_v44 = vpop.f32.mrb[37].mxu0  ;;  %v14238_v36 = vsel %vm9166_vm2, %v14237_v42, %v14236_v32  ;;  %v25487_v61 = vld [vmem:[%s26455_s2 + $0xdd8] sm:$0xff]   ;;  %v25491_v42 = vld [vmem:[%s26455_s2 + $0xe60] sm:$0xff]  }
 0xad2   : > { %14149 = vmatpush1.bf16.msra.mxu0 %v25459_v20  ;;  %23411 = vmatprep.subr.bf16.mxu1 %v25460_v30  ;;  %v12115_v27 = vpop.f32.mrb[38].mxu0  ;;  %v14248_v26 = vpack.c.b16 %v14238_v36, %v14238_v36  ;;  %v25486_v20 = vld [vmem:[%s26455_s2 + $0xe10] sm:$0xff]   ;;  %v21852_v36 = vcombine.low %v29272_v8, %v29272_v8  ;;  %v25499_v8 = vld [vmem:[%s26455_s2 + $0xdf8] sm:$0xff]  }
 0xad3   : > { %v29253_v54 = vadd.f32 %v12113_v28, %v29158_v62  ;;  %14150 = vmatprep.subr.bf16.mxu0 %v26178_v12  ;;  %v12116_v23 = vpop.f32.mrb[39].mxu0  ;;  %v14251_v62 = vpack.c.b16 %v14247_v15, %v14247_v15  ;;  %v25492_v28 = vld [vmem:[%s26455_s2 + $0xe20] sm:$0xff]   ;;  %v29329_v44 = vld [vmem:[#allocation2 + $0x68] sm:$0x11]  ;;  %v25493_v27 = vld [vmem:[%s26455_s2 + $0xde8] sm:$0xff]  }
 0xad4   : > { %v29337_v23 = vld [vmem:[#allocation2 + $0x28] sm:$0x11]  ;;  %v29356_v1 = vunpack.c.l.b16 %v21852_v36 }
 0xad5   : > { %23412 = vmatpush3.bf16.msra.mxu1 %v25461_v50  ;;  %v25488_v50 = vld [vmem:[%s26455_s2 + $0xe58] sm:$0xff]   ;;  %v25496_v15 = vld [vmem:[%s26455_s2 + $0xdf0] sm:$0xff]  }
 0xad6   : > { %14151 = vmatpush1.bf16.msra.mxu0 %v25462_v49  ;;  %23413 = vmatprep.subr.bf16.mxu1 %v25463_v14  ;;  %v25489_v49 = vld [vmem:[%s26455_s2 + $0xe18] sm:$0xff]   ;;  %v25490_v14 = vld [vmem:[%s26455_s2 + $0xde0] sm:$0xff]  }
 0xad7   : > { %14152 = vmatprep.subr.bf16.mxu0 %v26178_v12 }
 0xad9   : > { %23414 = vmatpush3.bf16.msra.mxu1 %v25464_v33  ;;  %v21859_v33 = vcombine.high %v29329_v44, %v29329_v44 }
 0xada   : > { %14153 = vmatpush1.bf16.msra.mxu0 %v25465_v46  ;;  %14466 = vmatprep.subr.bf16.mxu1 %v26178_v12  ;;  %v29344_v46 = vunpack.c.l.b16 %v21856_v18  ;;  %v14920_v18 = vrot.slane %v29356_v1, 1 }
 0xadb   : > { %14154 = vmatprep.subr.bf16.mxu0 %v26178_v12  ;;  %v29350_v37 = vunpack.c.l.b16 %v21859_v33 }
 0xadc   : > { %14459 = vmatmul.mubr.bf16.vlgmr.msra.gmra.mrb[56].mxu1 %v14248_v26  ;;  %v25497_v26 = vld [vmem:[%s26455_s2 + $0xe70] sm:$0xff]  }
 0xadd   : > { %14467 = vmatpush1.bf16.msra.mxu1 %v25466_v38  ;;  %21795 = vmatprep.mubr.msk.bf16.mxu1 %vm9349_vm4, %v14251_v62  ;;  %v14242_v38 = vrot.slane %v29279_v21, 7  ;;  %v14243_v62 = vrot.slane %v29281_v40, 6  ;;  %v25502_v21 = vld [vmem:[%s26455_s2 + $0xf20] sm:$0xff]   ;;  %v14922_v40 = vrot.slane %v29295_v17, 1 }
 0xade   : > { %14155 = vmatpush1.bf16.msra.mxu0 %v25467_v10  ;;  %14468 = vmatprep.subr.bf16.mxu1 %v26178_v12  ;;  %v21855_v10 = vcombine.high %v29337_v23, %v29337_v23  ;;  %v25508_v17 = vld [vmem:[%s26455_s2 + $0xe80] sm:$0xff]  }
 0xadf   : > { %14156 = vmatprep.subr.bf16.mxu0 %v26178_v12 }
 0xae0   : > { %v29366_v7 = vunpack.c.l.b16 %v21855_v10  ;;  %v29420_v10 = vld [vmem:[#allocation2 + $0x20] sm:$0x22] }
 0xae1   : > { %14469 = vmatpush1.bf16.msra.mxu1 %v25468_v0  ;;  %v14596_v0 = vrot.slane %v29344_v46, 7 }
 0xae2   : > { %14157 = vmatpush1.bf16.msra.mxu0 %v25469_v39  ;;  %14470 = vmatprep.subr.bf16.mxu1 %v26178_v12  ;;  %v25501_v39 = vld [vmem:[%s26455_s2 + $0xe38] sm:$0xff]  }
 0xae3   : > { %14158 = vmatprep.subr.bf16.mxu0 %v26178_v12  ;;  %v14597_v34 = vsel %vm9166_vm2, %v14596_v0, %v29356_v1  ;;  %v29422_v1 = vld [vmem:[#allocation2 + $0x60] sm:$0x22]  ;;  %v21858_v0 = vcombine.low %v29329_v44, %v29329_v44  ;;  %v21854_v44 = vcombine.low %v29337_v23, %v29337_v23 }
 0xae4   : > { %v14604_v16 = vpack.c.b16 %v14597_v34, %v14597_v34 }
 0xae5   : > { %14471 = vmatpush1.bf16.msra.mxu1 %v25470_v35  ;;  %v14602_v35 = vrot.slane %v29350_v37, 7  ;;  %v29449_v34 = vunpack.c.l.b16 %v21854_v44 }
 0xae6   : > { %14159 = vmatpush1.bf16.msra.mxu0 %v25471_v63  ;;  %14472 = vmatprep.subr.bf16.mxu1 %v26178_v12  ;;  %v14244_v63 = vsel %vm9166_vm2, %v14243_v62, %v14242_v38  ;;  %v25530_v62 = vld [vmem:[%s26455_s2 + $0xf60] sm:$0xff]  }
 0xae7   : > { %14160 = vmatprep.subr.bf16.mxu0 %v26178_v12 }
 0xae9   : > { %14473 = vmatpush1.bf16.msra.mxu1 %v25472_v51  ;;  %v14250_v51 = vpack.c.b16 %v14244_v63, %v14244_v63 }
 0xaea   : > { %14161 = vmatpush1.bf16.msra.mxu0 %v25473_v19  ;;  %14474 = vmatprep.subr.bf16.mxu1 %v26178_v12  ;;  %v14923_v19 = vsel %vm9166_vm2, %v29288_v11, %v14922_v40  ;;  %v25534_v40 = vld [vmem:[%s26455_s2 + $0xf70] sm:$0xff]  }
 0xaeb   : > { %23421 = vmatprep.subr.bf16.mxu0 %v25479_v45  ;;  %v14603_v45 = vsel %vm9166_vm2, %v14602_v35, %v29366_v7  ;;  %v14929_v43 = vpack.c.b16 %v14923_v19, %v14923_v19 }
 0xaed   : > { %14171 = vmatmul.mubr.bf16.vlgmr.msra.gmra.mrb[60].mxu0 %v13922_v53  ;;  %14475 = vmatpush1.bf16.msra.mxu1 %v25478_v25  ;;  %v25510_v25 = vld [vmem:[%s26455_s2 + $0xee8] sm:$0xff]  }
 0xaee   : > { %23422 = vmatpush3.bf16.msra.mxu0 %v25480_v57  ;;  %14476 = vmatprep.subr.bf16.mxu1 %v26178_v12  ;;  %v25511_v53 = vld [vmem:[%s26455_s2 + $0xe88] sm:$0xff]   ;;  %v25512_v57 = vld [vmem:[%s26455_s2 + $0xf30] sm:$0xff]  }
 0xaef   : > { %v12436_v3 = vpop.f32.mrb[36].mxu1  ;;  %23423 = vmatprep.subr.bf16.mxu0 %v25482_v52  ;;  %14814 = vmatprep.mubr.bf16.mxu0 %v14605_v24  ;;  %v14607_v52 = vpack.c.b16 %v14603_v45, %v14603_v45  ;;  %v25542_v45 = vld [vmem:[%s26455_s2 + $0xf80] sm:$0xff]  }
 0xaf0   : > { %v12437_v55 = vadd.f32 %v29227_v59, %v12436_v3  ;;  %v12438_v6 = vpop.f32.mrb[37].mxu1  ;;  %v23305_v48 = vpop.f32.mrb[40].mxu0 }
 0xaf1   : > { %v12439_v47 = vpop.f32.mrb[38].mxu1  ;;  %14477 = vmatpush1.bf16.msra.mxu1 %v25481_v22  ;;  %v23306_v56 = vpop.f32.mrb[41].mxu0  ;;  %v25513_v22 = vld [vmem:[%s26455_s2 + $0xef0] sm:$0xff]   ;;  %v25515_v6 = vld [vmem:[%s26455_s2 + $0xf38] sm:$0xff]  }
 0xaf2   : > { %v29316_v31 = vadd.f32 %v12437_v55, %v29253_v54  ;;  %v12440_v58 = vpop.f32.mrb[39].mxu1  ;;  %23424 = vmatpush3.bf16.msra.mxu0 %v25483_v9  ;;  %14478 = vmatprep.subr.bf16.mxu1 %v26178_v12  ;;  %v29320_v59 = vadd.f32 %v23306_v56, %v23305_v48  ;;  %v23308_v30 = vpop.f32.mrb[42].mxu0  ;;  %v25495_v54 = vld [vmem:[%s26455_s2 + $0xe28] sm:$0xff]   ;;  %v25517_v48 = vld [vmem:[%s26455_s2 + $0xe98] sm:$0xff]   ;;  %v25518_v47 = vld [vmem:[%s26455_s2 + $0xf40] sm:$0xff]  }
 0xaf3   : > { %23425 = vmatprep.subr.bf16.mxu0 %v25485_v4  ;;  %v23309_v32 = vpop.f32.mrb[43].mxu0  ;;  %v25514_v4 = vld [vmem:[%s26455_s2 + $0xe90] sm:$0xff]   ;;  %v25519_v56 = vld [vmem:[%s26455_s2 + $0xf00] sm:$0xff]   ;;  %v25522_v30 = vld [vmem:[%s26455_s2 + $0xf08] sm:$0xff]  }
 0xaf4   : > { %v25520_v58 = vld [vmem:[%s26455_s2 + $0xea0] sm:$0xff]   ;;  %v25524_v32 = vld [vmem:[%s26455_s2 + $0xf50] sm:$0xff]  }
 0xaf5   : > { %14479 = vmatpush1.bf16.msra.mxu1 %v25484_v5  ;;  %v25516_v5 = vld [vmem:[%s26455_s2 + $0xef8] sm:$0xff]  }
 0xaf6   : > { %23426 = vmatpush3.bf16.msra.mxu0 %v25486_v20  ;;  %14480 = vmatprep.subr.bf16.mxu1 %v26178_v12  ;;  %v25521_v20 = vld [vmem:[%s26455_s2 + $0xf48] sm:$0xff]  }
 0xaf7   : > { %23427 = vmatprep.subr.bf16.mxu0 %v25488_v50  ;;  %v25523_v50 = vld [vmem:[%s26455_s2 + $0xea8] sm:$0xff]  }
 0xaf9   : > { %14481 = vmatpush1.bf16.msra.mxu1 %v25487_v61  ;;  %v25525_v61 = vld [vmem:[%s26455_s2 + $0xf10] sm:$0xff]  }
 0xafa   : > { %23428 = vmatpush3.bf16.msra.mxu0 %v25489_v49  ;;  %14482 = vmatprep.subr.bf16.mxu1 %v26178_v12 }
 0xafb   : > { %23429 = vmatprep.subr.bf16.mxu0 %v25491_v42  ;;  %v25527_v42 = vld [vmem:[%s26455_s2 + $0xf58] sm:$0xff]  }
 0xafd   : > { %14483 = vmatpush1.bf16.msra.mxu1 %v25490_v14  ;;  %v25526_v14 = vld [vmem:[%s26455_s2 + $0xeb0] sm:$0xff]  }
 0xafe   : > { %23430 = vmatpush3.bf16.msra.mxu0 %v25492_v28  ;;  %14484 = vmatprep.subr.bf16.mxu1 %v26178_v12 }
 0xaff   : > { %23431 = vmatprep.subr.bf16.mxu0 %v25494_v29 }
 0xb01   : > { %14485 = vmatpush1.bf16.msra.mxu1 %v25493_v27 }
 0xb02   : > { %23432 = vmatpush3.bf16.msra.mxu0 %v25495_v54  ;;  %14486 = vmatprep.subr.bf16.mxu1 %v26178_v12  ;;  %v14926_v54 = vrot.slane %v29366_v7, 1  ;;  %v25535_v7 = vld [vmem:[%s26455_s2 + $0xed0] sm:$0xff]  }
 0xb03   : > { %23433 = vmatprep.subr.bf16.mxu0 %v25497_v26  ;;  %v25529_v26 = vld [vmem:[%s26455_s2 + $0xeb8] sm:$0xff]  }
 0xb04   : > { %v14927_v38 = vsel %vm9166_vm2, %v29350_v37, %v14926_v54  ;;  %v25532_v37 = vld [vmem:[%s26455_s2 + $0xf68] sm:$0xff]   ;;  %v22034_v54 = vcombine.low %v29422_v1, %v29422_v1 }
 0xb05   : > { %14487 = vmatpush1.bf16.msra.mxu1 %v25496_v15  ;;  %v25528_v15 = vld [vmem:[%s26455_s2 + $0xf18] sm:$0xff]  }
 0xb06   : > { %23434 = vmatpush3.bf16.msra.mxu0 %v25498_v60  ;;  %14488 = vmatprep.subr.bf16.mxu1 %v26178_v12  ;;  %v14931_v60 = vpack.c.b16 %v14927_v38, %v14927_v38 }
 0xb07   : > { %23435 = vmatprep.subr.bf16.mxu0 %v25500_v13  ;;  %v22035_v13 = vcombine.high %v29422_v1, %v29422_v1 }
 0xb09   : > { %14489 = vmatpush1.bf16.msra.mxu1 %v25499_v8  ;;  %v22031_v8 = vcombine.high %v29420_v10, %v29420_v10  ;;  %v29445_v63 = vunpack.c.l.b16 %v22035_v13 }
 0xb0a   : > { %23436 = vmatpush3.bf16.msra.mxu0 %v25501_v39  ;;  %23443 = vmatprep.subr.bf16.mxu1 %v25502_v21  ;;  %v25533_v39 = vld [vmem:[%s26455_s2 + $0xec8] sm:$0xff]   ;;  %v29439_v21 = vunpack.c.l.b16 %v21858_v0  ;;  %v25562_v0 = vld [vmem:[%s26455_s2 + $0xff0] sm:$0xff]  }
 0xb0b   : > { %14822 = vmatprep.subr.bf16.mxu0 %v26178_v12  ;;  %v29443_v35 = vunpack.c.l.b16 %v22031_v8 }
 0xb0c   : > { %14499 = vmatmul.mubr.bf16.vlgmr.msra.gmra.mrb[60].mxu1 %v14250_v51  ;;  %v14600_v23 = vrot.slane %v29439_v21, 7 }
 0xb0d   : > { %23444 = vmatpush3.bf16.msra.mxu1 %v25507_v41  ;;  %14815 = vmatmul.mubr.bf16.vlgmr.msra.gmra.mrb[64].mxu0 %v14604_v16  ;;  %v25536_v41 = vld [vmem:[%s26455_s2 + $0xf78] sm:$0xff]   ;;  %v15279_v51 = vrot.slane %v29443_v35, 2  ;;  %v25543_v16 = vld [vmem:[%s26455_s2 + $0x1000] sm:$0xff]   ;;  %v15607_v44 = vrot.slane %v29443_v35, 3 }
 0xb0e   : > { %14823 = vmatpush1.bf16.msra.mxu0 %v25508_v17  ;;  %23445 = vmatprep.subr.bf16.mxu1 %v25509_v2  ;;  %v15280_v17 = vrot.slane %v29445_v63, 1  ;;  %v25537_v2 = vld [vmem:[%s26455_s2 + $0xed8] sm:$0xff]   ;;  %v14601_v19 = vsel %vm9166_vm2, %v14600_v23, %v29449_v34  ;;  %v25571_v35 = vld [vmem:[%s26455_s2 + $0x10a0] sm:$0xff]  }
 0xb0f   : > { %v23327_v11 = vpop.f32.mrb[40].mxu1  ;;  %14824 = vmatprep.subr.bf16.mxu0 %v26178_v12  ;;  %15138 = vmatprep.mubr.bf16.mxu1 %v14929_v43  ;;  %v14606_v43 = vpack.c.b16 %v14601_v19, %v14601_v19  ;;  %v25573_v19 = vld [vmem:[%s26455_s2 + $0x10e8] sm:$0xff]  }
 0xb10   : > { %v23328_v24 = vpop.f32.mrb[41].mxu1  ;;  %21888 = vmatprep.mubr.msk.bf16.mxu0 %vm9349_vm4, %v14607_v52 }
 0xb11   : > { %v29385_v9 = vadd.f32 %v23328_v24, %v23327_v11  ;;  %v23330_v3 = vpop.f32.mrb[42].mxu1  ;;  %23446 = vmatpush3.bf16.msra.mxu1 %v25510_v25  ;;  %v15281_v25 = vsel %vm9166_vm2, %v15280_v17, %v15279_v51  ;;  %v25545_v11 = vld [vmem:[%s26455_s2 + $0xf88] sm:$0xff]  }
 0xb12   : > { %v23331_v55 = vpop.f32.mrb[43].mxu1  ;;  %14825 = vmatpush1.bf16.msra.mxu0 %v25511_v53  ;;  %23447 = vmatprep.subr.bf16.mxu1 %v25512_v57  ;;  %v25544_v53 = vld [vmem:[%s26455_s2 + $0xfc0] sm:$0xff]   ;;  %v25546_v57 = vld [vmem:[%s26455_s2 + $0x1008] sm:$0xff]   ;;  %v15289_v52 = vpack.c.b16 %v15281_v25, %v15281_v25  ;;  %v25549_v3 = vld [vmem:[%s26455_s2 + $0x1010] sm:$0xff]  }
 0xb13   : > { %14826 = vmatprep.subr.bf16.mxu0 %v26178_v12  ;;  %v25547_v24 = vld [vmem:[%s26455_s2 + $0xfc8] sm:$0xff]  }
 0xb15   : > { %23448 = vmatpush3.bf16.msra.mxu1 %v25513_v22 }
 0xb16   : > { %14827 = vmatpush1.bf16.msra.mxu0 %v25514_v4  ;;  %23449 = vmatprep.subr.bf16.mxu1 %v25515_v6  ;;  %v25548_v6 = vld [vmem:[%s26455_s2 + $0xf90] sm:$0xff]  }
 0xb17   : > { %14828 = vmatprep.subr.bf16.mxu0 %v26178_v12 }
 0xb19   : > { %23450 = vmatpush3.bf16.msra.mxu1 %v25516_v5 }
 0xb1a   : > { %14829 = vmatpush1.bf16.msra.mxu0 %v25517_v48  ;;  %23451 = vmatprep.subr.bf16.mxu1 %v25518_v47 }
 0xb1b   : > { %14830 = vmatprep.subr.bf16.mxu0 %v26178_v12 }
 0xb1d   : > { %23452 = vmatpush3.bf16.msra.mxu1 %v25519_v56 }
 0xb1e   : > { %14831 = vmatpush1.bf16.msra.mxu0 %v25520_v58  ;;  %23453 = vmatprep.subr.bf16.mxu1 %v25521_v20  ;;  %v25550_v20 = vld [vmem:[%s26455_s2 + $0xfd0] sm:$0xff]  }
 0xb1f   : > { %14832 = vmatprep.subr.bf16.mxu0 %v26178_v12 }
 0xb20   : > { %v12796_v49 = vpop.f32.mrb[44].mxu0 }
 0xb21   : > { %v12797_v28 = vadd.f32 %v29320_v59, %v12796_v49  ;;  %23454 = vmatpush3.bf16.msra.mxu1 %v25522_v30  ;;  %v12798_v27 = vpop.f32.mrb[45].mxu0  ;;  %v14921_v59 = vsel %vm9166_vm2, %v29344_v46, %v14920_v18  ;;  %v25531_v46 = vld [vmem:[%s26455_s2 + $0xec0] sm:$0xff]   ;;  %v25553_v49 = vld [vmem:[%s26455_s2 + $0xfd8] sm:$0xff]  }
 0xb22   : > { %14833 = vmatpush1.bf16.msra.mxu0 %v25523_v50  ;;  %23455 = vmatprep.subr.bf16.mxu1 %v25524_v32  ;;  %v12799_v29 = vpop.f32.mrb[46].mxu0  ;;  %v25552_v50 = vld [vmem:[%s26455_s2 + $0x1018] sm:$0xff]   ;;  %v25556_v18 = vld [vmem:[%s26455_s2 + $0xfe0] sm:$0xff]  }
 0xb23   : > { %v29409_v33 = vadd.f32 %v12797_v28, %v29316_v31  ;;  %14834 = vmatprep.subr.bf16.mxu0 %v26178_v12  ;;  %v12800_v36 = vpop.f32.mrb[47].mxu0  ;;  %v14928_v31 = vpack.c.b16 %v14921_v59, %v14921_v59  ;;  %v29486_v28 = vld [vmem:[#allocation2 + $0x28] sm:$0x22]  ;;  %v22030_v29 = vcombine.low %v29420_v10, %v29420_v10 }
 0xb24   : > { %v29489_v27 = vld [vmem:[#allocation2 + $0x68] sm:$0x22]  ;;  %v25558_v36 = vld [vmem:[%s26455_s2 + $0x1028] sm:$0xff]   ;;  %v22033_v59 = vcombine.high %v29486_v28, %v29486_v28 }
 0xb25   : > { %23456 = vmatpush3.bf16.msra.mxu1 %v25525_v61  ;;  %v25551_v61 = vld [vmem:[%s26455_s2 + $0xf98] sm:$0xff]   ;;  %v29504_v38 = vunpack.c.l.b16 %v22030_v29  ;;  %v25560_v10 = vld [vmem:[%s26455_s2 + $0xfb0] sm:$0xff]  }
 0xb26   : > { %14835 = vmatpush1.bf16.msra.mxu0 %v25526_v14  ;;  %23457 = vmatprep.subr.bf16.mxu1 %v25527_v42  ;;  %v25554_v14 = vld [vmem:[%s26455_s2 + $0xfa0] sm:$0xff]   ;;  %v29511_v1 = vunpack.c.l.b16 %v22033_v59  ;;  %v25590_v29 = vld [vmem:[%s26455_s2 + $0x1070] sm:$0xff]  }
 0xb27   : > { %14836 = vmatprep.subr.bf16.mxu0 %v26178_v12  ;;  %v25555_v42 = vld [vmem:[%s26455_s2 + $0x1020] sm:$0xff]   ;;  %v15276_v8 = vrot.slane %v29504_v38, 2 }
 0xb28   : > { %v15285_v23 = vrot.slane %v29511_v1, 2  ;;  %v15613_v59 = vrot.slane %v29511_v1, 3 }
 0xb29   : > { %23458 = vmatpush3.bf16.msra.mxu1 %v25528_v15  ;;  %v25559_v15 = vld [vmem:[%s26455_s2 + $0xfe8] sm:$0xff]  }
 0xb2a   : > { %14837 = vmatpush1.bf16.msra.mxu0 %v25529_v26  ;;  %15146 = vmatprep.subr.bf16.mxu1 %v26178_v12  ;;  %v22037_v26 = vcombine.high %v29489_v27, %v29489_v27 }
 0xb2b   : > { %14838 = vmatprep.subr.bf16.mxu0 %v26178_v12 }
 0xb2c   : > { %15139 = vmatmul.mubr.bf16.vlgmr.msra.gmra.mrb[64].mxu1 %v14928_v31  ;;  %v29506_v31 = vunpack.c.l.b16 %v22034_v54  ;;  %v25591_v54 = vld [vmem:[%s26455_s2 + $0x1118] sm:$0xff]  }
 0xb2d   : > { %15147 = vmatpush1.bf16.msra.mxu1 %v25530_v62  ;;  %21973 = vmatprep.mubr.msk.bf16.mxu1 %vm9349_vm4, %v14931_v60  ;;  %v25561_v62 = vld [vmem:[%s26455_s2 + $0x1030] sm:$0xff]   ;;  %v14924_v60 = vrot.slane %v29449_v34, 1  ;;  %v25566_v34 = vld [vmem:[%s26455_s2 + $0x10e0] sm:$0xff]  }
 0xb2e   : > { %14839 = vmatpush1.bf16.msra.mxu0 %v25531_v46  ;;  %15148 = vmatprep.subr.bf16.mxu1 %v26178_v12  ;;  %v29513_v46 = vunpack.c.l.b16 %v22037_v26  ;;  %v15277_v13 = vrot.slane %v29506_v31, 1 }
 0xb2f   : > { %14840 = vmatprep.subr.bf16.mxu0 %v26178_v12  ;;  %v14925_v51 = vsel %vm9166_vm2, %v29439_v21, %v14924_v60  ;;  %v25574_v21 = vld [vmem:[%s26455_s2 + $0x10a8] sm:$0xff]   ;;  %v25593_v60 = vld [vmem:[%s26455_s2 + $0x1078] sm:$0xff]  }
 0xb30   : > { %v15278_v17 = vsel %vm9166_vm2, %v15277_v13, %v15276_v8  ;;  %v29580_v8 = vld [vmem:[#allocation2 + $0x60] sm:$0x44]  ;;  %v25595_v13 = vld [vmem:[%s26455_s2 + $0x1080] sm:$0xff]  }
 0xb31   : > { %15149 = vmatpush1.bf16.msra.mxu1 %v25532_v37  ;;  %v25564_v37 = vld [vmem:[%s26455_s2 + $0x1038] sm:$0xff]  }
 0xb32   : > { %14841 = vmatpush1.bf16.msra.mxu0 %v25533_v39  ;;  %15150 = vmatprep.subr.bf16.mxu1 %v26178_v12  ;;  %v25563_v39 = vld [vmem:[%s26455_s2 + $0xfb8] sm:$0xff]  }
 0xb33   : > { %14842 = vmatprep.subr.bf16.mxu0 %v26178_v12 }
 0xb35   : > { %15151 = vmatpush1.bf16.msra.mxu1 %v25534_v40  ;;  %v15608_v40 = vrot.slane %v29445_v63, 2  ;;  %v14930_v63 = vpack.c.b16 %v14925_v51, %v14925_v51  ;;  %v25599_v51 = vld [vmem:[%s26455_s2 + $0x1090] sm:$0xff]  }
 0xb36   : > { %14843 = vmatpush1.bf16.msra.mxu0 %v25535_v7  ;;  %15152 = vmatprep.subr.bf16.mxu1 %v26178_v12  ;;  %v25565_v7 = vld [vmem:[%s26455_s2 + $0xff8] sm:$0xff]  }
 0xb37   : > { %14844 = vmatprep.subr.bf16.mxu0 %v26178_v12 }
 0xb39   : > { %15153 = vmatpush1.bf16.msra.mxu1 %v25536_v41  ;;  %v15286_v41 = vrot.slane %v29513_v46, 1 }
 0xb3a   : > { %14845 = vmatpush1.bf16.msra.mxu0 %v25537_v2  ;;  %15154 = vmatprep.subr.bf16.mxu1 %v26178_v12  ;;  %v25572_v2 = vld [vmem:[%s26455_s2 + $0x1040] sm:$0xff]  }
 0xb3b   : > { %23465 = vmatprep.subr.bf16.mxu0 %v25543_v16  ;;  %v15609_v16 = vsel %vm9166_vm2, %v15608_v40, %v15607_v44  ;;  %v15287_v25 = vsel %vm9166_vm2, %v15286_v41, %v15285_v23  ;;  %v22036_v44 = vcombine.low %v29489_v27, %v29489_v27  ;;  %v25596_v40 = vld [vmem:[%s26455_s2 + $0x1128] sm:$0xff]   ;;  %v25598_v41 = vld [vmem:[%s26455_s2 + $0x1130] sm:$0xff]  }
 0xb3d   : > { %14855 = vmatmul.mubr.bf16.vlgmr.msra.gmra.mrb[68].mxu0 %v14606_v43  ;;  %15155 = vmatpush1.bf16.msra.mxu1 %v25542_v45  ;;  %v15288_v45 = vpack.c.b16 %v15278_v17, %v15278_v17  ;;  %v15617_v43 = vpack.c.b16 %v15609_v16, %v15609_v16  ;;  %v29599_v27 = vunpack.c.l.b16 %v22036_v44 }
 0xb3e   : > { %23466 = vmatpush3.bf16.msra.mxu0 %v25544_v53  ;;  %15156 = vmatprep.subr.bf16.mxu1 %v26178_v12  ;;  %v25575_v53 = vld [vmem:[%s26455_s2 + $0x1048] sm:$0xff]  }
 0xb3f   : > { %v13124_v22 = vpop.f32.mrb[44].mxu1  ;;  %23467 = vmatprep.subr.bf16.mxu0 %v25546_v57  ;;  %15498 = vmatprep.mubr.bf16.mxu0 %v15289_v52  ;;  %v25576_v57 = vld [vmem:[%s26455_s2 + $0x10f0] sm:$0xff]   ;;  %v15291_v52 = vpack.c.b16 %v15287_v25, %v15287_v25  ;;  %v25601_v25 = vld [vmem:[%s26455_s2 + $0x1098] sm:$0xff]  }
 0xb40   : > { %v13125_v4 = vadd.f32 %v29385_v9, %v13124_v22  ;;  %v13126_v55 = vpop.f32.mrb[45].mxu1  ;;  %v23349_v5 = vpop.f32.mrb[48].mxu0  ;;  %v25577_v22 = vld [vmem:[%s26455_s2 + $0x10b0] sm:$0xff]  }
 0xb41   : > { %v13127_v48 = vpop.f32.mrb[46].mxu1  ;;  %15157 = vmatpush1.bf16.msra.mxu1 %v25545_v11  ;;  %v23350_v47 = vpop.f32.mrb[49].mxu0  ;;  %v25578_v55 = vld [vmem:[%s26455_s2 + $0x1050] sm:$0xff]  }
 0xb42   : > { %v29474_v56 = vadd.f32 %v13125_v4, %v29409_v33  ;;  %v13128_v58 = vpop.f32.mrb[47].mxu1  ;;  %23468 = vmatpush3.bf16.msra.mxu0 %v25547_v24  ;;  %15158 = vmatprep.subr.bf16.mxu1 %v26178_v12  ;;  %v29478_v9 = vadd.f32 %v23350_v47, %v23349_v5  ;;  %v23352_v30 = vpop.f32.mrb[50].mxu0  ;;  %v25557_v33 = vld [vmem:[%s26455_s2 + $0xfa8] sm:$0xff]   ;;  %v25579_v5 = vld [vmem:[%s26455_s2 + $0x10f8] sm:$0xff]  }
 0xb43   : > { %23469 = vmatprep.subr.bf16.mxu0 %v25549_v3  ;;  %v23353_v32 = vpop.f32.mrb[51].mxu0  ;;  %v25580_v48 = vld [vmem:[%s26455_s2 + $0x10b8] sm:$0xff]   ;;  %v25582_v58 = vld [vmem:[%s26455_s2 + $0x1100] sm:$0xff]  }
 0xb44   : > { %v25581_v47 = vld [vmem:[%s26455_s2 + $0x1058] sm:$0xff]   ;;  %v25584_v30 = vld [vmem:[%s26455_s2 + $0x1060] sm:$0xff]   ;;  %v25586_v32 = vld [vmem:[%s26455_s2 + $0x10c8] sm:$0xff]  }
 0xb45   : > { %15159 = vmatpush1.bf16.msra.mxu1 %v25548_v6 }
 0xb46   : > { %23470 = vmatpush3.bf16.msra.mxu0 %v25550_v20  ;;  %15160 = vmatprep.subr.bf16.mxu1 %v26178_v12  ;;  %v25583_v20 = vld [vmem:[%s26455_s2 + $0x10c0] sm:$0xff]  }
 0xb47   : > { %23471 = vmatprep.subr.bf16.mxu0 %v25552_v50  ;;  %v25585_v50 = vld [vmem:[%s26455_s2 + $0x1108] sm:$0xff]  }
 0xb49   : > { %15161 = vmatpush1.bf16.msra.mxu1 %v25551_v61  ;;  %v25587_v61 = vld [vmem:[%s26455_s2 + $0x1068] sm:$0xff]  }
 0xb4a   : > { %23472 = vmatpush3.bf16.msra.mxu0 %v25553_v49  ;;  %15162 = vmatprep.subr.bf16.mxu1 %v26178_v12  ;;  %v25588_v49 = vld [vmem:[%s26455_s2 + $0x1110] sm:$0xff]  }
 0xb4b   : > { %23473 = vmatprep.subr.bf16.mxu0 %v25555_v42  ;;  %v15604_v42 = vrot.slane %v29504_v38, 3 }
 0xb4d   : > { %15163 = vmatpush1.bf16.msra.mxu1 %v25554_v14  ;;  %v25589_v14 = vld [vmem:[%s26455_s2 + $0x10d0] sm:$0xff]  }
 0xb4e   : > { %23474 = vmatpush3.bf16.msra.mxu0 %v25556_v18  ;;  %15164 = vmatprep.subr.bf16.mxu1 %v26178_v12 }
 0xb4f   : > { %23475 = vmatprep.subr.bf16.mxu0 %v25558_v36 }
 0xb51   : > { %15165 = vmatpush1.bf16.msra.mxu1 %v25557_v33  ;;  %v15605_v33 = vrot.slane %v29506_v31, 2  ;;  %v25592_v31 = vld [vmem:[%s26455_s2 + $0x10d8] sm:$0xff]  }
 0xb52   : > { %23476 = vmatpush3.bf16.msra.mxu0 %v25559_v15  ;;  %15166 = vmatprep.subr.bf16.mxu1 %v26178_v12 }
 0xb53   : > { %23477 = vmatprep.subr.bf16.mxu0 %v25561_v62  ;;  %v15614_v62 = vrot.slane %v29513_v46, 2 }
 0xb55   : > { %15167 = vmatpush1.bf16.msra.mxu1 %v25560_v10  ;;  %v15615_v1 = vsel %vm9166_vm2, %v15614_v62, %v15613_v59  ;;  %v25620_v59 = vld [vmem:[%s26455_s2 + $0x11a0] sm:$0xff]  }
 0xb56   : > { %23478 = vmatpush3.bf16.msra.mxu0 %v25562_v0  ;;  %15168 = vmatprep.subr.bf16.mxu1 %v26178_v12  ;;  %v25594_v0 = vld [vmem:[%s26455_s2 + $0x1120] sm:$0xff]  }
 0xb57   : > { %23479 = vmatprep.subr.bf16.mxu0 %v25564_v37  ;;  %v15619_v37 = vpack.c.b16 %v15615_v1, %v15615_v1 }
 0xb59   : > { %15169 = vmatpush1.bf16.msra.mxu1 %v25563_v39  ;;  %v22032_v39 = vcombine.low %v29486_v28, %v29486_v28  ;;  %v25597_v28 = vld [vmem:[%s26455_s2 + $0x1088] sm:$0xff]  }
 0xb5a   : > { %23480 = vmatpush3.bf16.msra.mxu0 %v25565_v7  ;;  %23487 = vmatprep.subr.bf16.mxu1 %v25566_v34  ;;  %v22213_v34 = vcombine.high %v29580_v8, %v29580_v8 }
 0xb5b   : > { %15506 = vmatprep.subr.bf16.mxu0 %v26178_v12  ;;  %v29597_v23 = vunpack.c.l.b16 %v22032_v39 }
 0xb5c   : > { %15179 = vmatmul.mubr.bf16.vlgmr.msra.gmra.mrb[68].mxu1 %v14930_v63 }
 0xb5d   : > { %23488 = vmatpush3.bf16.msra.mxu1 %v25571_v35  ;;  %15499 = vmatmul.mubr.bf16.vlgmr.msra.gmra.mrb[72].mxu0 %v15288_v45  ;;  %v29606_v35 = vunpack.c.l.b16 %v22213_v34  ;;  %v15282_v63 = vrot.slane %v29597_v23, 2 }
 0xb5e   : > { %15507 = vmatpush1.bf16.msra.mxu0 %v25572_v2  ;;  %23489 = vmatprep.subr.bf16.mxu1 %v25573_v19  ;;  %v15283_v2 = vrot.slane %v29599_v27, 1  ;;  %v25600_v19 = vld [vmem:[%s26455_s2 + $0x1138] sm:$0xff]  }
 0xb5f   : > { %v23371_v11 = vpop.f32.mrb[48].mxu1  ;;  %15508 = vmatprep.subr.bf16.mxu0 %v26178_v12  ;;  %15826 = vmatprep.mubr.bf16.mxu1 %v15617_v43  ;;  %v15968_v45 = vrot.slane %v29606_v35, 3  ;;  %v25607_v43 = vld [vmem:[%s26455_s2 + $0x11c0] sm:$0xff]  }
 0xb60   : > { %v23372_v24 = vpop.f32.mrb[49].mxu1  ;;  %22066 = vmatprep.mubr.msk.bf16.mxu0 %vm9349_vm4, %v15291_v52 }
 0xb61   : > { %v29543_v3 = vadd.f32 %v23372_v24, %v23371_v11  ;;  %v23374_v4 = vpop.f32.mrb[50].mxu1  ;;  %23490 = vmatpush3.bf16.msra.mxu1 %v25574_v21  ;;  %v15284_v21 = vsel %vm9166_vm2, %v15283_v2, %v15282_v63  ;;  %v25608_v11 = vld [vmem:[%s26455_s2 + $0x1180] sm:$0xff]   ;;  %v25610_v24 = vld [vmem:[%s26455_s2 + $0x11c8] sm:$0xff]  }
 0xb62   : > { %v23375_v6 = vpop.f32.mrb[51].mxu1  ;;  %15509 = vmatpush1.bf16.msra.mxu0 %v25575_v53  ;;  %23491 = vmatprep.subr.bf16.mxu1 %v25576_v57  ;;  %v25606_v53 = vld [vmem:[%s26455_s2 + $0x1140] sm:$0xff]   ;;  %v15290_v52 = vpack.c.b16 %v15284_v21, %v15284_v21  ;;  %v25609_v4 = vld [vmem:[%s26455_s2 + $0x1148] sm:$0xff]  }
 0xb63   : > { %15510 = vmatprep.subr.bf16.mxu0 %v26178_v12  ;;  %v25630_v63 = vld [vmem:[%s26455_s2 + $0x12a0] sm:$0xff]   ;;  %v25637_v21 = vld [vmem:[%s26455_s2 + $0x12a8] sm:$0xff]  }
 0xb65   : > { %23492 = vmatpush3.bf16.msra.mxu1 %v25577_v22 }
 0xb66   : > { %15511 = vmatpush1.bf16.msra.mxu0 %v25578_v55  ;;  %23493 = vmatprep.subr.bf16.mxu1 %v25579_v5  ;;  %v25611_v55 = vld [vmem:[%s26455_s2 + $0x1188] sm:$0xff]   ;;  %v25613_v5 = vld [vmem:[%s26455_s2 + $0x11d0] sm:$0xff]  }
 0xb67   : > { %15512 = vmatprep.subr.bf16.mxu0 %v26178_v12 }
 0xb69   : > { %23494 = vmatpush3.bf16.msra.mxu1 %v25580_v48 }
 0xb6a   : > { %15513 = vmatpush1.bf16.msra.mxu0 %v25581_v47  ;;  %23495 = vmatprep.subr.bf16.mxu1 %v25582_v58  ;;  %v25612_v58 = vld [vmem:[%s26455_s2 + $0x1150] sm:$0xff]  }
 0xb6b   : > { %15514 = vmatprep.subr.bf16.mxu0 %v26178_v12 }
 0xb6d   : > { %23496 = vmatpush3.bf16.msra.mxu1 %v25583_v20 }
 0xb6e   : > { %15515 = vmatpush1.bf16.msra.mxu0 %v25584_v30  ;;  %23497 = vmatprep.subr.bf16.mxu1 %v25585_v50 }
 0xb6f   : > { %15516 = vmatprep.subr.bf16.mxu0 %v26178_v12 }
 0xb70   : > { %v13484_v18 = vpop.f32.mrb[52].mxu0 }
 0xb71   : > { %v13485_v36 = vadd.f32 %v29478_v9, %v13484_v18  ;;  %23498 = vmatpush3.bf16.msra.mxu1 %v25586_v32  ;;  %v13486_v15 = vpop.f32.mrb[53].mxu0  ;;  %v15606_v9 = vsel %vm9166_vm2, %v15605_v33, %v15604_v42  ;;  %v25616_v42 = vld [vmem:[%s26455_s2 + $0x11d8] sm:$0xff]   ;;  %v25618_v33 = vld [vmem:[%s26455_s2 + $0x1160] sm:$0xff]  }
 0xb72   : > { %15517 = vmatpush1.bf16.msra.mxu0 %v25587_v61  ;;  %23499 = vmatprep.subr.bf16.mxu1 %v25588_v49  ;;  %v13487_v26 = vpop.f32.mrb[54].mxu0  ;;  %v15616_v46 = vpack.c.b16 %v15606_v9, %v15606_v9  ;;  %v25614_v49 = vld [vmem:[%s26455_s2 + $0x1190] sm:$0xff]   ;;  %v25623_v9 = vld [vmem:[%s26455_s2 + $0x11a8] sm:$0xff]  }
 0xb73   : > { %v29569_v38 = vadd.f32 %v13485_v36, %v29474_v56  ;;  %15518 = vmatprep.subr.bf16.mxu0 %v26178_v12  ;;  %v13488_v10 = vpop.f32.mrb[55].mxu0  ;;  %v29578_v56 = vld [vmem:[#allocation2 + $0x20] sm:$0x44]  ;;  %v25619_v36 = vld [vmem:[%s26455_s2 + $0x11e0] sm:$0xff]   ;;  %v29644_v15 = vld [vmem:[#allocation2 + $0x28] sm:$0x44] }
 0xb74   : > { %v22209_v7 = vcombine.high %v29578_v56, %v29578_v56  ;;  %v29647_v26 = vld [vmem:[#allocation2 + $0x68] sm:$0x44]  ;;  %v22208_v62 = vcombine.low %v29578_v56, %v29578_v56  ;;  %v25621_v10 = vld [vmem:[%s26455_s2 + $0x1168] sm:$0xff]  }
 0xb75   : > { %23500 = vmatpush3.bf16.msra.mxu1 %v25589_v14  ;;  %v22215_v1 = vcombine.high %v29647_v26, %v29647_v26  ;;  %v25624_v56 = vld [vmem:[%s26455_s2 + $0x1170] sm:$0xff]  }
 0xb76   : > { %15519 = vmatpush1.bf16.msra.mxu0 %v25590_v29  ;;  %23501 = vmatprep.subr.bf16.mxu1 %v25591_v54  ;;  %v29604_v17 = vunpack.c.l.b16 %v22209_v7  ;;  %v25615_v29 = vld [vmem:[%s26455_s2 + $0x1158] sm:$0xff]  }
 0xb77   : > { %15520 = vmatprep.subr.bf16.mxu0 %v26178_v12  ;;  %v25617_v54 = vld [vmem:[%s26455_s2 + $0x1198] sm:$0xff]   ;;  %v29672_v44 = vunpack.c.l.b16 %v22215_v1 }
 0xb78   : > { %v15967_v16 = vrot.slane %v29604_v17, 4  ;;  %v25628_v7 = vld [vmem:[%s26455_s2 + $0x11f8] sm:$0xff]  }
 0xb79   : > { %23502 = vmatpush3.bf16.msra.mxu1 %v25592_v31  ;;  %v25622_v31 = vld [vmem:[%s26455_s2 + $0x11e8] sm:$0xff]  }
 0xb7a   : > { %15521 = vmatpush1.bf16.msra.mxu0 %v25593_v60  ;;  %15834 = vmatprep.subr.bf16.mxu1 %v26178_v12  ;;  %v15969_v57 = vsel %vm9166_vm2, %v15968_v45, %v15967_v16  ;;  %v22211_v60 = vcombine.high %v29644_v15, %v29644_v15 }
 0xb7b   : > { %15522 = vmatprep.subr.bf16.mxu0 %v26178_v12  ;;  %v15977_v22 = vpack.c.b16 %v15969_v57, %v15969_v57 }
 0xb7c   : > { %15827 = vmatmul.mubr.bf16.vlgmr.msra.gmra.mrb[72].mxu1 %v15616_v46  ;;  %v29662_v46 = vunpack.c.l.b16 %v22208_v62  ;;  %v29670_v39 = vunpack.c.l.b16 %v22211_v60  ;;  %v25653_v62 = vld [vmem:[%s26455_s2 + $0x1290] sm:$0xff]   ;;  %v25655_v60 = vld [vmem:[%s26455_s2 + $0x12d8] sm:$0xff]  }
 0xb7d   : > { %15835 = vmatpush1.bf16.msra.mxu1 %v25594_v0  ;;  %22151 = vmatprep.mubr.msk.bf16.mxu1 %vm9349_vm4, %v15619_v37  ;;  %v25625_v37 = vld [vmem:[%s26455_s2 + $0x11f0] sm:$0xff]  }
 0xb7e   : > { %15523 = vmatpush1.bf16.msra.mxu0 %v25595_v13  ;;  %15836 = vmatprep.subr.bf16.mxu1 %v26178_v12  ;;  %v15611_v13 = vrot.slane %v29599_v27, 2  ;;  %v15964_v34 = vrot.slane %v29662_v46, 4  ;;  %v16295_v27 = vrot.slane %v29604_v17, 5  ;;  %v15973_v2 = vrot.slane %v29670_v39, 4  ;;  %v25635_v17 = vld [vmem:[%s26455_s2 + $0x1260] sm:$0xff]  }
 0xb7f   : > { %15524 = vmatprep.subr.bf16.mxu0 %v26178_v12 }
 0xb81   : > { %15837 = vmatpush1.bf16.msra.mxu1 %v25596_v40  ;;  %v25626_v40 = vld [vmem:[%s26455_s2 + $0x11b0] sm:$0xff]  }
 0xb82   : > { %15525 = vmatpush1.bf16.msra.mxu0 %v25597_v28  ;;  %15838 = vmatprep.subr.bf16.mxu1 %v26178_v12 }
 0xb83   : > { %15526 = vmatprep.subr.bf16.mxu0 %v26178_v12 }
 0xb85   : > { %15839 = vmatpush1.bf16.msra.mxu1 %v25598_v41  ;;  %v16296_v41 = vrot.slane %v29606_v35, 4 }
 0xb86   : > { %15527 = vmatpush1.bf16.msra.mxu0 %v25599_v51  ;;  %15840 = vmatprep.subr.bf16.mxu1 %v26178_v12  ;;  %v25629_v51 = vld [vmem:[%s26455_s2 + $0x11b8] sm:$0xff]  }
 0xb87   : > { %15528 = vmatprep.subr.bf16.mxu0 %v26178_v12 }
 0xb89   : > { %15841 = vmatpush1.bf16.msra.mxu1 %v25600_v19  ;;  %v15974_v19 = vrot.slane %v29672_v44, 3 }
 0xb8a   : > { %15529 = vmatpush1.bf16.msra.mxu0 %v25601_v25  ;;  %15842 = vmatprep.subr.bf16.mxu1 %v26178_v12  ;;  %v25636_v25 = vld [vmem:[%s26455_s2 + $0x1200] sm:$0xff]  }
 0xb8b   : > { %23509 = vmatprep.subr.bf16.mxu0 %v25607_v43  ;;  %v16297_v43 = vsel %vm9166_vm2, %v16296_v41, %v16295_v27  ;;  %v15975_v57 = vsel %vm9166_vm2, %v15974_v19, %v15973_v2  ;;  %v22214_v27 = vcombine.low %v29647_v26, %v29647_v26 }
 0xb8d   : > { %15539 = vmatmul.mubr.bf16.vlgmr.msra.gmra.mrb[76].mxu0 %v15290_v52  ;;  %15843 = vmatpush1.bf16.msra.mxu1 %v25606_v53  ;;  %v25638_v52 = vld [vmem:[%s26455_s2 + $0x1268] sm:$0xff]   ;;  %v29757_v2 = vunpack.c.l.b16 %v22214_v27 }
 0xb8e   : > { %23510 = vmatpush3.bf16.msra.mxu0 %v25608_v11  ;;  %15844 = vmatprep.subr.bf16.mxu1 %v26178_v12  ;;  %v16305_v11 = vpack.c.b16 %v16297_v43, %v16297_v43 }
 0xb8f   : > { %v13812_v6 = vpop.f32.mrb[52].mxu1  ;;  %23511 = vmatprep.subr.bf16.mxu0 %v25610_v24  ;;  %16186 = vmatprep.mubr.bf16.mxu0 %v15977_v22  ;;  %v25639_v24 = vld [vmem:[%s26455_s2 + $0x1208] sm:$0xff]   ;;  %v25640_v22 = vld [vmem:[%s26455_s2 + $0x12b0] sm:$0xff]  }
 0xb90   : > { %v13813_v48 = vadd.f32 %v29543_v3, %v13812_v6  ;;  %v13814_v47 = vpop.f32.mrb[53].mxu1  ;;  %v23393_v20 = vpop.f32.mrb[56].mxu0 }
 0xb91   : > { %v13815_v30 = vpop.f32.mrb[54].mxu1  ;;  %15845 = vmatpush1.bf16.msra.mxu1 %v25609_v4  ;;  %v23394_v50 = vpop.f32.mrb[57].mxu0  ;;  %v15979_v4 = vpack.c.b16 %v15975_v57, %v15975_v57  ;;  %v25665_v57 = vld [vmem:[%s26455_s2 + $0x1258] sm:$0xff]  }
 0xb92   : > { %v29632_v32 = vadd.f32 %v13813_v48, %v29569_v38  ;;  %v13816_v61 = vpop.f32.mrb[55].mxu1  ;;  %23512 = vmatpush3.bf16.msra.mxu0 %v25611_v55  ;;  %15846 = vmatprep.subr.bf16.mxu1 %v26178_v12  ;;  %v29636_v3 = vadd.f32 %v23394_v50, %v23393_v20  ;;  %v23396_v14 = vpop.f32.mrb[58].mxu0  ;;  %v22212_v38 = vcombine.low %v29580_v8, %v29580_v8  ;;  %v15610_v8 = vrot.slane %v29597_v23, 3  ;;  %v25627_v23 = vld [vmem:[%s26455_s2 + $0x1178] sm:$0xff]  }
 0xb93   : > { %23513 = vmatprep.subr.bf16.mxu0 %v25613_v5  ;;  %v23397_v18 = vpop.f32.mrb[59].mxu0  ;;  %v25641_v5 = vld [vmem:[%s26455_s2 + $0x1270] sm:$0xff]   ;;  %v25643_v30 = vld [vmem:[%s26455_s2 + $0x12b8] sm:$0xff]   ;;  %v25647_v14 = vld [vmem:[%s26455_s2 + $0x1280] sm:$0xff]  }
 0xb94   : > { %v29664_v0 = vunpack.c.l.b16 %v22212_v38  ;;  %v15612_v16 = vsel %vm9166_vm2, %v15611_v13, %v15610_v8  ;;  %v25644_v50 = vld [vmem:[%s26455_s2 + $0x1278] sm:$0xff]   ;;  %v25649_v18 = vld [vmem:[%s26455_s2 + $0x12c8] sm:$0xff]   ;;  %v16292_v38 = vrot.slane %v29662_v46, 5 }
 0xb95   : > { %15847 = vmatpush1.bf16.msra.mxu1 %v25612_v58  ;;  %v15618_v35 = vpack.c.b16 %v15612_v16, %v15612_v16  ;;  %v25642_v58 = vld [vmem:[%s26455_s2 + $0x1210] sm:$0xff]   ;;  %v25645_v61 = vld [vmem:[%s26455_s2 + $0x1218] sm:$0xff]  }
 0xb96   : > { %23514 = vmatpush3.bf16.msra.mxu0 %v25614_v49  ;;  %15848 = vmatprep.subr.bf16.mxu1 %v26178_v12  ;;  %v15965_v28 = vrot.slane %v29664_v0, 3  ;;  %v25646_v49 = vld [vmem:[%s26455_s2 + $0x12c0] sm:$0xff]   ;;  %v25657_v13 = vld [vmem:[%s26455_s2 + $0x1238] sm:$0xff]  }
 0xb97   : > { %23515 = vmatprep.subr.bf16.mxu0 %v25616_v42  ;;  %v25648_v42 = vld [vmem:[%s26455_s2 + $0x1220] sm:$0xff]  }
 0xb98   : > { %v15966_v45 = vsel %vm9166_vm2, %v15965_v28, %v15964_v34  ;;  %v29738_v34 = vld [vmem:[#allocation2 + $0x60] sm:$0x88]  ;;  %v25659_v28 = vld [vmem:[%s26455_s2 + $0x1240] sm:$0xff]  }
 0xb99   : > { %15849 = vmatpush1.bf16.msra.mxu1 %v25615_v29  ;;  %v15976_v53 = vpack.c.b16 %v15966_v45, %v15966_v45  ;;  %v25650_v29 = vld [vmem:[%s26455_s2 + $0x1288] sm:$0xff]   ;;  %v25662_v45 = vld [vmem:[%s26455_s2 + $0x12f0] sm:$0xff]  }
 0xb9a   : > { %23516 = vmatpush3.bf16.msra.mxu0 %v25617_v54  ;;  %15850 = vmatprep.subr.bf16.mxu1 %v26178_v12  ;;  %v25651_v54 = vld [vmem:[%s26455_s2 + $0x1228] sm:$0xff]  }
 0xb9b   : > { %23517 = vmatprep.subr.bf16.mxu0 %v25619_v36 }
 0xb9d   : > { %15851 = vmatpush1.bf16.msra.mxu1 %v25618_v33  ;;  %v25652_v33 = vld [vmem:[%s26455_s2 + $0x12d0] sm:$0xff]  }
 0xb9e   : > { %23518 = vmatpush3.bf16.msra.mxu0 %v25620_v59  ;;  %15852 = vmatprep.subr.bf16.mxu1 %v26178_v12 }
 0xb9f   : > { %23519 = vmatprep.subr.bf16.mxu0 %v25622_v31 }
 0xba1   : > { %15853 = vmatpush1.bf16.msra.mxu1 %v25621_v10  ;;  %v16293_v10 = vrot.slane %v29664_v0, 4  ;;  %v25656_v0 = vld [vmem:[%s26455_s2 + $0x1298] sm:$0xff]  }
 0xba2   : > { %23520 = vmatpush3.bf16.msra.mxu0 %v25623_v9  ;;  %15854 = vmatprep.subr.bf16.mxu1 %v26178_v12  ;;  %v25654_v9 = vld [vmem:[%s26455_s2 + $0x1230] sm:$0xff]  }
 0xba3   : > { %23521 = vmatprep.subr.bf16.mxu0 %v25625_v37  ;;  %v16302_v37 = vrot.slane %v29672_v44, 4  ;;  %v16294_v8 = vsel %vm9166_vm2, %v16293_v10, %v16292_v38  ;;  %v25679_v38 = vld [vmem:[%s26455_s2 + $0x1318] sm:$0xff]  }
 0xba4   : > { %v25681_v10 = vld [vmem:[%s26455_s2 + $0x1358] sm:$0xff]  }
 0xba5   : > { %15855 = vmatpush1.bf16.msra.mxu1 %v25624_v56  ;;  %v16301_v56 = vrot.slane %v29670_v39, 5  ;;  %v16304_v39 = vpack.c.b16 %v16294_v8, %v16294_v8 }
 0xba6   : > { %23522 = vmatpush3.bf16.msra.mxu0 %v25626_v40  ;;  %15856 = vmatprep.subr.bf16.mxu1 %v26178_v12 }
 0xba7   : > { %23523 = vmatprep.subr.bf16.mxu0 %v25628_v7  ;;  %v16303_v40 = vsel %vm9166_vm2, %v16302_v37, %v16301_v56  ;;  %v29736_v7 = vld [vmem:[#allocation2 + $0x20] sm:$0x88]  ;;  %v22390_v56 = vcombine.low %v29738_v34, %v29738_v34  ;;  %v29808_v37 = vld [vmem:[#allocation2 + $0x28] sm:$0x88] }
 0xba8   : > { %v16307_v44 = vpack.c.b16 %v16303_v40, %v16303_v40  ;;  %v22387_v41 = vcombine.high %v29736_v7, %v29736_v7  ;;  %v22389_v8 = vcombine.high %v29808_v37, %v29808_v37  ;;  %v25687_v40 = vld [vmem:[%s26455_s2 + $0x1368] sm:$0xff]  }
 0xba9   : > { %15857 = vmatpush1.bf16.msra.mxu1 %v25627_v23  ;;  %v22210_v23 = vcombine.low %v29644_v15, %v29644_v15  ;;  %v25661_v15 = vld [vmem:[%s26455_s2 + $0x1248] sm:$0xff]  }
 0xbaa   : > { %23524 = vmatpush3.bf16.msra.mxu0 %v25629_v51  ;;  %23531 = vmatprep.subr.bf16.mxu1 %v25630_v63  ;;  %v22391_v51 = vcombine.high %v29738_v34, %v29738_v34  ;;  %v25660_v63 = vld [vmem:[%s26455_s2 + $0x12e8] sm:$0xff]   ;;  %v29760_v19 = vunpack.c.l.b16 %v22387_v41  ;;  %v25690_v41 = vld [vmem:[%s26455_s2 + $0x1370] sm:$0xff]  }
 0xbab   : > { %16194 = vmatprep.subr.bf16.mxu0 %v26178_v12  ;;  %v29755_v26 = vunpack.c.l.b16 %v22210_v23  ;;  %v29828_v23 = vunpack.c.l.b16 %v22389_v8  ;;  %v25718_v8 = vld [vmem:[%s26455_s2 + $0x13f0] sm:$0xff]  }
 0xbac   : > { %15867 = vmatmul.mubr.bf16.vlgmr.msra.gmra.mrb[76].mxu1 %v15618_v35  ;;  %v29762_v16 = vunpack.c.l.b16 %v22391_v51 }
 0xbad   : > { %23532 = vmatpush3.bf16.msra.mxu1 %v25635_v17  ;;  %16187 = vmatmul.mubr.bf16.vlgmr.msra.gmra.mrb[80].mxu0 %v15976_v53  ;;  %v25663_v17 = vld [vmem:[%s26455_s2 + $0x1250] sm:$0xff]   ;;  %v15970_v35 = vrot.slane %v29755_v26, 4  ;;  %v25664_v53 = vld [vmem:[%s26455_s2 + $0x12f8] sm:$0xff]   ;;  %v16298_v34 = vrot.slane %v29755_v26, 5  ;;  %v16983_v26 = vrot.slane %v29760_v19, 7 }
 0xbae   : > { %16195 = vmatpush1.bf16.msra.mxu0 %v25636_v25  ;;  %23533 = vmatprep.subr.bf16.mxu1 %v25637_v21  ;;  %v15971_v25 = vrot.slane %v29757_v2, 3  ;;  %v16655_v21 = vrot.slane %v29760_v19, 6  ;;  %v16656_v43 = vrot.slane %v29762_v16, 5 }
 0xbaf   : > { %v23415_v55 = vpop.f32.mrb[56].mxu1  ;;  %16196 = vmatprep.subr.bf16.mxu0 %v26178_v12  ;;  %16514 = vmatprep.mubr.bf16.mxu1 %v16305_v11  ;;  %v25671_v11 = vld [vmem:[%s26455_s2 + $0x1380] sm:$0xff]  }
 0xbb0   : > { %v23416_v6 = vpop.f32.mrb[57].mxu1  ;;  %22244 = vmatprep.mubr.msk.bf16.mxu0 %vm9349_vm4, %v15979_v4  ;;  %v25670_v4 = vld [vmem:[%s26455_s2 + $0x1300] sm:$0xff]  }
 0xbb1   : > { %v29701_v48 = vadd.f32 %v23416_v6, %v23415_v55  ;;  %v23418_v47 = vpop.f32.mrb[58].mxu1  ;;  %23534 = vmatpush3.bf16.msra.mxu1 %v25638_v52  ;;  %v15972_v52 = vsel %vm9166_vm2, %v15971_v25, %v15970_v35  ;;  %v25672_v55 = vld [vmem:[%s26455_s2 + $0x1340] sm:$0xff]   ;;  %v25674_v6 = vld [vmem:[%s26455_s2 + $0x1388] sm:$0xff]   ;;  %v16661_v35 = vrot.slane %v29828_v23, 6 }
 0xbb2   : > { %v23419_v20 = vpop.f32.mrb[59].mxu1  ;;  %16197 = vmatpush1.bf16.msra.mxu0 %v25639_v24  ;;  %23535 = vmatprep.subr.bf16.mxu1 %v25640_v22  ;;  %v16657_v24 = vsel %vm9166_vm2, %v16656_v43, %v16655_v21  ;;  %v15978_v22 = vpack.c.b16 %v15972_v52, %v15972_v52  ;;  %v25673_v47 = vld [vmem:[%s26455_s2 + $0x1308] sm:$0xff]   ;;  %v25693_v21 = vld [vmem:[%s26455_s2 + $0x1378] sm:$0xff]   ;;  %v25694_v43 = vld [vmem:[%s26455_s2 + $0x1460] sm:$0xff]  }
 0xbb3   : > { %16198 = vmatprep.subr.bf16.mxu0 %v26178_v12 }
 0xbb5   : > { %23536 = vmatpush3.bf16.msra.mxu1 %v25641_v5  ;;  %v16665_v5 = vpack.c.b16 %v16657_v24, %v16657_v24  ;;  %v25700_v24 = vld [vmem:[%s26455_s2 + $0x13c0] sm:$0xff]  }
 0xbb6   : > { %16199 = vmatpush1.bf16.msra.mxu0 %v25642_v58  ;;  %23537 = vmatprep.subr.bf16.mxu1 %v25643_v30  ;;  %v25675_v58 = vld [vmem:[%s26455_s2 + $0x1348] sm:$0xff]   ;;  %v25677_v30 = vld [vmem:[%s26455_s2 + $0x1390] sm:$0xff]  }
 0xbb7   : > { %16200 = vmatprep.subr.bf16.mxu0 %v26178_v12 }
 0xbb9   : > { %23538 = vmatpush3.bf16.msra.mxu1 %v25644_v50 }
 0xbba   : > { %16201 = vmatpush1.bf16.msra.mxu0 %v25645_v61  ;;  %23539 = vmatprep.subr.bf16.mxu1 %v25646_v49 }
 0xbbb   : > { %16202 = vmatprep.subr.bf16.mxu0 %v26178_v12 }
 0xbbd   : > { %23540 = vmatpush3.bf16.msra.mxu1 %v25647_v14 }
 0xbbe   : > { %16203 = vmatpush1.bf16.msra.mxu0 %v25648_v42  ;;  %23541 = vmatprep.subr.bf16.mxu1 %v25649_v18  ;;  %v25676_v42 = vld [vmem:[%s26455_s2 + $0x1310] sm:$0xff]  }
 0xbbf   : > { %16204 = vmatprep.subr.bf16.mxu0 %v26178_v12 }
 0xbc0   : > { %v14172_v36 = vpop.f32.mrb[60].mxu0 }
 0xbc1   : > { %v14173_v59 = vadd.f32 %v29636_v3, %v14172_v36  ;;  %23542 = vmatpush3.bf16.msra.mxu1 %v25650_v29  ;;  %v14174_v31 = vpop.f32.mrb[61].mxu0 }
 0xbc2   : > { %16205 = vmatpush1.bf16.msra.mxu0 %v25651_v54  ;;  %23543 = vmatprep.subr.bf16.mxu1 %v25652_v33  ;;  %v14175_v1 = vpop.f32.mrb[62].mxu0  ;;  %v25678_v33 = vld [vmem:[%s26455_s2 + $0x1350] sm:$0xff]   ;;  %v25683_v31 = vld [vmem:[%s26455_s2 + $0x13a0] sm:$0xff]  }
 0xbc3   : > { %v29727_v3 = vadd.f32 %v14173_v59, %v29632_v32  ;;  %16206 = vmatprep.subr.bf16.mxu0 %v26178_v12  ;;  %v14176_v46 = vpop.f32.mrb[63].mxu0  ;;  %v25658_v32 = vld [vmem:[%s26455_s2 + $0x12e0] sm:$0xff]   ;;  %v25680_v59 = vld [vmem:[%s26455_s2 + $0x1398] sm:$0xff]   ;;  %v22386_v1 = vcombine.low %v29736_v7, %v29736_v7  ;;  %v25688_v7 = vld [vmem:[%s26455_s2 + $0x1330] sm:$0xff]  }
 0xbc4   : > { %v25686_v46 = vld [vmem:[%s26455_s2 + $0x13a8] sm:$0xff]  }
 0xbc5   : > { %23544 = vmatpush3.bf16.msra.mxu1 %v25653_v62 }
 0xbc6   : > { %16207 = vmatpush1.bf16.msra.mxu0 %v25654_v9  ;;  %23545 = vmatprep.subr.bf16.mxu1 %v25655_v60  ;;  %v25682_v9 = vld [vmem:[%s26455_s2 + $0x1320] sm:$0xff]  }
 0xbc7   : > { %16208 = vmatprep.subr.bf16.mxu0 %v26178_v12  ;;  %v25684_v60 = vld [vmem:[%s26455_s2 + $0x1360] sm:$0xff]  }
 0xbc9   : > { %23546 = vmatpush3.bf16.msra.mxu1 %v25656_v0  ;;  %v25685_v0 = vld [vmem:[%s26455_s2 + $0x1328] sm:$0xff]  }
 0xbca   : > { %16209 = vmatpush1.bf16.msra.mxu0 %v25657_v13  ;;  %16522 = vmatprep.subr.bf16.mxu1 %v26178_v12 }
 0xbcb   : > { %16210 = vmatprep.subr.bf16.mxu0 %v26178_v12 }
 0xbcc   : > { %16515 = vmatmul.mubr.bf16.vlgmr.msra.gmra.mrb[80].mxu1 %v16304_v39  ;;  %v29820_v39 = vunpack.c.l.b16 %v22386_v1  ;;  %v25717_v1 = vld [vmem:[%s26455_s2 + $0x1450] sm:$0xff]  }
 0xbcd   : > { %16523 = vmatpush1.bf16.msra.mxu1 %v25658_v32  ;;  %22329 = vmatprep.mubr.msk.bf16.mxu1 %vm9349_vm4, %v16307_v44  ;;  %v29822_v32 = vunpack.c.l.b16 %v22390_v56  ;;  %v25689_v44 = vld [vmem:[%s26455_s2 + $0x13b0] sm:$0xff]  }
 0xbce   : > { %16211 = vmatpush1.bf16.msra.mxu0 %v25659_v28  ;;  %16524 = vmatprep.subr.bf16.mxu1 %v26178_v12  ;;  %v16299_v28 = vrot.slane %v29757_v2, 4  ;;  %v16652_v51 = vrot.slane %v29820_v39, 6  ;;  %v16984_v2 = vrot.slane %v29762_v16, 6  ;;  %v16980_v56 = vrot.slane %v29820_v39, 7 }
 0xbcf   : > { %16212 = vmatprep.subr.bf16.mxu0 %v26178_v12 }
 0xbd0   : > { %v16985_v16 = vsel %vm9166_vm2, %v16984_v2, %v16983_v26 }
 0xbd1   : > { %16525 = vmatpush1.bf16.msra.mxu1 %v25660_v63  ;;  %v16653_v63 = vrot.slane %v29822_v32, 5 }
 0xbd2   : > { %16213 = vmatpush1.bf16.msra.mxu0 %v25661_v15  ;;  %16526 = vmatprep.subr.bf16.mxu1 %v26178_v12  ;;  %v25692_v15 = vld [vmem:[%s26455_s2 + $0x13b8] sm:$0xff]  }
 0xbd3   : > { %16214 = vmatprep.subr.bf16.mxu0 %v26178_v12  ;;  %v16654_v19 = vsel %vm9166_vm2, %v16653_v63, %v16652_v51  ;;  %v29894_v51 = vld [vmem:[#allocation2 + $0x70] sm:$0x11] }
 0xbd4   : > { %v16664_v52 = vpack.c.b16 %v16654_v19, %v16654_v19  ;;  %v25723_v63 = vld [vmem:[%s26455_s2 + $0x1400] sm:$0xff]   ;;  %v22569_v2 = vcombine.high %v29894_v51, %v29894_v51  ;;  %v25727_v19 = vld [vmem:[%s26455_s2 + $0x1410] sm:$0xff]  }
 0xbd5   : > { %16527 = vmatpush1.bf16.msra.mxu1 %v25662_v45  ;;  %v25691_v45 = vld [vmem:[%s26455_s2 + $0x1338] sm:$0xff]  }
 0xbd6   : > { %16215 = vmatpush1.bf16.msra.mxu0 %v25663_v17  ;;  %16528 = vmatprep.subr.bf16.mxu1 %v26178_v12  ;;  %v16300_v17 = vsel %vm9166_vm2, %v16299_v28, %v16298_v34  ;;  %v25721_v28 = vld [vmem:[%s26455_s2 + $0x13f8] sm:$0xff]  }
 0xbd7   : > { %16216 = vmatprep.subr.bf16.mxu0 %v26178_v12 }
 0xbd9   : > { %16529 = vmatpush1.bf16.msra.mxu1 %v25664_v53  ;;  %v16306_v53 = vpack.c.b16 %v16300_v17, %v16300_v17  ;;  %v29907_v17 = vld [vmem:[#allocation2 + $0x30] sm:$0x11] }
 0xbda   : > { %16217 = vmatpush1.bf16.msra.mxu0 %v25665_v57  ;;  %16530 = vmatprep.subr.bf16.mxu1 %v26178_v12  ;;  %v25699_v57 = vld [vmem:[%s26455_s2 + $0x1420] sm:$0xff]  }
 0xbdb   : > { %23553 = vmatprep.subr.bf16.mxu0 %v25671_v11 }
 0xbdd   : > { %16227 = vmatmul.mubr.bf16.vlgmr.msra.gmra.mrb[84].mxu0 %v15978_v22  ;;  %16531 = vmatpush1.bf16.msra.mxu1 %v25670_v4  ;;  %v25701_v22 = vld [vmem:[%s26455_s2 + $0x1468] sm:$0xff]   ;;  %v16993_v4 = vpack.c.b16 %v16985_v16, %v16985_v16 }
 0xbde   : > { %23554 = vmatpush3.bf16.msra.mxu0 %v25672_v55  ;;  %16532 = vmatprep.subr.bf16.mxu1 %v26178_v12 }
 0xbdf   : > { %v14500_v20 = vpop.f32.mrb[60].mxu1  ;;  %23555 = vmatprep.subr.bf16.mxu0 %v25674_v6  ;;  %16874 = vmatprep.mubr.bf16.mxu0 %v16665_v5  ;;  %v25702_v6 = vld [vmem:[%s26455_s2 + $0x1428] sm:$0xff]  }
 0xbe0   : > { %v14501_v50 = vadd.f32 %v29701_v48, %v14500_v20  ;;  %v14502_v61 = vpop.f32.mrb[61].mxu1  ;;  %v23437_v49 = vpop.f32.mrb[64].mxu0  ;;  %v25703_v5 = vld [vmem:[%s26455_s2 + $0x13c8] sm:$0xff]  }
 0xbe1   : > { %v14503_v14 = vpop.f32.mrb[62].mxu1  ;;  %16533 = vmatpush1.bf16.msra.mxu1 %v25673_v47  ;;  %v23438_v18 = vpop.f32.mrb[65].mxu0  ;;  %v25704_v47 = vld [vmem:[%s26455_s2 + $0x1470] sm:$0xff]  }
 0xbe2   : > { %v29790_v29 = vadd.f32 %v14501_v50, %v29727_v3  ;;  %v14504_v54 = vpop.f32.mrb[63].mxu1  ;;  %23556 = vmatpush3.bf16.msra.mxu0 %v25675_v58  ;;  %16534 = vmatprep.subr.bf16.mxu1 %v26178_v12  ;;  %v29794_v36 = vadd.f32 %v23438_v18, %v23437_v49  ;;  %v23440_v48 = vpop.f32.mrb[66].mxu0  ;;  %v29810_v3 = vld [vmem:[#allocation2 + $0x68] sm:$0x88] }
 0xbe3   : > { %23557 = vmatprep.subr.bf16.mxu0 %v25677_v30  ;;  %v23441_v62 = vpop.f32.mrb[67].mxu0  ;;  %v22393_v13 = vcombine.high %v29810_v3, %v29810_v3  ;;  %v25705_v61 = vld [vmem:[%s26455_s2 + $0x1430] sm:$0xff]   ;;  %v25708_v18 = vld [vmem:[%s26455_s2 + $0x1438] sm:$0xff]   ;;  %v25711_v48 = vld [vmem:[%s26455_s2 + $0x1440] sm:$0xff]   ;;  %v22392_v26 = vcombine.low %v29810_v3, %v29810_v3 }
 0xbe4   : > { %v25706_v14 = vld [vmem:[%s26455_s2 + $0x13d0] sm:$0xff]   ;;  %v25709_v54 = vld [vmem:[%s26455_s2 + $0x13d8] sm:$0xff]   ;;  %v25713_v62 = vld [vmem:[%s26455_s2 + $0x1488] sm:$0xff]  }
 0xbe5   : > { %16535 = vmatpush1.bf16.msra.mxu1 %v25676_v42  ;;  %v29830_v27 = vunpack.c.l.b16 %v22393_v13  ;;  %v25707_v42 = vld [vmem:[%s26455_s2 + $0x1478] sm:$0xff]   ;;  %v29913_v3 = vunpack.c.l.b16 %v22392_v26 }
 0xbe6   : > { %23558 = vmatpush3.bf16.msra.mxu0 %v25678_v33  ;;  %16536 = vmatprep.subr.bf16.mxu1 %v26178_v12  ;;  %v25710_v33 = vld [vmem:[%s26455_s2 + $0x1480] sm:$0xff]   ;;  %v25719_v13 = vld [vmem:[%s26455_s2 + $0x1498] sm:$0xff]  }
 0xbe7   : > { %23559 = vmatprep.subr.bf16.mxu0 %v25680_v59  ;;  %v16662_v25 = vrot.slane %v29830_v27, 5  ;;  %v25712_v59 = vld [vmem:[%s26455_s2 + $0x13e0] sm:$0xff]   ;;  %v16659_v16 = vrot.slane %v29913_v3, 5 }
 0xbe9   : > { %16537 = vmatpush1.bf16.msra.mxu1 %v25679_v38  ;;  %v16663_v11 = vsel %vm9166_vm2, %v16662_v25, %v16661_v35  ;;  %v25714_v38 = vld [vmem:[%s26455_s2 + $0x1448] sm:$0xff]   ;;  %v22565_v25 = vcombine.high %v29907_v17, %v29907_v17 }
 0xbea   : > { %23560 = vmatpush3.bf16.msra.mxu0 %v25681_v10  ;;  %16538 = vmatprep.subr.bf16.mxu1 %v26178_v12  ;;  %v16667_v55 = vpack.c.b16 %v16663_v11, %v16663_v11  ;;  %v25715_v10 = vld [vmem:[%s26455_s2 + $0x13e8] sm:$0xff]   ;;  %v25728_v11 = vld [vmem:[%s26455_s2 + $0x14b8] sm:$0xff]  }
 0xbeb   : > { %23561 = vmatprep.subr.bf16.mxu0 %v25683_v31  ;;  %v25716_v31 = vld [vmem:[%s26455_s2 + $0x1490] sm:$0xff]  }
 0xbed   : > { %16539 = vmatpush1.bf16.msra.mxu1 %v25682_v9 }
 0xbee   : > { %23562 = vmatpush3.bf16.msra.mxu0 %v25684_v60  ;;  %16540 = vmatprep.subr.bf16.mxu1 %v26178_v12 }
 0xbef   : > { %23563 = vmatprep.subr.bf16.mxu0 %v25686_v46  ;;  %v16981_v46 = vrot.slane %v29822_v32, 6  ;;  %v25720_v32 = vld [vmem:[%s26455_s2 + $0x1458] sm:$0xff]  }
 0xbf1   : > { %16541 = vmatpush1.bf16.msra.mxu1 %v25685_v0  ;;  %v16982_v34 = vsel %vm9166_vm2, %v16981_v46, %v16980_v56  ;;  %v25745_v56 = vld [vmem:[%s26455_s2 + $0x1518] sm:$0xff]   ;;  %v25747_v46 = vld [vmem:[%s26455_s2 + $0x1560] sm:$0xff]  }
 0xbf2   : > { %23564 = vmatpush3.bf16.msra.mxu0 %v25687_v40  ;;  %16542 = vmatprep.subr.bf16.mxu1 %v26178_v12 }
 0xbf3   : > { %23565 = vmatprep.subr.bf16.mxu0 %v25689_v44  ;;  %v16989_v44 = vrot.slane %v29828_v23, 7  ;;  %v16992_v23 = vpack.c.b16 %v16982_v34, %v16982_v34 }
 0xbf5   : > { %16543 = vmatpush1.bf16.msra.mxu1 %v25688_v7  ;;  %v16990_v7 = vrot.slane %v29830_v27, 6 }
 0xbf6   : > { %23566 = vmatpush3.bf16.msra.mxu0 %v25690_v41  ;;  %16544 = vmatprep.subr.bf16.mxu1 %v26178_v12 }
 0xbf7   : > { %23567 = vmatprep.subr.bf16.mxu0 %v25692_v15  ;;  %v16991_v41 = vsel %vm9166_vm2, %v16990_v7, %v16989_v44  ;;  %v22388_v15 = vcombine.low %v29808_v37, %v29808_v37  ;;  %v25725_v37 = vld [vmem:[%s26455_s2 + $0x1408] sm:$0xff]  }
 0xbf8   : > { %v16995_v27 = vpack.c.b16 %v16991_v41, %v16991_v41  ;;  %v25750_v44 = vld [vmem:[%s26455_s2 + $0x1568] sm:$0xff]   ;;  %v25753_v41 = vld [vmem:[%s26455_s2 + $0x1570] sm:$0xff]  }
 0xbf9   : > { %16545 = vmatpush1.bf16.msra.mxu1 %v25691_v45  ;;  %v25724_v45 = vld [vmem:[%s26455_s2 + $0x14a8] sm:$0xff]   ;;  %v29911_v35 = vunpack.c.l.b16 %v22388_v15  ;;  %v25754_v15 = vld [vmem:[%s26455_s2 + $0x1530] sm:$0xff]  }
 0xbfa   : > { %23568 = vmatpush3.bf16.msra.mxu0 %v25693_v21  ;;  %23575 = vmatprep.subr.bf16.mxu1 %v25694_v43  ;;  %v29918_v21 = vunpack.c.l.b16 %v22569_v2  ;;  %v25726_v43 = vld [vmem:[%s26455_s2 + $0x14b0] sm:$0xff]   ;;  %v25749_v7 = vld [vmem:[%s26455_s2 + $0x14e8] sm:$0xff]  }
 0xbfb   : > { %16882 = vmatprep.subr.bf16.mxu0 %v26178_v12 }
 0xbfc   : > { %16555 = vmatmul.mubr.bf16.vlgmr.msra.gmra.mrb[84].mxu1 %v16306_v53  ;;  %v16658_v53 = vrot.slane %v29911_v35, 6 }
 0xbfd   : > { %23576 = vmatpush3.bf16.msra.mxu1 %v25699_v57  ;;  %16875 = vmatmul.mubr.bf16.vlgmr.msra.gmra.mrb[88].mxu0 %v16664_v52  ;;  %v29926_v57 = vunpack.c.l.b16 %v22565_v25  ;;  %v17342_v52 = vrot.slane %v29918_v21, 7 }
 0xbfe   : > { %16883 = vmatpush1.bf16.msra.mxu0 %v25700_v24  ;;  %23577 = vmatprep.subr.bf16.mxu1 %v25701_v22  ;;  %v25729_v24 = vld [vmem:[%s26455_s2 + $0x1418] sm:$0xff]   ;;  %v16660_v22 = vsel %vm9166_vm2, %v16659_v16, %v16658_v53 }
 0xbff   : > { %v23459_v58 = vpop.f32.mrb[64].mxu1  ;;  %16884 = vmatprep.subr.bf16.mxu0 %v26178_v12  ;;  %17202 = vmatprep.mubr.bf16.mxu1 %v16993_v4  ;;  %v25735_v4 = vld [vmem:[%s26455_s2 + $0x1540] sm:$0xff]  }
 0xc00   : > { %v23460_v20 = vpop.f32.mrb[65].mxu1  ;;  %22422 = vmatprep.mubr.msk.bf16.mxu0 %vm9349_vm4, %v16667_v55  ;;  %v17343_v55 = vsel %vm9166_vm2, %v17342_v52, %v29926_v57  ;;  %v25763_v52 = vld [vmem:[%s26455_s2 + $0x15e0] sm:$0xff]  }
 0xc01   : > { %v29858_v30 = vadd.f32 %v23460_v20, %v23459_v58  ;;  %v23462_v50 = vpop.f32.mrb[66].mxu1  ;;  %23578 = vmatpush3.bf16.msra.mxu1 %v25702_v6  ;;  %v16666_v6 = vpack.c.b16 %v16660_v22, %v16660_v22  ;;  %v25738_v58 = vld [vmem:[%s26455_s2 + $0x1548] sm:$0xff]   ;;  %v17349_v20 = vpack.c.b16 %v17343_v55, %v17343_v55  ;;  %v25764_v22 = vld [vmem:[%s26455_s2 + $0x1580] sm:$0xff]  }
 0xc02   : > { %v23463_v49 = vpop.f32.mrb[67].mxu1  ;;  %16885 = vmatpush1.bf16.msra.mxu0 %v25703_v5  ;;  %23579 = vmatprep.subr.bf16.mxu1 %v25704_v47  ;;  %v25734_v5 = vld [vmem:[%s26455_s2 + $0x14c0] sm:$0xff]   ;;  %v25737_v50 = vld [vmem:[%s26455_s2 + $0x14c8] sm:$0xff]  }
 0xc03   : > { %16886 = vmatprep.subr.bf16.mxu0 %v26178_v12  ;;  %v25736_v47 = vld [vmem:[%s26455_s2 + $0x1500] sm:$0xff]  }
 0xc05   : > { %23580 = vmatpush3.bf16.msra.mxu1 %v25705_v61  ;;  %v25739_v61 = vld [vmem:[%s26455_s2 + $0x1508] sm:$0xff]  }
 0xc06   : > { %16887 = vmatpush1.bf16.msra.mxu0 %v25706_v14  ;;  %23581 = vmatprep.subr.bf16.mxu1 %v25707_v42  ;;  %v25741_v14 = vld [vmem:[%s26455_s2 + $0x1550] sm:$0xff]  }
 0xc07   : > { %16888 = vmatprep.subr.bf16.mxu0 %v26178_v12 }
 0xc09   : > { %23582 = vmatpush3.bf16.msra.mxu1 %v25708_v18 }
 0xc0a   : > { %16889 = vmatpush1.bf16.msra.mxu0 %v25709_v54  ;;  %23583 = vmatprep.subr.bf16.mxu1 %v25710_v33 }
 0xc0b   : > { %16890 = vmatprep.subr.bf16.mxu0 %v26178_v12 }
 0xc0d   : > { %23584 = vmatpush3.bf16.msra.mxu1 %v25711_v48  ;;  %v25740_v48 = vld [vmem:[%s26455_s2 + $0x14d0] sm:$0xff]  }
 0xc0e   : > { %16891 = vmatpush1.bf16.msra.mxu0 %v25712_v59  ;;  %23585 = vmatprep.subr.bf16.mxu1 %v25713_v62 }
 0xc0f   : > { %16892 = vmatprep.subr.bf16.mxu0 %v26178_v12 }
 0xc10   : > { %v14856_v9 = vpop.f32.mrb[68].mxu0 }
 0xc11   : > { %v14857_v60 = vadd.f32 %v29794_v36, %v14856_v9  ;;  %23586 = vmatpush3.bf16.msra.mxu1 %v25714_v38  ;;  %v14858_v0 = vpop.f32.mrb[69].mxu0  ;;  %v25744_v9 = vld [vmem:[%s26455_s2 + $0x1558] sm:$0xff]  }
 0xc12   : > { %16893 = vmatpush1.bf16.msra.mxu0 %v25715_v10  ;;  %23587 = vmatprep.subr.bf16.mxu1 %v25716_v31  ;;  %v14859_v40 = vpop.f32.mrb[70].mxu0  ;;  %v25742_v10 = vld [vmem:[%s26455_s2 + $0x1510] sm:$0xff]   ;;  %v25746_v0 = vld [vmem:[%s26455_s2 + $0x14e0] sm:$0xff]  }
 0xc13   : > { %v29885_v36 = vadd.f32 %v14857_v60, %v29790_v29  ;;  %16894 = vmatprep.subr.bf16.mxu0 %v26178_v12  ;;  %v14860_v39 = vpop.f32.mrb[71].mxu0  ;;  %v25722_v29 = vld [vmem:[%s26455_s2 + $0x14a0] sm:$0xff]  }
 0xc14   : > { %v29964_v40 = vld [vmem:[#allocation2 + $0x78] sm:$0x11] }
 0xc15   : > { %23588 = vmatpush3.bf16.msra.mxu1 %v25717_v1  ;;  %v25743_v1 = vld [vmem:[%s26455_s2 + $0x14d8] sm:$0xff]   ;;  %v25751_v39 = vld [vmem:[%s26455_s2 + $0x1528] sm:$0xff]  }
 0xc16   : > { %16895 = vmatpush1.bf16.msra.mxu0 %v25718_v8  ;;  %23589 = vmatprep.subr.bf16.mxu1 %v25719_v13  ;;  %v25748_v8 = vld [vmem:[%s26455_s2 + $0x1520] sm:$0xff]   ;;  %v22568_v13 = vcombine.low %v29894_v51, %v29894_v51 }
 0xc17   : > { %16896 = vmatprep.subr.bf16.mxu0 %v26178_v12 }
 0xc18   : > { %v29974_v34 = vunpack.c.l.b16 %v22568_v13  ;;  %v25782_v13 = vld [vmem:[%s26455_s2 + $0x15b0] sm:$0xff]  }
 0xc19   : > { %23590 = vmatpush3.bf16.msra.mxu1 %v25720_v32  ;;  %v22564_v32 = vcombine.low %v29907_v17, %v29907_v17  ;;  %v17666_v17 = vrot.slane %v29926_v57, 1 }
 0xc1a   : > { %16897 = vmatpush1.bf16.msra.mxu0 %v25721_v28  ;;  %17210 = vmatprep.subr.bf16.mxu1 %v26178_v12  ;;  %v29976_v28 = vld [vmem:[#allocation2 + $0x38] sm:$0x11]  ;;  %v17340_v2 = vrot.slane %v29974_v34, 7 }
 0xc1b   : > { %16898 = vmatprep.subr.bf16.mxu0 %v26178_v12  ;;  %v22567_v51 = vcombine.high %v29976_v28, %v29976_v28  ;;  %v29988_v26 = vunpack.c.l.b16 %v22564_v32  ;;  %v17667_v57 = vsel %vm9166_vm2, %v29918_v21, %v17666_v17  ;;  %v25766_v21 = vld [vmem:[%s26455_s2 + $0x15e8] sm:$0xff]   ;;  %v25784_v32 = vld [vmem:[%s26455_s2 + $0x1618] sm:$0xff]  }
 0xc1c   : > { %17203 = vmatmul.mubr.bf16.vlgmr.msra.gmra.mrb[88].mxu1 %v16992_v23  ;;  %v25752_v23 = vld [vmem:[%s26455_s2 + $0x14f0] sm:$0xff]   ;;  %v17673_v55 = vpack.c.b16 %v17667_v57, %v17667_v57  ;;  %v25788_v17 = vld [vmem:[%s26455_s2 + $0x1668] sm:$0xff]  }
 0xc1d   : > { %17211 = vmatpush1.bf16.msra.mxu1 %v25722_v29  ;;  %22507 = vmatprep.mubr.msk.bf16.mxu1 %vm9349_vm4, %v16995_v27  ;;  %v16986_v29 = vrot.slane %v29911_v35, 7  ;;  %v16987_v27 = vrot.slane %v29913_v3, 6  ;;  %v29995_v3 = vunpack.c.l.b16 %v22567_v51  ;;  %v17341_v53 = vsel %vm9166_vm2, %v17340_v2, %v29988_v26 }
 0xc1e   : > { %16899 = vmatpush1.bf16.msra.mxu0 %v25723_v63  ;;  %17212 = vmatprep.subr.bf16.mxu1 %v26178_v12  ;;  %v22570_v2 = vcombine.low %v29964_v40, %v29964_v40 }
 0xc1f   : > { %16900 = vmatprep.subr.bf16.mxu0 %v26178_v12  ;;  %v16988_v35 = vsel %vm9166_vm2, %v16987_v27, %v16986_v29  ;;  %v25786_v27 = vld [vmem:[%s26455_s2 + $0x1660] sm:$0xff]  }
 0xc20   : > { %v16994_v16 = vpack.c.b16 %v16988_v35, %v16988_v35  ;;  %v30071_v35 = vunpack.c.l.b16 %v22570_v2  ;;  %v25818_v2 = vld [vmem:[%s26455_s2 + $0x16f0] sm:$0xff]  }
 0xc21   : > { %17213 = vmatpush1.bf16.msra.mxu1 %v25724_v45  ;;  %v25756_v45 = vld [vmem:[%s26455_s2 + $0x1578] sm:$0xff]  }
 0xc22   : > { %16901 = vmatpush1.bf16.msra.mxu0 %v25725_v37  ;;  %17214 = vmatprep.subr.bf16.mxu1 %v26178_v12  ;;  %v25755_v37 = vld [vmem:[%s26455_s2 + $0x14f8] sm:$0xff]  }
 0xc23   : > { %16902 = vmatprep.subr.bf16.mxu0 %v26178_v12 }
 0xc25   : > { %17215 = vmatpush1.bf16.msra.mxu1 %v25726_v43  ;;  %v25757_v43 = vld [vmem:[%s26455_s2 + $0x1538] sm:$0xff]  }
 0xc26   : > { %16903 = vmatpush1.bf16.msra.mxu0 %v25727_v19  ;;  %17216 = vmatprep.subr.bf16.mxu1 %v26178_v12  ;;  %v25758_v19 = vld [vmem:[%s26455_s2 + $0x1620] sm:$0xff]  }
 0xc27   : > { %16904 = vmatprep.subr.bf16.mxu0 %v26178_v12 }
 0xc29   : > { %17217 = vmatpush1.bf16.msra.mxu1 %v25728_v11  ;;  %v17348_v11 = vpack.c.b16 %v17341_v53, %v17341_v53 }
 0xc2a   : > { %16905 = vmatpush1.bf16.msra.mxu0 %v25729_v24  ;;  %17218 = vmatprep.subr.bf16.mxu1 %v26178_v12 }
 0xc2b   : > { %23597 = vmatprep.subr.bf16.mxu0 %v25735_v4  ;;  %v25765_v4 = vld [vmem:[%s26455_s2 + $0x1628] sm:$0xff]  }
 0xc2d   : > { %16915 = vmatmul.mubr.bf16.vlgmr.msra.gmra.mrb[92].mxu0 %v16666_v6  ;;  %17219 = vmatpush1.bf16.msra.mxu1 %v25734_v5  ;;  %v25767_v5 = vld [vmem:[%s26455_s2 + $0x1588] sm:$0xff]  }
 0xc2e   : > { %23598 = vmatpush3.bf16.msra.mxu0 %v25736_v47  ;;  %17220 = vmatprep.subr.bf16.mxu1 %v26178_v12  ;;  %v25768_v47 = vld [vmem:[%s26455_s2 + $0x1630] sm:$0xff]  }
 0xc2f   : > { %v15180_v49 = vpop.f32.mrb[68].mxu1  ;;  %23599 = vmatprep.subr.bf16.mxu0 %v25738_v58  ;;  %17558 = vmatprep.mubr.bf16.mxu0 %v17349_v20 }
 0xc30   : > { %v15181_v42 = vadd.f32 %v29858_v30, %v15180_v49  ;;  %v15182_v18 = vpop.f32.mrb[69].mxu1  ;;  %v23481_v54 = vpop.f32.mrb[72].mxu0  ;;  %v25769_v49 = vld [vmem:[%s26455_s2 + $0x15f0] sm:$0xff]  }
 0xc31   : > { %v15183_v33 = vpop.f32.mrb[70].mxu1  ;;  %17221 = vmatpush1.bf16.msra.mxu1 %v25737_v50  ;;  %v23482_v59 = vpop.f32.mrb[73].mxu0  ;;  %v25771_v18 = vld [vmem:[%s26455_s2 + $0x1638] sm:$0xff]  }
 0xc32   : > { %v29948_v62 = vadd.f32 %v15181_v42, %v29885_v36  ;;  %v15184_v38 = vpop.f32.mrb[71].mxu1  ;;  %23600 = vmatpush3.bf16.msra.mxu0 %v25739_v61  ;;  %17222 = vmatprep.subr.bf16.mxu1 %v26178_v12  ;;  %v29952_v31 = vadd.f32 %v23482_v59, %v23481_v54  ;;  %v23484_v30 = vpop.f32.mrb[74].mxu0  ;;  %v22571_v36 = vcombine.high %v29964_v40, %v29964_v40  ;;  %v25770_v42 = vld [vmem:[%s26455_s2 + $0x1590] sm:$0xff]   ;;  %v25772_v54 = vld [vmem:[%s26455_s2 + $0x15f8] sm:$0xff]   ;;  %v25775_v59 = vld [vmem:[%s26455_s2 + $0x1600] sm:$0xff]  }
 0xc33   : > { %23601 = vmatprep.subr.bf16.mxu0 %v25741_v14  ;;  %v23485_v60 = vpop.f32.mrb[75].mxu0  ;;  %v25773_v33 = vld [vmem:[%s26455_s2 + $0x1598] sm:$0xff]   ;;  %v25776_v38 = vld [vmem:[%s26455_s2 + $0x15a0] sm:$0xff]   ;;  %v25778_v30 = vld [vmem:[%s26455_s2 + $0x1608] sm:$0xff]   ;;  %v22566_v40 = vcombine.low %v29976_v28, %v29976_v28  ;;  %v17344_v28 = vrot.slane %v30071_v35, 7 }
 0xc34   : > { %v29984_v63 = vunpack.c.l.b16 %v22571_v36  ;;  %v25780_v60 = vld [vmem:[%s26455_s2 + $0x1650] sm:$0xff]   ;;  %v17670_v36 = vrot.slane %v29995_v3, 1 }
 0xc35   : > { %17223 = vmatpush1.bf16.msra.mxu1 %v25740_v48  ;;  %v25774_v48 = vld [vmem:[%s26455_s2 + $0x1640] sm:$0xff]   ;;  %v30081_v53 = vunpack.c.l.b16 %v22566_v40 }
 0xc36   : > { %23602 = vmatpush3.bf16.msra.mxu0 %v25742_v10  ;;  %17224 = vmatprep.subr.bf16.mxu1 %v26178_v12  ;;  %v17346_v25 = vrot.slane %v29984_v63, 7  ;;  %v25777_v10 = vld [vmem:[%s26455_s2 + $0x1648] sm:$0xff]   ;;  %v17671_v29 = vsel %vm9166_vm2, %v29984_v63, %v17670_v36 }
 0xc37   : > { %23603 = vmatprep.subr.bf16.mxu0 %v25744_v9  ;;  %v25779_v9 = vld [vmem:[%s26455_s2 + $0x15a8] sm:$0xff]   ;;  %v17675_v51 = vpack.c.b16 %v17671_v29, %v17671_v29 }
 0xc38   : > { %v17347_v24 = vsel %vm9166_vm2, %v17346_v25, %v29995_v3  ;;  %v30126_v36 = vld [vmem:[#allocation2 + $0x78] sm:$0x22] }
 0xc39   : > { %17225 = vmatpush1.bf16.msra.mxu1 %v25743_v1  ;;  %v17351_v6 = vpack.c.b16 %v17347_v24, %v17347_v24  ;;  %v17345_v24 = vsel %vm9166_vm2, %v17344_v28, %v30081_v53 }
 0xc3a   : > { %23604 = vmatpush3.bf16.msra.mxu0 %v25745_v56  ;;  %17226 = vmatprep.subr.bf16.mxu1 %v26178_v12 }
 0xc3b   : > { %23605 = vmatprep.subr.bf16.mxu0 %v25747_v46  ;;  %v25781_v46 = vld [vmem:[%s26455_s2 + $0x1610] sm:$0xff]  }
 0xc3d   : > { %17227 = vmatpush1.bf16.msra.mxu1 %v25746_v0  ;;  %v17664_v0 = vrot.slane %v29988_v26, 1  ;;  %v30054_v26 = vld [vmem:[#allocation2 + $0x70] sm:$0x22] }
 0xc3e   : > { %23606 = vmatpush3.bf16.msra.mxu0 %v25748_v8  ;;  %17228 = vmatprep.subr.bf16.mxu1 %v26178_v12 }
 0xc3f   : > { %23607 = vmatprep.subr.bf16.mxu0 %v25750_v44  ;;  %v25783_v44 = vld [vmem:[%s26455_s2 + $0x1658] sm:$0xff]  }
 0xc41   : > { %17229 = vmatpush1.bf16.msra.mxu1 %v25749_v7 }
 0xc42   : > { %23608 = vmatpush3.bf16.msra.mxu0 %v25751_v39  ;;  %17230 = vmatprep.subr.bf16.mxu1 %v26178_v12 }
 0xc43   : > { %23609 = vmatprep.subr.bf16.mxu0 %v25753_v41  ;;  %v17665_v41 = vsel %vm9166_vm2, %v29974_v34, %v17664_v0  ;;  %v25787_v34 = vld [vmem:[%s26455_s2 + $0x15c0] sm:$0xff]  }
 0xc44   : > { %v25810_v0 = vld [vmem:[%s26455_s2 + $0x16a0] sm:$0xff]  }
 0xc45   : > { %17231 = vmatpush1.bf16.msra.mxu1 %v25752_v23  ;;  %v25785_v23 = vld [vmem:[%s26455_s2 + $0x15b8] sm:$0xff]  }
 0xc46   : > { %23610 = vmatpush3.bf16.msra.mxu0 %v25754_v15  ;;  %17232 = vmatprep.subr.bf16.mxu1 %v26178_v12  ;;  %v30052_v15 = vld [vmem:[#allocation2 + $0x30] sm:$0x22] }
 0xc47   : > { %23611 = vmatprep.subr.bf16.mxu0 %v25756_v45  ;;  %v22743_v63 = vcombine.high %v30052_v15, %v30052_v15  ;;  %v22747_v45 = vcombine.high %v30054_v26, %v30054_v26 }
 0xc49   : > { %17233 = vmatpush1.bf16.msra.mxu1 %v25755_v37  ;;  %v25789_v37 = vld [vmem:[%s26455_s2 + $0x15c8] sm:$0xff]   ;;  %v30074_v3 = vunpack.c.l.b16 %v22743_v63  ;;  %v30076_v25 = vunpack.c.l.b16 %v22747_v45 }
 0xc4a   : > { %23612 = vmatpush3.bf16.msra.mxu0 %v25757_v43  ;;  %23619 = vmatprep.subr.bf16.mxu1 %v25758_v19  ;;  %v25790_v43 = vld [vmem:[%s26455_s2 + $0x1670] sm:$0xff]  }
 0xc4b   : > { %17566 = vmatprep.subr.bf16.mxu0 %v26178_v12  ;;  %v25791_v19 = vld [vmem:[%s26455_s2 + $0x15d0] sm:$0xff]   ;;  %v18024_v57 = vrot.slane %v30076_v25, 1  ;;  %v18352_v40 = vrot.slane %v30076_v25, 2 }
 0xc4c   : > { %17243 = vmatmul.mubr.bf16.vlgmr.msra.gmra.mrb[92].mxu1 %v16994_v16  ;;  %v18023_v16 = vrot.slane %v30074_v3, 2 }
 0xc4d   : > { %23620 = vmatpush3.bf16.msra.mxu1 %v25763_v52  ;;  %17559 = vmatmul.mubr.bf16.vlgmr.msra.gmra.mrb[96].mxu0 %v17348_v11  ;;  %v25792_v52 = vld [vmem:[%s26455_s2 + $0x1678] sm:$0xff]  }
 0xc4e   : > { %17567 = vmatpush1.bf16.msra.mxu0 %v25764_v22  ;;  %23621 = vmatprep.subr.bf16.mxu1 %v25765_v4  ;;  %v25793_v11 = vld [vmem:[%s26455_s2 + $0x15d8] sm:$0xff]   ;;  %v25799_v22 = vld [vmem:[%s26455_s2 + $0x1700] sm:$0xff]   ;;  %v18025_v4 = vsel %vm9166_vm2, %v18024_v57, %v18023_v16 }
 0xc4f   : > { %v23503_v58 = vpop.f32.mrb[72].mxu1  ;;  %17568 = vmatprep.subr.bf16.mxu0 %v26178_v12  ;;  %17882 = vmatprep.mubr.bf16.mxu1 %v17673_v55  ;;  %v17350_v55 = vpack.c.b16 %v17345_v24, %v17345_v24  ;;  %v25821_v16 = vld [vmem:[%s26455_s2 + $0x16f8] sm:$0xff]   ;;  %v25822_v57 = vld [vmem:[%s26455_s2 + $0x17e0] sm:$0xff]  }
 0xc50   : > { %v23504_v20 = vpop.f32.mrb[73].mxu1  ;;  %22600 = vmatprep.mubr.msk.bf16.mxu0 %vm9349_vm4, %v17351_v6  ;;  %v25798_v6 = vld [vmem:[%s26455_s2 + $0x1680] sm:$0xff]  }
 0xc51   : > { %v30016_v50 = vadd.f32 %v23504_v20, %v23503_v58  ;;  %v23506_v61 = vpop.f32.mrb[74].mxu1  ;;  %23622 = vmatpush3.bf16.msra.mxu1 %v25766_v21  ;;  %v25800_v21 = vld [vmem:[%s26455_s2 + $0x16c0] sm:$0xff]   ;;  %v25801_v58 = vld [vmem:[%s26455_s2 + $0x1688] sm:$0xff]  }
 0xc52   : > { %v23507_v14 = vpop.f32.mrb[75].mxu1  ;;  %17569 = vmatpush1.bf16.msra.mxu0 %v25767_v5  ;;  %23623 = vmatprep.subr.bf16.mxu1 %v25768_v47  ;;  %v25802_v5 = vld [vmem:[%s26455_s2 + $0x1708] sm:$0xff]   ;;  %v18033_v47 = vpack.c.b16 %v18025_v4, %v18025_v4 }
 0xc53   : > { %17570 = vmatprep.subr.bf16.mxu0 %v26178_v12  ;;  %v25803_v20 = vld [vmem:[%s26455_s2 + $0x16c8] sm:$0xff]  }
 0xc54   : > { %v25829_v4 = vld [vmem:[%s26455_s2 + $0x17e8] sm:$0xff]  }
 0xc55   : > { %23624 = vmatpush3.bf16.msra.mxu1 %v25769_v49  ;;  %v25805_v49 = vld [vmem:[%s26455_s2 + $0x1710] sm:$0xff]  }
 0xc56   : > { %17571 = vmatpush1.bf16.msra.mxu0 %v25770_v42  ;;  %23625 = vmatprep.subr.bf16.mxu1 %v25771_v18 }
 0xc57   : > { %17572 = vmatprep.subr.bf16.mxu0 %v26178_v12 }
 0xc59   : > { %23626 = vmatpush3.bf16.msra.mxu1 %v25772_v54 }
 0xc5a   : > { %17573 = vmatpush1.bf16.msra.mxu0 %v25773_v33  ;;  %23627 = vmatprep.subr.bf16.mxu1 %v25774_v48  ;;  %v25804_v33 = vld [vmem:[%s26455_s2 + $0x1690] sm:$0xff]  }
 0xc5b   : > { %17574 = vmatprep.subr.bf16.mxu0 %v26178_v12 }
 0xc5d   : > { %23628 = vmatpush3.bf16.msra.mxu1 %v25775_v59 }
 0xc5e   : > { %17575 = vmatpush1.bf16.msra.mxu0 %v25776_v38  ;;  %23629 = vmatprep.subr.bf16.mxu1 %v25777_v10  ;;  %v25806_v10 = vld [vmem:[%s26455_s2 + $0x16d0] sm:$0xff]  }
 0xc5f   : > { %17576 = vmatprep.subr.bf16.mxu0 %v26178_v12 }
 0xc60   : > { %v15540_v1 = vpop.f32.mrb[76].mxu0 }
 0xc61   : > { %v15541_v56 = vadd.f32 %v29952_v31, %v15540_v1  ;;  %23630 = vmatpush3.bf16.msra.mxu1 %v25778_v30  ;;  %v15542_v8 = vpop.f32.mrb[77].mxu0  ;;  %v25807_v1 = vld [vmem:[%s26455_s2 + $0x1698] sm:$0xff]  }
 0xc62   : > { %17577 = vmatpush1.bf16.msra.mxu0 %v25779_v9  ;;  %23631 = vmatprep.subr.bf16.mxu1 %v25780_v60  ;;  %v15543_v7 = vpop.f32.mrb[78].mxu0  ;;  %v25808_v9 = vld [vmem:[%s26455_s2 + $0x1718] sm:$0xff]   ;;  %v25812_v8 = vld [vmem:[%s26455_s2 + $0x16e0] sm:$0xff]  }
 0xc63   : > { %v30041_v39 = vadd.f32 %v15541_v56, %v29948_v62  ;;  %17578 = vmatprep.subr.bf16.mxu0 %v26178_v12  ;;  %v15544_v31 = vpop.f32.mrb[79].mxu0  ;;  %v17672_v62 = vpack.c.b16 %v17665_v41, %v17665_v41  ;;  %v25809_v56 = vld [vmem:[%s26455_s2 + $0x16d8] sm:$0xff]   ;;  %v30124_v7 = vld [vmem:[#allocation2 + $0x38] sm:$0x22]  ;;  %v22749_v41 = vcombine.high %v30126_v36, %v30126_v36 }
 0xc64   : > { %v25813_v31 = vld [vmem:[%s26455_s2 + $0x16a8] sm:$0xff]  }
 0xc65   : > { %23632 = vmatpush3.bf16.msra.mxu1 %v25781_v46  ;;  %v25811_v46 = vld [vmem:[%s26455_s2 + $0x1720] sm:$0xff]  }
 0xc66   : > { %17579 = vmatpush1.bf16.msra.mxu0 %v25782_v13  ;;  %23633 = vmatprep.subr.bf16.mxu1 %v25783_v44  ;;  %v22742_v13 = vcombine.low %v30052_v15, %v30052_v15  ;;  %v22746_v44 = vcombine.low %v30054_v26, %v30054_v26  ;;  %v17668_v15 = vrot.slane %v30081_v53, 1 }
 0xc67   : > { %17580 = vmatprep.subr.bf16.mxu0 %v26178_v12 }
 0xc68   : > { %v30136_v29 = vunpack.c.l.b16 %v22742_v13 }
 0xc69   : > { %23634 = vmatpush3.bf16.msra.mxu1 %v25784_v32  ;;  %v22745_v32 = vcombine.high %v30124_v7, %v30124_v7 }
 0xc6a   : > { %17581 = vmatpush1.bf16.msra.mxu0 %v25785_v23  ;;  %17890 = vmatprep.subr.bf16.mxu1 %v26178_v12  ;;  %v25815_v23 = vld [vmem:[%s26455_s2 + $0x16e8] sm:$0xff]   ;;  %v18020_v63 = vrot.slane %v30136_v29, 2  ;;  %v18348_v13 = vrot.slane %v30136_v29, 3 }
 0xc6b   : > { %17582 = vmatprep.subr.bf16.mxu0 %v26178_v12  ;;  %v30143_v26 = vunpack.c.l.b16 %v22745_v32  ;;  %v25847_v32 = vld [vmem:[%s26455_s2 + $0x1818] sm:$0xff]  }
 0xc6c   : > { %17883 = vmatmul.mubr.bf16.vlgmr.msra.gmra.mrb[96].mxu1 %v17672_v62  ;;  %v30138_v62 = vunpack.c.l.b16 %v22746_v44 }
 0xc6d   : > { %17891 = vmatpush1.bf16.msra.mxu1 %v25786_v27  ;;  %22685 = vmatprep.mubr.msk.bf16.mxu1 %vm9349_vm4, %v17675_v51  ;;  %v25817_v27 = vld [vmem:[%s26455_s2 + $0x1730] sm:$0xff]   ;;  %v18029_v53 = vrot.slane %v30143_v26, 2 }
 0xc6e   : > { %17583 = vmatpush1.bf16.msra.mxu0 %v25787_v34  ;;  %17892 = vmatprep.subr.bf16.mxu1 %v26178_v12  ;;  %v25816_v51 = vld [vmem:[%s26455_s2 + $0x16b0] sm:$0xff]   ;;  %v30145_v34 = vunpack.c.l.b16 %v22749_v41  ;;  %v18021_v45 = vrot.slane %v30138_v62, 1  ;;  %v18349_v44 = vrot.slane %v30138_v62, 2  ;;  %v25848_v62 = vld [vmem:[%s26455_s2 + $0x17d8] sm:$0xff]  }
 0xc6f   : > { %17584 = vmatprep.subr.bf16.mxu0 %v26178_v12 }
 0xc70   : > { %v18030_v28 = vrot.slane %v30145_v34, 1 }
 0xc71   : > { %17893 = vmatpush1.bf16.msra.mxu1 %v25788_v17  ;;  %v25820_v17 = vld [vmem:[%s26455_s2 + $0x1738] sm:$0xff]  }
 0xc72   : > { %17585 = vmatpush1.bf16.msra.mxu0 %v25789_v37  ;;  %17894 = vmatprep.subr.bf16.mxu1 %v26178_v12  ;;  %v18351_v37 = vrot.slane %v30074_v3, 3  ;;  %v18022_v3 = vsel %vm9166_vm2, %v18021_v45, %v18020_v63  ;;  %v18031_v24 = vsel %vm9166_vm2, %v18030_v28, %v18029_v53  ;;  %v30210_v63 = vld [vmem:[#allocation2 + $0x30] sm:$0x44]  ;;  %v25852_v53 = vld [vmem:[%s26455_s2 + $0x1828] sm:$0xff]  }
 0xc73   : > { %17586 = vmatprep.subr.bf16.mxu0 %v26178_v12  ;;  %v30212_v45 = vld [vmem:[#allocation2 + $0x70] sm:$0x44] }
 0xc75   : > { %17895 = vmatpush1.bf16.msra.mxu1 %v25790_v43  ;;  %v25819_v43 = vld [vmem:[%s26455_s2 + $0x16b8] sm:$0xff]  }
 0xc76   : > { %17587 = vmatpush1.bf16.msra.mxu0 %v25791_v19  ;;  %17896 = vmatprep.subr.bf16.mxu1 %v26178_v12  ;;  %v17669_v19 = vsel %vm9166_vm2, %v30071_v35, %v17668_v15  ;;  %v25827_v35 = vld [vmem:[%s26455_s2 + $0x17a0] sm:$0xff]   ;;  %v25849_v15 = vld [vmem:[%s26455_s2 + $0x1778] sm:$0xff]  }
 0xc77   : > { %17588 = vmatprep.subr.bf16.mxu0 %v26178_v12  ;;  %v17674_v25 = vpack.c.b16 %v17669_v19, %v17669_v19  ;;  %v22925_v19 = vcombine.high %v30212_v45, %v30212_v45 }
 0xc79   : > { %17897 = vmatpush1.bf16.msra.mxu1 %v25792_v52  ;;  %v18353_v52 = vsel %vm9166_vm2, %v18352_v40, %v18351_v37  ;;  %v22744_v37 = vcombine.low %v30124_v7, %v30124_v7  ;;  %v22748_v40 = vcombine.low %v30126_v36, %v30126_v36  ;;  %v25853_v7 = vld [vmem:[%s26455_s2 + $0x1788] sm:$0xff]  }
 0xc7a   : > { %17589 = vmatpush1.bf16.msra.mxu0 %v25793_v11  ;;  %17898 = vmatprep.subr.bf16.mxu1 %v26178_v12  ;;  %v18032_v11 = vpack.c.b16 %v18022_v3, %v18022_v3  ;;  %v25854_v3 = vld [vmem:[%s26455_s2 + $0x1830] sm:$0xff]  }
 0xc7b   : > { %23641 = vmatprep.subr.bf16.mxu0 %v25799_v22  ;;  %v25828_v22 = vld [vmem:[%s26455_s2 + $0x1740] sm:$0xff]   ;;  %v30229_v36 = vunpack.c.l.b16 %v22744_v37  ;;  %v30231_v28 = vunpack.c.l.b16 %v22748_v40 }
 0xc7d   : > { %17599 = vmatmul.mubr.bf16.vlgmr.msra.gmra.mrb[100].mxu0 %v17350_v55  ;;  %17899 = vmatpush1.bf16.msra.mxu1 %v25798_v6  ;;  %v18361_v55 = vpack.c.b16 %v18353_v52, %v18353_v52  ;;  %v18035_v6 = vpack.c.b16 %v18031_v24, %v18031_v24  ;;  %v18026_v52 = vrot.slane %v30229_v36, 2 }
 0xc7e   : > { %23642 = vmatpush3.bf16.msra.mxu0 %v25800_v21  ;;  %17900 = vmatprep.subr.bf16.mxu1 %v26178_v12  ;;  %v25830_v21 = vld [vmem:[%s26455_s2 + $0x17a8] sm:$0xff]  }
 0xc7f   : > { %v15868_v61 = vpop.f32.mrb[76].mxu1  ;;  %23643 = vmatprep.subr.bf16.mxu0 %v25802_v5  ;;  %18242 = vmatprep.mubr.bf16.mxu0 %v18033_v47  ;;  %v25831_v5 = vld [vmem:[%s26455_s2 + $0x1748] sm:$0xff]   ;;  %v25832_v47 = vld [vmem:[%s26455_s2 + $0x17f0] sm:$0xff]  }
 0xc80   : > { %v15869_v14 = vadd.f32 %v30016_v50, %v15868_v61  ;;  %v15870_v42 = vpop.f32.mrb[77].mxu1  ;;  %v23525_v18 = vpop.f32.mrb[80].mxu0 }
 0xc81   : > { %v15871_v54 = vpop.f32.mrb[78].mxu1  ;;  %17901 = vmatpush1.bf16.msra.mxu1 %v25801_v58  ;;  %v23526_v48 = vpop.f32.mrb[81].mxu0 }
 0xc82   : > { %v30106_v59 = vadd.f32 %v15869_v14, %v30041_v39  ;;  %v15872_v38 = vpop.f32.mrb[79].mxu1  ;;  %23644 = vmatpush3.bf16.msra.mxu0 %v25803_v20  ;;  %17902 = vmatprep.subr.bf16.mxu1 %v26178_v12  ;;  %v30110_v30 = vadd.f32 %v23526_v48, %v23525_v18  ;;  %v23528_v50 = vpop.f32.mrb[82].mxu0  ;;  %v25814_v39 = vld [vmem:[%s26455_s2 + $0x1728] sm:$0xff]   ;;  %v25833_v14 = vld [vmem:[%s26455_s2 + $0x17b0] sm:$0xff]   ;;  %v25835_v54 = vld [vmem:[%s26455_s2 + $0x17f8] sm:$0xff]  }
 0xc83   : > { %23645 = vmatprep.subr.bf16.mxu0 %v25805_v49  ;;  %v23529_v60 = vpop.f32.mrb[83].mxu0  ;;  %v25834_v18 = vld [vmem:[%s26455_s2 + $0x1750] sm:$0xff]   ;;  %v25837_v48 = vld [vmem:[%s26455_s2 + $0x1758] sm:$0xff]   ;;  %v25838_v38 = vld [vmem:[%s26455_s2 + $0x1800] sm:$0xff]  }
 0xc84   : > { %v25840_v50 = vld [vmem:[%s26455_s2 + $0x1760] sm:$0xff]   ;;  %v25842_v60 = vld [vmem:[%s26455_s2 + $0x17c8] sm:$0xff]  }
 0xc85   : > { %17903 = vmatpush1.bf16.msra.mxu1 %v25804_v33  ;;  %v25836_v33 = vld [vmem:[%s26455_s2 + $0x17b8] sm:$0xff]  }
 0xc86   : > { %23646 = vmatpush3.bf16.msra.mxu0 %v25806_v10  ;;  %17904 = vmatprep.subr.bf16.mxu1 %v26178_v12  ;;  %v25839_v10 = vld [vmem:[%s26455_s2 + $0x17c0] sm:$0xff]  }
 0xc87   : > { %23647 = vmatprep.subr.bf16.mxu0 %v25808_v9  ;;  %v25841_v9 = vld [vmem:[%s26455_s2 + $0x1808] sm:$0xff]  }
 0xc89   : > { %17905 = vmatpush1.bf16.msra.mxu1 %v25807_v1  ;;  %v25843_v1 = vld [vmem:[%s26455_s2 + $0x1768] sm:$0xff]  }
 0xc8a   : > { %23648 = vmatpush3.bf16.msra.mxu0 %v25809_v56  ;;  %17906 = vmatprep.subr.bf16.mxu1 %v26178_v12  ;;  %v25844_v56 = vld [vmem:[%s26455_s2 + $0x1810] sm:$0xff]  }
 0xc8b   : > { %23649 = vmatprep.subr.bf16.mxu0 %v25811_v46 }
 0xc8d   : > { %17907 = vmatpush1.bf16.msra.mxu1 %v25810_v0 }
 0xc8e   : > { %23650 = vmatpush3.bf16.msra.mxu0 %v25812_v8  ;;  %17908 = vmatprep.subr.bf16.mxu1 %v26178_v12  ;;  %v25845_v8 = vld [vmem:[%s26455_s2 + $0x17d0] sm:$0xff]  }
 0xc8f   : > { %23651 = vmatprep.subr.bf16.mxu0 %v25814_v39 }
 0xc91   : > { %17909 = vmatpush1.bf16.msra.mxu1 %v25813_v31  ;;  %v25846_v31 = vld [vmem:[%s26455_s2 + $0x1770] sm:$0xff]  }
 0xc92   : > { %23652 = vmatpush3.bf16.msra.mxu0 %v25815_v23  ;;  %17910 = vmatprep.subr.bf16.mxu1 %v26178_v12  ;;  %v18357_v23 = vrot.slane %v30143_v26, 3 }
 0xc93   : > { %23653 = vmatprep.subr.bf16.mxu0 %v25817_v27  ;;  %v18358_v27 = vrot.slane %v30145_v34, 2 }
 0xc95   : > { %17911 = vmatpush1.bf16.msra.mxu1 %v25816_v51  ;;  %v18350_v51 = vsel %vm9166_vm2, %v18349_v44, %v18348_v13  ;;  %v25871_v13 = vld [vmem:[%s26455_s2 + $0x1858] sm:$0xff]  }
 0xc96   : > { %23654 = vmatpush3.bf16.msra.mxu0 %v25818_v2  ;;  %17912 = vmatprep.subr.bf16.mxu1 %v26178_v12  ;;  %v18359_v2 = vsel %vm9166_vm2, %v18358_v27, %v18357_v23  ;;  %v18360_v26 = vpack.c.b16 %v18350_v51, %v18350_v51  ;;  %v25873_v44 = vld [vmem:[%s26455_s2 + $0x1898] sm:$0xff]   ;;  %v22924_v23 = vcombine.low %v30212_v45, %v30212_v45  ;;  %v30282_v27 = vld [vmem:[#allocation2 + $0x38] sm:$0x44]  ;;  %v18354_v45 = vrot.slane %v30229_v36, 3 }
 0xc97   : > { %23655 = vmatprep.subr.bf16.mxu0 %v25820_v17  ;;  %v18363_v34 = vpack.c.b16 %v18359_v2, %v18359_v2  ;;  %v25851_v17 = vld [vmem:[%s26455_s2 + $0x1780] sm:$0xff]   ;;  %v22923_v51 = vcombine.high %v30282_v27, %v30282_v27  ;;  %v25879_v2 = vld [vmem:[%s26455_s2 + $0x18a8] sm:$0xff]  }
 0xc99   : > { %17913 = vmatpush1.bf16.msra.mxu1 %v25819_v43  ;;  %v22921_v43 = vcombine.high %v30210_v63, %v30210_v63  ;;  %v30302_v37 = vunpack.c.l.b16 %v22923_v51  ;;  %v25910_v51 = vld [vmem:[%s26455_s2 + $0x1930] sm:$0xff]  }
 0xc9a   : > { %23656 = vmatpush3.bf16.msra.mxu0 %v25821_v16  ;;  %23663 = vmatprep.subr.bf16.mxu1 %v25822_v57  ;;  %v30236_v57 = vunpack.c.l.b16 %v22925_v19 }
 0xc9b   : > { %18250 = vmatprep.subr.bf16.mxu0 %v26178_v12  ;;  %v30234_v16 = vunpack.c.l.b16 %v22921_v43  ;;  %v25882_v43 = vld [vmem:[%s26455_s2 + $0x18b0] sm:$0xff]  }
 0xc9c   : > { %17923 = vmatmul.mubr.bf16.vlgmr.msra.gmra.mrb[100].mxu1 %v17674_v25  ;;  %v25855_v25 = vld [vmem:[%s26455_s2 + $0x1790] sm:$0xff]   ;;  %v18712_v24 = vrot.slane %v30236_v57, 3 }
 0xc9d   : > { %23664 = vmatpush3.bf16.msra.mxu1 %v25827_v35  ;;  %18243 = vmatmul.mubr.bf16.vlgmr.msra.gmra.mrb[104].mxu0 %v18032_v11  ;;  %v18027_v35 = vrot.slane %v30231_v28, 1  ;;  %v18711_v11 = vrot.slane %v30234_v16, 4  ;;  %v19039_v36 = vrot.slane %v30234_v16, 5 }
 0xc9e   : > { %18251 = vmatpush1.bf16.msra.mxu0 %v25828_v22  ;;  %23665 = vmatprep.subr.bf16.mxu1 %v25829_v4  ;;  %v25856_v22 = vld [vmem:[%s26455_s2 + $0x1838] sm:$0xff]  }
 0xc9f   : > { %v23547_v58 = vpop.f32.mrb[80].mxu1  ;;  %18252 = vmatprep.subr.bf16.mxu0 %v26178_v12  ;;  %18570 = vmatprep.mubr.bf16.mxu1 %v18361_v55  ;;  %v25857_v4 = vld [vmem:[%s26455_s2 + $0x1798] sm:$0xff]   ;;  %v18028_v55 = vsel %vm9166_vm2, %v18027_v35, %v18026_v52  ;;  %v18717_v52 = vrot.slane %v30302_v37, 4 }
 0xca0   : > { %v23548_v20 = vpop.f32.mrb[81].mxu1  ;;  %22778 = vmatprep.mubr.msk.bf16.mxu0 %vm9349_vm4, %v18035_v6  ;;  %v25863_v6 = vld [vmem:[%s26455_s2 + $0x18c0] sm:$0xff]  }
 0xca1   : > { %v30174_v61 = vadd.f32 %v23548_v20, %v23547_v58  ;;  %v23550_v49 = vpop.f32.mrb[82].mxu1  ;;  %23666 = vmatpush3.bf16.msra.mxu1 %v25830_v21  ;;  %v18713_v21 = vsel %vm9166_vm2, %v18712_v24, %v18711_v11  ;;  %v25864_v58 = vld [vmem:[%s26455_s2 + $0x1880] sm:$0xff]   ;;  %v25866_v20 = vld [vmem:[%s26455_s2 + $0x18c8] sm:$0xff]   ;;  %v25885_v11 = vld [vmem:[%s26455_s2 + $0x18b8] sm:$0xff]  }
 0xca2   : > { %v23551_v42 = vpop.f32.mrb[83].mxu1  ;;  %18253 = vmatpush1.bf16.msra.mxu0 %v25831_v5  ;;  %23667 = vmatprep.subr.bf16.mxu1 %v25832_v47  ;;  %v18034_v5 = vpack.c.b16 %v18028_v55, %v18028_v55  ;;  %v25862_v47 = vld [vmem:[%s26455_s2 + $0x1840] sm:$0xff]   ;;  %v18721_v49 = vpack.c.b16 %v18713_v21, %v18713_v21 }
 0xca3   : > { %18254 = vmatprep.subr.bf16.mxu0 %v26178_v12  ;;  %v25867_v42 = vld [vmem:[%s26455_s2 + $0x1888] sm:$0xff]   ;;  %v25886_v24 = vld [vmem:[%s26455_s2 + $0x19a0] sm:$0xff]  }
 0xca4   : > { %v25892_v21 = vld [vmem:[%s26455_s2 + $0x1900] sm:$0xff]  }
 0xca5   : > { %23668 = vmatpush3.bf16.msra.mxu1 %v25833_v14  ;;  %v25865_v14 = vld [vmem:[%s26455_s2 + $0x1848] sm:$0xff]  }
 0xca6   : > { %18255 = vmatpush1.bf16.msra.mxu0 %v25834_v18  ;;  %23669 = vmatprep.subr.bf16.mxu1 %v25835_v54  ;;  %v25869_v54 = vld [vmem:[%s26455_s2 + $0x18d0] sm:$0xff]  }
 0xca7   : > { %18256 = vmatprep.subr.bf16.mxu0 %v26178_v12 }
 0xca9   : > { %23670 = vmatpush3.bf16.msra.mxu1 %v25836_v33 }
 0xcaa   : > { %18257 = vmatpush1.bf16.msra.mxu0 %v25837_v48  ;;  %23671 = vmatprep.subr.bf16.mxu1 %v25838_v38 }
 0xcab   : > { %18258 = vmatprep.subr.bf16.mxu0 %v26178_v12 }
 0xcad   : > { %23672 = vmatpush3.bf16.msra.mxu1 %v25839_v10 }
 0xcae   : > { %18259 = vmatpush1.bf16.msra.mxu0 %v25840_v50  ;;  %23673 = vmatprep.subr.bf16.mxu1 %v25841_v9  ;;  %v25868_v50 = vld [vmem:[%s26455_s2 + $0x1850] sm:$0xff]  }
 0xcaf   : > { %18260 = vmatprep.subr.bf16.mxu0 %v26178_v12 }
 0xcb0   : > { %v16228_v46 = vpop.f32.mrb[84].mxu0 }
 0xcb1   : > { %v16229_v0 = vadd.f32 %v30110_v30, %v16228_v46  ;;  %23674 = vmatpush3.bf16.msra.mxu1 %v25842_v60  ;;  %v16230_v39 = vpop.f32.mrb[85].mxu0 }
 0xcb2   : > { %18261 = vmatpush1.bf16.msra.mxu0 %v25843_v1  ;;  %23675 = vmatprep.subr.bf16.mxu1 %v25844_v56  ;;  %v16231_v41 = vpop.f32.mrb[86].mxu0  ;;  %v25870_v56 = vld [vmem:[%s26455_s2 + $0x1890] sm:$0xff]   ;;  %v25875_v39 = vld [vmem:[%s26455_s2 + $0x18e0] sm:$0xff]  }
 0xcb3   : > { %v30201_v30 = vadd.f32 %v16229_v0, %v30106_v59  ;;  %18262 = vmatprep.subr.bf16.mxu0 %v26178_v12  ;;  %v16232_v29 = vpop.f32.mrb[87].mxu0  ;;  %v25850_v59 = vld [vmem:[%s26455_s2 + $0x1820] sm:$0xff]   ;;  %v25872_v0 = vld [vmem:[%s26455_s2 + $0x18d8] sm:$0xff]   ;;  %v22920_v41 = vcombine.low %v30210_v63, %v30210_v63  ;;  %v25880_v63 = vld [vmem:[%s26455_s2 + $0x1870] sm:$0xff]  }
 0xcb4   : > { %v25878_v29 = vld [vmem:[%s26455_s2 + $0x18e8] sm:$0xff]  }
 0xcb5   : > { %23676 = vmatpush3.bf16.msra.mxu1 %v25845_v8 }
 0xcb6   : > { %18263 = vmatpush1.bf16.msra.mxu0 %v25846_v31  ;;  %23677 = vmatprep.subr.bf16.mxu1 %v25847_v32  ;;  %v25874_v31 = vld [vmem:[%s26455_s2 + $0x1860] sm:$0xff]  }
 0xcb7   : > { %18264 = vmatprep.subr.bf16.mxu0 %v26178_v12  ;;  %v25876_v32 = vld [vmem:[%s26455_s2 + $0x18a0] sm:$0xff]  }
 0xcb9   : > { %23678 = vmatpush3.bf16.msra.mxu1 %v25848_v62  ;;  %v25877_v62 = vld [vmem:[%s26455_s2 + $0x1868] sm:$0xff]  }
 0xcba   : > { %18265 = vmatpush1.bf16.msra.mxu0 %v25849_v15  ;;  %18578 = vmatprep.subr.bf16.mxu1 %v26178_v12 }
 0xcbb   : > { %18266 = vmatprep.subr.bf16.mxu0 %v26178_v12 }
 0xcbc   : > { %18571 = vmatmul.mubr.bf16.vlgmr.msra.gmra.mrb[104].mxu1 %v18360_v26  ;;  %v30294_v26 = vunpack.c.l.b16 %v22920_v41  ;;  %v25909_v41 = vld [vmem:[%s26455_s2 + $0x1990] sm:$0xff]  }
 0xcbd   : > { %18579 = vmatpush1.bf16.msra.mxu1 %v25850_v59  ;;  %22863 = vmatprep.mubr.msk.bf16.mxu1 %vm9349_vm4, %v18363_v34  ;;  %v30296_v59 = vunpack.c.l.b16 %v22924_v23  ;;  %v25881_v34 = vld [vmem:[%s26455_s2 + $0x18f0] sm:$0xff]  }
 0xcbe   : > { %18267 = vmatpush1.bf16.msra.mxu0 %v25851_v17  ;;  %18580 = vmatprep.subr.bf16.mxu1 %v26178_v12  ;;  %v18355_v17 = vrot.slane %v30231_v28, 2  ;;  %v18708_v19 = vrot.slane %v30294_v26, 4  ;;  %v19040_v28 = vrot.slane %v30236_v57, 4  ;;  %v19036_v23 = vrot.slane %v30294_v26, 5 }
 0xcbf   : > { %18268 = vmatprep.subr.bf16.mxu0 %v26178_v12 }
 0xcc0   : > { %v19041_v57 = vsel %vm9166_vm2, %v19040_v28, %v19039_v36  ;;  %v25916_v36 = vld [vmem:[%s26455_s2 + $0x19e8] sm:$0xff]  }
 0xcc1   : > { %18581 = vmatpush1.bf16.msra.mxu1 %v25852_v53  ;;  %v18709_v53 = vrot.slane %v30296_v59, 3  ;;  %v25917_v28 = vld [vmem:[%s26455_s2 + $0x1948] sm:$0xff]  }
 0xcc2   : > { %18269 = vmatpush1.bf16.msra.mxu0 %v25853_v7  ;;  %18582 = vmatprep.subr.bf16.mxu1 %v26178_v12  ;;  %v25884_v7 = vld [vmem:[%s26455_s2 + $0x18f8] sm:$0xff]  }
 0xcc3   : > { %18270 = vmatprep.subr.bf16.mxu0 %v26178_v12  ;;  %v18710_v16 = vsel %vm9166_vm2, %v18709_v53, %v18708_v19  ;;  %v25915_v19 = vld [vmem:[%s26455_s2 + $0x1940] sm:$0xff]   ;;  %v22922_v53 = vcombine.low %v30282_v27, %v30282_v27  ;;  %v25918_v27 = vld [vmem:[%s26455_s2 + $0x19f0] sm:$0xff]  }
 0xcc4   : > { %v18720_v55 = vpack.c.b16 %v18710_v16, %v18710_v16 }
 0xcc5   : > { %18583 = vmatpush1.bf16.msra.mxu1 %v25854_v3  ;;  %v25883_v3 = vld [vmem:[%s26455_s2 + $0x1878] sm:$0xff]  }
 0xcc6   : > { %18271 = vmatpush1.bf16.msra.mxu0 %v25855_v25  ;;  %18584 = vmatprep.subr.bf16.mxu1 %v26178_v12  ;;  %v18356_v25 = vsel %vm9166_vm2, %v18355_v17, %v18354_v45  ;;  %v25913_v17 = vld [vmem:[%s26455_s2 + $0x1938] sm:$0xff]  }
 0xcc7   : > { %18272 = vmatprep.subr.bf16.mxu0 %v26178_v12 }
 0xcc9   : > { %18585 = vmatpush1.bf16.msra.mxu1 %v25856_v22  ;;  %v18362_v22 = vpack.c.b16 %v18356_v25, %v18356_v25 }
 0xcca   : > { %18273 = vmatpush1.bf16.msra.mxu0 %v25857_v4  ;;  %18586 = vmatprep.subr.bf16.mxu1 %v26178_v12  ;;  %v25891_v4 = vld [vmem:[%s26455_s2 + $0x1960] sm:$0xff]  }
 0xccb   : > { %23685 = vmatprep.subr.bf16.mxu0 %v25863_v6 }
 0xccd   : > { %18283 = vmatmul.mubr.bf16.vlgmr.msra.gmra.mrb[108].mxu0 %v18034_v5  ;;  %18587 = vmatpush1.bf16.msra.mxu1 %v25862_v47  ;;  %v25893_v5 = vld [vmem:[%s26455_s2 + $0x19a8] sm:$0xff]   ;;  %v19049_v47 = vpack.c.b16 %v19041_v57, %v19041_v57  ;;  %v25926_v57 = vld [vmem:[%s26455_s2 + $0x1a00] sm:$0xff]  }
 0xcce   : > { %23686 = vmatpush3.bf16.msra.mxu0 %v25864_v58  ;;  %18588 = vmatprep.subr.bf16.mxu1 %v26178_v12 }
 0xccf   : > { %v16556_v18 = vpop.f32.mrb[84].mxu1  ;;  %23687 = vmatprep.subr.bf16.mxu0 %v25866_v20  ;;  %18930 = vmatprep.mubr.bf16.mxu0 %v18721_v49  ;;  %v25894_v20 = vld [vmem:[%s26455_s2 + $0x1968] sm:$0xff]  }
 0xcd0   : > { %v16557_v33 = vadd.f32 %v30174_v61, %v16556_v18  ;;  %v16558_v48 = vpop.f32.mrb[85].mxu1  ;;  %v23569_v38 = vpop.f32.mrb[88].mxu0  ;;  %v25895_v49 = vld [vmem:[%s26455_s2 + $0x1908] sm:$0xff]  }
 0xcd1   : > { %v16559_v10 = vpop.f32.mrb[86].mxu1  ;;  %18589 = vmatpush1.bf16.msra.mxu1 %v25865_v14  ;;  %v23570_v9 = vpop.f32.mrb[89].mxu0  ;;  %v25896_v14 = vld [vmem:[%s26455_s2 + $0x19b0] sm:$0xff]  }
 0xcd2   : > { %v30264_v60 = vadd.f32 %v16557_v33, %v30201_v30  ;;  %v16560_v1 = vpop.f32.mrb[87].mxu1  ;;  %23688 = vmatpush3.bf16.msra.mxu0 %v25867_v42  ;;  %18590 = vmatprep.subr.bf16.mxu1 %v26178_v12  ;;  %v30268_v46 = vadd.f32 %v23570_v9, %v23569_v38  ;;  %v23572_v61 = vpop.f32.mrb[90].mxu0  ;;  %v30284_v30 = vld [vmem:[#allocation2 + $0x78] sm:$0x44]  ;;  %v25897_v48 = vld [vmem:[%s26455_s2 + $0x1970] sm:$0xff]   ;;  %v25900_v9 = vld [vmem:[%s26455_s2 + $0x1978] sm:$0xff]  }
 0xcd3   : > { %23689 = vmatprep.subr.bf16.mxu0 %v25869_v54  ;;  %v23573_v8 = vpop.f32.mrb[91].mxu0  ;;  %v22927_v15 = vcombine.high %v30284_v30, %v30284_v30  ;;  %v25898_v10 = vld [vmem:[%s26455_s2 + $0x1910] sm:$0xff]   ;;  %v25901_v1 = vld [vmem:[%s26455_s2 + $0x1918] sm:$0xff]   ;;  %v25903_v61 = vld [vmem:[%s26455_s2 + $0x1980] sm:$0xff]  }
 0xcd4   : > { %v25905_v8 = vld [vmem:[%s26455_s2 + $0x19c8] sm:$0xff]  }
 0xcd5   : > { %18591 = vmatpush1.bf16.msra.mxu1 %v25868_v50  ;;  %v30304_v40 = vunpack.c.l.b16 %v22927_v15  ;;  %v25899_v50 = vld [vmem:[%s26455_s2 + $0x19b8] sm:$0xff]  }
 0xcd6   : > { %23690 = vmatpush3.bf16.msra.mxu0 %v25870_v56  ;;  %18592 = vmatprep.subr.bf16.mxu1 %v26178_v12  ;;  %v25902_v56 = vld [vmem:[%s26455_s2 + $0x19c0] sm:$0xff]   ;;  %v25911_v15 = vld [vmem:[%s26455_s2 + $0x19d8] sm:$0xff]  }
 0xcd7   : > { %23691 = vmatprep.subr.bf16.mxu0 %v25872_v0  ;;  %v18718_v35 = vrot.slane %v30304_v40, 3  ;;  %v25904_v0 = vld [vmem:[%s26455_s2 + $0x1920] sm:$0xff]  }
 0xcd9   : > { %18593 = vmatpush1.bf16.msra.mxu1 %v25871_v13  ;;  %v18719_v6 = vsel %vm9166_vm2, %v18718_v35, %v18717_v52  ;;  %v25906_v13 = vld [vmem:[%s26455_s2 + $0x1988] sm:$0xff]  }
 0xcda   : > { %23692 = vmatpush3.bf16.msra.mxu0 %v25873_v44  ;;  %18594 = vmatprep.subr.bf16.mxu1 %v26178_v12  ;;  %v18723_v58 = vpack.c.b16 %v18719_v6, %v18719_v6  ;;  %v25907_v44 = vld [vmem:[%s26455_s2 + $0x1928] sm:$0xff]  }
 0xcdb   : > { %23693 = vmatprep.subr.bf16.mxu0 %v25875_v39  ;;  %v25908_v39 = vld [vmem:[%s26455_s2 + $0x19d0] sm:$0xff]  }
 0xcdd   : > { %18595 = vmatpush1.bf16.msra.mxu1 %v25874_v31 }
 0xcde   : > { %23694 = vmatpush3.bf16.msra.mxu0 %v25876_v32  ;;  %18596 = vmatprep.subr.bf16.mxu1 %v26178_v12 }
 0xcdf   : > { %23695 = vmatprep.subr.bf16.mxu0 %v25878_v29  ;;  %v19037_v29 = vrot.slane %v30296_v59, 4  ;;  %v25912_v59 = vld [vmem:[%s26455_s2 + $0x1998] sm:$0xff]  }
 0xce1   : > { %18597 = vmatpush1.bf16.msra.mxu1 %v25877_v62  ;;  %v19038_v45 = vsel %vm9166_vm2, %v19037_v29, %v19036_v23 }
 0xce2   : > { %23696 = vmatpush3.bf16.msra.mxu0 %v25879_v2  ;;  %18598 = vmatprep.subr.bf16.mxu1 %v26178_v12 }
 0xce3   : > { %23697 = vmatprep.subr.bf16.mxu0 %v25881_v34  ;;  %v19045_v34 = vrot.slane %v30302_v37, 5  ;;  %v19048_v37 = vpack.c.b16 %v19038_v45, %v19038_v45 }
 0xce5   : > { %18599 = vmatpush1.bf16.msra.mxu1 %v25880_v63  ;;  %v19046_v63 = vrot.slane %v30304_v40, 4 }
 0xce6   : > { %23698 = vmatpush3.bf16.msra.mxu0 %v25882_v43  ;;  %18600 = vmatprep.subr.bf16.mxu1 %v26178_v12 }
 0xce7   : > { %23699 = vmatprep.subr.bf16.mxu0 %v25884_v7  ;;  %v19047_v43 = vsel %vm9166_vm2, %v19046_v63, %v19045_v34  ;;  %v22926_v7 = vcombine.low %v30284_v30, %v30284_v30  ;;  %v25919_v30 = vld [vmem:[%s26455_s2 + $0x1950] sm:$0xff]  }
 0xce8   : > { %v19051_v40 = vpack.c.b16 %v19047_v43, %v19047_v43  ;;  %v25934_v43 = vld [vmem:[%s26467_s26] sm:$0xff]  }
 0xce9   : > { %18601 = vmatpush1.bf16.msra.mxu1 %v25883_v3  ;;  %v18702_v3 = vunpack.c.l.b16 %v22922_v53  ;;  %v18706_v25 = vunpack.c.l.b16 %v22926_v7  ;;  %v25938_v53 = vld [vmem:[%s26467_s26 + $0x20] sm:$0xff]   ;;  %v25939_v7 = vld [vmem:[%s26467_s26 + $0x28] sm:$0xff]  }
 0xcea   : > { %23700 = vmatpush3.bf16.msra.mxu0 %v25885_v11  ;;  %23707 = vmatprep.subr.bf16.mxu1 %v25886_v24  ;;  %v25920_v11 = vld [vmem:[%s26455_s2 + $0x19f8] sm:$0xff]  }
 0xceb   : > { %18938 = vmatprep.subr.bf16.mxu0 %v26178_v12  ;;  %v18714_v52 = vrot.slane %v18702_v3, 4  ;;  %v18715_v35 = vrot.slane %v18706_v25, 3  ;;  %v25921_v24 = vld [vmem:[%s26455_s2 + $0x1958] sm:$0xff]  }
 0xcec   : > { %18611 = vmatmul.mubr.bf16.vlgmr.msra.gmra.mrb[108].mxu1 %v18362_v22 }
 0xced   : > { %23708 = vmatpush3.bf16.msra.mxu1 %v25891_v4  ;;  %18931 = vmatmul.mubr.bf16.vlgmr.msra.gmra.mrb[112].mxu0 %v18720_v55  ;;  %v18716_v16 = vsel %vm9166_vm2, %v18715_v35, %v18714_v52  ;;  %v25927_v4 = vld [vmem:[%s26455_s2 + $0x1a08] sm:$0xff]  }
 0xcee   : > { %18939 = vmatpush1.bf16.msra.mxu0 %v25892_v21  ;;  %23709 = vmatprep.subr.bf16.mxu1 %v25893_v5  ;;  %v18722_v22 = vpack.c.b16 %v18716_v16, %v18716_v16  ;;  %v25941_v52 = vld [vmem:[%s26467_s26 + $0x38] sm:$0xff]  }
 0xcef   : > { %v23591_v42 = vpop.f32.mrb[88].mxu1  ;;  %18940 = vmatprep.subr.bf16.mxu0 %v26178_v12  ;;  %19258 = vmatprep.mubr.bf16.mxu1 %v19049_v47 }
 0xcf0   : > { %v23592_v18 = vpop.f32.mrb[89].mxu1  ;;  %22956 = vmatprep.mubr.msk.bf16.mxu0 %vm9349_vm4, %v18723_v58  ;;  %v25928_v58 = vld [vmem:[%s26455_s2 + $0x1a10] sm:$0xff]  }
 0xcf1   : > { %v30332_v54 = vadd.f32 %v23592_v18, %v23591_v42  ;;  %v23594_v33 = vpop.f32.mrb[90].mxu1  ;;  %23710 = vmatpush3.bf16.msra.mxu1 %v25894_v20 }
 0xcf2   : > { %v23595_v38 = vpop.f32.mrb[91].mxu1  ;;  %18941 = vmatpush1.bf16.msra.mxu0 %v25895_v49  ;;  %23711 = vmatprep.subr.bf16.mxu1 %v25896_v14 }
 0xcf3   : > { %18942 = vmatprep.subr.bf16.mxu0 %v26178_v12  ;;  %v25931_v38 = vld [vmem:[%s26455_s2 + $0x1a28] sm:$0xff]  }
 0xcf5   : > { %23712 = vmatpush3.bf16.msra.mxu1 %v25897_v48  ;;  %v25930_v48 = vld [vmem:[%s26455_s2 + $0x1a20] sm:$0xff]  }
 0xcf6   : > { %18943 = vmatpush1.bf16.msra.mxu0 %v25898_v10  ;;  %23713 = vmatprep.subr.bf16.mxu1 %v25899_v50  ;;  %v25932_v10 = vld [vmem:[%s26455_s2 + $0x1a30] sm:$0xff]   ;;  %v19042_v50 = vrot.slane %v18702_v3, 5 }
 0xcf7   : > { %18944 = vmatprep.subr.bf16.mxu0 %v26178_v12 }
 0xcf9   : > { %23714 = vmatpush3.bf16.msra.mxu1 %v25900_v9  ;;  %v19043_v9 = vrot.slane %v18706_v25, 4 }
 0xcfa   : > { %18945 = vmatpush1.bf16.msra.mxu0 %v25901_v1  ;;  %23715 = vmatprep.subr.bf16.mxu1 %v25902_v56  ;;  %v25933_v1 = vld [vmem:[%s26455_s2 + $0x1a38] sm:$0xff]  }
 0xcfb   : > { %18946 = vmatprep.subr.bf16.mxu0 %v26178_v12  ;;  %v19044_v56 = vsel %vm9166_vm2, %v19043_v9, %v19042_v50 }
 0xcfd   : > { %23716 = vmatpush3.bf16.msra.mxu1 %v25903_v61  ;;  %v19050_v61 = vpack.c.b16 %v19044_v56, %v19044_v56 }
 0xcfe   : > { %18947 = vmatpush1.bf16.msra.mxu0 %v25904_v0  ;;  %23717 = vmatprep.subr.bf16.mxu1 %v25905_v8 }
 0xcff   : > { %18948 = vmatprep.subr.bf16.mxu0 %v26178_v12 }
 0xd00   : > { %v16916_v31 = vpop.f32.mrb[92].mxu0 }
 0xd01   : > { %v16917_v32 = vadd.f32 %v30268_v46, %v16916_v31  ;;  %23718 = vmatpush3.bf16.msra.mxu1 %v25906_v13  ;;  %v16918_v62 = vpop.f32.mrb[93].mxu0 }
 0xd02   : > { %18949 = vmatpush1.bf16.msra.mxu0 %v25907_v44  ;;  %23719 = vmatprep.subr.bf16.mxu1 %v25908_v39  ;;  %v16919_v2 = vpop.f32.mrb[94].mxu0 }
 0xd03   : > { %v30359_v46 = vadd.f32 %v16917_v32, %v30264_v60  ;;  %18950 = vmatprep.subr.bf16.mxu0 %v26178_v12  ;;  %v16920_v26 = vpop.f32.mrb[95].mxu0  ;;  %v25914_v60 = vld [vmem:[%s26455_s2 + $0x19e0] sm:$0xff]  }
 0xd05   : > { %23720 = vmatpush3.bf16.msra.mxu1 %v25909_v41 }
 0xd06   : > { %18951 = vmatpush1.bf16.msra.mxu0 %v25910_v51  ;;  %23721 = vmatprep.subr.bf16.mxu1 %v25911_v15 }
 0xd07   : > { %18952 = vmatprep.subr.bf16.mxu0 %v26178_v12 }
 0xd09   : > { %23722 = vmatpush3.bf16.msra.mxu1 %v25912_v59 }
 0xd0a   : > { %18953 = vmatpush1.bf16.msra.mxu0 %v25913_v17  ;;  %19266 = vmatprep.subr.bf16.mxu1 %v26178_v12 }
 0xd0b   : > { %18954 = vmatprep.subr.bf16.mxu0 %v26178_v12 }
 0xd0c   : > { %19259 = vmatmul.mubr.bf16.vlgmr.msra.gmra.mrb[112].mxu1 %v19048_v37  ;;  %v26179_v37 = vmov 0.0  }
 0xd0d   : > { %19267 = vmatpush1.bf16.msra.mxu1 %v25914_v60  ;;  %23041 = vmatprep.mubr.msk.bf16.mxu1 %vm9349_vm4, %v19051_v40  ;;  %v25935_v60 = vld [vmem:[%s26467_s26 + $0x8] sm:$0xff]   ;;  %v25936_v40 = vld [vmem:[%s26467_s26 + $0x10] sm:$0xff]  }
 0xd0e   : > { %18955 = vmatpush1.bf16.msra.mxu0 %v25915_v19  ;;  %19268 = vmatprep.subr.bf16.mxu1 %v26178_v12  ;;  %v25937_v19 = vld [vmem:[%s26467_s26 + $0x18] sm:$0xff]  }
 0xd0f   : > { %18956 = vmatprep.subr.bf16.mxu0 %v26178_v12 }
 0xd11   : > { %19269 = vmatpush1.bf16.msra.mxu1 %v25916_v36 }
 0xd12   : > { %18957 = vmatpush1.bf16.msra.mxu0 %v25917_v28  ;;  %19270 = vmatprep.subr.bf16.mxu1 %v26178_v12 }
 0xd13   : > { %18958 = vmatprep.subr.bf16.mxu0 %v26178_v12 }
 0xd15   : > { %19271 = vmatpush1.bf16.msra.mxu1 %v25918_v27  ;;  %v25940_v27 = vld [vmem:[%s26467_s26 + $0x30] sm:$0xff]  }
 0xd16   : > { %18959 = vmatpush1.bf16.msra.mxu0 %v25919_v30  ;;  %19272 = vmatprep.subr.bf16.mxu1 %v26178_v12 }
 0xd17   : > { %18960 = vmatprep.subr.bf16.mxu0 %v26178_v12 }
 0xd19   : > { %19273 = vmatpush1.bf16.msra.mxu1 %v25920_v11 }
 0xd1a   : > { %18961 = vmatpush1.bf16.msra.mxu0 %v25921_v24  ;;  %19274 = vmatprep.subr.bf16.mxu1 %v26178_v12 }
 0xd1b   : > { %23738 = vmatprep.subr.bf16.mxu0 %v26179_v37 }
 0xd1d   : > { %18971 = vmatmul.mubr.bf16.vlgmr.msra.gmra.mrb[116].mxu0 %v18722_v22  ;;  %19275 = vmatpush1.bf16.msra.mxu1 %v25926_v57 }
 0xd1e   : > { %19276 = vmatprep.subr.bf16.mxu1 %v26178_v12  ;;  %23739 = vmatpush3.bf16.msra.mxu0 %v25934_v43 }
 0xd1f   : > { %v17244_v55 = vpop.f32.mrb[92].mxu1  ;;  %23740 = vmatprep.subr.bf16.mxu0 %v26179_v37  ;;  %23754 = vmatprep.mubr.msk.bf16.mxu0 %vm26180_vm5, %v26179_v37 }
 0xd20   : > { %v17245_v6 = vadd.f32 %v30332_v54, %v17244_v55  ;;  %v17246_v21 = vpop.f32.mrb[93].mxu1  ;;  %v23613_v5 = vpop.f32.mrb[96].mxu0  ;;  %v25929_v54 = vld [vmem:[%s26455_s2 + $0x1a18] sm:$0xff]  }
 0xd21   : > { %v17247_v47 = vpop.f32.mrb[94].mxu1  ;;  %19277 = vmatpush1.bf16.msra.mxu1 %v25927_v4  ;;  %v23614_v20 = vpop.f32.mrb[97].mxu0 }
 0xd22   : > { %v17250_v49 = vadd.f32 %v17245_v6, %v30359_v46  ;;  %v17248_v14 = vpop.f32.mrb[95].mxu1  ;;  %19278 = vmatprep.subr.bf16.mxu1 %v26178_v12  ;;  %v23615_v42 = vadd.f32 %v23614_v20, %v23613_v5  ;;  %v23616_v18 = vpop.f32.mrb[98].mxu0  ;;  %23741 = vmatpush3.bf16.msra.mxu0 %v25935_v60 }
 0xd23   : > { %v23617_v33 = vpop.f32.mrb[99].mxu0  ;;  %23742 = vmatprep.subr.bf16.mxu0 %v26179_v37 }
 0xd25   : > { %19279 = vmatpush1.bf16.msra.mxu1 %v25928_v58 }
 0xd26   : > { %19280 = vmatprep.subr.bf16.mxu1 %v26178_v12  ;;  %23743 = vmatpush3.bf16.msra.mxu0 %v25936_v40 }
 0xd27   : > { %23744 = vmatprep.subr.bf16.mxu0 %v26179_v37 }
 0xd29   : > { %19281 = vmatpush1.bf16.msra.mxu1 %v25929_v54 }
 0xd2a   : > { %19282 = vmatprep.subr.bf16.mxu1 %v26178_v12  ;;  %23745 = vmatpush3.bf16.msra.mxu0 %v25937_v19 }
 0xd2b   : > { %23746 = vmatprep.subr.bf16.mxu0 %v26179_v37 }
 0xd2d   : > { %19283 = vmatpush1.bf16.msra.mxu1 %v25930_v48 }
 0xd2e   : > { %19284 = vmatprep.subr.bf16.mxu1 %v26178_v12  ;;  %23747 = vmatpush3.bf16.msra.mxu0 %v25938_v53 }
 0xd2f   : > { %23748 = vmatprep.subr.bf16.mxu0 %v26179_v37 }
 0xd31   : > { %19285 = vmatpush1.bf16.msra.mxu1 %v25931_v38 }
 0xd32   : > { %19286 = vmatprep.subr.bf16.mxu1 %v26178_v12  ;;  %23749 = vmatpush3.bf16.msra.mxu0 %v25939_v7 }
 0xd33   : > { %23750 = vmatprep.subr.bf16.mxu0 %v26179_v37 }
 0xd35   : > { %19287 = vmatpush1.bf16.msra.mxu1 %v25932_v10 }
 0xd36   : > { %19288 = vmatprep.subr.bf16.mxu1 %v26178_v12  ;;  %23751 = vmatpush3.bf16.msra.mxu0 %v25940_v27 }
 0xd37   : > { %23752 = vmatprep.subr.bf16.mxu0 %v26179_v37 }
 0xd39   : > { %19289 = vmatpush1.bf16.msra.mxu1 %v25933_v1 }
 0xd3a   : > { %23753 = vmatpush3.bf16.msra.mxu0 %v25941_v52 }
 0xd3c   : > { %19299 = vmatmul.mubr.bf16.vlgmr.msra.gmra.mrb[116].mxu1 %v19050_v61 }
 0xd3f   : > { %v23635_v0 = vpop.f32.mrb[96].mxu1 }
 0xd40   : > { %v23636_v8 = vpop.f32.mrb[97].mxu1 }
 0xd41   : > { %v23637_v13 = vadd.f32 %v23636_v8, %v23635_v0  ;;  %v23638_v44 = vpop.f32.mrb[98].mxu1 }
 0xd42   : > { %v23639_v39 = vpop.f32.mrb[99].mxu1  ;;  %v23042_v44 = vld [vmem:[%s26474_s25] ss:$0 sm:$0xff] }
 0xd50   : > { %v17600_v31 = vpop.f32.mrb[100].mxu0 }
 0xd51   : > { %v17601_v32 = vadd.f32 %v23615_v42, %v17600_v31  ;;  %v17602_v41 = vpop.f32.mrb[101].mxu0 }
 0xd52   : > { %v17603_v23 = vpop.f32.mrb[102].mxu0 }
 0xd53   : > { %v17606_v29 = vadd.f32 %v17601_v32, %v17250_v49  ;;  %v17604_v62 = vpop.f32.mrb[103].mxu0 }
 0xd6f   : > { %v17924_v51 = vpop.f32.mrb[100].mxu1 }
 0xd70   : > { %v17925_v15 = vadd.f32 %v23637_v13, %v17924_v51  ;;  %v17926_v2 = vpop.f32.mrb[101].mxu1  ;;  %v23657_v12 = vpop.f32.mrb[104].mxu0 }
 0xd71   : > { %v17927_v34 = vpop.f32.mrb[102].mxu1  ;;  %v23658_v63 = vpop.f32.mrb[105].mxu0 }
 0xd72   : > { %v17930_v46 = vadd.f32 %v17925_v15, %v17606_v29  ;;  %v17928_v26 = vpop.f32.mrb[103].mxu1  ;;  %v23659_v59 = vadd.f32 %v23658_v63, %v23657_v12  ;;  %v23660_v45 = vpop.f32.mrb[106].mxu0 }
 0xd73   : > { %v23661_v17 = vpop.f32.mrb[107].mxu0 }
 0xd8f   : > { %v23679_v36 = vpop.f32.mrb[104].mxu1 }
 0xd90   : > { %v23680_v28 = vpop.f32.mrb[105].mxu1 }
 0xd91   : > { %v23681_v3 = vadd.f32 %v23680_v28, %v23679_v36  ;;  %v23682_v25 = vpop.f32.mrb[106].mxu1 }
 0xd92   : > { %v23683_v30 = vpop.f32.mrb[107].mxu1 }
 0xda0   : > { %v18284_v35 = vpop.f32.mrb[108].mxu0 }
 0xda1   : > { %v18285_v11 = vadd.f32 %v23659_v59, %v18284_v35  ;;  %v18286_v24 = vpop.f32.mrb[109].mxu0 }
 0xda2   : > { %v18287_v16 = vpop.f32.mrb[110].mxu0 }
 0xda3   : > { %v18290_v22 = vadd.f32 %v18285_v11, %v17930_v46  ;;  %v18288_v57 = vpop.f32.mrb[111].mxu0 }
 0xdbf   : > { %v18612_v4 = vpop.f32.mrb[108].mxu1 }
 0xdc0   : > { %v18613_v55 = vadd.f32 %v23681_v3, %v18612_v4  ;;  %v18614_v6 = vpop.f32.mrb[109].mxu1  ;;  %v23701_v21 = vpop.f32.mrb[112].mxu0 }
 0xdc1   : > { %v18615_v5 = vpop.f32.mrb[110].mxu1  ;;  %v23702_v47 = vpop.f32.mrb[113].mxu0 }
 0xdc2   : > { %v18618_v58 = vadd.f32 %v18613_v55, %v18290_v22  ;;  %v18616_v20 = vpop.f32.mrb[111].mxu1  ;;  %v23703_v49 = vadd.f32 %v23702_v47, %v23701_v21  ;;  %v23704_v14 = vpop.f32.mrb[114].mxu0 }
 0xdc3   : > { %v23705_v42 = vpop.f32.mrb[115].mxu0 }
 0xddf   : > { %v23723_v18 = vpop.f32.mrb[112].mxu1 }
 0xde0   : > { %v23724_v33 = vpop.f32.mrb[113].mxu1 }
 0xde1   : > { %v23725_v54 = vadd.f32 %v23724_v33, %v23723_v18  ;;  %v23726_v48 = vpop.f32.mrb[114].mxu1 }
 0xde2   : > { %v23727_v38 = vpop.f32.mrb[115].mxu1 }
 0xdf0   : > { %v18972_v10 = vpop.f32.mrb[116].mxu0 }
 0xdf1   : > { %v18973_v50 = vadd.f32 %v23703_v49, %v18972_v10  ;;  %v18974_v9 = vpop.f32.mrb[117].mxu0 }
 0xdf2   : > { %v18975_v1 = vpop.f32.mrb[118].mxu0 }
 0xdf3   : > { %v18978_v56 = vadd.f32 %v18973_v50, %v18618_v58  ;;  %v18976_v61 = vpop.f32.mrb[119].mxu0 }
 0xe0f   : > { %v19300_v0 = vpop.f32.mrb[116].mxu1 }
 0xe10   : > { %v19301_v8 = vadd.f32 %v23725_v54, %v19300_v0  ;;  %v19302_v13 = vpop.f32.mrb[117].mxu1 }
 0xe11   : > { %v19303_v39 = vpop.f32.mrb[118].mxu1 }
 0xe12   : > { %v19306_v31 = vadd.f32 %v19301_v8, %v18978_v56  ;;  %v19304_v32 = vpop.f32.mrb[119].mxu1 }
 0xe14   : > { %v19314_v41 = vadd.f32 %v23042_v44, %v19306_v31 }
 0xe16   : > { %v19315_v23 = vmax.f32 %v19314_v41, 0.0 }
 0xe18   : > { %v19316_v29 = vpack.c.bf16 %v19315_v23, %v19315_v23 }
 0xe1a   : > { %23755 = vmatmul.mubr.bf16.vlgmr.msra.gmra.mrb[120].mxu0 %v19316_v29 }
 0xeed   : > { %v19415_v62 = vpop.f32.mrb[120].mxu0 }
 0xeee   : > { %19422 = vst.msk [vmem:[%s26472_s10] sm:$0x3] %vm19421_vm6, %v19415_v62  ;;  %v23756_v51 = vpop.f32.mrb[121].mxu0 }
 0xeef   : > { %v19418_v15 = vpop.f32.mrb[122].mxu0 }
 0xef0   : > { %v23757_v2 = vpop.f32.mrb[123].mxu0 }
 0xef1 PF: > { %s30490_s30 = sld [smem:[#allocation16_spill]]  ;;  %s30491_s2 = sld [smem:[#allocation17_spill]] }
 0xef2   : > { %s30492_s27 = smov %s26152_s28  ;;  %s30493_s28 = smov %s26156_s29 }
 0xef7   : > { %p18_p13 = scmp.ge.s32.totalorder %s30490_s30, 4   ;;  %s30494_s29 = smov %s30491_s2 }
 0xef9   :  { %20 = sbr.rel (!%p18_p13) target bundleno = 8 (0x8), region = 172 }
 0xf00   :  { %19442 = vsyncpa [#allocation4], 1 }
 0xf01   :  { %19444 = vsyncpa [#allocation4 + $0x1], 1 }
 0xf02   :  { %19445 = vsyncpa [#allocation6], 1 }
 0xf03   :  { %19446 = vsyncpa [#allocation9], 1 }

</bundles_post_ra>
